<compile_context>
chip_gen: v5e
topology: v5e:2x2
jax: 0.10.0
libtpu: 0.0.40
codegen_flags: <defaults>
</compile_context>

<pallas_src>
import jax
import jax.numpy as jnp
from jax import lax
from jax.experimental import pallas as pl
from jax.experimental.pallas import tpu as pltpu

LANE = 128  # lane width used to pad the residual hidden dimension

# (output row/col phase r, tap offset a) -> (source phase r', trunk offset d)
# for consuming the 4-phase conv_trans_1 output directly in phase space.
_PHASE_TAP = {(0, 0): (1, -1), (0, 1): (0, 0), (0, 2): (1, 0),
              (1, 0): (0, 0), (1, 1): (1, 0), (1, 2): (0, 1)}


# ---------------------------------------------------------------------------
# Fused whole-decoder kernel
# ---------------------------------------------------------------------------
def _make_decoder_kernel(H, W, Cin, nh, C1, C2, nres):
    f32 = jnp.float32
    bf16 = jnp.bfloat16
    M = H * W

    def gather9(read_tap, relu):
        # read_tap(di, dj) -> (H, W, C) f32 slice of a zero-padded buffer
        taps = []
        for di in range(3):
            for dj in range(3):
                t = read_tap(di, dj)
                if relu:
                    t = jnp.maximum(t, 0.0)
                taps.append(t.astype(bf16))
        return jnp.concatenate(taps, axis=-1).reshape(M, -1)

    def kernel(x_ref, w1_ref, b1_ref, w3s_ref, w1s_ref,
               wt1_ref, bt1_ref, wt2_ref, bt2_ref,
               o_ref, xpad, trunk, ph00, ph01, ph10, ph11):
        phb = ((ph00, ph01), (ph10, ph11))

        # Zero scratch so the 1-pixel borders act as conv zero padding.
        xpad[...] = jnp.zeros_like(xpad)
        trunk[...] = jnp.zeros_like(trunk)
        for r in range(2):
            for s in range(2):
                phb[r][s][...] = jnp.zeros_like(phb[r][s])

        # ---- conv_1: 3x3, pad 1, bias -------------------------------------
        xpad[1:H + 1, 1:W + 1, :] = x_ref[0].astype(f32)
        pat = gather9(lambda di, dj: xpad[di:di + H, dj:dj + W, :], relu=False)
        y = jnp.dot(pat, w1_ref[...], preferred_element_type=f32) + b1_ref[...]
        trunk[1:H + 1, 1:W + 1, :] = y.reshape(H, W, nh)

        # ---- residual stack (trunk stays f32 in VMEM) ----------------------
        for l in range(nres):
            pat = gather9(lambda di, dj: trunk[di:di + H, dj:dj + W, :],
                          relu=True)
            h = jnp.dot(pat, w3s_ref[l], preferred_element_type=f32)
            h = jnp.maximum(h, 0.0).astype(bf16)
            z = jnp.dot(h, w1s_ref[l], preferred_element_type=f32)
            trunk[1:H + 1, 1:W + 1, :] = (trunk[1:H + 1, 1:W + 1, :]
                                          + z.reshape(H, W, nh))

        # ---- stack ReLU + conv_trans_1 (4-phase) + bias + ReLU -------------
        pat = gather9(lambda di, dj: trunk[di:di + H, dj:dj + W, :], relu=True)
        t1 = jnp.dot(pat, wt1_ref[...], preferred_element_type=f32) + bt1_ref[...]
        t1 = jnp.maximum(t1, 0.0)                     # (M, 4*C1), cols (r,s,c)
        for r in range(2):
            for s in range(2):
                k = 2 * r + s
                phb[r][s][1:H + 1, 1:W + 1, :] = (
                    t1[:, k * C1:(k + 1) * C1].reshape(H, W, C1))

        # ---- conv_trans_2 (4-phase), taps read straight from phase bufs ----
        rows = []
        for r in range(2):
            for s in range(2):
                taps = []
                for a in range(3):
                    rp, dd = _PHASE_TAP[(r, a)]
                    for b in range(3):
                        sp, ee = _PHASE_TAP[(s, b)]
                        taps.append(
                            phb[rp][sp][dd + 1:dd + 1 + H,
                                        ee + 1:ee + 1 + W, :].astype(bf16))
                rows.append(jnp.concatenate(taps, axis=-1).reshape(M, -1))
        big = jnp.concatenate(rows, axis=0)           # (4*M, 9*C1)
        o2 = jnp.dot(big, wt2_ref[...], preferred_element_type=f32) + bt2_ref[...]

        # Store out[n, i, 2r+rho, j, (2s+sig)*C2 + d]; this block's row-major
        # bytes equal NHWC (4H, 4W, C2), so the wrapper reshape is free-form.
        for r in range(2):
            for s in range(2):
                blk = o2[(2 * r + s) * M:(2 * r + s + 1) * M, :]   # (M, 4*C2)
                for rho in range(2):
                    val = blk[:, 2 * rho * C2:(2 * rho + 2) * C2]  # (M, 2*C2)
                    o_ref[0, :, 2 * r + rho, :,
                          2 * s * C2:(2 * s + 2) * C2] = (
                        val.reshape(H, W, 2 * C2).astype(o_ref.dtype))

    return kernel


# ---------------------------------------------------------------------------
# Weight packing (done once, outside jit)
# ---------------------------------------------------------------------------
def _conv_w_to_mat(w_oihw):
    # PyTorch Conv2d weight (Cout, Cin, kh, kw) -> [kh*kw*Cin, Cout]
    cout, cin, kh, kw = w_oihw.shape
    return jnp.transpose(w_oihw, (2, 3, 1, 0)).reshape(kh * kw * cin, cout)


def _convT_phase_wmat(w_t, bias):
    """ConvTranspose2d(k=4, s=2, p=1) as a 3x3 'phase' conv on the un-dilated,
    pad-1 input producing 4*Cout phase channels (sub-pixel decomposition)."""
    cin, cout, _, _ = w_t.shape
    wc = jnp.zeros((3, 3, cin, 2, 2, cout), w_t.dtype)
    for r in range(2):
        for s in range(2):
            for di in range(2):
                for dj in range(2):
                    a, b = r + di, s + dj          # tap offset in padded input
                    ki, kj = 3 - r - 2 * di, 3 - s - 2 * dj   # ConvT kernel tap
                    wc = wc.at[a, b, :, r, s, :].set(w_t[:, :, ki, kj])
    wmat = wc.reshape(9 * cin, 4 * cout)           # rows: (tap, cin); cols (r,s,co)
    bvec = jnp.tile(bias, 4)
    return wmat, bvec


def pack_params(p):
    nh = p['w1'].shape[0]
    pp = {'w1': _conv_w_to_mat(p['w1']).astype(jnp.bfloat16),
          'b1': p['b1'].reshape(1, -1).astype(jnp.float32)}
    nres = len(p['res'])
    if nres:
        nrh = p['res'][0][0].shape[0]
        P = ((nrh + LANE - 1) // LANE) * LANE
        w3s, w1s = [], []
        for (w3, w1x1) in p['res']:
            w3m = jnp.pad(_conv_w_to_mat(w3), ((0, 0), (0, P - nrh)))
            w1m = jnp.pad(_conv_w_to_mat(w1x1), ((0, P - nrh), (0, 0)))
            w3s.append(w3m)
            w1s.append(w1m)
        pp['w3s'] = jnp.stack(w3s).astype(jnp.bfloat16)
        pp['w1s'] = jnp.stack(w1s).astype(jnp.bfloat16)
    else:
        pp['w3s'] = jnp.zeros((1, 9 * nh, LANE), jnp.bfloat16)
        pp['w1s'] = jnp.zeros((1, LANE, nh), jnp.bfloat16)
    wt1m, bt1 = _convT_phase_wmat(p['wt1'], p['bt1'])
    wt2m, bt2 = _convT_phase_wmat(p['wt2'], p['bt2'])
    pp['wt1'] = wt1m.astype(jnp.bfloat16)
    pp['bt1'] = bt1.reshape(1, -1).astype(jnp.float32)
    pp['wt2'] = wt2m.astype(jnp.bfloat16)
    pp['bt2'] = bt2.reshape(1, -1).astype(jnp.float32)
    return pp


# ---------------------------------------------------------------------------
# Decoder forward (single fused pallas_call)
# ---------------------------------------------------------------------------
def decoder_pallas(x_nchw, pp, num_residual_layers):
    N, Cin, H, W = x_nchw.shape
    nh = pp['w1'].shape[1]
    C1 = pp['wt1'].shape[1] // 4
    C2 = pp['wt2'].shape[1] // 4
    x = jnp.transpose(x_nchw, (0, 2, 3, 1)).astype(jnp.float32)   # NHWC

    out = pl.pallas_call(
        _make_decoder_kernel(H, W, Cin, nh, C1, C2, num_residual_layers),
        out_shape=jax.ShapeDtypeStruct((N, H, 4, W, 4 * C2), jnp.float32),
        grid_spec=pltpu.PrefetchScalarGridSpec(
            num_scalar_prefetch=0,
            grid=(N,),
            in_specs=[
                pl.BlockSpec((1, H, W, Cin), lambda n: (n, 0, 0, 0)),
                pl.BlockSpec(pp['w1'].shape, lambda n: (0, 0)),
                pl.BlockSpec(pp['b1'].shape, lambda n: (0, 0)),
                pl.BlockSpec(pp['w3s'].shape, lambda n: (0, 0, 0)),
                pl.BlockSpec(pp['w1s'].shape, lambda n: (0, 0, 0)),
                pl.BlockSpec(pp['wt1'].shape, lambda n: (0, 0)),
                pl.BlockSpec(pp['bt1'].shape, lambda n: (0, 0)),
                pl.BlockSpec(pp['wt2'].shape, lambda n: (0, 0)),
                pl.BlockSpec(pp['bt2'].shape, lambda n: (0, 0)),
            ],
            out_specs=pl.BlockSpec((1, H, 4, W, 4 * C2),
                                   lambda n: (n, 0, 0, 0, 0)),
            scratch_shapes=[
                pltpu.VMEM((H + 2, W + 2, Cin), jnp.float32),   # padded input
                pltpu.VMEM((H + 2, W + 2, nh), jnp.float32),    # padded trunk
                pltpu.VMEM((H + 2, W + 2, C1), jnp.float32),    # ConvT1 phases
                pltpu.VMEM((H + 2, W + 2, C1), jnp.float32),
                pltpu.VMEM((H + 2, W + 2, C1), jnp.float32),
                pltpu.VMEM((H + 2, W + 2, C1), jnp.float32),
            ]),
        compiler_params=pltpu.CompilerParams(
            dimension_semantics=("parallel",)),
    )(x, pp['w1'], pp['b1'], pp['w3s'], pp['w1s'],
      pp['wt1'], pp['bt1'], pp['wt2'], pp['bt2'])

    out = out.reshape(N, 4 * H, 4 * W, C2)     # byte-identical reinterpretation
    return jnp.transpose(out, (0, 3, 1, 2))    # NHWC -> NCHW (tiny final tensor)


# ---------------------------------------------------------------------------
# Pure-JAX reference (lax convs, f32 HIGHEST) for correctness checking
# ---------------------------------------------------------------------------
def decoder_ref(x, p, num_residual_layers):
    dn = ('NCHW', 'OIHW', 'NCHW')

    def conv(x, w, b=None, pad=1):
        y = lax.conv_general_dilated(x, w, (1, 1), [(pad, pad), (pad, pad)],
                                     dimension_numbers=dn,
                                     precision=lax.Precision.HIGHEST)
        return y if b is None else y + b[None, :, None, None]

    def convT(x, w_t, b, k=4, s=2, pad=1):
        w_conv = jnp.flip(w_t, (2, 3)).transpose(1, 0, 2, 3)
        y = lax.conv_general_dilated(x, w_conv, (1, 1),
                                     [(k - 1 - pad,) * 2] * 2,
                                     lhs_dilation=(s, s),
                                     dimension_numbers=dn,
                                     precision=lax.Precision.HIGHEST)
        return y + b[None, :, None, None]

    x = conv(x, p['w1'], p['b1'], pad=1)
    for (w3, w1x1) in p['res']:
        h = conv(jax.nn.relu(x), w3, None, pad=1)
        h = conv(jax.nn.relu(h), w1x1, None, pad=0)
        x = x + h
    x = jax.nn.relu(x)
    x = jax.nn.relu(convT(x, p['wt1'], p['bt1']))
    return convT(x, p['wt2'], p['bt2'])


# ---------------------------------------------------------------------------
# Deterministic parameter init (PyTorch-shaped weights)
# ---------------------------------------------------------------------------
def init_params(key, in_channels, num_hiddens, num_residual_layers,
                num_residual_hiddens):
    keys = iter(jax.random.split(key, 6 + 2 * num_residual_layers))

    def u(k, shape, fan_in):
        bound = 1.0 / float(fan_in) ** 0.5
        return jax.random.uniform(k, shape, jnp.float32, -bound, bound)

    p = {}
    p['w1'] = u(next(keys), (num_hiddens, in_channels, 3, 3), in_channels * 9)
    p['b1'] = u(next(keys), (num_hiddens,), in_channels * 9)
    p['res'] = []
    for _ in range(num_residual_layers):
        w3 = u(next(keys), (num_residual_hiddens, num_hiddens, 3, 3),
               num_hiddens * 9)
        w1x1 = u(next(keys), (num_hiddens, num_residual_hiddens, 1, 1),
                 num_residual_hiddens)
        p['res'].append((w3, w1x1))
    p['wt1'] = u(next(keys), (num_hiddens, num_hiddens // 2, 4, 4),
                 num_hiddens * 16)
    p['bt1'] = u(next(keys), (num_hiddens // 2,), num_hiddens * 16)
    p['wt2'] = u(next(keys), (num_hiddens // 2, 3, 4, 4),
                 (num_hiddens // 2) * 16)
    p['bt2'] = u(next(keys), (3,), (num_hiddens // 2) * 16)
    return p


if __name__ == "__main__":
    in_channels, num_hiddens = 4, 32
    num_residual_layers, num_residual_hiddens = 2, 8
    N, H, W = 2, 8, 8

    key = jax.random.PRNGKey(0)
    kx, kp = jax.random.split(key)
    x = jax.random.normal(kx, (N, in_channels, H, W), jnp.float32)
    params = init_params(kp, in_channels, num_hiddens,
                         num_residual_layers, num_residual_hiddens)
    packed = pack_params(params)

    fwd = jax.jit(lambda inp: decoder_pallas(inp, packed, num_residual_layers))
    out = jax.block_until_ready(fwd(x))

    assert out.shape == (N, 3, 4 * H, 4 * W), out.shape
    ref = decoder_ref(x, params, num_residual_layers)
    err = float(jnp.max(jnp.abs(out - ref)))
    scale = float(jnp.max(jnp.abs(ref)))
    # bf16 MXU operands (f32 accumulation, f32 VMEM-resident trunk), so the
    # tolerance vs. the f32/HIGHEST reference is moderately loose.
    assert err < 3e-2 * max(1.0, scale), f"max abs error {err} (scale {scale})"
    print("KERNEL_OK")
</pallas_src>

<mosaic_0001>
module attributes {stable_mosaic.version = 11 : i64} {
  func.func @kernel(%arg0: i32, %arg1: memref<1x8x8x4xf32, #tpu.memory_space<vmem>>, %arg2: memref<36x32xbf16, #tpu.memory_space<vmem>>, %arg3: memref<1x32xf32, #tpu.memory_space<vmem>>, %arg4: memref<2x288x128xbf16, #tpu.memory_space<vmem>>, %arg5: memref<2x128x32xbf16, #tpu.memory_space<vmem>>, %arg6: memref<288x64xbf16, #tpu.memory_space<vmem>>, %arg7: memref<1x64xf32, #tpu.memory_space<vmem>>, %arg8: memref<144x12xbf16, #tpu.memory_space<vmem>>, %arg9: memref<1x12xf32, #tpu.memory_space<vmem>>, %arg10: memref<1x8x4x8x12xf32, #tpu.memory_space<vmem>>, %arg11: memref<10x10x4xf32, #tpu.memory_space<vmem>>, %arg12: memref<10x10x32xf32, #tpu.memory_space<vmem>>, %arg13: memref<10x10x16xf32, #tpu.memory_space<vmem>>, %arg14: memref<10x10x16xf32, #tpu.memory_space<vmem>>, %arg15: memref<10x10x16xf32, #tpu.memory_space<vmem>>, %arg16: memref<10x10x16xf32, #tpu.memory_space<vmem>>) attributes {dimension_semantics = [#tpu.dimension_semantics<parallel>], iteration_bounds = array<i64: 2>, scalar_prefetch = 0 : i64, scratch_operands = 6 : i64, tpu.core_type = #tpu.core_type<tc>, window_params = [{transform_indices = @transform_0, window_bounds = array<i64: 1, 8, 8, 4>}, {pipeline_mode = #tpu.pipeline_mode<synchronous>, transform_indices = @transform_1, window_bounds = array<i64: 36, 32>}, {pipeline_mode = #tpu.pipeline_mode<synchronous>, transform_indices = @transform_2, window_bounds = array<i64: 1, 32>}, {pipeline_mode = #tpu.pipeline_mode<synchronous>, transform_indices = @transform_3, window_bounds = array<i64: 2, 288, 128>}, {pipeline_mode = #tpu.pipeline_mode<synchronous>, transform_indices = @transform_4, window_bounds = array<i64: 2, 128, 32>}, {pipeline_mode = #tpu.pipeline_mode<synchronous>, transform_indices = @transform_5, window_bounds = array<i64: 288, 64>}, {pipeline_mode = #tpu.pipeline_mode<synchronous>, transform_indices = @transform_6, window_bounds = array<i64: 1, 64>}, {pipeline_mode = #tpu.pipeline_mode<synchronous>, transform_indices = @transform_7, window_bounds = array<i64: 144, 12>}, {pipeline_mode = #tpu.pipeline_mode<synchronous>, transform_indices = @transform_8, window_bounds = array<i64: 1, 12>}, {transform_indices = @transform_9, window_bounds = array<i64: 1, 8, 4, 8, 12>}]} {
    %cst = arith.constant 0.000000e+00 : f32
    %0 = vector.broadcast %cst : f32 to vector<10x10x4xf32>
    %c0 = arith.constant 0 : index
    %c0_0 = arith.constant 0 : index
    %c0_1 = arith.constant 0 : index
    %1 = vector.load %arg11[%c0, %c0_0, %c0_1] : memref<10x10x4xf32, #tpu.memory_space<vmem>>, vector<10x10x4xf32>
    tpu.vector_store %arg11[%c0, %c0_0, %c0_1], %0 {strides = array<i32>} : memref<10x10x4xf32, #tpu.memory_space<vmem>>, vector<10x10x4xf32>,
    %cst_2 = arith.constant 0.000000e+00 : f32
    %2 = vector.broadcast %cst_2 : f32 to vector<10x10x32xf32>
    %c0_3 = arith.constant 0 : index
    %c0_4 = arith.constant 0 : index
    %c0_5 = arith.constant 0 : index
    %3 = vector.load %arg12[%c0_3, %c0_4, %c0_5] : memref<10x10x32xf32, #tpu.memory_space<vmem>>, vector<10x10x32xf32>
    tpu.vector_store %arg12[%c0_3, %c0_4, %c0_5], %2 {strides = array<i32>} : memref<10x10x32xf32, #tpu.memory_space<vmem>>, vector<10x10x32xf32>,
    %cst_6 = arith.constant 0.000000e+00 : f32
    %4 = vector.broadcast %cst_6 : f32 to vector<10x10x16xf32>
    %c0_7 = arith.constant 0 : index
    %c0_8 = arith.constant 0 : index
    %c0_9 = arith.constant 0 : index
    %5 = vector.load %arg13[%c0_7, %c0_8, %c0_9] : memref<10x10x16xf32, #tpu.memory_space<vmem>>, vector<10x10x16xf32>
    tpu.vector_store %arg13[%c0_7, %c0_8, %c0_9], %4 {strides = array<i32>} : memref<10x10x16xf32, #tpu.memory_space<vmem>>, vector<10x10x16xf32>,
    %cst_10 = arith.constant 0.000000e+00 : f32
    %6 = vector.broadcast %cst_10 : f32 to vector<10x10x16xf32>
    %c0_11 = arith.constant 0 : index
    %c0_12 = arith.constant 0 : index
    %c0_13 = arith.constant 0 : index
    %7 = vector.load %arg14[%c0_11, %c0_12, %c0_13] : memref<10x10x16xf32, #tpu.memory_space<vmem>>, vector<10x10x16xf32>
    tpu.vector_store %arg14[%c0_11, %c0_12, %c0_13], %6 {strides = array<i32>} : memref<10x10x16xf32, #tpu.memory_space<vmem>>, vector<10x10x16xf32>,
    %cst_14 = arith.constant 0.000000e+00 : f32
    %8 = vector.broadcast %cst_14 : f32 to vector<10x10x16xf32>
    %c0_15 = arith.constant 0 : index
    %c0_16 = arith.constant 0 : index
    %c0_17 = arith.constant 0 : index
    %9 = vector.load %arg15[%c0_15, %c0_16, %c0_17] : memref<10x10x16xf32, #tpu.memory_space<vmem>>, vector<10x10x16xf32>
    tpu.vector_store %arg15[%c0_15, %c0_16, %c0_17], %8 {strides = array<i32>} : memref<10x10x16xf32, #tpu.memory_space<vmem>>, vector<10x10x16xf32>,
    %cst_18 = arith.constant 0.000000e+00 : f32
    %10 = vector.broadcast %cst_18 : f32 to vector<10x10x16xf32>
    %c0_19 = arith.constant 0 : index
    %c0_20 = arith.constant 0 : index
    %c0_21 = arith.constant 0 : index
    %11 = vector.load %arg16[%c0_19, %c0_20, %c0_21] : memref<10x10x16xf32, #tpu.memory_space<vmem>>, vector<10x10x16xf32>
    tpu.vector_store %arg16[%c0_19, %c0_20, %c0_21], %10 {strides = array<i32>} : memref<10x10x16xf32, #tpu.memory_space<vmem>>, vector<10x10x16xf32>,
    %c0_22 = arith.constant 0 : index
    %c0_23 = arith.constant 0 : index
    %c0_24 = arith.constant 0 : index
    %c0_25 = arith.constant 0 : index
    %12 = vector.load %arg1[%c0_22, %c0_23, %c0_24, %c0_25] : memref<1x8x8x4xf32, #tpu.memory_space<vmem>>, vector<1x8x8x4xf32>
    %13 = vector.shape_cast %12 : vector<1x8x8x4xf32> to vector<8x8x4xf32>
    %c1 = arith.constant 1 : index
    %c1_26 = arith.constant 1 : index
    %c0_27 = arith.constant 0 : index
    %14 = vector.load %arg11[%c1, %c1_26, %c0_27] : memref<10x10x4xf32, #tpu.memory_space<vmem>>, vector<8x8x4xf32>
    tpu.vector_store %arg11[%c1, %c1_26, %c0_27], %13 {strides = array<i32>} : memref<10x10x4xf32, #tpu.memory_space<vmem>>, vector<8x8x4xf32>,
    %c0_28 = arith.constant 0 : index
    %c0_29 = arith.constant 0 : index
    %c0_30 = arith.constant 0 : index
    %15 = vector.load %arg11[%c0_28, %c0_29, %c0_30] : memref<10x10x4xf32, #tpu.memory_space<vmem>>, vector<8x8x4xf32>
    %16 = arith.truncf %15 : vector<8x8x4xf32> to vector<8x8x4xbf16>
    %c0_31 = arith.constant 0 : index
    %c1_32 = arith.constant 1 : index
    %c0_33 = arith.constant 0 : index
    %17 = vector.load %arg11[%c0_31, %c1_32, %c0_33] : memref<10x10x4xf32, #tpu.memory_space<vmem>>, vector<8x8x4xf32>
    %18 = arith.truncf %17 : vector<8x8x4xf32> to vector<8x8x4xbf16>
    %c0_34 = arith.constant 0 : index
    %c2 = arith.constant 2 : index
    %c0_35 = arith.constant 0 : index
    %19 = vector.load %arg11[%c0_34, %c2, %c0_35] : memref<10x10x4xf32, #tpu.memory_space<vmem>>, vector<8x8x4xf32>
    %20 = arith.truncf %19 : vector<8x8x4xf32> to vector<8x8x4xbf16>
    %c1_36 = arith.constant 1 : index
    %c0_37 = arith.constant 0 : index
    %c0_38 = arith.constant 0 : index
    %21 = vector.load %arg11[%c1_36, %c0_37, %c0_38] : memref<10x10x4xf32, #tpu.memory_space<vmem>>, vector<8x8x4xf32>
    %22 = arith.truncf %21 : vector<8x8x4xf32> to vector<8x8x4xbf16>
    %c1_39 = arith.constant 1 : index
    %c1_40 = arith.constant 1 : index
    %c0_41 = arith.constant 0 : index
    %23 = vector.load %arg11[%c1_39, %c1_40, %c0_41] : memref<10x10x4xf32, #tpu.memory_space<vmem>>, vector<8x8x4xf32>
    %24 = arith.truncf %23 : vector<8x8x4xf32> to vector<8x8x4xbf16>
    %c1_42 = arith.constant 1 : index
    %c2_43 = arith.constant 2 : index
    %c0_44 = arith.constant 0 : index
    %25 = vector.load %arg11[%c1_42, %c2_43, %c0_44] : memref<10x10x4xf32, #tpu.memory_space<vmem>>, vector<8x8x4xf32>
    %26 = arith.truncf %25 : vector<8x8x4xf32> to vector<8x8x4xbf16>
    %c2_45 = arith.constant 2 : index
    %c0_46 = arith.constant 0 : index
    %c0_47 = arith.constant 0 : index
    %27 = vector.load %arg11[%c2_45, %c0_46, %c0_47] : memref<10x10x4xf32, #tpu.memory_space<vmem>>, vector<8x8x4xf32>
    %28 = arith.truncf %27 : vector<8x8x4xf32> to vector<8x8x4xbf16>
    %c2_48 = arith.constant 2 : index
    %c1_49 = arith.constant 1 : index
    %c0_50 = arith.constant 0 : index
    %29 = vector.load %arg11[%c2_48, %c1_49, %c0_50] : memref<10x10x4xf32, #tpu.memory_space<vmem>>, vector<8x8x4xf32>
    %30 = arith.truncf %29 : vector<8x8x4xf32> to vector<8x8x4xbf16>
    %c2_51 = arith.constant 2 : index
    %c2_52 = arith.constant 2 : index
    %c0_53 = arith.constant 0 : index
    %31 = vector.load %arg11[%c2_51, %c2_52, %c0_53] : memref<10x10x4xf32, #tpu.memory_space<vmem>>, vector<8x8x4xf32>
    %32 = arith.truncf %31 : vector<8x8x4xf32> to vector<8x8x4xbf16>
    %33 = tpu.concatenate %16, %18, %20, %22, %24, %26, %28, %30, %32 in 2 : vector<8x8x4xbf16>, vector<8x8x4xbf16>, vector<8x8x4xbf16>, vector<8x8x4xbf16>, vector<8x8x4xbf16>, vector<8x8x4xbf16>, vector<8x8x4xbf16>, vector<8x8x4xbf16>, vector<8x8x4xbf16> -> vector<8x8x36xbf16>
    %34 = vector.shape_cast %33 : vector<8x8x36xbf16> to vector<64x36xbf16>
    %c0_54 = arith.constant 0 : index
    %c0_55 = arith.constant 0 : index
    %35 = vector.load %arg2[%c0_54, %c0_55] : memref<36x32xbf16, #tpu.memory_space<vmem>>, vector<36x32xbf16>
    %cst_56 = arith.constant dense<0.000000e+00> : vector<64x32xf32>
    %36 = tpu.matmul %34, %35, %cst_56 {dimension_numbers = #tpu.dot_dimension_numbers<[1], [0], [0], [1], [0, 0, 1, 1], [], []>} : vector<64x36xbf16>, vector<36x32xbf16>, vector<64x32xf32> -> vector<64x32xf32>
    %c0_57 = arith.constant 0 : index
    %c0_58 = arith.constant 0 : index
    %37 = vector.load %arg3[%c0_57, %c0_58] : memref<1x32xf32, #tpu.memory_space<vmem>>, vector<1x32xf32>
    %38 = vector.broadcast %37 : vector<1x32xf32> to vector<64x32xf32>
    %39 = arith.addf %36, %38 : vector<64x32xf32>
    %40 = vector.shape_cast %39 : vector<64x32xf32> to vector<8x8x32xf32>
    %c1_59 = arith.constant 1 : index
    %c1_60 = arith.constant 1 : index
    %c0_61 = arith.constant 0 : index
    %41 = vector.load %arg12[%c1_59, %c1_60, %c0_61] : memref<10x10x32xf32, #tpu.memory_space<vmem>>, vector<8x8x32xf32>
    tpu.vector_store %arg12[%c1_59, %c1_60, %c0_61], %40 {strides = array<i32>} : memref<10x10x32xf32, #tpu.memory_space<vmem>>, vector<8x8x32xf32>,
    %c0_62 = arith.constant 0 : index
    %c0_63 = arith.constant 0 : index
    %c0_64 = arith.constant 0 : index
    %42 = vector.load %arg12[%c0_62, %c0_63, %c0_64] : memref<10x10x32xf32, #tpu.memory_space<vmem>>, vector<8x8x32xf32>
    %cst_65 = arith.constant 0.000000e+00 : f32
    %43 = vector.broadcast %cst_65 : f32 to vector<8x8x32xf32>
    %44 = arith.maximumf %42, %43 : vector<8x8x32xf32>
    %45 = arith.truncf %44 : vector<8x8x32xf32> to vector<8x8x32xbf16>
    %c0_66 = arith.constant 0 : index
    %c1_67 = arith.constant 1 : index
    %c0_68 = arith.constant 0 : index
    %46 = vector.load %arg12[%c0_66, %c1_67, %c0_68] : memref<10x10x32xf32, #tpu.memory_space<vmem>>, vector<8x8x32xf32>
    %cst_69 = arith.constant 0.000000e+00 : f32
    %47 = vector.broadcast %cst_69 : f32 to vector<8x8x32xf32>
    %48 = arith.maximumf %46, %47 : vector<8x8x32xf32>
    %49 = arith.truncf %48 : vector<8x8x32xf32> to vector<8x8x32xbf16>
    %c0_70 = arith.constant 0 : index
    %c2_71 = arith.constant 2 : index
    %c0_72 = arith.constant 0 : index
    %50 = vector.load %arg12[%c0_70, %c2_71, %c0_72] : memref<10x10x32xf32, #tpu.memory_space<vmem>>, vector<8x8x32xf32>
    %cst_73 = arith.constant 0.000000e+00 : f32
    %51 = vector.broadcast %cst_73 : f32 to vector<8x8x32xf32>
    %52 = arith.maximumf %50, %51 : vector<8x8x32xf32>
    %53 = arith.truncf %52 : vector<8x8x32xf32> to vector<8x8x32xbf16>
    %c1_74 = arith.constant 1 : index
    %c0_75 = arith.constant 0 : index
    %c0_76 = arith.constant 0 : index
    %54 = vector.load %arg12[%c1_74, %c0_75, %c0_76] : memref<10x10x32xf32, #tpu.memory_space<vmem>>, vector<8x8x32xf32>
    %cst_77 = arith.constant 0.000000e+00 : f32
    %55 = vector.broadcast %cst_77 : f32 to vector<8x8x32xf32>
    %56 = arith.maximumf %54, %55 : vector<8x8x32xf32>
    %57 = arith.truncf %56 : vector<8x8x32xf32> to vector<8x8x32xbf16>
    %c1_78 = arith.constant 1 : index
    %c1_79 = arith.constant 1 : index
    %c0_80 = arith.constant 0 : index
    %58 = vector.load %arg12[%c1_78, %c1_79, %c0_80] : memref<10x10x32xf32, #tpu.memory_space<vmem>>, vector<8x8x32xf32>
    %cst_81 = arith.constant 0.000000e+00 : f32
    %59 = vector.broadcast %cst_81 : f32 to vector<8x8x32xf32>
    %60 = arith.maximumf %58, %59 : vector<8x8x32xf32>
    %61 = arith.truncf %60 : vector<8x8x32xf32> to vector<8x8x32xbf16>
    %c1_82 = arith.constant 1 : index
    %c2_83 = arith.constant 2 : index
    %c0_84 = arith.constant 0 : index
    %62 = vector.load %arg12[%c1_82, %c2_83, %c0_84] : memref<10x10x32xf32, #tpu.memory_space<vmem>>, vector<8x8x32xf32>
    %cst_85 = arith.constant 0.000000e+00 : f32
    %63 = vector.broadcast %cst_85 : f32 to vector<8x8x32xf32>
    %64 = arith.maximumf %62, %63 : vector<8x8x32xf32>
    %65 = arith.truncf %64 : vector<8x8x32xf32> to vector<8x8x32xbf16>
    %c2_86 = arith.constant 2 : index
    %c0_87 = arith.constant 0 : index
    %c0_88 = arith.constant 0 : index
    %66 = vector.load %arg12[%c2_86, %c0_87, %c0_88] : memref<10x10x32xf32, #tpu.memory_space<vmem>>, vector<8x8x32xf32>
    %cst_89 = arith.constant 0.000000e+00 : f32
    %67 = vector.broadcast %cst_89 : f32 to vector<8x8x32xf32>
    %68 = arith.maximumf %66, %67 : vector<8x8x32xf32>
    %69 = arith.truncf %68 : vector<8x8x32xf32> to vector<8x8x32xbf16>
    %c2_90 = arith.constant 2 : index
    %c1_91 = arith.constant 1 : index
    %c0_92 = arith.constant 0 : index
    %70 = vector.load %arg12[%c2_90, %c1_91, %c0_92] : memref<10x10x32xf32, #tpu.memory_space<vmem>>, vector<8x8x32xf32>
    %cst_93 = arith.constant 0.000000e+00 : f32
    %71 = vector.broadcast %cst_93 : f32 to vector<8x8x32xf32>
    %72 = arith.maximumf %70, %71 : vector<8x8x32xf32>
    %73 = arith.truncf %72 : vector<8x8x32xf32> to vector<8x8x32xbf16>
    %c2_94 = arith.constant 2 : index
    %c2_95 = arith.constant 2 : index
    %c0_96 = arith.constant 0 : index
    %74 = vector.load %arg12[%c2_94, %c2_95, %c0_96] : memref<10x10x32xf32, #tpu.memory_space<vmem>>, vector<8x8x32xf32>
    %cst_97 = arith.constant 0.000000e+00 : f32
    %75 = vector.broadcast %cst_97 : f32 to vector<8x8x32xf32>
    %76 = arith.maximumf %74, %75 : vector<8x8x32xf32>
    %77 = arith.truncf %76 : vector<8x8x32xf32> to vector<8x8x32xbf16>
    %78 = tpu.concatenate %45, %49, %53, %57, %61, %65, %69, %73, %77 in 2 : vector<8x8x32xbf16>, vector<8x8x32xbf16>, vector<8x8x32xbf16>, vector<8x8x32xbf16>, vector<8x8x32xbf16>, vector<8x8x32xbf16>, vector<8x8x32xbf16>, vector<8x8x32xbf16>, vector<8x8x32xbf16> -> vector<8x8x288xbf16>
    %79 = vector.shape_cast %78 : vector<8x8x288xbf16> to vector<64x288xbf16>
    %c0_98 = arith.constant 0 : index
    %c0_99 = arith.constant 0 : index
    %c0_100 = arith.constant 0 : index
    %80 = vector.load %arg4[%c0_98, %c0_99, %c0_100] : memref<2x288x128xbf16, #tpu.memory_space<vmem>>, vector<1x288x128xbf16>
    %81 = vector.shape_cast %80 : vector<1x288x128xbf16> to vector<288x128xbf16>
    %cst_101 = arith.constant dense<0.000000e+00> : vector<64x128xf32>
    %82 = tpu.matmul %79, %81, %cst_101 {dimension_numbers = #tpu.dot_dimension_numbers<[1], [0], [0], [1], [0, 0, 1, 1], [], []>} : vector<64x288xbf16>, vector<288x128xbf16>, vector<64x128xf32> -> vector<64x128xf32>
    %cst_102 = arith.constant 0.000000e+00 : f32
    %83 = vector.broadcast %cst_102 : f32 to vector<64x128xf32>
    %84 = arith.maximumf %82, %83 : vector<64x128xf32>
    %85 = arith.truncf %84 : vector<64x128xf32> to vector<64x128xbf16>
    %c0_103 = arith.constant 0 : index
    %c0_104 = arith.constant 0 : index
    %c0_105 = arith.constant 0 : index
    %86 = vector.load %arg5[%c0_103, %c0_104, %c0_105] : memref<2x128x32xbf16, #tpu.memory_space<vmem>>, vector<1x128x32xbf16>
    %87 = vector.shape_cast %86 : vector<1x128x32xbf16> to vector<128x32xbf16>
    %cst_106 = arith.constant dense<0.000000e+00> : vector<64x32xf32>
    %88 = tpu.matmul %85, %87, %cst_106 {dimension_numbers = #tpu.dot_dimension_numbers<[1], [0], [0], [1], [0, 0, 1, 1], [], []>} : vector<64x128xbf16>, vector<128x32xbf16>, vector<64x32xf32> -> vector<64x32xf32>
    %c1_107 = arith.constant 1 : index
    %c1_108 = arith.constant 1 : index
    %c0_109 = arith.constant 0 : index
    %89 = vector.load %arg12[%c1_107, %c1_108, %c0_109] : memref<10x10x32xf32, #tpu.memory_space<vmem>>, vector<8x8x32xf32>
    %90 = vector.shape_cast %88 : vector<64x32xf32> to vector<8x8x32xf32>
    %91 = arith.addf %89, %90 : vector<8x8x32xf32>
    %c1_110 = arith.constant 1 : index
    %c1_111 = arith.constant 1 : index
    %c0_112 = arith.constant 0 : index
    %92 = vector.load %arg12[%c1_110, %c1_111, %c0_112] : memref<10x10x32xf32, #tpu.memory_space<vmem>>, vector<8x8x32xf32>
    tpu.vector_store %arg12[%c1_110, %c1_111, %c0_112], %91 {strides = array<i32>} : memref<10x10x32xf32, #tpu.memory_space<vmem>>, vector<8x8x32xf32>,
    %c0_113 = arith.constant 0 : index
    %c0_114 = arith.constant 0 : index
    %c0_115 = arith.constant 0 : index
    %93 = vector.load %arg12[%c0_113, %c0_114, %c0_115] : memref<10x10x32xf32, #tpu.memory_space<vmem>>, vector<8x8x32xf32>
    %cst_116 = arith.constant 0.000000e+00 : f32
    %94 = vector.broadcast %cst_116 : f32 to vector<8x8x32xf32>
    %95 = arith.maximumf %93, %94 : vector<8x8x32xf32>
    %96 = arith.truncf %95 : vector<8x8x32xf32> to vector<8x8x32xbf16>
    %c0_117 = arith.constant 0 : index
    %c1_118 = arith.constant 1 : index
    %c0_119 = arith.constant 0 : index
    %97 = vector.load %arg12[%c0_117, %c1_118, %c0_119] : memref<10x10x32xf32, #tpu.memory_space<vmem>>, vector<8x8x32xf32>
    %cst_120 = arith.constant 0.000000e+00 : f32
    %98 = vector.broadcast %cst_120 : f32 to vector<8x8x32xf32>
    %99 = arith.maximumf %97, %98 : vector<8x8x32xf32>
    %100 = arith.truncf %99 : vector<8x8x32xf32> to vector<8x8x32xbf16>
    %c0_121 = arith.constant 0 : index
    %c2_122 = arith.constant 2 : index
    %c0_123 = arith.constant 0 : index
    %101 = vector.load %arg12[%c0_121, %c2_122, %c0_123] : memref<10x10x32xf32, #tpu.memory_space<vmem>>, vector<8x8x32xf32>
    %cst_124 = arith.constant 0.000000e+00 : f32
    %102 = vector.broadcast %cst_124 : f32 to vector<8x8x32xf32>
    %103 = arith.maximumf %101, %102 : vector<8x8x32xf32>
    %104 = arith.truncf %103 : vector<8x8x32xf32> to vector<8x8x32xbf16>
    %c1_125 = arith.constant 1 : index
    %c0_126 = arith.constant 0 : index
    %c0_127 = arith.constant 0 : index
    %105 = vector.load %arg12[%c1_125, %c0_126, %c0_127] : memref<10x10x32xf32, #tpu.memory_space<vmem>>, vector<8x8x32xf32>
    %cst_128 = arith.constant 0.000000e+00 : f32
    %106 = vector.broadcast %cst_128 : f32 to vector<8x8x32xf32>
    %107 = arith.maximumf %105, %106 : vector<8x8x32xf32>
    %108 = arith.truncf %107 : vector<8x8x32xf32> to vector<8x8x32xbf16>
    %c1_129 = arith.constant 1 : index
    %c1_130 = arith.constant 1 : index
    %c0_131 = arith.constant 0 : index
    %109 = vector.load %arg12[%c1_129, %c1_130, %c0_131] : memref<10x10x32xf32, #tpu.memory_space<vmem>>, vector<8x8x32xf32>
    %cst_132 = arith.constant 0.000000e+00 : f32
    %110 = vector.broadcast %cst_132 : f32 to vector<8x8x32xf32>
    %111 = arith.maximumf %109, %110 : vector<8x8x32xf32>
    %112 = arith.truncf %111 : vector<8x8x32xf32> to vector<8x8x32xbf16>
    %c1_133 = arith.constant 1 : index
    %c2_134 = arith.constant 2 : index
    %c0_135 = arith.constant 0 : index
    %113 = vector.load %arg12[%c1_133, %c2_134, %c0_135] : memref<10x10x32xf32, #tpu.memory_space<vmem>>, vector<8x8x32xf32>
    %cst_136 = arith.constant 0.000000e+00 : f32
    %114 = vector.broadcast %cst_136 : f32 to vector<8x8x32xf32>
    %115 = arith.maximumf %113, %114 : vector<8x8x32xf32>
    %116 = arith.truncf %115 : vector<8x8x32xf32> to vector<8x8x32xbf16>
    %c2_137 = arith.constant 2 : index
    %c0_138 = arith.constant 0 : index
    %c0_139 = arith.constant 0 : index
    %117 = vector.load %arg12[%c2_137, %c0_138, %c0_139] : memref<10x10x32xf32, #tpu.memory_space<vmem>>, vector<8x8x32xf32>
    %cst_140 = arith.constant 0.000000e+00 : f32
    %118 = vector.broadcast %cst_140 : f32 to vector<8x8x32xf32>
    %119 = arith.maximumf %117, %118 : vector<8x8x32xf32>
    %120 = arith.truncf %119 : vector<8x8x32xf32> to vector<8x8x32xbf16>
    %c2_141 = arith.constant 2 : index
    %c1_142 = arith.constant 1 : index
    %c0_143 = arith.constant 0 : index
    %121 = vector.load %arg12[%c2_141, %c1_142, %c0_143] : memref<10x10x32xf32, #tpu.memory_space<vmem>>, vector<8x8x32xf32>
    %cst_144 = arith.constant 0.000000e+00 : f32
    %122 = vector.broadcast %cst_144 : f32 to vector<8x8x32xf32>
    %123 = arith.maximumf %121, %122 : vector<8x8x32xf32>
    %124 = arith.truncf %123 : vector<8x8x32xf32> to vector<8x8x32xbf16>
    %c2_145 = arith.constant 2 : index
    %c2_146 = arith.constant 2 : index
    %c0_147 = arith.constant 0 : index
    %125 = vector.load %arg12[%c2_145, %c2_146, %c0_147] : memref<10x10x32xf32, #tpu.memory_space<vmem>>, vector<8x8x32xf32>
    %cst_148 = arith.constant 0.000000e+00 : f32
    %126 = vector.broadcast %cst_148 : f32 to vector<8x8x32xf32>
    %127 = arith.maximumf %125, %126 : vector<8x8x32xf32>
    %128 = arith.truncf %127 : vector<8x8x32xf32> to vector<8x8x32xbf16>
    %129 = tpu.concatenate %96, %100, %104, %108, %112, %116, %120, %124, %128 in 2 : vector<8x8x32xbf16>, vector<8x8x32xbf16>, vector<8x8x32xbf16>, vector<8x8x32xbf16>, vector<8x8x32xbf16>, vector<8x8x32xbf16>, vector<8x8x32xbf16>, vector<8x8x32xbf16>, vector<8x8x32xbf16> -> vector<8x8x288xbf16>
    %130 = vector.shape_cast %129 : vector<8x8x288xbf16> to vector<64x288xbf16>
    %c1_149 = arith.constant 1 : index
    %c0_150 = arith.constant 0 : index
    %c0_151 = arith.constant 0 : index
    %131 = vector.load %arg4[%c1_149, %c0_150, %c0_151] : memref<2x288x128xbf16, #tpu.memory_space<vmem>>, vector<1x288x128xbf16>
    %132 = vector.shape_cast %131 : vector<1x288x128xbf16> to vector<288x128xbf16>
    %cst_152 = arith.constant dense<0.000000e+00> : vector<64x128xf32>
    %133 = tpu.matmul %130, %132, %cst_152 {dimension_numbers = #tpu.dot_dimension_numbers<[1], [0], [0], [1], [0, 0, 1, 1], [], []>} : vector<64x288xbf16>, vector<288x128xbf16>, vector<64x128xf32> -> vector<64x128xf32>
    %cst_153 = arith.constant 0.000000e+00 : f32
    %134 = vector.broadcast %cst_153 : f32 to vector<64x128xf32>
    %135 = arith.maximumf %133, %134 : vector<64x128xf32>
    %136 = arith.truncf %135 : vector<64x128xf32> to vector<64x128xbf16>
    %c1_154 = arith.constant 1 : index
    %c0_155 = arith.constant 0 : index
    %c0_156 = arith.constant 0 : index
    %137 = vector.load %arg5[%c1_154, %c0_155, %c0_156] : memref<2x128x32xbf16, #tpu.memory_space<vmem>>, vector<1x128x32xbf16>
    %138 = vector.shape_cast %137 : vector<1x128x32xbf16> to vector<128x32xbf16>
    %cst_157 = arith.constant dense<0.000000e+00> : vector<64x32xf32>
    %139 = tpu.matmul %136, %138, %cst_157 {dimension_numbers = #tpu.dot_dimension_numbers<[1], [0], [0], [1], [0, 0, 1, 1], [], []>} : vector<64x128xbf16>, vector<128x32xbf16>, vector<64x32xf32> -> vector<64x32xf32>
    %c1_158 = arith.constant 1 : index
    %c1_159 = arith.constant 1 : index
    %c0_160 = arith.constant 0 : index
    %140 = vector.load %arg12[%c1_158, %c1_159, %c0_160] : memref<10x10x32xf32, #tpu.memory_space<vmem>>, vector<8x8x32xf32>
    %141 = vector.shape_cast %139 : vector<64x32xf32> to vector<8x8x32xf32>
    %142 = arith.addf %140, %141 : vector<8x8x32xf32>
    %c1_161 = arith.constant 1 : index
    %c1_162 = arith.constant 1 : index
    %c0_163 = arith.constant 0 : index
    %143 = vector.load %arg12[%c1_161, %c1_162, %c0_163] : memref<10x10x32xf32, #tpu.memory_space<vmem>>, vector<8x8x32xf32>
    tpu.vector_store %arg12[%c1_161, %c1_162, %c0_163], %142 {strides = array<i32>} : memref<10x10x32xf32, #tpu.memory_space<vmem>>, vector<8x8x32xf32>,
    %c0_164 = arith.constant 0 : index
    %c0_165 = arith.constant 0 : index
    %c0_166 = arith.constant 0 : index
    %144 = vector.load %arg12[%c0_164, %c0_165, %c0_166] : memref<10x10x32xf32, #tpu.memory_space<vmem>>, vector<8x8x32xf32>
    %cst_167 = arith.constant 0.000000e+00 : f32
    %145 = vector.broadcast %cst_167 : f32 to vector<8x8x32xf32>
    %146 = arith.maximumf %144, %145 : vector<8x8x32xf32>
    %147 = arith.truncf %146 : vector<8x8x32xf32> to vector<8x8x32xbf16>
    %c0_168 = arith.constant 0 : index
    %c1_169 = arith.constant 1 : index
    %c0_170 = arith.constant 0 : index
    %148 = vector.load %arg12[%c0_168, %c1_169, %c0_170] : memref<10x10x32xf32, #tpu.memory_space<vmem>>, vector<8x8x32xf32>
    %cst_171 = arith.constant 0.000000e+00 : f32
    %149 = vector.broadcast %cst_171 : f32 to vector<8x8x32xf32>
    %150 = arith.maximumf %148, %149 : vector<8x8x32xf32>
    %151 = arith.truncf %150 : vector<8x8x32xf32> to vector<8x8x32xbf16>
    %c0_172 = arith.constant 0 : index
    %c2_173 = arith.constant 2 : index
    %c0_174 = arith.constant 0 : index
    %152 = vector.load %arg12[%c0_172, %c2_173, %c0_174] : memref<10x10x32xf32, #tpu.memory_space<vmem>>, vector<8x8x32xf32>
    %cst_175 = arith.constant 0.000000e+00 : f32
    %153 = vector.broadcast %cst_175 : f32 to vector<8x8x32xf32>
    %154 = arith.maximumf %152, %153 : vector<8x8x32xf32>
    %155 = arith.truncf %154 : vector<8x8x32xf32> to vector<8x8x32xbf16>
    %c1_176 = arith.constant 1 : index
    %c0_177 = arith.constant 0 : index
    %c0_178 = arith.constant 0 : index
    %156 = vector.load %arg12[%c1_176, %c0_177, %c0_178] : memref<10x10x32xf32, #tpu.memory_space<vmem>>, vector<8x8x32xf32>
    %cst_179 = arith.constant 0.000000e+00 : f32
    %157 = vector.broadcast %cst_179 : f32 to vector<8x8x32xf32>
    %158 = arith.maximumf %156, %157 : vector<8x8x32xf32>
    %159 = arith.truncf %158 : vector<8x8x32xf32> to vector<8x8x32xbf16>
    %c1_180 = arith.constant 1 : index
    %c1_181 = arith.constant 1 : index
    %c0_182 = arith.constant 0 : index
    %160 = vector.load %arg12[%c1_180, %c1_181, %c0_182] : memref<10x10x32xf32, #tpu.memory_space<vmem>>, vector<8x8x32xf32>
    %cst_183 = arith.constant 0.000000e+00 : f32
    %161 = vector.broadcast %cst_183 : f32 to vector<8x8x32xf32>
    %162 = arith.maximumf %160, %161 : vector<8x8x32xf32>
    %163 = arith.truncf %162 : vector<8x8x32xf32> to vector<8x8x32xbf16>
    %c1_184 = arith.constant 1 : index
    %c2_185 = arith.constant 2 : index
    %c0_186 = arith.constant 0 : index
    %164 = vector.load %arg12[%c1_184, %c2_185, %c0_186] : memref<10x10x32xf32, #tpu.memory_space<vmem>>, vector<8x8x32xf32>
    %cst_187 = arith.constant 0.000000e+00 : f32
    %165 = vector.broadcast %cst_187 : f32 to vector<8x8x32xf32>
    %166 = arith.maximumf %164, %165 : vector<8x8x32xf32>
    %167 = arith.truncf %166 : vector<8x8x32xf32> to vector<8x8x32xbf16>
    %c2_188 = arith.constant 2 : index
    %c0_189 = arith.constant 0 : index
    %c0_190 = arith.constant 0 : index
    %168 = vector.load %arg12[%c2_188, %c0_189, %c0_190] : memref<10x10x32xf32, #tpu.memory_space<vmem>>, vector<8x8x32xf32>
    %cst_191 = arith.constant 0.000000e+00 : f32
    %169 = vector.broadcast %cst_191 : f32 to vector<8x8x32xf32>
    %170 = arith.maximumf %168, %169 : vector<8x8x32xf32>
    %171 = arith.truncf %170 : vector<8x8x32xf32> to vector<8x8x32xbf16>
    %c2_192 = arith.constant 2 : index
    %c1_193 = arith.constant 1 : index
    %c0_194 = arith.constant 0 : index
    %172 = vector.load %arg12[%c2_192, %c1_193, %c0_194] : memref<10x10x32xf32, #tpu.memory_space<vmem>>, vector<8x8x32xf32>
    %cst_195 = arith.constant 0.000000e+00 : f32
    %173 = vector.broadcast %cst_195 : f32 to vector<8x8x32xf32>
    %174 = arith.maximumf %172, %173 : vector<8x8x32xf32>
    %175 = arith.truncf %174 : vector<8x8x32xf32> to vector<8x8x32xbf16>
    %c2_196 = arith.constant 2 : index
    %c2_197 = arith.constant 2 : index
    %c0_198 = arith.constant 0 : index
    %176 = vector.load %arg12[%c2_196, %c2_197, %c0_198] : memref<10x10x32xf32, #tpu.memory_space<vmem>>, vector<8x8x32xf32>
    %cst_199 = arith.constant 0.000000e+00 : f32
    %177 = vector.broadcast %cst_199 : f32 to vector<8x8x32xf32>
    %178 = arith.maximumf %176, %177 : vector<8x8x32xf32>
    %179 = arith.truncf %178 : vector<8x8x32xf32> to vector<8x8x32xbf16>
    %180 = tpu.concatenate %147, %151, %155, %159, %163, %167, %171, %175, %179 in 2 : vector<8x8x32xbf16>, vector<8x8x32xbf16>, vector<8x8x32xbf16>, vector<8x8x32xbf16>, vector<8x8x32xbf16>, vector<8x8x32xbf16>, vector<8x8x32xbf16>, vector<8x8x32xbf16>, vector<8x8x32xbf16> -> vector<8x8x288xbf16>
    %181 = vector.shape_cast %180 : vector<8x8x288xbf16> to vector<64x288xbf16>
    %c0_200 = arith.constant 0 : index
    %c0_201 = arith.constant 0 : index
    %182 = vector.load %arg6[%c0_200, %c0_201] : memref<288x64xbf16, #tpu.memory_space<vmem>>, vector<288x64xbf16>
    %cst_202 = arith.constant dense<0.000000e+00> : vector<64x64xf32>
    %183 = tpu.matmul %181, %182, %cst_202 {dimension_numbers = #tpu.dot_dimension_numbers<[1], [0], [0], [1], [0, 0, 1, 1], [], []>} : vector<64x288xbf16>, vector<288x64xbf16>, vector<64x64xf32> -> vector<64x64xf32>
    %c0_203 = arith.constant 0 : index
    %c0_204 = arith.constant 0 : index
    %184 = vector.load %arg7[%c0_203, %c0_204] : memref<1x64xf32, #tpu.memory_space<vmem>>, vector<1x64xf32>
    %185 = vector.broadcast %184 : vector<1x64xf32> to vector<64x64xf32>
    %186 = arith.addf %183, %185 : vector<64x64xf32>
    %cst_205 = arith.constant 0.000000e+00 : f32
    %187 = vector.broadcast %cst_205 : f32 to vector<64x64xf32>
    %188 = arith.maximumf %186, %187 : vector<64x64xf32>
    %189 = vector.extract_strided_slice %188 {offsets = [0, 0], sizes = [64, 16], strides = [1, 1]} : vector<64x64xf32> to vector<64x16xf32>
    %190 = vector.shape_cast %189 : vector<64x16xf32> to vector<8x8x16xf32>
    %c1_206 = arith.constant 1 : index
    %c1_207 = arith.constant 1 : index
    %c0_208 = arith.constant 0 : index
    %191 = vector.load %arg13[%c1_206, %c1_207, %c0_208] : memref<10x10x16xf32, #tpu.memory_space<vmem>>, vector<8x8x16xf32>
    tpu.vector_store %arg13[%c1_206, %c1_207, %c0_208], %190 {strides = array<i32>} : memref<10x10x16xf32, #tpu.memory_space<vmem>>, vector<8x8x16xf32>,
    %192 = vector.extract_strided_slice %188 {offsets = [0, 16], sizes = [64, 16], strides = [1, 1]} : vector<64x64xf32> to vector<64x16xf32>
    %193 = vector.shape_cast %192 : vector<64x16xf32> to vector<8x8x16xf32>
    %c1_209 = arith.constant 1 : index
    %c1_210 = arith.constant 1 : index
    %c0_211 = arith.constant 0 : index
    %194 = vector.load %arg14[%c1_209, %c1_210, %c0_211] : memref<10x10x16xf32, #tpu.memory_space<vmem>>, vector<8x8x16xf32>
    tpu.vector_store %arg14[%c1_209, %c1_210, %c0_211], %193 {strides = array<i32>} : memref<10x10x16xf32, #tpu.memory_space<vmem>>, vector<8x8x16xf32>,
    %195 = vector.extract_strided_slice %188 {offsets = [0, 32], sizes = [64, 16], strides = [1, 1]} : vector<64x64xf32> to vector<64x16xf32>
    %196 = vector.shape_cast %195 : vector<64x16xf32> to vector<8x8x16xf32>
    %c1_212 = arith.constant 1 : index
    %c1_213 = arith.constant 1 : index
    %c0_214 = arith.constant 0 : index
    %197 = vector.load %arg15[%c1_212, %c1_213, %c0_214] : memref<10x10x16xf32, #tpu.memory_space<vmem>>, vector<8x8x16xf32>
    tpu.vector_store %arg15[%c1_212, %c1_213, %c0_214], %196 {strides = array<i32>} : memref<10x10x16xf32, #tpu.memory_space<vmem>>, vector<8x8x16xf32>,
    %198 = vector.extract_strided_slice %188 {offsets = [0, 48], sizes = [64, 16], strides = [1, 1]} : vector<64x64xf32> to vector<64x16xf32>
    %199 = vector.shape_cast %198 : vector<64x16xf32> to vector<8x8x16xf32>
    %c1_215 = arith.constant 1 : index
    %c1_216 = arith.constant 1 : index
    %c0_217 = arith.constant 0 : index
    %200 = vector.load %arg16[%c1_215, %c1_216, %c0_217] : memref<10x10x16xf32, #tpu.memory_space<vmem>>, vector<8x8x16xf32>
    tpu.vector_store %arg16[%c1_215, %c1_216, %c0_217], %199 {strides = array<i32>} : memref<10x10x16xf32, #tpu.memory_space<vmem>>, vector<8x8x16xf32>,
    %c0_218 = arith.constant 0 : index
    %c0_219 = arith.constant 0 : index
    %c0_220 = arith.constant 0 : index
    %201 = vector.load %arg16[%c0_218, %c0_219, %c0_220] : memref<10x10x16xf32, #tpu.memory_space<vmem>>, vector<8x8x16xf32>
    %202 = arith.truncf %201 : vector<8x8x16xf32> to vector<8x8x16xbf16>
    %c0_221 = arith.constant 0 : index
    %c1_222 = arith.constant 1 : index
    %c0_223 = arith.constant 0 : index
    %203 = vector.load %arg15[%c0_221, %c1_222, %c0_223] : memref<10x10x16xf32, #tpu.memory_space<vmem>>, vector<8x8x16xf32>
    %204 = arith.truncf %203 : vector<8x8x16xf32> to vector<8x8x16xbf16>
    %c0_224 = arith.constant 0 : index
    %c1_225 = arith.constant 1 : index
    %c0_226 = arith.constant 0 : index
    %205 = vector.load %arg16[%c0_224, %c1_225, %c0_226] : memref<10x10x16xf32, #tpu.memory_space<vmem>>, vector<8x8x16xf32>
    %206 = arith.truncf %205 : vector<8x8x16xf32> to vector<8x8x16xbf16>
    %c1_227 = arith.constant 1 : index
    %c0_228 = arith.constant 0 : index
    %c0_229 = arith.constant 0 : index
    %207 = vector.load %arg14[%c1_227, %c0_228, %c0_229] : memref<10x10x16xf32, #tpu.memory_space<vmem>>, vector<8x8x16xf32>
    %208 = arith.truncf %207 : vector<8x8x16xf32> to vector<8x8x16xbf16>
    %c1_230 = arith.constant 1 : index
    %c1_231 = arith.constant 1 : index
    %c0_232 = arith.constant 0 : index
    %209 = vector.load %arg13[%c1_230, %c1_231, %c0_232] : memref<10x10x16xf32, #tpu.memory_space<vmem>>, vector<8x8x16xf32>
    %210 = arith.truncf %209 : vector<8x8x16xf32> to vector<8x8x16xbf16>
    %c1_233 = arith.constant 1 : index
    %c1_234 = arith.constant 1 : index
    %c0_235 = arith.constant 0 : index
    %211 = vector.load %arg14[%c1_233, %c1_234, %c0_235] : memref<10x10x16xf32, #tpu.memory_space<vmem>>, vector<8x8x16xf32>
    %212 = arith.truncf %211 : vector<8x8x16xf32> to vector<8x8x16xbf16>
    %c1_236 = arith.constant 1 : index
    %c0_237 = arith.constant 0 : index
    %c0_238 = arith.constant 0 : index
    %213 = vector.load %arg16[%c1_236, %c0_237, %c0_238] : memref<10x10x16xf32, #tpu.memory_space<vmem>>, vector<8x8x16xf32>
    %214 = arith.truncf %213 : vector<8x8x16xf32> to vector<8x8x16xbf16>
    %c1_239 = arith.constant 1 : index
    %c1_240 = arith.constant 1 : index
    %c0_241 = arith.constant 0 : index
    %215 = vector.load %arg15[%c1_239, %c1_240, %c0_241] : memref<10x10x16xf32, #tpu.memory_space<vmem>>, vector<8x8x16xf32>
    %216 = arith.truncf %215 : vector<8x8x16xf32> to vector<8x8x16xbf16>
    %c1_242 = arith.constant 1 : index
    %c1_243 = arith.constant 1 : index
    %c0_244 = arith.constant 0 : index
    %217 = vector.load %arg16[%c1_242, %c1_243, %c0_244] : memref<10x10x16xf32, #tpu.memory_space<vmem>>, vector<8x8x16xf32>
    %218 = arith.truncf %217 : vector<8x8x16xf32> to vector<8x8x16xbf16>
    %219 = tpu.concatenate %202, %204, %206, %208, %210, %212, %214, %216, %218 in 2 : vector<8x8x16xbf16>, vector<8x8x16xbf16>, vector<8x8x16xbf16>, vector<8x8x16xbf16>, vector<8x8x16xbf16>, vector<8x8x16xbf16>, vector<8x8x16xbf16>, vector<8x8x16xbf16>, vector<8x8x16xbf16> -> vector<8x8x144xbf16>
    %220 = vector.shape_cast %219 : vector<8x8x144xbf16> to vector<64x144xbf16>
    %c0_245 = arith.constant 0 : index
    %c1_246 = arith.constant 1 : index
    %c0_247 = arith.constant 0 : index
    %221 = vector.load %arg15[%c0_245, %c1_246, %c0_247] : memref<10x10x16xf32, #tpu.memory_space<vmem>>, vector<8x8x16xf32>
    %222 = arith.truncf %221 : vector<8x8x16xf32> to vector<8x8x16xbf16>
    %c0_248 = arith.constant 0 : index
    %c1_249 = arith.constant 1 : index
    %c0_250 = arith.constant 0 : index
    %223 = vector.load %arg16[%c0_248, %c1_249, %c0_250] : memref<10x10x16xf32, #tpu.memory_space<vmem>>, vector<8x8x16xf32>
    %224 = arith.truncf %223 : vector<8x8x16xf32> to vector<8x8x16xbf16>
    %c0_251 = arith.constant 0 : index
    %c2_252 = arith.constant 2 : index
    %c0_253 = arith.constant 0 : index
    %225 = vector.load %arg15[%c0_251, %c2_252, %c0_253] : memref<10x10x16xf32, #tpu.memory_space<vmem>>, vector<8x8x16xf32>
    %226 = arith.truncf %225 : vector<8x8x16xf32> to vector<8x8x16xbf16>
    %c1_254 = arith.constant 1 : index
    %c1_255 = arith.constant 1 : index
    %c0_256 = arith.constant 0 : index
    %227 = vector.load %arg13[%c1_254, %c1_255, %c0_256] : memref<10x10x16xf32, #tpu.memory_space<vmem>>, vector<8x8x16xf32>
    %228 = arith.truncf %227 : vector<8x8x16xf32> to vector<8x8x16xbf16>
    %c1_257 = arith.constant 1 : index
    %c1_258 = arith.constant 1 : index
    %c0_259 = arith.constant 0 : index
    %229 = vector.load %arg14[%c1_257, %c1_258, %c0_259] : memref<10x10x16xf32, #tpu.memory_space<vmem>>, vector<8x8x16xf32>
    %230 = arith.truncf %229 : vector<8x8x16xf32> to vector<8x8x16xbf16>
    %c1_260 = arith.constant 1 : index
    %c2_261 = arith.constant 2 : index
    %c0_262 = arith.constant 0 : index
    %231 = vector.load %arg13[%c1_260, %c2_261, %c0_262] : memref<10x10x16xf32, #tpu.memory_space<vmem>>, vector<8x8x16xf32>
    %232 = arith.truncf %231 : vector<8x8x16xf32> to vector<8x8x16xbf16>
    %c1_263 = arith.constant 1 : index
    %c1_264 = arith.constant 1 : index
    %c0_265 = arith.constant 0 : index
    %233 = vector.load %arg15[%c1_263, %c1_264, %c0_265] : memref<10x10x16xf32, #tpu.memory_space<vmem>>, vector<8x8x16xf32>
    %234 = arith.truncf %233 : vector<8x8x16xf32> to vector<8x8x16xbf16>
    %c1_266 = arith.constant 1 : index
    %c1_267 = arith.constant 1 : index
    %c0_268 = arith.constant 0 : index
    %235 = vector.load %arg16[%c1_266, %c1_267, %c0_268] : memref<10x10x16xf32, #tpu.memory_space<vmem>>, vector<8x8x16xf32>
    %236 = arith.truncf %235 : vector<8x8x16xf32> to vector<8x8x16xbf16>
    %c1_269 = arith.constant 1 : index
    %c2_270 = arith.constant 2 : index
    %c0_271 = arith.constant 0 : index
    %237 = vector.load %arg15[%c1_269, %c2_270, %c0_271] : memref<10x10x16xf32, #tpu.memory_space<vmem>>, vector<8x8x16xf32>
    %238 = arith.truncf %237 : vector<8x8x16xf32> to vector<8x8x16xbf16>
    %239 = tpu.concatenate %222, %224, %226, %228, %230, %232, %234, %236, %238 in 2 : vector<8x8x16xbf16>, vector<8x8x16xbf16>, vector<8x8x16xbf16>, vector<8x8x16xbf16>, vector<8x8x16xbf16>, vector<8x8x16xbf16>, vector<8x8x16xbf16>, vector<8x8x16xbf16>, vector<8x8x16xbf16> -> vector<8x8x144xbf16>
    %240 = vector.shape_cast %239 : vector<8x8x144xbf16> to vector<64x144xbf16>
    %c1_272 = arith.constant 1 : index
    %c0_273 = arith.constant 0 : index
    %c0_274 = arith.constant 0 : index
    %241 = vector.load %arg14[%c1_272, %c0_273, %c0_274] : memref<10x10x16xf32, #tpu.memory_space<vmem>>, vector<8x8x16xf32>
    %242 = arith.truncf %241 : vector<8x8x16xf32> to vector<8x8x16xbf16>
    %c1_275 = arith.constant 1 : index
    %c1_276 = arith.constant 1 : index
    %c0_277 = arith.constant 0 : index
    %243 = vector.load %arg13[%c1_275, %c1_276, %c0_277] : memref<10x10x16xf32, #tpu.memory_space<vmem>>, vector<8x8x16xf32>
    %244 = arith.truncf %243 : vector<8x8x16xf32> to vector<8x8x16xbf16>
    %c1_278 = arith.constant 1 : index
    %c1_279 = arith.constant 1 : index
    %c0_280 = arith.constant 0 : index
    %245 = vector.load %arg14[%c1_278, %c1_279, %c0_280] : memref<10x10x16xf32, #tpu.memory_space<vmem>>, vector<8x8x16xf32>
    %246 = arith.truncf %245 : vector<8x8x16xf32> to vector<8x8x16xbf16>
    %c1_281 = arith.constant 1 : index
    %c0_282 = arith.constant 0 : index
    %c0_283 = arith.constant 0 : index
    %247 = vector.load %arg16[%c1_281, %c0_282, %c0_283] : memref<10x10x16xf32, #tpu.memory_space<vmem>>, vector<8x8x16xf32>
    %248 = arith.truncf %247 : vector<8x8x16xf32> to vector<8x8x16xbf16>
    %c1_284 = arith.constant 1 : index
    %c1_285 = arith.constant 1 : index
    %c0_286 = arith.constant 0 : index
    %249 = vector.load %arg15[%c1_284, %c1_285, %c0_286] : memref<10x10x16xf32, #tpu.memory_space<vmem>>, vector<8x8x16xf32>
    %250 = arith.truncf %249 : vector<8x8x16xf32> to vector<8x8x16xbf16>
    %c1_287 = arith.constant 1 : index
    %c1_288 = arith.constant 1 : index
    %c0_289 = arith.constant 0 : index
    %251 = vector.load %arg16[%c1_287, %c1_288, %c0_289] : memref<10x10x16xf32, #tpu.memory_space<vmem>>, vector<8x8x16xf32>
    %252 = arith.truncf %251 : vector<8x8x16xf32> to vector<8x8x16xbf16>
    %c2_290 = arith.constant 2 : index
    %c0_291 = arith.constant 0 : index
    %c0_292 = arith.constant 0 : index
    %253 = vector.load %arg14[%c2_290, %c0_291, %c0_292] : memref<10x10x16xf32, #tpu.memory_space<vmem>>, vector<8x8x16xf32>
    %254 = arith.truncf %253 : vector<8x8x16xf32> to vector<8x8x16xbf16>
    %c2_293 = arith.constant 2 : index
    %c1_294 = arith.constant 1 : index
    %c0_295 = arith.constant 0 : index
    %255 = vector.load %arg13[%c2_293, %c1_294, %c0_295] : memref<10x10x16xf32, #tpu.memory_space<vmem>>, vector<8x8x16xf32>
    %256 = arith.truncf %255 : vector<8x8x16xf32> to vector<8x8x16xbf16>
    %c2_296 = arith.constant 2 : index
    %c1_297 = arith.constant 1 : index
    %c0_298 = arith.constant 0 : index
    %257 = vector.load %arg14[%c2_296, %c1_297, %c0_298] : memref<10x10x16xf32, #tpu.memory_space<vmem>>, vector<8x8x16xf32>
    %258 = arith.truncf %257 : vector<8x8x16xf32> to vector<8x8x16xbf16>
    %259 = tpu.concatenate %242, %244, %246, %248, %250, %252, %254, %256, %258 in 2 : vector<8x8x16xbf16>, vector<8x8x16xbf16>, vector<8x8x16xbf16>, vector<8x8x16xbf16>, vector<8x8x16xbf16>, vector<8x8x16xbf16>, vector<8x8x16xbf16>, vector<8x8x16xbf16>, vector<8x8x16xbf16> -> vector<8x8x144xbf16>
    %260 = vector.shape_cast %259 : vector<8x8x144xbf16> to vector<64x144xbf16>
    %c1_299 = arith.constant 1 : index
    %c1_300 = arith.constant 1 : index
    %c0_301 = arith.constant 0 : index
    %261 = vector.load %arg13[%c1_299, %c1_300, %c0_301] : memref<10x10x16xf32, #tpu.memory_space<vmem>>, vector<8x8x16xf32>
    %262 = arith.truncf %261 : vector<8x8x16xf32> to vector<8x8x16xbf16>
    %c1_302 = arith.constant 1 : index
    %c1_303 = arith.constant 1 : index
    %c0_304 = arith.constant 0 : index
    %263 = vector.load %arg14[%c1_302, %c1_303, %c0_304] : memref<10x10x16xf32, #tpu.memory_space<vmem>>, vector<8x8x16xf32>
    %264 = arith.truncf %263 : vector<8x8x16xf32> to vector<8x8x16xbf16>
    %c1_305 = arith.constant 1 : index
    %c2_306 = arith.constant 2 : index
    %c0_307 = arith.constant 0 : index
    %265 = vector.load %arg13[%c1_305, %c2_306, %c0_307] : memref<10x10x16xf32, #tpu.memory_space<vmem>>, vector<8x8x16xf32>
    %266 = arith.truncf %265 : vector<8x8x16xf32> to vector<8x8x16xbf16>
    %c1_308 = arith.constant 1 : index
    %c1_309 = arith.constant 1 : index
    %c0_310 = arith.constant 0 : index
    %267 = vector.load %arg15[%c1_308, %c1_309, %c0_310] : memref<10x10x16xf32, #tpu.memory_space<vmem>>, vector<8x8x16xf32>
    %268 = arith.truncf %267 : vector<8x8x16xf32> to vector<8x8x16xbf16>
    %c1_311 = arith.constant 1 : index
    %c1_312 = arith.constant 1 : index
    %c0_313 = arith.constant 0 : index
    %269 = vector.load %arg16[%c1_311, %c1_312, %c0_313] : memref<10x10x16xf32, #tpu.memory_space<vmem>>, vector<8x8x16xf32>
    %270 = arith.truncf %269 : vector<8x8x16xf32> to vector<8x8x16xbf16>
    %c1_314 = arith.constant 1 : index
    %c2_315 = arith.constant 2 : index
    %c0_316 = arith.constant 0 : index
    %271 = vector.load %arg15[%c1_314, %c2_315, %c0_316] : memref<10x10x16xf32, #tpu.memory_space<vmem>>, vector<8x8x16xf32>
    %272 = arith.truncf %271 : vector<8x8x16xf32> to vector<8x8x16xbf16>
    %c2_317 = arith.constant 2 : index
    %c1_318 = arith.constant 1 : index
    %c0_319 = arith.constant 0 : index
    %273 = vector.load %arg13[%c2_317, %c1_318, %c0_319] : memref<10x10x16xf32, #tpu.memory_space<vmem>>, vector<8x8x16xf32>
    %274 = arith.truncf %273 : vector<8x8x16xf32> to vector<8x8x16xbf16>
    %c2_320 = arith.constant 2 : index
    %c1_321 = arith.constant 1 : index
    %c0_322 = arith.constant 0 : index
    %275 = vector.load %arg14[%c2_320, %c1_321, %c0_322] : memref<10x10x16xf32, #tpu.memory_space<vmem>>, vector<8x8x16xf32>
    %276 = arith.truncf %275 : vector<8x8x16xf32> to vector<8x8x16xbf16>
    %c2_323 = arith.constant 2 : index
    %c2_324 = arith.constant 2 : index
    %c0_325 = arith.constant 0 : index
    %277 = vector.load %arg13[%c2_323, %c2_324, %c0_325] : memref<10x10x16xf32, #tpu.memory_space<vmem>>, vector<8x8x16xf32>
    %278 = arith.truncf %277 : vector<8x8x16xf32> to vector<8x8x16xbf16>
    %279 = tpu.concatenate %262, %264, %266, %268, %270, %272, %274, %276, %278 in 2 : vector<8x8x16xbf16>, vector<8x8x16xbf16>, vector<8x8x16xbf16>, vector<8x8x16xbf16>, vector<8x8x16xbf16>, vector<8x8x16xbf16>, vector<8x8x16xbf16>, vector<8x8x16xbf16>, vector<8x8x16xbf16> -> vector<8x8x144xbf16>
    %280 = vector.shape_cast %279 : vector<8x8x144xbf16> to vector<64x144xbf16>
    %281 = tpu.concatenate %220, %240, %260, %280 in 0 : vector<64x144xbf16>, vector<64x144xbf16>, vector<64x144xbf16>, vector<64x144xbf16> -> vector<256x144xbf16>
    %c0_326 = arith.constant 0 : index
    %c0_327 = arith.constant 0 : index
    %282 = vector.load %arg8[%c0_326, %c0_327] : memref<144x12xbf16, #tpu.memory_space<vmem>>, vector<144x12xbf16>
    %cst_328 = arith.constant dense<0.000000e+00> : vector<256x12xf32>
    %283 = tpu.matmul %281, %282, %cst_328 {dimension_numbers = #tpu.dot_dimension_numbers<[1], [0], [0], [1], [0, 0, 1, 1], [], []>} : vector<256x144xbf16>, vector<144x12xbf16>, vector<256x12xf32> -> vector<256x12xf32>
    %c0_329 = arith.constant 0 : index
    %c0_330 = arith.constant 0 : index
    %284 = vector.load %arg9[%c0_329, %c0_330] : memref<1x12xf32, #tpu.memory_space<vmem>>, vector<1x12xf32>
    %285 = vector.broadcast %284 : vector<1x12xf32> to vector<256x12xf32>
    %286 = arith.addf %283, %285 : vector<256x12xf32>
    %287 = vector.extract_strided_slice %286 {offsets = [0, 0], sizes = [64, 12], strides = [1, 1]} : vector<256x12xf32> to vector<64x12xf32>
    %288 = vector.extract_strided_slice %287 {offsets = [0, 0], sizes = [64, 6], strides = [1, 1]} : vector<64x12xf32> to vector<64x6xf32>
    %289 = vector.shape_cast %288 : vector<64x6xf32> to vector<8x8x6xf32>
    %c0_331 = arith.constant 0 : index
    %c0_332 = arith.constant 0 : index
    %c0_333 = arith.constant 0 : index
    %c0_334 = arith.constant 0 : index
    %c0_335 = arith.constant 0 : index
    %290 = vector.load %arg10[%c0_331, %c0_332, %c0_333, %c0_334, %c0_335] : memref<1x8x4x8x12xf32, #tpu.memory_space<vmem>>, vector<1x8x1x8x6xf32>
    %291 = vector.shape_cast %290 : vector<1x8x1x8x6xf32> to vector<8x8x6xf32>
    %292 = vector.shape_cast %289 : vector<8x8x6xf32> to vector<1x8x1x8x6xf32>
    tpu.vector_store %arg10[%c0_331, %c0_332, %c0_333, %c0_334, %c0_335], %292 {strides = array<i32>} : memref<1x8x4x8x12xf32, #tpu.memory_space<vmem>>, vector<1x8x1x8x6xf32>,
    %293 = vector.extract_strided_slice %287 {offsets = [0, 6], sizes = [64, 6], strides = [1, 1]} : vector<64x12xf32> to vector<64x6xf32>
    %294 = vector.shape_cast %293 : vector<64x6xf32> to vector<8x8x6xf32>
    %c0_336 = arith.constant 0 : index
    %c0_337 = arith.constant 0 : index
    %c1_338 = arith.constant 1 : index
    %c0_339 = arith.constant 0 : index
    %c0_340 = arith.constant 0 : index
    %295 = vector.load %arg10[%c0_336, %c0_337, %c1_338, %c0_339, %c0_340] : memref<1x8x4x8x12xf32, #tpu.memory_space<vmem>>, vector<1x8x1x8x6xf32>
    %296 = vector.shape_cast %295 : vector<1x8x1x8x6xf32> to vector<8x8x6xf32>
    %297 = vector.shape_cast %294 : vector<8x8x6xf32> to vector<1x8x1x8x6xf32>
    tpu.vector_store %arg10[%c0_336, %c0_337, %c1_338, %c0_339, %c0_340], %297 {strides = array<i32>} : memref<1x8x4x8x12xf32, #tpu.memory_space<vmem>>, vector<1x8x1x8x6xf32>,
    %298 = vector.extract_strided_slice %286 {offsets = [64, 0], sizes = [64, 12], strides = [1, 1]} : vector<256x12xf32> to vector<64x12xf32>
    %299 = vector.extract_strided_slice %298 {offsets = [0, 0], sizes = [64, 6], strides = [1, 1]} : vector<64x12xf32> to vector<64x6xf32>
    %300 = vector.shape_cast %299 : vector<64x6xf32> to vector<8x8x6xf32>
    %c0_341 = arith.constant 0 : index
    %c0_342 = arith.constant 0 : index
    %c0_343 = arith.constant 0 : index
    %c0_344 = arith.constant 0 : index
    %c6 = arith.constant 6 : index
    %301 = vector.load %arg10[%c0_341, %c0_342, %c0_343, %c0_344, %c6] : memref<1x8x4x8x12xf32, #tpu.memory_space<vmem>>, vector<1x8x1x8x6xf32>
    %302 = vector.shape_cast %301 : vector<1x8x1x8x6xf32> to vector<8x8x6xf32>
    %303 = vector.shape_cast %300 : vector<8x8x6xf32> to vector<1x8x1x8x6xf32>
    tpu.vector_store %arg10[%c0_341, %c0_342, %c0_343, %c0_344, %c6], %303 {strides = array<i32>} : memref<1x8x4x8x12xf32, #tpu.memory_space<vmem>>, vector<1x8x1x8x6xf32>,
    %304 = vector.extract_strided_slice %298 {offsets = [0, 6], sizes = [64, 6], strides = [1, 1]} : vector<64x12xf32> to vector<64x6xf32>
    %305 = vector.shape_cast %304 : vector<64x6xf32> to vector<8x8x6xf32>
    %c0_345 = arith.constant 0 : index
    %c0_346 = arith.constant 0 : index
    %c1_347 = arith.constant 1 : index
    %c0_348 = arith.constant 0 : index
    %c6_349 = arith.constant 6 : index
    %306 = vector.load %arg10[%c0_345, %c0_346, %c1_347, %c0_348, %c6_349] : memref<1x8x4x8x12xf32, #tpu.memory_space<vmem>>, vector<1x8x1x8x6xf32>
    %307 = vector.shape_cast %306 : vector<1x8x1x8x6xf32> to vector<8x8x6xf32>
    %308 = vector.shape_cast %305 : vector<8x8x6xf32> to vector<1x8x1x8x6xf32>
    tpu.vector_store %arg10[%c0_345, %c0_346, %c1_347, %c0_348, %c6_349], %308 {strides = array<i32>} : memref<1x8x4x8x12xf32, #tpu.memory_space<vmem>>, vector<1x8x1x8x6xf32>,
    %309 = vector.extract_strided_slice %286 {offsets = [128, 0], sizes = [64, 12], strides = [1, 1]} : vector<256x12xf32> to vector<64x12xf32>
    %310 = vector.extract_strided_slice %309 {offsets = [0, 0], sizes = [64, 6], strides = [1, 1]} : vector<64x12xf32> to vector<64x6xf32>
    %311 = vector.shape_cast %310 : vector<64x6xf32> to vector<8x8x6xf32>
    %c0_350 = arith.constant 0 : index
    %c0_351 = arith.constant 0 : index
    %c2_352 = arith.constant 2 : index
    %c0_353 = arith.constant 0 : index
    %c0_354 = arith.constant 0 : index
    %312 = vector.load %arg10[%c0_350, %c0_351, %c2_352, %c0_353, %c0_354] : memref<1x8x4x8x12xf32, #tpu.memory_space<vmem>>, vector<1x8x1x8x6xf32>
    %313 = vector.shape_cast %312 : vector<1x8x1x8x6xf32> to vector<8x8x6xf32>
    %314 = vector.shape_cast %311 : vector<8x8x6xf32> to vector<1x8x1x8x6xf32>
    tpu.vector_store %arg10[%c0_350, %c0_351, %c2_352, %c0_353, %c0_354], %314 {strides = array<i32>} : memref<1x8x4x8x12xf32, #tpu.memory_space<vmem>>, vector<1x8x1x8x6xf32>,
    %315 = vector.extract_strided_slice %309 {offsets = [0, 6], sizes = [64, 6], strides = [1, 1]} : vector<64x12xf32> to vector<64x6xf32>
    %316 = vector.shape_cast %315 : vector<64x6xf32> to vector<8x8x6xf32>
    %c0_355 = arith.constant 0 : index
    %c0_356 = arith.constant 0 : index
    %c3 = arith.constant 3 : index
    %c0_357 = arith.constant 0 : index
    %c0_358 = arith.constant 0 : index
    %317 = vector.load %arg10[%c0_355, %c0_356, %c3, %c0_357, %c0_358] : memref<1x8x4x8x12xf32, #tpu.memory_space<vmem>>, vector<1x8x1x8x6xf32>
    %318 = vector.shape_cast %317 : vector<1x8x1x8x6xf32> to vector<8x8x6xf32>
    %319 = vector.shape_cast %316 : vector<8x8x6xf32> to vector<1x8x1x8x6xf32>
    tpu.vector_store %arg10[%c0_355, %c0_356, %c3, %c0_357, %c0_358], %319 {strides = array<i32>} : memref<1x8x4x8x12xf32, #tpu.memory_space<vmem>>, vector<1x8x1x8x6xf32>,
    %320 = vector.extract_strided_slice %286 {offsets = [192, 0], sizes = [64, 12], strides = [1, 1]} : vector<256x12xf32> to vector<64x12xf32>
    %321 = vector.extract_strided_slice %320 {offsets = [0, 0], sizes = [64, 6], strides = [1, 1]} : vector<64x12xf32> to vector<64x6xf32>
    %322 = vector.shape_cast %321 : vector<64x6xf32> to vector<8x8x6xf32>
    %c0_359 = arith.constant 0 : index
    %c0_360 = arith.constant 0 : index
    %c2_361 = arith.constant 2 : index
    %c0_362 = arith.constant 0 : index
    %c6_363 = arith.constant 6 : index
    %323 = vector.load %arg10[%c0_359, %c0_360, %c2_361, %c0_362, %c6_363] : memref<1x8x4x8x12xf32, #tpu.memory_space<vmem>>, vector<1x8x1x8x6xf32>
    %324 = vector.shape_cast %323 : vector<1x8x1x8x6xf32> to vector<8x8x6xf32>
    %325 = vector.shape_cast %322 : vector<8x8x6xf32> to vector<1x8x1x8x6xf32>
    tpu.vector_store %arg10[%c0_359, %c0_360, %c2_361, %c0_362, %c6_363], %325 {strides = array<i32>} : memref<1x8x4x8x12xf32, #tpu.memory_space<vmem>>, vector<1x8x1x8x6xf32>,
    %326 = vector.extract_strided_slice %320 {offsets = [0, 6], sizes = [64, 6], strides = [1, 1]} : vector<64x12xf32> to vector<64x6xf32>
    %327 = vector.shape_cast %326 : vector<64x6xf32> to vector<8x8x6xf32>
    %c0_364 = arith.constant 0 : index
    %c0_365 = arith.constant 0 : index
    %c3_366 = arith.constant 3 : index
    %c0_367 = arith.constant 0 : index
    %c6_368 = arith.constant 6 : index
    %328 = vector.load %arg10[%c0_364, %c0_365, %c3_366, %c0_367, %c6_368] : memref<1x8x4x8x12xf32, #tpu.memory_space<vmem>>, vector<1x8x1x8x6xf32>
    %329 = vector.shape_cast %328 : vector<1x8x1x8x6xf32> to vector<8x8x6xf32>
    %330 = vector.shape_cast %327 : vector<8x8x6xf32> to vector<1x8x1x8x6xf32>
    tpu.vector_store %arg10[%c0_364, %c0_365, %c3_366, %c0_367, %c6_368], %330 {strides = array<i32>} : memref<1x8x4x8x12xf32, #tpu.memory_space<vmem>>, vector<1x8x1x8x6xf32>,
    return
  }
  func.func @transform_0(%arg0: i32) -> (i32, i32, i32, i32) {
    %c0_i32 = arith.constant 0 : i32
    %c0_i32_0 = arith.constant 0 : i32
    %c0_i32_1 = arith.constant 0 : i32
    %c0_i32_2 = arith.constant 0 : i32
    return %arg0, %c0_i32, %c0_i32_0, %c0_i32_1 : i32, i32, i32, i32
  }
  func.func @transform_1(%arg0: i32) -> (i32, i32) {
    %c0_i32 = arith.constant 0 : i32
    %c0_i32_0 = arith.constant 0 : i32
    %c0_i32_1 = arith.constant 0 : i32
    return %c0_i32, %c0_i32_0 : i32, i32
  }
  func.func @transform_2(%arg0: i32) -> (i32, i32) {
    %c0_i32 = arith.constant 0 : i32
    %c0_i32_0 = arith.constant 0 : i32
    %c0_i32_1 = arith.constant 0 : i32
    return %c0_i32, %c0_i32_0 : i32, i32
  }
  func.func @transform_3(%arg0: i32) -> (i32, i32, i32) {
    %c0_i32 = arith.constant 0 : i32
    %c0_i32_0 = arith.constant 0 : i32
    %c0_i32_1 = arith.constant 0 : i32
    %c0_i32_2 = arith.constant 0 : i32
    return %c0_i32, %c0_i32_0, %c0_i32_1 : i32, i32, i32
  }
  func.func @transform_4(%arg0: i32) -> (i32, i32, i32) {
    %c0_i32 = arith.constant 0 : i32
    %c0_i32_0 = arith.constant 0 : i32
    %c0_i32_1 = arith.constant 0 : i32
    %c0_i32_2 = arith.constant 0 : i32
    return %c0_i32, %c0_i32_0, %c0_i32_1 : i32, i32, i32
  }
  func.func @transform_5(%arg0: i32) -> (i32, i32) {
    %c0_i32 = arith.constant 0 : i32
    %c0_i32_0 = arith.constant 0 : i32
    %c0_i32_1 = arith.constant 0 : i32
    return %c0_i32, %c0_i32_0 : i32, i32
  }
  func.func @transform_6(%arg0: i32) -> (i32, i32) {
    %c0_i32 = arith.constant 0 : i32
    %c0_i32_0 = arith.constant 0 : i32
    %c0_i32_1 = arith.constant 0 : i32
    return %c0_i32, %c0_i32_0 : i32, i32
  }
  func.func @transform_7(%arg0: i32) -> (i32, i32) {
    %c0_i32 = arith.constant 0 : i32
    %c0_i32_0 = arith.constant 0 : i32
    %c0_i32_1 = arith.constant 0 : i32
    return %c0_i32, %c0_i32_0 : i32, i32
  }
  func.func @transform_8(%arg0: i32) -> (i32, i32) {
    %c0_i32 = arith.constant 0 : i32
    %c0_i32_0 = arith.constant 0 : i32
    %c0_i32_1 = arith.constant 0 : i32
    return %c0_i32, %c0_i32_0 : i32, i32
  }
  func.func @transform_9(%arg0: i32) -> (i32, i32, i32, i32, i32) {
    %c0_i32 = arith.constant 0 : i32
    %c0_i32_0 = arith.constant 0 : i32
    %c0_i32_1 = arith.constant 0 : i32
    %c0_i32_2 = arith.constant 0 : i32
    %c0_i32_3 = arith.constant 0 : i32
    return %arg0, %c0_i32, %c0_i32_0, %c0_i32_1, %c0_i32_2 : i32, i32, i32, i32, i32
  }
}

</mosaic_0001>

<bundles_post_ra>
// kernel: _lambda_.1
= control target key start
LH: loop header
LB: loop body
LE: loop exit
PB: predicated region body
PF: predicated region fallthrough
CT: control target
= control target key end

     0   :  { %14 = vsyncpa [#allocation9], 0  ;;  %s10133_s0 = inlined_call_operand.vmem [shape: f32[2,8,8,4], index: 0, kind: input, shape index: {}]   ;;  %s10134_s1 = inlined_call_operand.vmem [shape: bf16[36,32], index: 1, kind: input, shape index: {}]   ;;  %s10135_s2 = inlined_call_operand.vmem [shape: f32[1,32], index: 2, kind: input, shape index: {}]   ;;  %s10136_s3 = inlined_call_operand.hbm [shape: bf16[2,288,128], index: 3, kind: input, shape index: {}]   ;;  %s10137_s4 = inlined_call_operand.hbm [shape: bf16[2,128,32], index: 4, kind: input, shape index: {}]   ;;  %s10138_s5 = inlined_call_operand.vmem [shape: bf16[288,64], index: 5, kind: input, shape index: {}]   ;;  %s10139_s6 = inlined_call_operand.vmem [shape: f32[1,64], index: 6, kind: input, shape index: {}]   ;;  %s10140_s7 = inlined_call_operand.hbm [shape: bf16[144,12], index: 7, kind: input, shape index: {}]   ;;  %s10141_s8 = inlined_call_operand.vmem [shape: f32[1,12], index: 8, kind: input, shape index: {}]   ;;  %s10142_s9 = inlined_call_operand.vmem [shape: f32[2,8,4,8,12], index: 9, kind: output, shape index: {}]  }
   0x1   :  { %15 = vsyncpa [#allocation11], 0  ;;  %s7233_s30 = smov 0  }
   0x2 LB: > { %s7239_s10 = sadd.s32 4294967295, %s7160_s30   ;;  %p6484_p0 = scmp.ge.s32.totalorder %s7160_s30, 1  ;;  %s7160_s30 = sphi %s7233_s30, %s21_s30  }
   0x3   : > { %p246_p1 = scmp.lt.s32.totalorder %s7160_s30, 3  ;;  %p7017_p2 = scmp.eq.s32.totalorder %s7239_s10, 0 }
   0x4   : > { %s277_s13 = sshll.u32 %s10137_s4, 4  ;;  %s263_s17 = sshll.u32 %s10136_s3, 4  ;;  %s278_s13 = int_to_ptr.hbm [resolvable:$true] %s277_s13  ;;  %s264_s17 = int_to_ptr.hbm [resolvable:$true] %s263_s17 }
   0x5   : > { %p7247_p3 = pnand %p6484_p0, %p246_p1  ;;  %s7162_s18 = smov [#allocation10]  }
   0x6   : > { %s279_s19 = sshll.u32 %s7162_s18, 4  ;;  %s7163_s20 = smov [#allocation8]   ;;  %s280_s19 = int_to_ptr.vmem [resolvable:$true] %s279_s19 }
   0x7   : > { %p7007_p4 = pneg %p7247_p3  ;;  %s265_s21 = sshll.u32 %s7163_s20, 4  ;;  %s266_s21 = int_to_ptr.vmem [resolvable:$true] %s265_s21 }
   0x8   : > { %s297_s24 = sshll.u32 %s10140_s7, 4  ;;  %s7164_s25 = smov 64   ;;  %s298_s24 = int_to_ptr.hbm [resolvable:$true] %s297_s24 }
   0x9   : > { %p7008_p5 = pnand %p7017_p2, %p7007_p4  ;;  %s7165_s26 = smov 4  }
   0xa   : > { %s7166_s27 = smov [#allocation12]   ;;  %326 = sbr.rel (%p7247_p3) target bundleno = 2691 (0xa83), region = 56 }
   0xb   : > { %7013 = dma.hbm_to_vmem [thread:$0]  (!%p7008_p5), %s278_s13, 2048, %s280_s19, [#allocation11], %s7164_s25, %s7164_s25, %s7165_s26  }
   0xc   : > { %7010 = dma.hbm_to_vmem [thread:$0]  (!%p7008_p5), %s264_s17, 4608, %s266_s21, [#allocation9], %s7164_s25, %s7164_s25, %s7165_s26  }
   0xd   : > { %s299_s28 = sshll.u32 %s7166_s27, 4  ;;  %s300_s28 = int_to_ptr.vmem [resolvable:$true] %s299_s28 }
   0xe   : > { %7016 = dma.hbm_to_vmem [thread:$0]  (!%p7008_p5), %s298_s24, 1152, %s300_s28, [#allocation11], %s7164_s25, %s7164_s25, %s7165_s26  }
   0xf   : > { %7151 = dma.done.wait (%p7017_p2), [#allocation9], 4608  }
  0x10   : > { %7153 = vsyncadd (%p7017_p2), [#allocation9], 4294962688 }
  0x11   : > { %7155 = dma.done.wait (%p7017_p2), [#allocation11], 3200  }
  0x12   : > { %7157 = vsyncadd (%p7017_p2), [#allocation11], 4294964096  ;;  %vm428_vm0 = vcmask 130048   ;;  %vm430_vm1 = vcmask 123904   ;;  %v7167_v0 = vmov 0.0   ;;  %vm384_vm2 = vcmask 31744  }
  0x13   : > { %432 = vst.msk [vmem:[#allocation4 + $0x10] sm:$0xff] %vm428_vm0, %v7167_v0  ;;  %vm386_vm3 = vcmask 25600   ;;  %p373_p6 = scmp.lt.s32.totalorder %s7239_s10, 1  ;;  %s7168_s14 = smov 8   ;;  %vm406_vm4 = vcmask 261120   ;;  %vm1190_vm5 = vcmask 1041408  }
  0x14   : > { %433 = vst.msk [vmem:[#allocation4 + $0x18] sm:$0x3] %vm430_vm1, %v7167_v0  ;;  %s7169_s15 = smov 4   ;;  %s7170_s16 = smov 12   ;;  %vm1016_vm6 = vcmask 64512   ;;  %vm1033_vm7 = vcmask 97280  }
  0x15   : > { %434 = vst.msk [vmem:[#allocation4 + $0x20] sm:$0xff] %vm428_vm0, %v7167_v0  ;;  %s10353_s10 = smov (!%p373_p6, %s7239_s10), 1  ;;  %s7171_s17 = smov 16   ;;  %vm1066_vm8 = vcmask 162816   ;;  %vm1083_vm9 = vcmask 195584   ;;  %vm1100_vm10 = vcmask 228352  }
  0x16   : > { %435 = vst.msk [vmem:[#allocation4 + $0x28] sm:$0x3] %vm430_vm1, %v7167_v0  ;;  %s6903_s29 = sshll.u32 %s10353_s10, 6  ;;  %s7172_s18 = smov 24   ;;  %vm1177_vm11 = vcmask 293888   ;;  %vm408_vm12 = vcmask 254976  }
  0x17   : > { %436 = vst.msk [vmem:[#allocation4 + $0x30] sm:$0xff] %vm428_vm0, %v7167_v0  ;;  %s7453_s13 = scalar_lea.vmem %s10133_s0, %s6903_s29  ;;  %s7173_s19 = smov 20   ;;  %vm1713_vm13 = vcmask 523264   ;;  %vm1730_vm14 = vcmask 785408   ;;  %vm4708_vm15 = vcmask 392192  }
  0x18   : > { %437 = vst.msk [vmem:[#allocation4 + $0x38] sm:$0x3] %vm430_vm1, %v7167_v0  ;;  %v510_v9 = vld [vmem:[%s7453_s13] sm:$0xff]  ;;  %v511_v10 = vld [vmem:[%s7453_s13 + $0x8] sm:$0xff]  ;;  %v512_v11 = vld [vmem:[%s7453_s13 + $0x10] sm:$0xff]  ;;  %s7174_s20 = smov 28  }
  0x19   : > { %438 = vst.msk [vmem:[#allocation4 + $0x40] sm:$0xff] %vm428_vm0, %v7167_v0  ;;  %v513_v30 = vld [vmem:[%s7453_s13 + $0x18] sm:$0xff]  ;;  %v514_v44 = vld [vmem:[%s7453_s13 + $0x20] sm:$0xff]  ;;  %s7175_s21 = smov 32   ;;  %v515_v54 = vld [vmem:[%s7453_s13 + $0x28] sm:$0xff]  ;;  %s7176_s28 = smov 64  }
  0x1a   : > { %439 = vst.msk [vmem:[#allocation4 + $0x48] sm:$0x3] %vm430_vm1, %v7167_v0  ;;  %s7177_s29 = smov 96   ;;  %s7179_s26 = smov 80  }
  0x1b   : > { %440 = vst.msk [vmem:[#allocation4 + $0x50] sm:$0xff] %vm428_vm0, %v7167_v0  ;;  %s7180_s27 = smov 48  }
  0x1c   : > { %441 = vst.msk [vmem:[#allocation4 + $0x58] sm:$0x3] %vm430_vm1, %v7167_v0 }
  0x1d   : > { %442 = vst.msk [vmem:[#allocation4 + $0x60] sm:$0xff] %vm428_vm0, %v7167_v0 }
  0x1e   : > { %443 = vst.msk [vmem:[#allocation4 + $0x68] sm:$0x3] %vm430_vm1, %v7167_v0 }
  0x1f   : > { %444 = vst.msk [vmem:[#allocation4 + $0x70] sm:$0xff] %vm428_vm0, %v7167_v0 }
  0x20   : > { %445 = vst.msk [vmem:[#allocation4 + $0x78] sm:$0x3] %vm430_vm1, %v7167_v0 }
  0x21   : > { %446 = vst.msk [vmem:[#allocation4 + $0x80] sm:$0xff] %vm428_vm0, %v7167_v0 }
  0x22   : > { %447 = vst.msk [vmem:[#allocation4 + $0x88] sm:$0x3] %vm430_vm1, %v7167_v0 }
  0x23   : > { %448 = vst.msk [vmem:[#allocation4 + $0x90] sm:$0xff] %vm428_vm0, %v7167_v0 }
  0x24   : > { %449 = vst.msk [vmem:[#allocation4 + $0x98] sm:$0x3] %vm430_vm1, %v7167_v0 }
  0x25   : > { %452 = vst.msk [vmem:[#allocation5 + $0x10] sm:$0xff] %vm428_vm0, %v7167_v0 }
  0x26   : > { %453 = vst.msk [vmem:[#allocation5 + $0x18] sm:$0x3] %vm430_vm1, %v7167_v0 }
  0x27   : > { %454 = vst.msk [vmem:[#allocation5 + $0x20] sm:$0xff] %vm428_vm0, %v7167_v0 }
  0x28   : > { %455 = vst.msk [vmem:[#allocation5 + $0x28] sm:$0x3] %vm430_vm1, %v7167_v0 }
  0x29   : > { %456 = vst.msk [vmem:[#allocation5 + $0x30] sm:$0xff] %vm428_vm0, %v7167_v0 }
  0x2a   : > { %457 = vst.msk [vmem:[#allocation5 + $0x38] sm:$0x3] %vm430_vm1, %v7167_v0 }
  0x2b   : > { %458 = vst.msk [vmem:[#allocation5 + $0x40] sm:$0xff] %vm428_vm0, %v7167_v0 }
  0x2c   : > { %459 = vst.msk [vmem:[#allocation5 + $0x48] sm:$0x3] %vm430_vm1, %v7167_v0 }
  0x2d   : > { %460 = vst.msk [vmem:[#allocation5 + $0x50] sm:$0xff] %vm428_vm0, %v7167_v0 }
  0x2e   : > { %461 = vst.msk [vmem:[#allocation5 + $0x58] sm:$0x3] %vm430_vm1, %v7167_v0 }
  0x2f   : > { %462 = vst.msk [vmem:[#allocation5 + $0x60] sm:$0xff] %vm428_vm0, %v7167_v0 }
  0x30   : > { %463 = vst.msk [vmem:[#allocation5 + $0x68] sm:$0x3] %vm430_vm1, %v7167_v0 }
  0x31   : > { %464 = vst.msk [vmem:[#allocation5 + $0x70] sm:$0xff] %vm428_vm0, %v7167_v0 }
  0x32   : > { %465 = vst.msk [vmem:[#allocation5 + $0x78] sm:$0x3] %vm430_vm1, %v7167_v0 }
  0x33   : > { %466 = vst.msk [vmem:[#allocation5 + $0x80] sm:$0xff] %vm428_vm0, %v7167_v0 }
  0x34   : > { %467 = vst.msk [vmem:[#allocation5 + $0x88] sm:$0x3] %vm430_vm1, %v7167_v0 }
  0x35   : > { %468 = vst.msk [vmem:[#allocation5 + $0x90] sm:$0xff] %vm428_vm0, %v7167_v0 }
  0x36   : > { %469 = vst.msk [vmem:[#allocation5 + $0x98] sm:$0x3] %vm430_vm1, %v7167_v0 }
  0x37   : > { %470 = vst.msk [vmem:[#allocation6] sm:$0xff] %vm428_vm0, %v7167_v0 }
  0x38   : > { %471 = vst.msk [vmem:[#allocation6 + $0x8] sm:$0x3] %vm430_vm1, %v7167_v0 }
  0x39   : > { %472 = vst.msk [vmem:[#allocation6 + $0x10] sm:$0xff] %vm428_vm0, %v7167_v0 }
  0x3a   : > { %473 = vst.msk [vmem:[#allocation6 + $0x18] sm:$0x3] %vm430_vm1, %v7167_v0 }
  0x3b   : > { %474 = vst.msk [vmem:[#allocation6 + $0x20] sm:$0xff] %vm428_vm0, %v7167_v0 }
  0x3c   : > { %475 = vst.msk [vmem:[#allocation6 + $0x28] sm:$0x3] %vm430_vm1, %v7167_v0 }
  0x3d   : > { %476 = vst.msk [vmem:[#allocation6 + $0x30] sm:$0xff] %vm428_vm0, %v7167_v0 }
  0x3e   : > { %477 = vst.msk [vmem:[#allocation6 + $0x38] sm:$0x3] %vm430_vm1, %v7167_v0 }
  0x3f   : > { %478 = vst.msk [vmem:[#allocation6 + $0x40] sm:$0xff] %vm428_vm0, %v7167_v0 }
  0x40   : > { %479 = vst.msk [vmem:[#allocation6 + $0x48] sm:$0x3] %vm430_vm1, %v7167_v0 }
  0x41   : > { %480 = vst.msk [vmem:[#allocation6 + $0x50] sm:$0xff] %vm428_vm0, %v7167_v0 }
  0x42   : > { %481 = vst.msk [vmem:[#allocation6 + $0x58] sm:$0x3] %vm430_vm1, %v7167_v0 }
  0x43   : > { %482 = vst.msk [vmem:[#allocation6 + $0x60] sm:$0xff] %vm428_vm0, %v7167_v0 }
  0x44   : > { %483 = vst.msk [vmem:[#allocation6 + $0x68] sm:$0x3] %vm430_vm1, %v7167_v0 }
  0x45   : > { %484 = vst.msk [vmem:[#allocation6 + $0x70] sm:$0xff] %vm428_vm0, %v7167_v0 }
  0x46   : > { %485 = vst.msk [vmem:[#allocation6 + $0x78] sm:$0x3] %vm430_vm1, %v7167_v0 }
  0x47   : > { %486 = vst.msk [vmem:[#allocation6 + $0x80] sm:$0xff] %vm428_vm0, %v7167_v0 }
  0x48   : > { %487 = vst.msk [vmem:[#allocation6 + $0x88] sm:$0x3] %vm430_vm1, %v7167_v0 }
  0x49   : > { %490 = vst.msk [vmem:[#allocation7] sm:$0xff] %vm428_vm0, %v7167_v0 }
  0x4a   : > { %491 = vst.msk [vmem:[#allocation7 + $0x8] sm:$0x3] %vm430_vm1, %v7167_v0 }
  0x4b   : > { %492 = vst.msk [vmem:[#allocation7 + $0x10] sm:$0xff] %vm428_vm0, %v7167_v0 }
  0x4c   : > { %493 = vst.msk [vmem:[#allocation7 + $0x18] sm:$0x3] %vm430_vm1, %v7167_v0 }
  0x4d   : > { %494 = vst.msk [vmem:[#allocation7 + $0x20] sm:$0xff] %vm428_vm0, %v7167_v0 }
  0x4e   : > { %495 = vst.msk [vmem:[#allocation7 + $0x28] sm:$0x3] %vm430_vm1, %v7167_v0 }
  0x4f   : > { %496 = vst.msk [vmem:[#allocation7 + $0x30] sm:$0xff] %vm428_vm0, %v7167_v0 }
  0x50   : > { %497 = vst.msk [vmem:[#allocation7 + $0x38] sm:$0x3] %vm430_vm1, %v7167_v0 }
  0x51   : > { %498 = vst.msk [vmem:[#allocation7 + $0x40] sm:$0xff] %vm428_vm0, %v7167_v0 }
  0x52   : > { %499 = vst.msk [vmem:[#allocation7 + $0x48] sm:$0x3] %vm430_vm1, %v7167_v0 }
  0x53   : > { %500 = vst.msk [vmem:[#allocation7 + $0x50] sm:$0xff] %vm428_vm0, %v7167_v0 }
  0x54   : > { %501 = vst.msk [vmem:[#allocation7 + $0x58] sm:$0x3] %vm430_vm1, %v7167_v0 }
  0x55   : > { %502 = vst.msk [vmem:[#allocation7 + $0x60] sm:$0xff] %vm428_vm0, %v7167_v0 }
  0x56   : > { %503 = vst.msk [vmem:[#allocation7 + $0x68] sm:$0x3] %vm430_vm1, %v7167_v0 }
  0x57   : > { %504 = vst.msk [vmem:[#allocation7 + $0x70] sm:$0xff] %vm428_vm0, %v7167_v0 }
  0x58   : > { %505 = vst.msk [vmem:[#allocation7 + $0x78] sm:$0x3] %vm430_vm1, %v7167_v0 }
  0x59   : > { %506 = vst.msk [vmem:[#allocation7 + $0x80] sm:$0xff] %vm428_vm0, %v7167_v0 }
  0x5a   : > { %507 = vst.msk [vmem:[#allocation7 + $0x88] sm:$0x3] %vm430_vm1, %v7167_v0  ;;  %vm4741_vm1 = vcmask 654336  }
  0x5b   : > { %385 = vst.msk [vmem:[#allocation2] sm:$0xff] %vm384_vm2, %v7167_v0 }
  0x5c   : > { %387 = vst.msk [vmem:[#allocation2 + $0x8] sm:$0x3] %vm386_vm3, %v7167_v0 }
  0x5d   : > { %388 = vst.msk [vmem:[#allocation2 + $0x10] sm:$0xff] %vm384_vm2, %v7167_v0 }
  0x5e   : > { %389 = vst.msk [vmem:[#allocation2 + $0x18] sm:$0x3] %vm386_vm3, %v7167_v0 }
  0x5f   : > { %390 = vst.msk [vmem:[#allocation2 + $0x20] sm:$0xff] %vm384_vm2, %v7167_v0 }
  0x60   : > { %391 = vst.msk [vmem:[#allocation2 + $0x28] sm:$0x3] %vm386_vm3, %v7167_v0 }
  0x61   : > { %392 = vst.msk [vmem:[#allocation2 + $0x30] sm:$0xff] %vm384_vm2, %v7167_v0 }
  0x62   : > { %393 = vst.msk [vmem:[#allocation2 + $0x38] sm:$0x3] %vm386_vm3, %v7167_v0 }
  0x63   : > { %v559_v1 = vld [vmem:[#allocation2 + $0x2] sm:$0xff]  ;;  %394 = vst.msk [vmem:[#allocation2 + $0x40] sm:$0xff] %vm384_vm2, %v7167_v0 }
  0x64   : > { %v543_v2 = vld [vmem:[#allocation2 + $0x1] sm:$0xff]  ;;  %v567_v3 = vpack.c.bf16 %v559_v1, %v559_v1  ;;  %395 = vst.msk [vmem:[#allocation2 + $0x48] sm:$0x3] %vm386_vm3, %v7167_v0 }
  0x65   : > { %v551_v4 = vpack.c.bf16 %v543_v2, %v543_v2  ;;  %396 = vst.msk [vmem:[#allocation2 + $0x50] sm:$0xff] %vm384_vm2, %v7167_v0 }
  0x66   : > { %v720_v5 = vunpack.c.l.b16 %v567_v3  ;;  %397 = vst.msk [vmem:[#allocation2 + $0x58] sm:$0x3] %vm386_vm3, %v7167_v0 }
  0x67   : > { %v680_v6 = vunpack.c.l.b16 %v551_v4  ;;  %398 = vst.msk [vmem:[#allocation2 + $0x60] sm:$0xff] %vm384_vm2, %v7167_v0  ;;  %v516_v4 = vld [vmem:[%s7453_s13 + $0x30] sm:$0xff] }
  0x68   : > { %v728_v7 = vpack.c.b16 %v720_v5, %v720_v5  ;;  %399 = vst.msk [vmem:[#allocation2 + $0x68] sm:$0x3] %vm386_vm3, %v7167_v0 }
  0x69   : > { %v688_v8 = vpack.c.b16 %v680_v6, %v680_v6  ;;  %400 = vst.msk [vmem:[#allocation2 + $0x70] sm:$0xff] %vm384_vm2, %v7167_v0 }
  0x6a   : > { %736 = vrot.lane.b32.xlu1 %v728_v7, %s7168_s14  ;;  %401 = vst.msk [vmem:[#allocation2 + $0x78] sm:$0x3] %vm386_vm3, %v7167_v0 }
  0x6b   : > { %696 = vrot.lane.b32.xlu0 %v688_v8, %s7169_s15  ;;  %402 = vst.msk [vmem:[#allocation2 + $0x80] sm:$0xff] %vm384_vm2, %v7167_v0 }
  0x6c   : > { %403 = vst.msk [vmem:[#allocation2 + $0x88] sm:$0x3] %vm386_vm3, %v7167_v0 }
  0x6d   : > { %404 = vst.msk [vmem:[#allocation2 + $0x90] sm:$0xff] %vm384_vm2, %v7167_v0 }
  0x6e   : > { %405 = vst.msk [vmem:[#allocation2 + $0x98] sm:$0x3] %vm386_vm3, %v7167_v0  ;;  %vm6199_vm3 = vcmask 48128  }
  0x6f   : > { %519 = vst.msk [vmem:[#allocation2 + $0x11] sm:$0xff] %vm384_vm2, %v510_v9 }
  0x70   : > { %520 = vst.msk [vmem:[#allocation2 + $0x21] sm:$0xff] %vm384_vm2, %v511_v10 }
  0x71   : > { %521 = vst.msk [vmem:[#allocation2 + $0x31] sm:$0xff] %vm384_vm2, %v512_v11 }
  0x72   : > { %522 = vst.msk [vmem:[#allocation2 + $0x41] sm:$0xff] %vm384_vm2, %v513_v30 }
  0x73   : > { %523 = vst.msk [vmem:[#allocation2 + $0x51] sm:$0xff] %vm384_vm2, %v514_v44 }
  0x74   : > { %524 = vst.msk [vmem:[#allocation2 + $0x61] sm:$0xff] %vm384_vm2, %v515_v54  ;;  %v6905_v54 = vld [vmem:[%s10134_s1] sm:$0xff] }
  0x75   : > { %525 = vst.msk [vmem:[#allocation2 + $0x71] sm:$0xff] %vm384_vm2, %v516_v4 }
  0x76   : > { %v560_v12 = vld [vmem:[#allocation2 + $0x12] sm:$0xff]  ;;  %407 = vst.msk [vmem:[#allocation3] sm:$0xff] %vm406_vm4, %v7167_v0 }
  0x77   : > { %v544_v13 = vld [vmem:[#allocation2 + $0x11] sm:$0xff]  ;;  %v568_v15 = vpack.c.bf16 %v560_v12, %v560_v12  ;;  %v592_v17 = vld [vmem:[#allocation2 + $0x21] sm:$0xff]  ;;  %410 = vst.msk [vmem:[#allocation3 + $0x10] sm:$0xff] %vm406_vm4, %v7167_v0 }
  0x78   : > { %v575_v14 = vld [vmem:[#allocation2 + $0x10] sm:$0xff]  ;;  %v552_v16 = vpack.c.bf16 %v544_v13, %v544_v13  ;;  %v600_v21 = vpack.c.bf16 %v592_v17, %v592_v17  ;;  %v624_v22 = vld [vmem:[#allocation2 + $0x20] sm:$0xff]  ;;  %412 = vst.msk [vmem:[#allocation3 + $0x20] sm:$0xff] %vm406_vm4, %v7167_v0 }
  0x79   : > { %v7473_v18 = vpack.c.bf16 %v575_v14, %v575_v14  ;;  %v721_v19 = vunpack.c.l.b16 %v568_v15  ;;  %v7476_v27 = vpack.c.bf16 %v624_v22, %v624_v22  ;;  %v608_v29 = vld [vmem:[#allocation2 + $0x22] sm:$0xff]  ;;  %v641_v36 = vld [vmem:[#allocation2 + $0x31] sm:$0xff]  ;;  %414 = vst.msk [vmem:[#allocation3 + $0x30] sm:$0xff] %vm406_vm4, %v7167_v0 }
  0x7a   : > { %v681_v20 = vunpack.c.l.b16 %v552_v16  ;;  %v801_v28 = vunpack.c.l.b16 %v600_v21  ;;  %v616_v33 = vpack.c.bf16 %v608_v29, %v608_v29  ;;  %v625_v37 = vld [vmem:[#allocation2 + $0x30] sm:$0xff]  ;;  %v649_v39 = vpack.c.bf16 %v641_v36, %v641_v36  ;;  %v578_v50 = vld [vmem:[#allocation2 + $0x40] sm:$0xff]  ;;  %v517_v22 = vld [vmem:[%s7453_s13 + $0x38] sm:$0xff]  ;;  %416 = vst.msk [vmem:[#allocation3 + $0x40] sm:$0xff] %vm406_vm4, %v7167_v0  ;;  %s7178_s13 = smov 112  }
  0x7b   : > { %v760_v23 = vunpack.c.l.b16 %v7473_v18  ;;  %v729_v24 = vpack.c.b16 %v721_v19, %v721_v19  ;;  %v880_v31 = vunpack.c.l.b16 %v7476_v27  ;;  %v7487_v40 = vpack.c.bf16 %v625_v37, %v625_v37  ;;  %v657_v42 = vld [vmem:[#allocation2 + $0x32] sm:$0xff]  ;;  %v610_v53 = vld [vmem:[#allocation2 + $0x42] sm:$0xff]  ;;  %526 = vst.msk [vmem:[#allocation2 + $0x81] sm:$0xff] %vm384_vm2, %v517_v22  ;;  %v1137_v36 = vld [vmem:[%s10134_s1 + $0x10] sm:$0x3] }
  0x7c   : > { %v689_v25 = vpack.c.b16 %v681_v20, %v681_v20  ;;  %v809_v32 = vpack.c.b16 %v801_v28, %v801_v28  ;;  %v841_v35 = vunpack.c.l.b16 %v616_v33  ;;  %v921_v41 = vunpack.c.l.b16 %v649_v39  ;;  %v642_v57 = vld [vmem:[#allocation2 + $0x41] sm:$0xff]  ;;  %v627_v60 = vld [vmem:[#allocation2 + $0x50] sm:$0xff]  ;;  %418 = vst.msk [vmem:[#allocation3 + $0x50] sm:$0xff] %vm406_vm4, %v7167_v0 }
  0x7d   : > { %v768_v26 = vpack.c.b16 %v760_v23, %v760_v23  ;;  %738 = vrot.lane.b32.xlu1 %v729_v24, %s7168_s14  ;;  %v888_v34 = vpack.c.b16 %v880_v31, %v880_v31  ;;  %v881_v43 = vunpack.c.l.b16 %v7487_v40  ;;  %v665_v46 = vpack.c.bf16 %v657_v42, %v657_v42  ;;  %v659_v3 = vld [vmem:[#allocation2 + $0x52] sm:$0xff]  ;;  %v580_v13 = vld [vmem:[#allocation2 + $0x60] sm:$0xff]  ;;  %420 = vst.msk [vmem:[#allocation3 + $0x60] sm:$0xff] %vm406_vm4, %v7167_v0 }
  0x7e   : > { %698 = vrot.lane.b32.xlu0 %v689_v25, %s7169_s15  ;;  %v849_v38 = vpack.c.b16 %v841_v35, %v841_v35  ;;  %v929_v45 = vpack.c.b16 %v921_v41, %v921_v41  ;;  %v7501_v51 = vpack.c.bf16 %v578_v50, %v578_v50  ;;  %v618_v56 = vpack.c.bf16 %v610_v53, %v610_v53  ;;  %v548_v7 = vld [vmem:[#allocation2 + $0x51] sm:$0xff]  ;;  %v596_v16 = vld [vmem:[#allocation2 + $0x61] sm:$0xff] }
  0x7f   : > { %776 = vrot.lane.b32.xlu2 %v768_v26, %s7170_s16  ;;  %v889_v47 = vpack.c.b16 %v881_v43, %v881_v43  ;;  %v961_v48 = vunpack.c.l.b16 %v665_v46  ;;  %v650_v58 = vpack.c.bf16 %v642_v57, %v642_v57  ;;  %v7512_v63 = vpack.c.bf16 %v627_v60, %v627_v60  ;;  %v629_v21 = vld [vmem:[#allocation2 + $0x70] sm:$0xff]  ;;  %v660_v26 = vld [vmem:[#allocation2 + $0x62] sm:$0xff]  ;;  %422 = vst.msk [vmem:[#allocation3 + $0x70] sm:$0xff] %vm406_vm4, %v7167_v0 }
  0x80   : > { %v763_v52 = vunpack.c.l.b16 %v7501_v51  ;;  %v843_v59 = vunpack.c.l.b16 %v618_v56  ;;  %v667_v6 = vpack.c.bf16 %v659_v3, %v659_v3  ;;  %v556_v8 = vpack.c.bf16 %v548_v7, %v548_v7  ;;  %v645_v30 = vld [vmem:[#allocation2 + $0x71] sm:$0xff]  ;;  %424 = vst.msk [vmem:[#allocation3 + $0x80] sm:$0xff] %vm406_vm4, %v7167_v0 }
  0x81   : > { %v969_v49 = vpack.c.b16 %v961_v48, %v961_v48  ;;  %v922_v61 = vunpack.c.l.b16 %v650_v58  ;;  %v883_v2 = vunpack.c.l.b16 %v7512_v63  ;;  %v7526_v14 = vpack.c.bf16 %v580_v13, %v580_v13  ;;  %v6906_v48 = vld [vmem:[%s10134_s1 + $0x8] sm:$0xff]  ;;  %426 = vst.msk [vmem:[#allocation3 + $0x90] sm:$0xff] %vm406_vm4, %v7167_v0 }
  0x82   : > { %v771_v55 = vpack.c.b16 %v763_v52, %v763_v52  ;;  %v851_v62 = vpack.c.b16 %v843_v59, %v843_v59  ;;  %v963_v9 = vunpack.c.l.b16 %v667_v6  ;;  %v685_v10 = vunpack.c.l.b16 %v556_v8  ;;  %v598_v56 = vld [vmem:[#allocation2 + $0x81] sm:$0xff]  ;;  %411 = vst.msk [vmem:[#allocation3 + $0x18] sm:$0x3] %vm408_vm12, %v7167_v0 }
  0x83   : > { %v930_v1 = vpack.c.b16 %v922_v61, %v922_v61  ;;  %v891_v5 = vpack.c.b16 %v883_v2, %v883_v2  ;;  %v765_v15 = vunpack.c.l.b16 %v7526_v14  ;;  %v604_v19 = vpack.c.bf16 %v596_v16, %v596_v16  ;;  %v527_v59 = vld [vmem:[#allocation2] sm:$0xff]  ;;  %409 = vst.msk [vmem:[#allocation3 + $0x8] sm:$0x3] %vm408_vm12, %v7167_v0 }
  0x84   : > { %v971_v11 = vpack.c.b16 %v963_v9, %v963_v9  ;;  %v693_v12 = vpack.c.b16 %v685_v10, %v685_v10  ;;  %v668_v28 = vpack.c.bf16 %v660_v26, %v660_v26  ;;  %v1171_v41 = vunpack.c.l.b16 %v1137_v36  ;;  %v614_v4 = vld [vmem:[#allocation2 + $0x82] sm:$0xff]  ;;  %413 = vst.msk [vmem:[#allocation3 + $0x28] sm:$0x3] %vm408_vm12, %v7167_v0 }
  0x85   : > { %818 = vrot.lane.b32.xlu1 %v809_v32, %s7171_s17  ;;  %v773_v17 = vpack.c.b16 %v765_v15, %v765_v15  ;;  %v805_v20 = vunpack.c.l.b16 %v604_v19  ;;  %v606_v61 = vpack.c.bf16 %v598_v56, %v598_v56  ;;  %415 = vst.msk [vmem:[#allocation3 + $0x38] sm:$0x3] %vm408_vm12, %v7167_v0 }
  0x86   : > { %816 = vrot.lane.b32.xlu0 %v689_v25, %s7171_s17  ;;  %v7539_v25 = vpack.c.bf16 %v629_v21, %v629_v21  ;;  %v964_v31 = vunpack.c.l.b16 %v668_v28  ;;  %v1174_v42 = vpack.c.b16 %v1171_v41, %v1171_v41  ;;  %v647_v21 = vld [vmem:[#allocation2 + $0x91] sm:$0xff]  ;;  %417 = vst.msk [vmem:[#allocation3 + $0x48] sm:$0x3] %vm408_vm12, %v7167_v0 }
  0x87   : > { %778 = vrot.lane.b32.xlu2 %v888_v34, %s7170_s16  ;;  %v807_v3 = vunpack.c.l.b16 %v606_v61  ;;  %419 = vst.msk [vmem:[#allocation3 + $0x58] sm:$0x3] %vm408_vm12, %v7167_v0 }
  0x88   : > { %v885_v29 = vunpack.c.l.b16 %v7539_v25  ;;  %v972_v35 = vpack.c.b16 %v964_v31, %v964_v31  ;;  %v1192_v46 = vsel %vm1190_vm5, %v1174_v42, 0  ;;  %421 = vst.msk [vmem:[#allocation3 + $0x68] sm:$0x3] %vm408_vm12, %v7167_v0 }
  0x89   : > { %1199 = vmatpush.bf16.msra.mxu0 %v1192_v46  ;;  %v815_v10 = vpack.c.b16 %v807_v3, %v807_v3  ;;  %423 = vst.msk [vmem:[#allocation3 + $0x78] sm:$0x3] %vm408_vm12, %v7167_v0 }
  0x8a   : > { %v893_v33 = vpack.c.b16 %v885_v29, %v885_v29  ;;  %425 = vst.msk [vmem:[#allocation3 + $0x88] sm:$0x3] %vm408_vm12, %v7167_v0 }
  0x8b   : > { %427 = vst.msk [vmem:[#allocation3 + $0x98] sm:$0x3] %vm408_vm12, %v7167_v0 }
  0x8d   : > { %896 = vrot.lane.b32.xlu1 %v888_v34, %s7172_s18  ;;  %v653_v34 = vpack.c.bf16 %v645_v30, %v645_v30  ;;  %1200 = vmatpush.bf16.msra.mxu0 %v6906_v48  ;;  %v655_v30 = vpack.c.bf16 %v647_v21, %v647_v21 }
  0x8e   : > { %858 = vrot.lane.b32.xlu0 %v849_v38, %s7173_s19 }
  0x8f   : > { %856 = vrot.lane.b32.xlu2 %v729_v24, %s7173_s19  ;;  %v813_v24 = vpack.c.b16 %v805_v20, %v805_v20  ;;  %v925_v39 = vunpack.c.l.b16 %v653_v34 }
  0x91   : > { %v933_v44 = vpack.c.b16 %v925_v39, %v925_v39  ;;  %1201 = vmatpush.bf16.msra.mxu0 %v6905_v54  ;;  %v663_v39 = vld [vmem:[#allocation2 + $0x92] sm:$0xff] }
  0x95   : > { %938 = vrot.lane.b32.xlu1 %v929_v45, %s7174_s20 }
  0x96   : > { %936 = vrot.lane.b32.xlu0 %v809_v32, %s7174_s20 }
  0x97   : > { %898 = vrot.lane.b32.xlu2 %v889_v47, %s7172_s18 }
  0x9d   : > { %700 = vrot.lane.b32.xlu1 %v809_v32, %s7169_s15 }
  0x9e   : > { %978 = vrot.lane.b32.xlu0 %v969_v49, %s7175_s21 }
  0x9f   : > { %976 = vrot.lane.b32.xlu2 %v849_v38, %s7175_s21 }
  0xa5   : > { %742 = vrot.lane.b32.xlu1 %v969_v49, %s7168_s14 }
  0xa6   : > { %740 = vrot.lane.b32.xlu0 %v849_v38, %s7168_s14 }
  0xa7   : > { %702 = vrot.lane.b32.xlu2 %v929_v45, %s7169_s15 }
  0xad   : > { %820 = vrot.lane.b32.xlu1 %v929_v45, %s7171_s17  ;;  %v566_v45 = vld [vmem:[#allocation2 + $0x72] sm:$0xff] }
  0xae   : > { %782 = vrot.lane.b32.xlu0 %v771_v55, %s7170_s16 }
  0xaf   : > { %780 = vrot.lane.b32.xlu2 %v889_v47, %s7170_s16  ;;  %v574_v47 = vpack.c.bf16 %v566_v45, %v566_v45 }
  0xb1   : > { %v727_v52 = vunpack.c.l.b16 %v574_v47 }
  0xb5   : > { %862 = vrot.lane.b32.xlu1 %v851_v62, %s7173_s19 }
  0xb6   : > { %860 = vrot.lane.b32.xlu0 %v969_v49, %s7173_s19 }
  0xb7   : > { %822 = vrot.lane.b32.xlu2 %v930_v1, %s7171_s17 }
  0xbd   : > { %940 = vrot.lane.b32.xlu1 %v930_v1, %s7174_s20 }
  0xbe   : > { %902 = vrot.lane.b32.xlu0 %v891_v5, %s7172_s18 }
  0xbf   : > { %900 = vrot.lane.b32.xlu2 %v771_v55, %s7172_s18  ;;  %v735_v55 = vpack.c.b16 %v727_v52, %v727_v52 }
  0xc5   : > { %982 = vrot.lane.b32.xlu1 %v971_v11, %s7175_s21 }
  0xc6   : > { %980 = vrot.lane.b32.xlu0 %v851_v62, %s7175_s21 }
  0xc7   : > { %942 = vrot.lane.b32.xlu2 %v693_v12, %s7174_s20 }
  0xcd   : > { %744 = vrot.lane.b32.xlu1 %v851_v62, %s7168_s14  ;;  %v630_v62 = vld [vmem:[#allocation2 + $0x80] sm:$0xff] }
  0xce   : > { %706 = vrot.lane.b32.xlu0 %v693_v12, %s7169_s15  ;;  %v638_v2 = vpack.c.bf16 %v630_v62, %v630_v62 }
  0xcf   : > { %704 = vrot.lane.b32.xlu2 %v930_v1, %s7169_s15  ;;  %v535_v1 = vpack.c.bf16 %v527_v59, %v527_v59 }
  0xd0   : > { %v886_v8 = vunpack.c.l.b16 %v638_v2 }
  0xd2   : > { %v894_v15 = vpack.c.b16 %v886_v8, %v886_v8 }
  0xd5   : > { %786 = vrot.lane.b32.xlu1 %v773_v17, %s7170_s16 }
  0xd6   : > { %784 = vrot.lane.b32.xlu0 %v891_v5, %s7170_s16 }
  0xd7   : > { %746 = vrot.lane.b32.xlu2 %v971_v11, %s7168_s14 }
  0xd9   : > { %v7537_v23 = vpop.permute.xlu2 %776 }
  0xdc   : > { %v7552_v37 = vpop.permute.xlu1 %736 }
  0xdd   : > { %864 = vrot.lane.b32.xlu1 %v971_v11, %s7173_s19  ;;  %v697_v38 = vpop.permute.xlu0 %696  ;;  %v622_v11 = vpack.c.bf16 %v614_v4, %v614_v4 }
  0xde   : > { %826 = vrot.lane.b32.xlu0 %v813_v24, %s7171_s17  ;;  %v994_v5 = vsel %vm384_vm2, %v535_v1, %v697_v38 }
  0xdf   : > { %824 = vrot.lane.b32.xlu2 %v693_v12, %s7171_s17  ;;  %v1018_v12 = vsel %vm1016_vm6, %v994_v5, %v7552_v37  ;;  %v927_v37 = vunpack.c.l.b16 %v655_v30 }
  0xe0   : > { %v1035_v16 = vsel %vm1033_vm7, %v1018_v12, %v7537_v23 }
  0xe1   : > { %v7545_v32 = vpop.permute.xlu2 %778 }
  0xe5   : > { %906 = vrot.lane.b32.xlu1 %v893_v33, %s7172_s18 }
  0xe6   : > { %904 = vrot.lane.b32.xlu0 %v773_v17, %s7172_s18  ;;  %v847_v17 = vunpack.c.l.b16 %v622_v11 }
  0xe7   : > { %866 = vrot.lane.b32.xlu2 %v972_v35, %s7173_s19 }
  0xe8   : > { %v855_v29 = vpack.c.b16 %v847_v17, %v847_v17 }
  0xe9   : > { %v7555_v43 = vpop.permute.xlu2 %856 }
  0xed   : > { %984 = vrot.lane.b32.xlu1 %v972_v35, %s7175_s21 }
  0xee   : > { %946 = vrot.lane.b32.xlu0 %v933_v44, %s7174_s20 }
  0xef   : > { %944 = vrot.lane.b32.xlu2 %v813_v24, %s7174_s20  ;;  %v739_v49 = vpop.permute.xlu1 %738 }
  0xf0   : > { %v699_v50 = vpop.permute.xlu0 %698 }
  0xf1   : > { %v7577_v53 = vpop.permute.xlu2 %898  ;;  %v997_v13 = vsel %vm384_vm2, %v7473_v18, %v699_v50  ;;  %v671_v50 = vpack.c.bf16 %v663_v39, %v663_v39 }
  0xf2   : > { %v1020_v19 = vsel %vm1016_vm6, %v997_v13, %v739_v49  ;;  %v935_v49 = vpack.c.b16 %v927_v37, %v927_v37 }
  0xf3   : > { %v1037_v23 = vsel %vm1033_vm7, %v1020_v19, %v7545_v32 }
  0xf5   : > { %710 = vrot.lane.b32.xlu1 %v933_v44, %s7169_s15 }
  0xf6   : > { %708 = vrot.lane.b32.xlu0 %v813_v24, %s7169_s15  ;;  %v631_v24 = vld [vmem:[#allocation2 + $0x90] sm:$0xff] }
  0xf7   : > { %986 = vrot.lane.b32.xlu2 %v735_v55, %s7175_s21  ;;  %v819_v57 = vpop.permute.xlu1 %818  ;;  %v639_v34 = vpack.c.bf16 %v631_v24, %v631_v24 }
  0xf8   : > { %v817_v58 = vpop.permute.xlu0 %816  ;;  %v1053_v31 = vsel %vm428_vm0, %v1037_v23, %v819_v57 }
  0xf9   : > { %v977_v60 = vpop.permute.xlu2 %976  ;;  %v1051_v20 = vsel %vm428_vm0, %v1035_v16, %v817_v58  ;;  %v887_v41 = vunpack.c.l.b16 %v639_v34 }
  0xfa   : > { %v1068_v28 = vsel %vm1066_vm8, %v1051_v20, %v7555_v43 }
  0xfb   : > { %v895_v52 = vpack.c.b16 %v887_v41, %v887_v41 }
  0xfd   : > { %788 = vrot.lane.b32.xlu1 %v893_v33, %s7170_s16 }
  0xfe   : > { %750 = vrot.lane.b32.xlu0 %v735_v55, %s7168_s14 }
  0xff   : > { %748 = vrot.lane.b32.xlu2 %v972_v35, %s7168_s14  ;;  %v897_v6 = vpop.permute.xlu1 %896  ;;  %s6904_s14 = sshll.u32 %s10353_s10, 8  ;;  %s7181_s10 = smov 122  }
 0x100   : > { %v859_v7 = vpop.permute.xlu0 %858  ;;  %v1085_v33 = vsel %vm1083_vm9, %v1068_v28, %v897_v6 }
 0x101   : > { %v7595_v9 = vpop.permute.xlu2 %702  ;;  %v1070_v35 = vsel %vm1066_vm8, %v1053_v31, %v859_v7 }
 0x102   : > { %v1087_v32 = vsel %vm1083_vm9, %v1070_v35, %v7577_v53  ;;  %v967_v53 = vunpack.c.l.b16 %v671_v50  ;;  %v1003_v4 = vsel %vm384_vm2, %v7487_v40, %v7595_v9 }
 0x104   : > { %v975_v58 = vpack.c.b16 %v967_v53, %v967_v53 }
 0x105   : > { %830 = vrot.lane.b32.xlu1 %v815_v10, %s7171_s17 }
 0x106   : > { %828 = vrot.lane.b32.xlu0 %v933_v44, %s7171_s17 }
 0x107   : > { %790 = vrot.lane.b32.xlu2 %v894_v15, %s7170_s16  ;;  %v939_v22 = vpop.permute.xlu1 %938 }
 0x108   : > { %v937_v18 = vpop.permute.xlu0 %936  ;;  %v1104_v42 = vsel %vm1100_vm10, %v1087_v32, %v939_v22 }
 0x109   : > { %v781_v26 = vpop.permute.xlu2 %780  ;;  %v1102_v36 = vsel %vm1100_vm10, %v1085_v33, %v937_v18 }
 0x10a   : > { %v1118_v38 = vsel %vm406_vm4, %v1102_v36, %v977_v60 }
 0x10b   : > { %v1150_v47 = vunpack.c.l.b16 %v1118_v38 }
 0x10d   : > { %908 = vrot.lane.b32.xlu1 %v894_v15, %s7172_s18 }
 0x10e   : > { %870 = vrot.lane.b32.xlu0 %v855_v29, %s7173_s19 }
 0x10f   : > { %868 = vrot.lane.b32.xlu2 %v735_v55, %s7173_s19  ;;  %v701_v43 = vpop.permute.xlu1 %700 }
 0x110   : > { %v979_v44 = vpop.permute.xlu0 %978  ;;  %v1000_v3 = vsel %vm384_vm2, %v7476_v27, %v701_v43 }
 0x111   : > { %v1120_v45 = vsel %vm406_vm4, %v1104_v42, %v979_v44  ;;  %v823_v46 = vpop.permute.xlu2 %822 }
 0x112   : > { %v1151_v48 = vunpack.c.l.b16 %v1120_v45 }
 0x114   : > { %v1158_v54 = vpack.c.b16 %v1151_v48, %v1150_v47 }
 0x115   : > { %950 = vrot.lane.b32.xlu1 %v935_v49, %s7174_s20 }
 0x116   : > { %948 = vrot.lane.b32.xlu0 %v815_v10, %s7174_s20  ;;  %6505 = vmatmul.msk.bf16.vlgmr.msra.gmra.mxu0 %vm1177_vm11, %v1158_v54 }
 0x117   : > { %910 = vrot.lane.b32.xlu2 %v895_v52, %s7172_s18  ;;  %v743_v55 = vpop.permute.xlu1 %742  ;;  %s9440_s18 = scalar_lea.vmem %s10142_s9, %s6904_s14 }
 0x118   : > { %v741_v56 = vpop.permute.xlu0 %740  ;;  %v1024_v5 = vsel %vm1016_vm6, %v1003_v4, %v743_v55 }
 0x119   : > { %v901_v57 = vpop.permute.xlu2 %900  ;;  %v1022_v6 = vsel %vm1016_vm6, %v1000_v3, %v741_v56  ;;  %v1280_v3 = vld [vmem:[#allocation3 + $0x2] sm:$0xff] }
 0x11a   : > { %v1039_v12 = vsel %vm1033_vm7, %v1022_v6, %v781_v26  ;;  %v1288_v6 = vmax.f32 %v1280_v3, 0.0 }
 0x11e   : > { %990 = vrot.lane.b32.xlu0 %v975_v58, %s7175_s21 }
 0x11f   : > { %988 = vrot.lane.b32.xlu2 %v855_v29, %s7175_s21  ;;  %v821_v59 = vpop.permute.xlu1 %820 }
 0x120   : > { %v783_v60 = vpop.permute.xlu0 %782  ;;  %v1055_v13 = vsel %vm428_vm0, %v1039_v12, %v821_v59 }
 0x121   : > { %v943_v61 = vpop.permute.xlu2 %942  ;;  %v1041_v7 = vsel %vm1033_vm7, %v1024_v5, %v783_v60 }
 0x122   : > { %v1057_v15 = vsel %vm428_vm0, %v1041_v7, %v823_v46 }
 0x127   : > { %v863_v62 = vpop.permute.xlu1 %862 }
 0x128   : > { %v861_v1 = vpop.permute.xlu0 %860  ;;  %v1074_v27 = vsel %vm1066_vm8, %v1057_v15, %v863_v62 }
 0x129   : > { %v705_v2 = vpop.permute.xlu2 %704  ;;  %v1072_v16 = vsel %vm1066_vm8, %v1055_v13, %v861_v1 }
 0x12a   : > { %v1089_v9 = vsel %vm1083_vm9, %v1072_v16, %v901_v57  ;;  %v1006_v32 = vsel %vm384_vm2, %v7501_v51, %v705_v2  ;;  %v1256_v2 = vld [vmem:[#allocation3 + $0x1] sm:$0xff]  ;;  %v1384_v16 = vld [vmem:[#allocation3 + $0x90] sm:$0xff] }
 0x12b   : > { %v1264_v5 = vmax.f32 %v1256_v2, 0.0 }
 0x12f   : > { %v941_v8 = vpop.permute.xlu1 %940 }
 0x130   : > { %v903_v10 = vpop.permute.xlu0 %902  ;;  %v1106_v17 = vsel %vm1100_vm10, %v1089_v9, %v941_v8 }
 0x131   : > { %v747_v11 = vpop.permute.xlu2 %746  ;;  %v1091_v40 = vsel %vm1083_vm9, %v1074_v27, %v903_v10  ;;  %v1272_v10 = vpack.c.bf16 %v1264_v5, %v1264_v5 }
 0x132   : > { %v1108_v19 = vsel %vm1100_vm10, %v1091_v40, %v943_v61  ;;  %v1392_v40 = vmax.f32 %v1384_v16, 0.0  ;;  %v6923_v16 = vld [vmem:[#allocation8 + $0x80] sm:$0xff] }
 0x133   : > { %v1457_v12 = vunpack.c.l.b16 %v1272_v10 }
 0x135   : > { %v1465_v15 = vpack.c.b16 %v1457_v12, %v1457_v12 }
 0x137   : > { %v983_v20 = vpop.permute.xlu1 %982  ;;  %1473 = vrot.lane.b32.xlu1 %v1465_v15, %s7175_s21 }
 0x138   : > { %v981_v21 = vpop.permute.xlu0 %980  ;;  %v1124_v22 = vsel %vm406_vm4, %v1108_v19, %v983_v20  ;;  %v1400_v19 = vpack.c.bf16 %v1392_v40, %v1392_v40 }
 0x139   : > { %v1122_v18 = vsel %vm406_vm4, %v1106_v17, %v981_v21  ;;  %v1153_v24 = vunpack.c.l.b16 %v1124_v22  ;;  %v825_v23 = vpop.permute.xlu2 %824  ;;  %v1408_v22 = vld [vmem:[#allocation3 + $0x91] sm:$0xff] }
 0x13a   : > { %v1152_v26 = vunpack.c.l.b16 %v1122_v18  ;;  %v1624_v20 = vunpack.c.l.b16 %v1400_v19  ;;  %v1416_v18 = vmax.f32 %v1408_v22, 0.0 }
 0x13c   : > { %v1159_v28 = vpack.c.b16 %v1153_v24, %v1152_v26  ;;  %v1632_v21 = vpack.c.b16 %v1624_v20, %v1624_v20  ;;  %v1424_v26 = vpack.c.bf16 %v1416_v18, %v1416_v18 }
 0x13e   : > { %6506 = vmatmul.msk.bf16.gmra.mxu0 %vm1177_vm11, %v1159_v28 }
 0x13f   : > { %v745_v29 = vpop.permute.xlu1 %744  ;;  %1647 = vrot.lane.b32.xlu1 %v1632_v21, %s7176_s28 }
 0x140   : > { %v707_v30 = vpop.permute.xlu0 %706  ;;  %v1026_v38 = vsel %vm1016_vm6, %v1006_v32, %v745_v29 }
 0x141   : > { %v867_v31 = vpop.permute.xlu2 %866  ;;  %v1009_v39 = vsel %vm384_vm2, %v7512_v63, %v707_v30  ;;  %v1664_v30 = vunpack.c.l.b16 %v1424_v26 }
 0x142   : > { %v1028_v44 = vsel %vm1016_vm6, %v1009_v39, %v747_v11  ;;  %v1296_v11 = vpack.c.bf16 %v1288_v6, %v1288_v6 }
 0x144   : > { %v1497_v13 = vunpack.c.l.b16 %v1296_v11 }
 0x146   : > { %v1505_v27 = vpack.c.b16 %v1497_v13, %v1497_v13  ;;  %v6924_v13 = vld [vmem:[#allocation8 + $0x88] sm:$0xff] }
 0x147   : > { %v787_v33 = vpop.permute.xlu1 %786  ;;  %2091 = vmatpush.bf16.msra.mxu3 %v6924_v13 }
 0x148   : > { %v785_v34 = vpop.permute.xlu0 %784  ;;  %v1045_v46 = vsel %vm1033_vm7, %v1028_v44, %v787_v33  ;;  %1513 = vrot.lane.b32.xlu0 %v1505_v27, %s7176_s28 }
 0x149   : > { %v945_v35 = vpop.permute.xlu2 %944  ;;  %v1043_v41 = vsel %vm1033_vm7, %v1026_v38, %v785_v34  ;;  %v1672_v34 = vpack.c.b16 %v1664_v30, %v1664_v30 }
 0x14a   : > { %v1059_v47 = vsel %vm428_vm0, %v1043_v41, %v825_v23 }
 0x14b   : > { %2092 = vmatpush.bf16.msra.mxu3 %v6923_v16 }
 0x14f   : > { %v865_v36 = vpop.permute.xlu1 %864 }
 0x150   : > { %v827_v37 = vpop.permute.xlu0 %826  ;;  %v1076_v48 = vsel %vm1066_vm8, %v1059_v47, %v865_v36  ;;  %1687 = vrot.lane.b32.xlu0 %v1672_v34, %s7177_s29 }
 0x151   : > { %v987_v45 = vpop.permute.xlu2 %986  ;;  %v1061_v51 = vsel %vm428_vm0, %v1045_v46, %v827_v37 }
 0x152   : > { %v1078_v50 = vsel %vm1066_vm8, %v1061_v51, %v867_v31 }
 0x157   : > { %v907_v42 = vpop.permute.xlu1 %906 }
 0x158   : > { %v905_v43 = vpop.permute.xlu0 %904  ;;  %v1095_v63 = vsel %vm1083_vm9, %v1078_v50, %v907_v42 }
 0x159   : > { %v1093_v49 = vsel %vm1083_vm9, %v1076_v48, %v905_v43  ;;  %v749_v60 = vpop.permute.xlu2 %748 }
 0x15a   : > { %v1110_v52 = vsel %vm1100_vm10, %v1093_v49, %v945_v35  ;;  %v7714_v49 = vld [vmem:[%s10135_s2] ss:$0 sm:$0xff] }
 0x15f   : > { %v985_v54 = vpop.permute.xlu1 %984 }
 0x160   : > { %v947_v53 = vpop.permute.xlu0 %946  ;;  %v1126_v55 = vsel %vm406_vm4, %v1110_v52, %v985_v54 }
 0x161   : > { %v1112_v56 = vsel %vm1100_vm10, %v1095_v63, %v947_v53  ;;  %v1154_v57 = vunpack.c.l.b16 %v1126_v55  ;;  %v791_v4 = vpop.permute.xlu2 %790 }
 0x162   : > { %v1128_v58 = vsel %vm406_vm4, %v1112_v56, %v987_v45 }
 0x163   : > { %v1155_v59 = vunpack.c.l.b16 %v1128_v58 }
 0x165   : > { %v1160_v61 = vpack.c.b16 %v1155_v59, %v1154_v57 }
 0x167   : > { %6507 = vmatmul.msk.bf16.gmra.mxu0 %vm1177_vm11, %v1160_v61  ;;  %v711_v62 = vpop.permute.xlu1 %710 }
 0x168   : > { %v709_v1 = vpop.permute.xlu0 %708  ;;  %v1015_v31 = vsel %vm384_vm2, %v7539_v25, %v711_v62 }
 0x169   : > { %v869_v17 = vpop.permute.xlu2 %868  ;;  %v1012_v23 = vsel %vm384_vm2, %v7526_v14, %v709_v1  ;;  %vm4774_vm2 = vcmask 916480  }
 0x16a   : > { %v1030_v33 = vsel %vm1016_vm6, %v1012_v23, %v749_v60 }
 0x16f   : > { %v789_v7 = vpop.permute.xlu1 %788 }
 0x170   : > { %v751_v8 = vpop.permute.xlu0 %750  ;;  %v1047_v35 = vsel %vm1033_vm7, %v1030_v33, %v789_v7 }
 0x171   : > { %v911_v28 = vpop.permute.xlu2 %910  ;;  %v1032_v36 = vsel %vm1016_vm6, %v1015_v31, %v751_v8 }
 0x172   : > { %v1049_v14 = vsel %vm1033_vm7, %v1032_v36, %v791_v4 }
 0x177   : > { %v831_v0 = vpop.permute.xlu1 %830 }
 0x178   : > { %v829_v9 = vpop.permute.xlu0 %828  ;;  %v1065_v39 = vsel %vm428_vm0, %v1049_v14, %v831_v0 }
 0x179   : > { %v1063_v37 = vsel %vm428_vm0, %v1047_v35, %v829_v9  ;;  %v989_v43 = vpop.permute.xlu2 %988 }
 0x17a   : > { %v1080_v38 = vsel %vm1066_vm8, %v1063_v37, %v869_v17 }
 0x17f   : > { %v909_v29 = vpop.permute.xlu1 %908 }
 0x180   : > { %v871_v24 = vpop.permute.xlu0 %870  ;;  %v1097_v25 = vsel %vm1083_vm9, %v1080_v38, %v909_v29 }
 0x181   : > { %v1082_v41 = vsel %vm1066_vm8, %v1065_v39, %v871_v24 }
 0x182   : > { %v1099_v45 = vsel %vm1083_vm9, %v1082_v41, %v911_v28 }
 0x187   : > { %v951_v44 = vpop.permute.xlu1 %950 }
 0x188   : > { %v949_v32 = vpop.permute.xlu0 %948  ;;  %v1116_v47 = vsel %vm1100_vm10, %v1099_v45, %v951_v44 }
 0x189   : > { %v1114_v42 = vsel %vm1100_vm10, %v1097_v25, %v949_v32 }
 0x18a   : > { %v1130_v46 = vsel %vm406_vm4, %v1114_v42, %v989_v43 }
 0x18b   : > { %v1156_v50 = vunpack.c.l.b16 %v1130_v46 }
 0x190   : > { %v991_v48 = vpop.permute.xlu0 %990 }
 0x191   : > { %v1132_v51 = vsel %vm406_vm4, %v1116_v47, %v991_v48 }
 0x192   : > { %v1157_v63 = vunpack.c.l.b16 %v1132_v51 }
 0x193   : > { %v1203_v52 = vpop.f32.mrf.mxu0 }
 0x194   : > { %v1161_v54 = vpack.c.b16 %v1157_v63, %v1156_v50  ;;  %v1204_v53 = vadd.f32 %v7714_v49, %v1203_v52 }
 0x196   : > { %6508 = vmatmul.msk.bf16.gmra.mxu0 %vm1177_vm11, %v1161_v54  ;;  %1224 = vst.msk [vmem:[#allocation3 + $0x11] sm:$0xff] %vm406_vm4, %v1204_v53 }
 0x19b   : > { %v1205_v55 = vpop.f32.mrf.mxu0 }
 0x19c   : > { %v1206_v56 = vadd.f32 %v7714_v49, %v1205_v55 }
 0x19d   : > { %v1352_v57 = vld [vmem:[#allocation3 + $0x12] sm:$0xff] }
 0x19e   : > { %v7720_v58 = vld [vmem:[#allocation3 + $0x11] sm:$0xff]  ;;  %1225 = vst.msk [vmem:[#allocation3 + $0x21] sm:$0xff] %vm406_vm4, %v1206_v56  ;;  %v1360_v59 = vmax.f32 %v1352_v57, 0.0 }
 0x19f   : > { %v1265_v60 = vmax.f32 %v7720_v58, 0.0  ;;  %v1304_v61 = vld [vmem:[#allocation3 + $0x10] sm:$0xff] }
 0x1a0   : > { %v1368_v62 = vpack.c.bf16 %v1360_v59, %v1360_v59  ;;  %v1312_v2 = vmax.f32 %v1304_v61, 0.0 }
 0x1a1   : > { %v7724_v1 = vpack.c.bf16 %v1265_v60, %v1265_v60 }
 0x1a2   : > { %v1577_v3 = vunpack.c.l.b16 %v1368_v62  ;;  %v7727_v8 = vpack.c.bf16 %v1312_v2, %v1312_v2 }
 0x1a3   : > { %v1458_v4 = vunpack.c.l.b16 %v7724_v1 }
 0x1a4   : > { %v1585_v5 = vpack.c.b16 %v1577_v3, %v1577_v3  ;;  %v1537_v40 = vunpack.c.l.b16 %v7727_v8 }
 0x1a5   : > { %v1466_v6 = vpack.c.b16 %v1458_v4, %v1458_v4  ;;  %v1377_v7 = vld [vmem:[#allocation3 + $0x20] sm:$0xff]  ;;  %v6914_v4 = vld [vmem:[#allocation8 + $0x38] sm:$0xff] }
 0x1a6   : > { %v7729_v10 = vld [vmem:[#allocation3 + $0x21] sm:$0xff]  ;;  %1593 = vrot.lane.b32.xlu1 %v1585_v5, %s7175_s21  ;;  %v1385_v11 = vmax.f32 %v1377_v7, 0.0  ;;  %v1545_v20 = vpack.c.b16 %v1537_v40, %v1537_v40  ;;  %2027 = vmatpush.bf16.msra.mxu1 %v6914_v4  ;;  %v6918_v4 = vld [vmem:[#allocation8 + $0x58] sm:$0xff] }
 0x1a7   : > { %1475 = vrot.lane.b32.xlu2 %v1466_v6, %s7175_s21  ;;  %v1353_v12 = vld [vmem:[#allocation3 + $0x22] sm:$0xff]  ;;  %v1266_v27 = vmax.f32 %v7729_v10, 0.0 }
 0x1a8   : > { %v7733_v15 = vpack.c.bf16 %v1385_v11, %v1385_v11  ;;  %v1361_v9 = vmax.f32 %v1353_v12, 0.0 }
 0x1a9   : > { %v7738_v19 = vpack.c.bf16 %v1266_v27, %v1266_v27 }
 0x1aa   : > { %v1617_v17 = vunpack.c.l.b16 %v7733_v15  ;;  %v1369_v21 = vpack.c.bf16 %v1361_v9, %v1361_v9 }
 0x1ab   : > { %v1459_v22 = vunpack.c.l.b16 %v7738_v19 }
 0x1ac   : > { %v1625_v0 = vpack.c.b16 %v1617_v17, %v1617_v17  ;;  %v1578_v18 = vunpack.c.l.b16 %v1369_v21  ;;  %v6913_v21 = vld [vmem:[#allocation8 + $0x30] sm:$0xff] }
 0x1ad   : > { %v1467_v24 = vpack.c.b16 %v1459_v22, %v1459_v22  ;;  %2028 = vmatpush.bf16.msra.mxu1 %v6913_v21 }
 0x1ae   : > { %1633 = vrot.lane.b32.xlu0 %v1625_v0, %s7176_s28  ;;  %1515 = vrot.lane.b32.xlu1 %v1585_v5, %s7176_s28  ;;  %v1586_v26 = vpack.c.b16 %v1578_v18, %v1578_v18 }
 0x1af   : > { %1553 = vrot.lane.b32.xlu2 %v1545_v20, %s7177_s29 }
 0x1b6   : > { %1555 = vrot.lane.b32.xlu0 %v1625_v0, %s7177_s29  ;;  %1477 = vrot.lane.b32.xlu1 %v1467_v24, %s7175_s21 }
 0x1b7   : > { %1595 = vrot.lane.b32.xlu2 %v1586_v26, %s7175_s21 }
 0x1bb   : > { %v1208_v23 = vpop.f32.mrf.mxu0 }
 0x1bc   : > { %v1209_v28 = vadd.f32 %v7714_v49, %v1208_v23 }
 0x1be   : > { %1226 = vst.msk [vmem:[#allocation3 + $0x31] sm:$0xff] %vm406_vm4, %v1209_v28  ;;  %1517 = vrot.lane.b32.xlu0 %v1586_v26, %s7176_s28 }
 0x1bf   : > { %1673 = vrot.lane.b32.xlu2 %v1467_v24, %s7177_s29 }
 0x1c3   : > { %v1210_v29 = vpop.f32.mrf.mxu0 }
 0x1c4   : > { %v1211_v30 = vadd.f32 %v7714_v49, %v1210_v29  ;;  %v6912_v29 = vld [vmem:[#allocation8 + $0x28] sm:$0xff] }
 0x1c5   : > { %v1426_v31 = vld [vmem:[#allocation3 + $0x32] sm:$0xff]  ;;  %2029 = vmatpush.bf16.msra.mxu1 %v6912_v29 }
 0x1c6   : > { %v7752_v33 = vld [vmem:[#allocation3 + $0x31] sm:$0xff]  ;;  %1227 = vst.msk [vmem:[#allocation3 + $0x41] sm:$0xff] %vm406_vm4, %v1211_v30  ;;  %v1434_v35 = vmax.f32 %v1426_v31, 0.0 }
 0x1c7   : > { %v1378_v34 = vld [vmem:[#allocation3 + $0x30] sm:$0xff]  ;;  %v1410_v36 = vmax.f32 %v7752_v33, 0.0 }
 0x1c8   : > { %v1386_v37 = vmax.f32 %v1378_v34, 0.0  ;;  %v1442_v32 = vpack.c.bf16 %v1434_v35, %v1434_v35  ;;  %v6911_v35 = vld [vmem:[#allocation8 + $0x20] sm:$0xff] }
 0x1c9   : > { %v7756_v14 = vpack.c.bf16 %v1410_v36, %v1410_v36  ;;  %2030 = vmatpush.bf16.msra.mxu1 %v6911_v35 }
 0x1ca   : > { %v7758_v38 = vpack.c.bf16 %v1386_v37, %v1386_v37  ;;  %v1832_v39 = vunpack.c.l.b16 %v1442_v32 }
 0x1cb   : > { %v1658_v25 = vunpack.c.l.b16 %v7756_v14 }
 0x1cc   : > { %v1618_v41 = vunpack.c.l.b16 %v7758_v38  ;;  %v1889_v42 = vpack.c.b16 %v1832_v39, %v1578_v18  ;;  %v1587_v52 = vpack.c.b16 %v1832_v39, %v1832_v39  ;;  %v6910_v39 = vld [vmem:[#allocation8 + $0x18] sm:$0xff] }
 0x1cd   : > { %v1666_v43 = vpack.c.b16 %v1658_v25, %v1658_v25  ;;  %v1379_v45 = vld [vmem:[#allocation3 + $0x40] sm:$0xff]  ;;  %2031 = vmatpush.bf16.msra.mxu1 %v6910_v39 }
 0x1ce   : > { %v1626_v44 = vpack.c.b16 %v1618_v41, %v1618_v41  ;;  %6581 = vmatmul.msk.bf16.vlgmr.msra.gmra.mxu3 %vm406_vm4, %v1889_v42  ;;  %v1387_v46 = vmax.f32 %v1379_v45, 0.0  ;;  %v1355_v47 = vld [vmem:[#allocation3 + $0x42] sm:$0xff] }
 0x1cf   : > { %1675 = vrot.lane.b32.xlu0 %v1666_v43, %s7177_s29  ;;  %1479 = vrot.lane.b32.xlu2 %v1666_v43, %s7175_s21  ;;  %v1363_v51 = vmax.f32 %v1355_v47, 0.0  ;;  %v7770_v53 = vld [vmem:[#allocation3 + $0x41] sm:$0xff]  ;;  %v6909_v43 = vld [vmem:[#allocation8 + $0x10] sm:$0xff]  ;;  %v6922_v47 = vld [vmem:[#allocation8 + $0x78] sm:$0xff] }
 0x1d0   : > { %1635 = vrot.lane.b32.xlu1 %v1626_v44, %s7176_s28  ;;  %v7766_v48 = vpack.c.bf16 %v1387_v46, %v1387_v46  ;;  %v1268_v56 = vmax.f32 %v7770_v53, 0.0  ;;  %v6908_v46 = vld [vmem:[#allocation8 + $0x8] sm:$0xff]  ;;  %2056 = vmatpush.bf16.msra.mxu2 %v6922_v47  ;;  %v1432_v47 = vld [vmem:[#allocation3 + $0x92] sm:$0xff] }
 0x1d1   : > { %v1371_v54 = vpack.c.bf16 %v1363_v51, %v1363_v51  ;;  %2032 = vmatpush.bf16.msra.mxu1 %v6909_v43  ;;  %v1474_v51 = vpop.permute.xlu1 %1473 }
 0x1d2   : > { %v1619_v50 = vunpack.c.l.b16 %v7766_v48  ;;  %v7775_v59 = vpack.c.bf16 %v1268_v56, %v1268_v56  ;;  %v6920_v56 = vld [vmem:[#allocation8 + $0x68] sm:$0xff] }
 0x1d3   : > { %v1580_v55 = vunpack.c.l.b16 %v1371_v54 }
 0x1d4   : > { %v1627_v63 = vpack.c.b16 %v1619_v50, %v1619_v50  ;;  %v1461_v60 = vunpack.c.l.b16 %v7775_v59 }
 0x1d5   : > { %v1588_v57 = vpack.c.b16 %v1580_v55, %v1580_v55  ;;  %2033 = vmatpush.bf16.msra.mxu1 %v6908_v46 }
 0x1d6   : > { %v1469_v2 = vpack.c.b16 %v1461_v60, %v1461_v60 }
 0x1d7   : > { %1637 = vrot.lane.b32.xlu0 %v1627_v63, %s7176_s28  ;;  %1557 = vrot.lane.b32.xlu2 %v1626_v44, %s7177_s29 }
 0x1d8   : > { %1597 = vrot.lane.b32.xlu1 %v1587_v52, %s7175_s21 }
 0x1df   : > { %1559 = vrot.lane.b32.xlu0 %v1627_v63, %s7177_s29  ;;  %1599 = vrot.lane.b32.xlu2 %v1588_v57, %s7175_s21  ;;  %v6907_v63 = vld [vmem:[#allocation8] sm:$0xff] }
 0x1e0   : > { %1519 = vrot.lane.b32.xlu1 %v1587_v52, %s7176_s28  ;;  %v6921_v52 = vld [vmem:[#allocation8 + $0x70] sm:$0xff]  ;;  %2034 = vmatpush.bf16.msra.mxu1 %v6907_v63 }
 0x1e1   : > { %2057 = vmatpush.bf16.msra.mxu2 %v6921_v52 }
 0x1e4   : > { %v1213_v61 = vpop.f32.mrf.mxu0 }
 0x1e5   : > { %v1214_v62 = vadd.f32 %v7714_v49, %v1213_v61  ;;  %2058 = vmatpush.bf16.msra.mxu2 %v6920_v56 }
 0x1e7   : > { %1521 = vrot.lane.b32.xlu0 %v1588_v57, %s7176_s28  ;;  %1228 = vst.msk [vmem:[#allocation3 + $0x51] sm:$0xff] %vm406_vm4, %v1214_v62  ;;  %1677 = vrot.lane.b32.xlu2 %v1469_v2, %s7177_s29  ;;  %v7827_v57 = vpop.permute.xlu1 %1647  ;;  %v6919_v62 = vld [vmem:[#allocation8 + $0x60] sm:$0xff] }
 0x1e8   : > { %1481 = vrot.lane.b32.xlu1 %v1469_v2, %s7175_s21  ;;  %v1232_v2 = vld [vmem:[#allocation3] sm:$0xff] }
 0x1e9   : > { %2059 = vmatpush.bf16.msra.mxu2 %v6919_v62 }
 0x1ec   : > { %v1215_v3 = vpop.f32.mrf.mxu0 }
 0x1ed   : > { %v1216_v5 = vadd.f32 %v7714_v49, %v1215_v3  ;;  %2060 = vmatpush.bf16.msra.mxu2 %v6918_v4 }
 0x1ee   : > { %v1428_v6 = vld [vmem:[#allocation3 + $0x52] sm:$0xff] }
 0x1ef   : > { %v7787_v7 = vld [vmem:[#allocation3 + $0x51] sm:$0xff]  ;;  %1229 = vst.msk [vmem:[#allocation3 + $0x61] sm:$0xff] %vm406_vm4, %v1216_v5  ;;  %v1436_v12 = vmax.f32 %v1428_v6, 0.0  ;;  %v1240_v5 = vmax.f32 %v1232_v2, 0.0 }
 0x1f0   : > { %v1380_v11 = vld [vmem:[#allocation3 + $0x50] sm:$0xff]  ;;  %v1412_v13 = vmax.f32 %v7787_v7, 0.0 }
 0x1f1   : > { %v1388_v27 = vmax.f32 %v1380_v11, 0.0  ;;  %v1444_v16 = vpack.c.bf16 %v1436_v12, %v1436_v12  ;;  %v6917_v12 = vld [vmem:[#allocation8 + $0x50] sm:$0xff] }
 0x1f2   : > { %v7791_v40 = vpack.c.bf16 %v1412_v13, %v1412_v13  ;;  %2061 = vmatpush.bf16.msra.mxu2 %v6917_v12 }
 0x1f3   : > { %v7793_v9 = vpack.c.bf16 %v1388_v27, %v1388_v27  ;;  %v1838_v17 = vunpack.c.l.b16 %v1444_v16 }
 0x1f4   : > { %v1660_v0 = vunpack.c.l.b16 %v7791_v40 }
 0x1f5   : > { %v1620_v20 = vunpack.c.l.b16 %v7793_v9  ;;  %v1892_v22 = vpack.c.b16 %v1838_v17, %v1580_v55  ;;  %v1589_v37 = vpack.c.b16 %v1838_v17, %v1838_v17  ;;  %v1514_v55 = vpop.permute.xlu0 %1513 }
 0x1f6   : > { %v1668_v18 = vpack.c.b16 %v1660_v0, %v1660_v0  ;;  %v1381_v26 = vld [vmem:[#allocation3 + $0x60] sm:$0xff] }
 0x1f7   : > { %v1628_v24 = vpack.c.b16 %v1620_v20, %v1620_v20  ;;  %6582 = vmatmul.msk.bf16.gmra.mxu3 %vm406_vm4, %v1892_v22  ;;  %v1389_v23 = vmax.f32 %v1381_v26, 0.0  ;;  %v1357_v28 = vld [vmem:[#allocation3 + $0x62] sm:$0xff]  ;;  %v1248_v20 = vpack.c.bf16 %v1240_v5, %v1240_v5 }
 0x1f8   : > { %1679 = vrot.lane.b32.xlu0 %v1668_v18, %s7177_s29  ;;  %1483 = vrot.lane.b32.xlu2 %v1668_v18, %s7175_s21  ;;  %v1365_v31 = vmax.f32 %v1357_v28, 0.0  ;;  %v7805_v25 = vld [vmem:[#allocation3 + $0x61] sm:$0xff] }
 0x1f9   : > { %1639 = vrot.lane.b32.xlu1 %v1628_v24, %s7176_s28  ;;  %v7801_v30 = vpack.c.bf16 %v1389_v23, %v1389_v23  ;;  %v1413_v42 = vmax.f32 %v7805_v25, 0.0 }
 0x1fa   : > { %v1373_v32 = vpack.c.bf16 %v1365_v31, %v1365_v31 }
 0x1fb   : > { %v1621_v34 = vunpack.c.l.b16 %v7801_v30  ;;  %v7816_v45 = vpack.c.bf16 %v1413_v42, %v1413_v42 }
 0x1fc   : > { %v7809_v41 = vunpack.c.l.b16 %v1373_v32  ;;  %v6915_v32 = vld [vmem:[#allocation8 + $0x40] sm:$0xff] }
 0x1fd   : > { %v1629_v36 = vpack.c.b16 %v1621_v34, %v1621_v34  ;;  %v1661_v50 = vunpack.c.l.b16 %v7816_v45  ;;  %v7831_v3 = vpop.permute.xlu0 %1687 }
 0x1fe   : > { %v7814_v44 = vpack.c.b16 %v7809_v41, %v7809_v41 }
 0x1ff   : > { %v7823_v54 = vpack.c.b16 %v1661_v50, %v1661_v50 }
 0x200   : > { %1641 = vrot.lane.b32.xlu0 %v1629_v36, %s7176_s28  ;;  %1561 = vrot.lane.b32.xlu2 %v1628_v24, %s7177_s29  ;;  %v6916_v24 = vld [vmem:[#allocation8 + $0x48] sm:$0xff] }
 0x201   : > { %1601 = vrot.lane.b32.xlu1 %v1589_v37, %s7175_s21  ;;  %v1476_v6 = vpop.permute.xlu2 %1475  ;;  %2062 = vmatpush.bf16.msra.mxu2 %v6916_v24 }
 0x205   : > { %2063 = vmatpush.bf16.msra.mxu2 %v6915_v32 }
 0x208   : > { %1563 = vrot.lane.b32.xlu0 %v1629_v36, %s7177_s29  ;;  %1603 = vrot.lane.b32.xlu2 %v7814_v44, %s7175_s21 }
 0x209   : > { %1523 = vrot.lane.b32.xlu1 %v1589_v37, %s7176_s28  ;;  %v1554_v42 = vpop.permute.xlu2 %1553 }
 0x210   : > { %1681 = vrot.lane.b32.xlu2 %v7823_v54, %s7177_s29 }
 0x211   : > { %v1596_v24 = vpop.permute.xlu2 %1595 }
 0x213   : > { %v1218_v60 = vpop.f32.mrf.mxu0 }
 0x214   : > { %v1219_v61 = vadd.f32 %v7714_v49, %v1218_v60  ;;  %v1440_v60 = vmax.f32 %v1432_v47, 0.0 }
 0x216   : > { %1230 = vst.msk [vmem:[#allocation3 + $0x71] sm:$0xff] %vm406_vm4, %v1219_v61 }
 0x218   : > { %v7833_v13 = vpop.permute.xlu1 %1593 }
 0x21b   : > { %v1220_v11 = vpop.f32.mrf.mxu0 }
 0x21c   : > { %v1221_v27 = vadd.f32 %v7714_v49, %v1220_v11  ;;  %v1691_v49 = vsel %vm406_vm4, %v1248_v20, %v1474_v51 }
 0x21d   : > { %v1430_v16 = vld [vmem:[#allocation3 + $0x72] sm:$0xff]  ;;  %v1715_v39 = vsel %vm1713_vm13, %v1691_v49, %v1514_v55 }
 0x21e   : > { %v7836_v17 = vld [vmem:[#allocation3 + $0x71] sm:$0xff]  ;;  %1231 = vst.msk [vmem:[#allocation3 + $0x81] sm:$0xff] %vm406_vm4, %v1221_v27  ;;  %v1438_v21 = vmax.f32 %v1430_v16, 0.0  ;;  %v1732_v55 = vsel %vm1730_vm14, %v1715_v39, %v1554_v42  ;;  %v1448_v27 = vpack.c.bf16 %v1440_v60, %v1440_v60  ;;  %v1752_v39 = vsel %vm406_vm4, %v7738_v19, %v1596_v24 }
 0x21f   : > { %v1382_v0 = vld [vmem:[#allocation3 + $0x70] sm:$0xff]  ;;  %v1414_v22 = vmax.f32 %v7836_v17, 0.0  ;;  %v1827_v12 = vunpack.c.l.b16 %v1732_v55 }
 0x220   : > { %v1390_v18 = vmax.f32 %v1382_v0, 0.0  ;;  %v1446_v26 = vpack.c.bf16 %v1438_v21, %v1438_v21  ;;  %v7844_v29 = vpop.permute.xlu0 %1633  ;;  %v1516_v51 = vpop.permute.xlu1 %1515  ;;  %v1850_v21 = vunpack.c.l.b16 %v1448_v27 }
 0x221   : > { %v7840_v23 = vpack.c.bf16 %v1414_v22, %v1414_v22 }
 0x222   : > { %v7842_v28 = vpack.c.bf16 %v1390_v18, %v1390_v18  ;;  %v1844_v31 = vunpack.c.l.b16 %v1446_v26 }
 0x223   : > { %v1662_v34 = vunpack.c.l.b16 %v7840_v23 }
 0x224   : > { %v1622_v35 = vunpack.c.l.b16 %v7842_v28  ;;  %v1895_v36 = vpack.c.b16 %v1844_v31, %v7809_v41  ;;  %v1694_v41 = vsel %vm406_vm4, %v7727_v8, %v1476_v6 }
 0x225   : > { %v1670_v37 = vpack.c.b16 %v1662_v34, %v1662_v34  ;;  %v1359_v46 = vld [vmem:[#allocation3 + $0x82] sm:$0xff]  ;;  %v1717_v62 = vsel %vm1713_vm13, %v1694_v41, %v1516_v51  ;;  %v1591_v34 = vpack.c.b16 %v1844_v31, %v1844_v31 }
 0x226   : > { %v1630_v43 = vpack.c.b16 %v1622_v35, %v1622_v35  ;;  %v1383_v50 = vld [vmem:[#allocation3 + $0x80] sm:$0xff]  ;;  %6583 = vmatmul.msk.bf16.gmra.mxu3 %vm406_vm4, %v1895_v36  ;;  %v1367_v63 = vmax.f32 %v1359_v46, 0.0  ;;  %v1674_v36 = vpop.permute.xlu2 %1673 }
 0x227   : > { %1683 = vrot.lane.b32.xlu0 %v1670_v37, %s7177_s29  ;;  %v7853_v52 = vld [vmem:[#allocation3 + $0x81] sm:$0xff]  ;;  %1487 = vrot.lane.b32.xlu2 %v1670_v37, %s7175_s21  ;;  %v1391_v61 = vmax.f32 %v1383_v50, 0.0  ;;  %v1749_v37 = vsel %vm406_vm4, %v7724_v1, %v7833_v13 }
 0x228   : > { %1643 = vrot.lane.b32.xlu1 %v1630_v43, %s7176_s28  ;;  %v1375_v56 = vpack.c.bf16 %v1367_v63, %v1367_v63  ;;  %v1556_v2 = vpop.permute.xlu0 %1555  ;;  %v1415_v4 = vmax.f32 %v7853_v52, 0.0  ;;  %v1772_v32 = vsel %vm1713_vm13, %v1749_v37, %v7844_v29 }
 0x229   : > { %v1734_v5 = vsel %vm1730_vm14, %v1717_v62, %v1556_v2  ;;  %v1399_v16 = vpack.c.bf16 %v1391_v61, %v1391_v61  ;;  %v1788_v46 = vsel %vm1730_vm14, %v1772_v32, %v1674_v36 }
 0x22a   : > { %v1584_v11 = vunpack.c.l.b16 %v1375_v56  ;;  %v1830_v8 = vunpack.c.l.b16 %v1734_v5  ;;  %v7863_v20 = vpack.c.bf16 %v1415_v4, %v1415_v4  ;;  %v1828_v50 = vunpack.c.l.b16 %v1788_v46 }
 0x22b   : > { %v1623_v22 = vunpack.c.l.b16 %v1399_v16 }
 0x22c   : > { %v1592_v6 = vpack.c.b16 %v1584_v11, %v1584_v11  ;;  %v1887_v0 = vpack.c.b16 %v1830_v8, %v1827_v12  ;;  %v1663_v18 = vunpack.c.l.b16 %v7863_v20  ;;  %v1898_v26 = vpack.c.b16 %v1850_v21, %v1584_v11 }
 0x22d   : > { %v1631_v49 = vpack.c.b16 %v1623_v22, %v1623_v22 }
 0x22e   : > { %2035 = vmatmul.bf16.vlgmr.msra.gmra.mxu1 %v1887_v0  ;;  %v1671_v35 = vpack.c.b16 %v1663_v18, %v1663_v18  ;;  %v1480_v13 = vpop.permute.xlu2 %1479 }
 0x22f   : > { %1525 = vrot.lane.b32.xlu0 %v7814_v44, %s7176_s28  ;;  %1607 = vrot.lane.b32.xlu2 %v1592_v6, %s7175_s21  ;;  %v1700_v60 = vsel %vm406_vm4, %v7758_v38, %v1480_v13 }
 0x230   : > { %1485 = vrot.lane.b32.xlu1 %v7823_v54, %s7175_s21  ;;  %v1518_v44 = vpop.permute.xlu0 %1517  ;;  %v1478_v54 = vpop.permute.xlu1 %1477 }
 0x236   : > { %6584 = vmatmul.msk.bf16.gmra.mxu3 %vm406_vm4, %v1898_v26  ;;  %v1558_v19 = vpop.permute.xlu2 %1557 }
 0x237   : > { %1645 = vrot.lane.b32.xlu0 %v1631_v49, %s7176_s28  ;;  %1685 = vrot.lane.b32.xlu2 %v1671_v35, %s7177_s29 }
 0x238   : > { %1605 = vrot.lane.b32.xlu1 %v1591_v34, %s7175_s21 }
 0x23e   : > { %v1600_v8 = vpop.permute.xlu2 %1599 }
 0x23f   : > { %1567 = vrot.lane.b32.xlu0 %v1631_v49, %s7177_s29  ;;  %1565 = vrot.lane.b32.xlu2 %v1630_v43, %s7177_s29  ;;  %v1697_v43 = vsel %vm406_vm4, %v7733_v15, %v1478_v54  ;;  %v1758_v21 = vsel %vm406_vm4, %v7775_v59, %v1600_v8  ;;  %v6930_v8 = vld [vmem:[#allocation10 + $0x28] sm:$0xff] }
 0x240   : > { %1527 = vrot.lane.b32.xlu1 %v1591_v34, %s7176_s28  ;;  %v1719_v55 = vsel %vm1713_vm13, %v1697_v43, %v1518_v44 }
 0x241   : > { %v1676_v31 = vpop.permute.xlu0 %1675  ;;  %v1736_v61 = vsel %vm1730_vm14, %v1719_v55, %v1558_v19 }
 0x242   : > { %v1636_v42 = vpop.permute.xlu1 %1635  ;;  %v1833_v5 = vunpack.c.l.b16 %v1736_v61 }
 0x243   : > { %v1774_v47 = vsel %vm1713_vm13, %v1752_v39, %v1636_v42 }
 0x244   : > { %v1790_v1 = vsel %vm1730_vm14, %v1774_v47, %v1676_v31 }
 0x245   : > { %v1831_v29 = vunpack.c.l.b16 %v1790_v1 }
 0x246   : > { %v1678_v27 = vpop.permute.xlu2 %1677 }
 0x247   : > { %v1888_v51 = vpack.c.b16 %v1831_v29, %v1828_v50 }
 0x249   : > { %2064 = vmatmul.bf16.vlgmr.msra.gmra.mxu2 %v1888_v51  ;;  %v1638_v63 = vpop.permute.xlu0 %1637 }
 0x24a   : > { %v1598_v41 = vpop.permute.xlu1 %1597 }
 0x24b   : > { %v1755_v16 = vsel %vm406_vm4, %v7756_v14, %v1598_v41  ;;  %v6932_v41 = vld [vmem:[#allocation10 + $0x38] sm:$0xff] }
 0x24c   : > { %v1776_v38 = vsel %vm1713_vm13, %v1755_v16, %v1638_v63  ;;  %2190 = vmatpush.bf16.msrb.mxu3 %v6932_v41 }
 0x24d   : > { %v1792_v18 = vsel %vm1730_vm14, %v1776_v38, %v1678_v27 }
 0x24e   : > { %v1834_v34 = vunpack.c.l.b16 %v1792_v18 }
 0x251   : > { %v1560_v56 = vpop.permute.xlu0 %1559 }
 0x252   : > { %v1520_v62 = vpop.permute.xlu1 %1519  ;;  %v1484_v26 = vpop.permute.xlu2 %1483 }
 0x253   : > { %v1721_v2 = vsel %vm1713_vm13, %v1700_v60, %v1520_v62  ;;  %v1706_v31 = vsel %vm406_vm4, %v7793_v9, %v1484_v26  ;;  %v6931_v60 = vld [vmem:[#allocation10 + $0x30] sm:$0xff] }
 0x254   : > { %v1738_v4 = vsel %vm1730_vm14, %v1721_v2, %v1560_v56  ;;  %2191 = vmatpush.bf16.msrb.mxu3 %v6931_v60 }
 0x255   : > { %v1836_v11 = vunpack.c.l.b16 %v1738_v4 }
 0x257   : > { %v1890_v12 = vpack.c.b16 %v1836_v11, %v1833_v5 }
 0x258   : > { %2192 = vmatpush.bf16.msrb.mxu3 %v6930_v8  ;;  %v2283_v8 = vld [vmem:[#allocation3 + $0x2] sm:$0xff] }
 0x259   : > { %2040 = vmatmul.bf16.gmra.mxu1 %v1890_v12  ;;  %v1522_v15 = vpop.permute.xlu0 %1521 }
 0x25a   : > { %v1482_v6 = vpop.permute.xlu1 %1481  ;;  %v1562_v37 = vpop.permute.xlu2 %1561 }
 0x25b   : > { %v1703_v36 = vsel %vm406_vm4, %v7766_v48, %v1482_v6 }
 0x25c   : > { %v1723_v59 = vsel %vm1713_vm13, %v1703_v36, %v1522_v15  ;;  %v6929_v15 = vld [vmem:[#allocation10 + $0x20] sm:$0xff] }
 0x25d   : > { %v1740_v39 = vsel %vm1730_vm14, %v1723_v59, %v1562_v37  ;;  %2193 = vmatpush.bf16.msrb.mxu3 %v6929_v15  ;;  %v2259_v15 = vld [vmem:[#allocation3 + $0x1] sm:$0xff] }
 0x25e   : > { %v1839_v1 = vunpack.c.l.b16 %v1740_v39  ;;  %v6925_v39 = vld [vmem:[#allocation10] sm:$0xff] }
 0x262   : > { %v1604_v29 = vpop.permute.xlu2 %1603 }
 0x263   : > { %v1764_v55 = vsel %vm406_vm4, %v7816_v45, %v1604_v29 }
 0x26a   : > { %v1680_v0 = vpop.permute.xlu0 %1679  ;;  %v1682_v48 = vpop.permute.xlu2 %1681 }
 0x26b   : > { %v1640_v22 = vpop.permute.xlu1 %1639 }
 0x26c   : > { %v1778_v24 = vsel %vm1713_vm13, %v1758_v21, %v1640_v22 }
 0x26d   : > { %v1794_v49 = vsel %vm1730_vm14, %v1778_v24, %v1680_v0  ;;  %v6928_v24 = vld [vmem:[#allocation10 + $0x18] sm:$0xff] }
 0x26e   : > { %v1837_v35 = vunpack.c.l.b16 %v1794_v49  ;;  %2194 = vmatpush.bf16.msrb.mxu3 %v6928_v24  ;;  %v2410_v24 = vld [vmem:[#allocation3 + $0x91] sm:$0xff] }
 0x270   : > { %v1891_v44 = vpack.c.b16 %v1837_v35, %v1834_v34 }
 0x272   : > { %2069 = vmatmul.bf16.gmra.mxu2 %v1891_v44  ;;  %v1642_v54 = vpop.permute.xlu0 %1641 }
 0x273   : > { %v1602_v14 = vpop.permute.xlu1 %1601 }
 0x274   : > { %v1761_v63 = vsel %vm406_vm4, %v7791_v40, %v1602_v14 }
 0x275   : > { %v1780_v9 = vsel %vm1713_vm13, %v1761_v63, %v1642_v54 }
 0x276   : > { %v1796_v56 = vsel %vm1730_vm14, %v1780_v9, %v1682_v48 }
 0x277   : > { %v1840_v4 = vunpack.c.l.b16 %v1796_v56 }
 0x27a   : > { %v1564_v32 = vpop.permute.xlu0 %1563 }
 0x27b   : > { %v1524_v42 = vpop.permute.xlu1 %1523 }
 0x27c   : > { %v1725_v46 = vsel %vm1713_vm13, %v1706_v31, %v1524_v42 }
 0x27d   : > { %v1742_v47 = vsel %vm1730_vm14, %v1725_v46, %v1564_v32  ;;  %v6926_v32 = vld [vmem:[#allocation10 + $0x8] sm:$0xff]  ;;  %v2094_v46 = vpop.f32.mrf.mxu3 }
 0x27e   : > { %v1842_v13 = vunpack.c.l.b16 %v1742_v47 }
 0x280   : > { %v1893_v50 = vpack.c.b16 %v1842_v13, %v1839_v1 }
 0x281   : > { %v1488_v51 = vpop.permute.xlu2 %1487 }
 0x282   : > { %2045 = vmatmul.bf16.gmra.mxu1 %v1893_v50 }
 0x285   : > { %v2096_v48 = vpop.f32.mrf.mxu3 }
 0x289   : > { %v1608_v2 = vpop.permute.xlu2 %1607 }
 0x28a   : > { %v1770_v45 = vsel %vm406_vm4, %v7863_v20, %v1608_v2 }
 0x28b   : > { %v1786_v27 = vsel %vm1713_vm13, %v1770_v45, %v7827_v57  ;;  %v2291_v45 = vmax.f32 %v2283_v8, 0.0 }
 0x28c   : > { %v1802_v21 = vsel %vm1730_vm14, %v1786_v27, %v7831_v3  ;;  %v1712_v3 = vsel %vm406_vm4, %v7842_v28, %v1488_v51 }
 0x28d   : > { %v1849_v49 = vunpack.c.l.b16 %v1802_v21  ;;  %v2299_v27 = vpack.c.bf16 %v2291_v45, %v2291_v45 }
 0x291   : > { %v1686_v6 = vpop.permute.xlu2 %1685 }
 0x299   : > { %v1684_v43 = vpop.permute.xlu0 %1683  ;;  %v1566_v35 = vpop.permute.xlu2 %1565 }
 0x29a   : > { %v1644_v19 = vpop.permute.xlu1 %1643 }
 0x29b   : > { %v1782_v61 = vsel %vm1713_vm13, %v1764_v55, %v1644_v19  ;;  %v2099_v55 = vpop.f32.mrf.mxu3 }
 0x29c   : > { %v1798_v62 = vsel %vm1730_vm14, %v1782_v61, %v1684_v43 }
 0x29d   : > { %v1843_v40 = vunpack.c.l.b16 %v1798_v62 }
 0x29f   : > { %v1894_v5 = vpack.c.b16 %v1843_v40, %v1840_v4 }
 0x2a1   : > { %2074 = vmatmul.bf16.gmra.mxu2 %v1894_v5  ;;  %v1526_v11 = vpop.permute.xlu0 %1525 }
 0x2a2   : > { %v1486_v12 = vpop.permute.xlu1 %1485 }
 0x2a3   : > { %v1709_v22 = vsel %vm406_vm4, %v7801_v30, %v1486_v12  ;;  %v2101_v4 = vpop.f32.mrf.mxu3 }
 0x2a4   : > { %v1727_v57 = vsel %vm1713_vm13, %v1709_v22, %v1526_v11 }
 0x2a5   : > { %v1744_v30 = vsel %vm1730_vm14, %v1727_v57, %v1566_v35  ;;  %v2418_v57 = vmax.f32 %v2410_v24, 0.0 }
 0x2a6   : > { %v1845_v37 = vunpack.c.l.b16 %v1744_v30 }
 0x2a7   : > { %v2426_v35 = vpack.c.bf16 %v2418_v57, %v2418_v57 }
 0x2a9   : > { %v1646_v16 = vpop.permute.xlu0 %1645 }
 0x2aa   : > { %v1606_v38 = vpop.permute.xlu1 %1605 }
 0x2ab   : > { %v1767_v0 = vsel %vm406_vm4, %v7840_v23, %v1606_v38  ;;  %v6927_v23 = vld [vmem:[#allocation10 + $0x10] sm:$0xff]  ;;  %v2036_v42 = vpop.f32.mrf.mxu1  ;;  %v2499_v38 = vunpack.c.l.b16 %v2299_v27  ;;  %v2104_v21 = vpop.f32.mrf.mxu3 }
 0x2ac   : > { %v1784_v18 = vsel %vm1713_vm13, %v1767_v0, %v1646_v16  ;;  %2195 = vmatpush.bf16.msrb.mxu3 %v6927_v23  ;;  %v2666_v23 = vunpack.c.l.b16 %v2426_v35 }
 0x2ad   : > { %v1800_v20 = vsel %vm1730_vm14, %v1784_v18, %v1686_v6  ;;  %v2267_v6 = vmax.f32 %v2259_v15, 0.0  ;;  %v2507_v18 = vpack.c.b16 %v2499_v38, %v2499_v38  ;;  %v5216_v38 = vld [vmem:[#allocation4 + $0x91] sm:$0xff] }
 0x2ae   : > { %v1846_v26 = vunpack.c.l.b16 %v1800_v20  ;;  %v2674_v30 = vpack.c.b16 %v2666_v23, %v2666_v23 }
 0x2af   : > { %v2275_v16 = vpack.c.bf16 %v2267_v6, %v2267_v6  ;;  %2515 = vrot.lane.b32.xlu0 %v2507_v18, %s7176_s28 }
 0x2b0   : > { %v1897_v34 = vpack.c.b16 %v1849_v49, %v1846_v26  ;;  %2196 = vmatpush.bf16.msrb.mxu3 %v6926_v32  ;;  %v2386_v26 = vld [vmem:[#allocation3 + $0x90] sm:$0xff] }
 0x2b1   : > { %v1568_v44 = vpop.permute.xlu0 %1567  ;;  %v2459_v0 = vunpack.c.l.b16 %v2275_v16 }
 0x2b2   : > { %v1528_v54 = vpop.permute.xlu1 %1527  ;;  %2079 = vmatmul.bf16.gmra.mxu2 %v1897_v34  ;;  %v2394_v34 = vmax.f32 %v2386_v26, 0.0 }
 0x2b3   : > { %v1729_v14 = vsel %vm1713_vm13, %v1712_v3, %v1528_v54  ;;  %v2038_v1 = vpop.f32.mrf.mxu1  ;;  %v2467_v20 = vpack.c.b16 %v2459_v0, %v2459_v0  ;;  %v5224_v0 = vpack.c.bf16 %v5216_v38, %v5216_v38 }
 0x2b4   : > { %v1746_v36 = vsel %vm1730_vm14, %v1729_v14, %v1568_v44  ;;  %2197 = vmatpush.bf16.msrb.mxu3 %v6925_v39  ;;  %v2402_v44 = vpack.c.bf16 %v2394_v34, %v2394_v34 }
 0x2b5   : > { %v1848_v59 = vunpack.c.l.b16 %v1746_v36  ;;  %2475 = vrot.lane.b32.xlu1 %v2467_v20, %s7175_s21  ;;  %v2106_v36 = vpop.f32.mrf.mxu3 }
 0x2b6   : > { %v2626_v3 = vunpack.c.l.b16 %v2402_v44 }
 0x2b7   : > { %v1896_v31 = vpack.c.b16 %v1848_v59, %v1845_v37  ;;  %2689 = vrot.lane.b32.xlu0 %v2674_v30, %s7177_s29 }
 0x2b8   : > { %v2634_v14 = vpack.c.b16 %v2626_v3, %v2626_v3 }
 0x2b9   : > { %2050 = vmatmul.bf16.gmra.mxu1 %v1896_v31 }
 0x2bd   : > { %2649 = vrot.lane.b32.xlu1 %v2634_v14, %s7176_s28 }
 0x2bf   : > { %3517 = vrot.lane.b32.xlu0 %v2507_v18, %s7176_s28 }
 0x2c5   : > { %3477 = vrot.lane.b32.xlu1 %v2467_v20, %s7175_s21 }
 0x2c7   : > { %3691 = vrot.lane.b32.xlu0 %v2674_v30, %s7177_s29 }
 0x2cc   : > { %v2065_v28 = vpop.f32.mrf.mxu2 }
 0x2cd   : > { %v2066_v47 = vadd.f32 %v2065_v28, %v2036_v42  ;;  %3651 = vrot.lane.b32.xlu1 %v2634_v14, %s7176_s28 }
 0x2cf   : > { %v2095_v50 = vadd.f32 %v2094_v46, %v2066_v47 }
 0x2d1   : > { %v2114_v63 = vmax.f32 %v2095_v50, 0.0 }
 0x2d4   : > { %v2067_v13 = vpop.f32.mrf.mxu2 }
 0x2d5   : > { %v2068_v29 = vadd.f32 %v2067_v13, %v2038_v1  ;;  %v2109_v1 = vpop.f32.mrf.mxu3 }
 0x2d6   : > { %v2041_v43 = vpop.f32.mrf.mxu1 }
 0x2d7   : > { %v2097_v51 = vadd.f32 %v2096_v48, %v2068_v29  ;;  %v4276_v48 = vld [vmem:[#allocation7 + $0x1] sm:$0xff] }
 0x2d9   : > { %v2115_v41 = vmax.f32 %v2097_v51, 0.0  ;;  %v4260_v51 = vld [vmem:[#allocation6 + $0x1] sm:$0xff] }
 0x2db   : > { %v2122_v9 = vpack.c.bf16 %v2115_v41, %v2114_v63  ;;  %v4284_v41 = vpack.c.bf16 %v4276_v48, %v4276_v48 }
 0x2dd   : > { %2198 = vmatmul.bf16.vlgmr.msrb.gmra.mxu3 %v2122_v9  ;;  %v7946_v9 = vpack.c.bf16 %v4260_v51, %v4260_v51 }
 0x2de   : > { %v2043_v60 = vpop.f32.mrf.mxu1 }
 0x2df   : > { %10179 = vst [vmem:[#allocation15_spill] sm:$0xff] %v7946_v9 }
 0x2f5   : > { %v2070_v19 = vpop.f32.mrf.mxu2 }
 0x2f6   : > { %v2071_v56 = vadd.f32 %v2070_v19, %v2041_v43  ;;  %v2111_v19 = vpop.f32.mrf.mxu3 }
 0x2f8   : > { %v2100_v62 = vadd.f32 %v2099_v55, %v2071_v56  ;;  %v4436_v56 = vunpack.c.l.b16 %v4284_v41 }
 0x2fa   : > { %v2116_v5 = vmax.f32 %v2100_v62, 0.0  ;;  %v4444_v62 = vpack.c.b16 %v4436_v56, %v4436_v56 }
 0x2fc   : > { %4452 = vrot.lane.b32.xlu0 %v4444_v62, %s7175_s21 }
 0x2fd   : > { %v2072_v61 = vpop.f32.mrf.mxu2 }
 0x2fe   : > { %v2073_v2 = vadd.f32 %v2072_v61, %v2043_v60  ;;  %v4396_v60 = vunpack.c.l.b16 %v7946_v9 }
 0x2ff   : > { %v2046_v22 = vpop.f32.mrf.mxu1 }
 0x300   : > { %v2102_v40 = vadd.f32 %v2101_v4, %v2073_v2  ;;  %v4404_v2 = vpack.c.b16 %v4396_v60, %v4396_v60 }
 0x302   : > { %v2117_v11 = vmax.f32 %v2102_v40, 0.0  ;;  %4412 = vrot.lane.b32.xlu1 %v4404_v2, %s7171_s17 }
 0x304   : > { %v2123_v12 = vpack.c.bf16 %v2117_v11, %v2116_v5  ;;  %v5199_v11 = vld [vmem:[#allocation5 + $0x90] sm:$0xff]  ;;  %4871 = vrot.lane.b32.xlu0 %v4444_v62, %s7171_s17 }
 0x305   : > { %v5207_v8 = vpack.c.bf16 %v5199_v11, %v5199_v11 }
 0x306   : > { %2203 = vmatmul.bf16.gmra.mxu3 %v2123_v12  ;;  %v4823_v12 = vld [vmem:[#allocation6 + $0x2] sm:$0xff] }
 0x307   : > { %v2048_v37 = vpop.f32.mrf.mxu1  ;;  %v4831_v15 = vpack.c.bf16 %v4823_v12, %v4823_v12  ;;  %v5336_v45 = vunpack.c.l.b16 %v5207_v8 }
 0x309   : > { %v4895_v6 = vunpack.c.l.b16 %v4831_v15  ;;  %v5344_v27 = vpack.c.b16 %v5336_v45, %v5336_v45 }
 0x30b   : > { %v4903_v16 = vpack.c.b16 %v4895_v6, %v4895_v6  ;;  %5359 = vrot.lane.b32.xlu1 %v5344_v27, %s7177_s29 }
 0x30d   : > { %4911 = vrot.lane.b32.xlu2 %v4903_v16, %s7175_s21 }
 0x324   : > { %v2075_v49 = vpop.f32.mrf.mxu2 }
 0x325   : > { %v2076_v54 = vadd.f32 %v2075_v49, %v2046_v22 }
 0x327   : > { %v2105_v32 = vadd.f32 %v2104_v21, %v2076_v54  ;;  %v5376_v21 = vunpack.c.l.b16 %v5224_v0 }
 0x329   : > { %v2118_v42 = vmax.f32 %v2105_v32, 0.0  ;;  %v7954_v22 = vpack.c.b16 %v5376_v21, %v5376_v21 }
 0x32b   : > { %10180 = vst [vmem:[#allocation16_spill] sm:$0xff] %v7954_v22  ;;  %5399 = vrot.lane.b32.xlu0 %v7954_v22, %s7178_s13 }
 0x32c   : > { %v2077_v59 = vpop.f32.mrf.mxu2 }
 0x32d   : > { %v2078_v31 = vadd.f32 %v2077_v59, %v2048_v37 }
 0x32f   : > { %v2107_v39 = vadd.f32 %v2106_v36, %v2078_v31 }
 0x331   : > { %v2119_v46 = vmax.f32 %v2107_v39, 0.0  ;;  %v6950_v39 = vld [vmem:[#allocation8 + $0x118] sm:$0xff] }
 0x332   : > { %3092 = vmatpush.bf16.msrb.mxu2 %v6950_v39 }
 0x333   : > { %v2124_v28 = vpack.c.bf16 %v2119_v46, %v2118_v42 }
 0x335   : > { %v2080_v47 = vpop.f32.mrf.mxu2  ;;  %2208 = vmatmul.bf16.gmra.mxu3 %v2124_v28 }
 0x336   : > { %v2051_v13 = vpop.f32.mrf.mxu1 }
 0x337   : > { %v2081_v50 = vadd.f32 %v2080_v47, %v2051_v13 }
 0x339   : > { %v2110_v43 = vadd.f32 %v2109_v1, %v2081_v50  ;;  %v6949_v1 = vld [vmem:[#allocation8 + $0x110] sm:$0xff] }
 0x33a   : > { %3093 = vmatpush.bf16.msrb.mxu2 %v6949_v1 }
 0x33b   : > { %v2120_v4 = vmax.f32 %v2110_v43, 0.0 }
 0x33d   : > { %v2082_v29 = vpop.f32.mrf.mxu2 }
 0x33e   : > { %v2053_v63 = vpop.f32.mrf.mxu1 }
 0x33f   : > { %v2083_v55 = vadd.f32 %v2082_v29, %v2053_v63 }
 0x341   : > { %v2112_v61 = vadd.f32 %v2111_v19, %v2083_v55 }
 0x343   : > { %v2121_v40 = vmax.f32 %v2112_v61, 0.0 }
 0x345   : > { %v2125_v5 = vpack.c.bf16 %v2121_v40, %v2120_v4 }
 0x347   : > { %2213 = vmatmul.bf16.gmra.mxu3 %v2125_v5 }
 0x360   : > { %v2199_v18 = vpop.f32.mrf.mxu3 }
 0x361   : > { %v2219_v20 = vadd.f32 %v2199_v18, %v7720_v58 }
 0x363   : > { %2227 = vst.msk [vmem:[#allocation3 + $0x11] sm:$0xff] %vm406_vm4, %v2219_v20 }
 0x368   : > { %v2201_v24 = vpop.f32.mrf.mxu3 }
 0x369   : > { %v2220_v26 = vadd.f32 %v2201_v24, %v7729_v10 }
 0x36a   : > { %v2284_v49 = vld [vmem:[#allocation3 + $0x12] sm:$0xff] }
 0x36b   : > { %v7961_v57 = vld [vmem:[#allocation3 + $0x11] sm:$0xff]  ;;  %2228 = vst.msk [vmem:[#allocation3 + $0x21] sm:$0xff] %vm406_vm4, %v2220_v26  ;;  %v2292_v35 = vmax.f32 %v2284_v49, 0.0 }
 0x36c   : > { %v2307_v34 = vld [vmem:[#allocation3 + $0x10] sm:$0xff]  ;;  %v2268_v44 = vmax.f32 %v7961_v57, 0.0 }
 0x36d   : > { %v2300_v23 = vpack.c.bf16 %v2292_v35, %v2292_v35  ;;  %v2315_v54 = vmax.f32 %v2307_v34, 0.0 }
 0x36e   : > { %v7965_v3 = vpack.c.bf16 %v2268_v44, %v2268_v44 }
 0x36f   : > { %v2500_v30 = vunpack.c.l.b16 %v2300_v23  ;;  %v7968_v37 = vpack.c.bf16 %v2315_v54, %v2315_v54  ;;  %v8018_v54 = vpop.permute.xlu0 %2515 }
 0x370   : > { %v2460_v58 = vunpack.c.l.b16 %v7965_v3 }
 0x371   : > { %v2508_v14 = vpack.c.b16 %v2500_v30, %v2500_v30  ;;  %v2539_v42 = vunpack.c.l.b16 %v7968_v37 }
 0x372   : > { %v2468_v36 = vpack.c.b16 %v2460_v58, %v2460_v58  ;;  %v7970_v10 = vld [vmem:[#allocation3 + $0x21] sm:$0xff] }
 0x373   : > { %v2285_v59 = vld [vmem:[#allocation3 + $0x22] sm:$0xff]  ;;  %2517 = vrot.lane.b32.xlu1 %v2508_v14, %s7176_s28  ;;  %v2269_v32 = vmax.f32 %v7970_v10, 0.0  ;;  %v2547_v50 = vpack.c.b16 %v2539_v42, %v2539_v42 }
 0x374   : > { %2477 = vrot.lane.b32.xlu2 %v2468_v36, %s7175_s21  ;;  %v2308_v31 = vld [vmem:[#allocation3 + $0x20] sm:$0xff]  ;;  %v2293_v28 = vmax.f32 %v2285_v59, 0.0  ;;  %v6940_v42 = vld [vmem:[#allocation8 + $0xc8] sm:$0xff] }
 0x375   : > { %v7976_v46 = vpack.c.bf16 %v2269_v32, %v2269_v32  ;;  %v2316_v47 = vmax.f32 %v2308_v31, 0.0  ;;  %v8027_v32 = vpop.permute.xlu1 %2475  ;;  %3028 = vmatpush.bf16.msrb.mxu0 %v6940_v42 }
 0x376   : > { %v2301_v48 = vpack.c.bf16 %v2293_v28, %v2293_v28 }
 0x377   : > { %v2461_v13 = vunpack.c.l.b16 %v7976_v46  ;;  %v7979_v51 = vpack.c.bf16 %v2316_v47, %v2316_v47  ;;  %v8023_v36 = vpop.permute.xlu0 %2689  ;;  %v6939_v47 = vld [vmem:[#allocation8 + $0xc0] sm:$0xff] }
 0x378   : > { %v2501_v63 = vunpack.c.l.b16 %v2301_v48 }
 0x379   : > { %v2469_v29 = vpack.c.b16 %v2461_v13, %v2461_v13  ;;  %v2540_v41 = vunpack.c.l.b16 %v7979_v51  ;;  %3029 = vmatpush.bf16.msrb.mxu0 %v6939_v47 }
 0x37a   : > { %v2509_v43 = vpack.c.b16 %v2501_v63, %v2501_v63 }
 0x37b   : > { %2595 = vrot.lane.b32.xlu1 %v2508_v14, %s7175_s21  ;;  %2479 = vrot.lane.b32.xlu0 %v2469_v29, %s7175_s21  ;;  %v2548_v55 = vpack.c.b16 %v2540_v41, %v2540_v41 }
 0x37c   : > { %2555 = vrot.lane.b32.xlu2 %v2547_v50, %s7177_s29 }
 0x37d   : > { %v8034_v13 = vpop.permute.xlu1 %2649 }
 0x37f   : > { %v8031_v28 = vpop.permute.xlu0 %3517 }
 0x383   : > { %2557 = vrot.lane.b32.xlu0 %v2548_v55, %s7177_s29 }
 0x384   : > { %2519 = vrot.lane.b32.xlu2 %v2509_v43, %s7176_s28 }
 0x389   : > { %v2204_v19 = vpop.f32.mrf.mxu3 }
 0x38a   : > { %v2221_v56 = vadd.f32 %v2204_v19, %v7752_v33 }
 0x38b   : > { %2635 = vrot.lane.b32.xlu0 %v2548_v55, %s7176_s28 }
 0x38c   : > { %2597 = vrot.lane.b32.xlu2 %v2509_v43, %s7175_s21  ;;  %2229 = vst.msk [vmem:[#allocation3 + $0x31] sm:$0xff] %vm406_vm4, %v2221_v56  ;;  %v6938_v43 = vld [vmem:[#allocation8 + $0xb8] sm:$0xff]  ;;  %v8044_v56 = vpop.permute.xlu0 %3691 }
 0x38d   : > { %3030 = vmatpush.bf16.msrb.mxu0 %v6938_v43 }
 0x391   : > { %v2206_v60 = vpop.f32.mrf.mxu3 }
 0x392   : > { %v2222_v61 = vadd.f32 %v2206_v60, %v7770_v53  ;;  %v6937_v60 = vld [vmem:[#allocation8 + $0xb0] sm:$0xff] }
 0x393   : > { %v2428_v62 = vld [vmem:[#allocation3 + $0x32] sm:$0xff]  ;;  %3031 = vmatpush.bf16.msrb.mxu0 %v6937_v60 }
 0x394   : > { %2675 = vrot.lane.b32.xlu2 %v2469_v29, %s7177_s29  ;;  %v7993_v2 = vld [vmem:[#allocation3 + $0x31] sm:$0xff]  ;;  %2230 = vst.msk [vmem:[#allocation3 + $0x41] sm:$0xff] %vm406_vm4, %v2222_v61  ;;  %v2436_v4 = vmax.f32 %v2428_v62, 0.0 }
 0x395   : > { %v2270_v40 = vmax.f32 %v7993_v2, 0.0  ;;  %v2309_v33 = vld [vmem:[#allocation3 + $0x30] sm:$0xff] }
 0x396   : > { %v2444_v5 = vpack.c.bf16 %v2436_v4, %v2436_v4  ;;  %v2317_v12 = vmax.f32 %v2309_v33, 0.0 }
 0x397   : > { %v7997_v11 = vpack.c.bf16 %v2270_v40, %v2270_v40 }
 0x398   : > { %v2832_v8 = vunpack.c.l.b16 %v2444_v5  ;;  %v8000_v27 = vpack.c.bf16 %v2317_v12, %v2317_v12 }
 0x399   : > { %v2462_v15 = vunpack.c.l.b16 %v7997_v11 }
 0x39a   : > { %v2890_v45 = vpack.c.b16 %v2832_v8, %v2501_v63  ;;  %v2510_v53 = vpack.c.b16 %v2832_v8, %v2832_v8  ;;  %v2541_v20 = vunpack.c.l.b16 %v8000_v27 }
 0x39b   : > { %v2470_v6 = vpack.c.b16 %v2462_v15, %v2462_v15  ;;  %v8002_v16 = vld [vmem:[#allocation3 + $0x41] sm:$0xff] }
 0x39c   : > { %v2310_v38 = vld [vmem:[#allocation3 + $0x40] sm:$0xff]  ;;  %6689 = vmatmul.msk.bf16.vlgmr.msrb.gmra.mxu2 %vm406_vm4, %v2890_v45  ;;  %2521 = vrot.lane.b32.xlu0 %v2510_v53, %s7176_s28  ;;  %v2271_v0 = vmax.f32 %v8002_v16, 0.0  ;;  %v2549_v34 = vpack.c.b16 %v2541_v20, %v2541_v20  ;;  %v8051_v45 = vpop.permute.xlu1 %3477 }
 0x39d   : > { %2481 = vrot.lane.b32.xlu1 %v2470_v6, %s7175_s21  ;;  %v2318_v18 = vmax.f32 %v2310_v38, 0.0  ;;  %v2287_v35 = vld [vmem:[#allocation3 + $0x42] sm:$0xff] }
 0x39e   : > { %v8008_v21 = vpack.c.bf16 %v2271_v0, %v2271_v0  ;;  %v2295_v23 = vmax.f32 %v2287_v35, 0.0  ;;  %v6936_v38 = vld [vmem:[#allocation8 + $0xa8] sm:$0xff]  ;;  %v8065_v35 = vpop.permute.xlu2 %4911 }
 0x39f   : > { %v8012_v49 = vpack.c.bf16 %v2318_v18, %v2318_v18  ;;  %3032 = vmatpush.bf16.msrb.mxu0 %v6936_v38  ;;  %10181 = vst [vmem:[#allocation17_spill] sm:$0xff] %v8065_v35 }
 0x3a0   : > { %v2463_v24 = vunpack.c.l.b16 %v8008_v21  ;;  %v2303_v58 = vpack.c.bf16 %v2295_v23, %v2295_v23 }
 0x3a1   : > { %v2542_v44 = vunpack.c.l.b16 %v8012_v49 }
 0x3a2   : > { %v2471_v26 = vpack.c.b16 %v2463_v24, %v2463_v24  ;;  %v2503_v14 = vunpack.c.l.b16 %v2303_v58 }
 0x3a3   : > { %v2550_v30 = vpack.c.b16 %v2542_v44, %v2542_v44 }
 0x3a4   : > { %2599 = vrot.lane.b32.xlu0 %v2510_v53, %s7175_s21  ;;  %2483 = vrot.lane.b32.xlu2 %v2471_v26, %s7175_s21  ;;  %v2511_v59 = vpack.c.b16 %v2503_v14, %v2503_v14  ;;  %v8078_v47 = vpop.permute.xlu1 %3651 }
 0x3a5   : > { %2559 = vrot.lane.b32.xlu1 %v2549_v34, %s7177_s29 }
 0x3ac   : > { %2677 = vrot.lane.b32.xlu0 %v2470_v6, %s7177_s29  ;;  %2561 = vrot.lane.b32.xlu2 %v2550_v30, %s7177_s29 }
 0x3ad   : > { %2637 = vrot.lane.b32.xlu1 %v2549_v34, %s7176_s28  ;;  %v8063_v34 = vpop.permute.xlu0 %4452 }
 0x3b4   : > { %2639 = vrot.lane.b32.xlu2 %v2550_v30, %s7176_s28 }
 0x3b5   : > { %2523 = vrot.lane.b32.xlu1 %v2511_v59, %s7176_s28 }
 0x3b8   : > { %v2209_v31 = vpop.f32.mrf.mxu3 }
 0x3b9   : > { %v2223_v39 = vadd.f32 %v2209_v31, %v7787_v7  ;;  %v6934_v31 = vld [vmem:[#allocation8 + $0x98] sm:$0xff] }
 0x3bb   : > { %2231 = vst.msk [vmem:[#allocation3 + $0x51] sm:$0xff] %vm406_vm4, %v2223_v39 }
 0x3bd   : > { %2601 = vrot.lane.b32.xlu1 %v2511_v59, %s7175_s21 }
 0x3c0   : > { %v2211_v1 = vpop.f32.mrf.mxu3 }
 0x3c1   : > { %v2224_v50 = vadd.f32 %v2211_v1, %v7805_v25 }
 0x3c2   : > { %v2430_v29 = vld [vmem:[#allocation3 + $0x52] sm:$0xff] }
 0x3c3   : > { %v8037_v48 = vld [vmem:[#allocation3 + $0x51] sm:$0xff]  ;;  %2232 = vst.msk [vmem:[#allocation3 + $0x61] sm:$0xff] %vm406_vm4, %v2224_v50  ;;  %v2438_v7 = vmax.f32 %v2430_v29, 0.0 }
 0x3c4   : > { %v2272_v63 = vmax.f32 %v8037_v48, 0.0  ;;  %v2311_v41 = vld [vmem:[#allocation3 + $0x50] sm:$0xff] }
 0x3c5   : > { %2679 = vrot.lane.b32.xlu1 %v2471_v26, %s7177_s29  ;;  %v2446_v55 = vpack.c.bf16 %v2438_v7, %v2438_v7  ;;  %v2319_v25 = vmax.f32 %v2311_v41, 0.0  ;;  %v6935_v26 = vld [vmem:[#allocation8 + $0xa0] sm:$0xff]  ;;  %v6948_v7 = vld [vmem:[#allocation8 + $0x108] sm:$0xff]  ;;  %v6933_v41 = vld [vmem:[#allocation8 + $0x90] sm:$0xff] }
 0x3c6   : > { %v8042_v19 = vpack.c.bf16 %v2272_v63, %v2272_v63  ;;  %3033 = vmatpush.bf16.msrb.mxu0 %v6935_v26  ;;  %3057 = vmatpush.bf16.msrb.mxu1 %v6948_v7 }
 0x3c7   : > { %v2838_v61 = vunpack.c.l.b16 %v2446_v55  ;;  %v8047_v12 = vpack.c.bf16 %v2319_v25, %v2319_v25 }
 0x3c8   : > { %v2464_v62 = vunpack.c.l.b16 %v8042_v19 }
 0x3c9   : > { %v2893_v4 = vpack.c.b16 %v2838_v61, %v2503_v14  ;;  %v2512_v40 = vpack.c.b16 %v2838_v61, %v2838_v61  ;;  %v2543_v20 = vunpack.c.l.b16 %v8047_v12  ;;  %v8085_v61 = vpop.permute.xlu0 %4871 }
 0x3ca   : > { %v2472_v33 = vpack.c.b16 %v2464_v62, %v2464_v62  ;;  %v2214_v5 = vpop.f32.mrf.mxu3  ;;  %v8049_v8 = vld [vmem:[#allocation3 + $0x61] sm:$0xff]  ;;  %3034 = vmatpush.bf16.msrb.mxu0 %v6934_v31  ;;  %10182 = vst [vmem:[#allocation18_spill] sm:$0xff] %v8085_v61 }
 0x3cb   : > { %v2312_v15 = vld [vmem:[#allocation3 + $0x60] sm:$0xff]  ;;  %v2225_v53 = vadd.f32 %v2214_v5, %v7836_v17  ;;  %6690 = vmatmul.msk.bf16.gmra.mxu2 %vm406_vm4, %v2893_v4  ;;  %2525 = vrot.lane.b32.xlu2 %v2512_v40, %s7176_s28  ;;  %v2273_v6 = vmax.f32 %v8049_v8, 0.0  ;;  %v2551_v14 = vpack.c.b16 %v2543_v20, %v2543_v20 }
 0x3cc   : > { %2485 = vrot.lane.b32.xlu0 %v2472_v33, %s7175_s21  ;;  %v2320_v18 = vmax.f32 %v2312_v15, 0.0  ;;  %v2431_v24 = vld [vmem:[#allocation3 + $0x62] sm:$0xff]  ;;  %v2434_v15 = vld [vmem:[#allocation3 + $0x92] sm:$0xff] }
 0x3cd   : > { %2233 = vst.msk [vmem:[#allocation3 + $0x71] sm:$0xff] %vm406_vm4, %v2225_v53  ;;  %v8059_v0 = vpack.c.bf16 %v2273_v6, %v2273_v6  ;;  %v2439_v30 = vmax.f32 %v2431_v24, 0.0  ;;  %v6947_v53 = vld [vmem:[#allocation8 + $0x100] sm:$0xff]  ;;  %v2442_v24 = vmax.f32 %v2434_v15, 0.0 }
 0x3ce   : > { %v8069_v23 = vpack.c.bf16 %v2320_v18, %v2320_v18  ;;  %3035 = vmatpush.bf16.msrb.mxu0 %v6933_v41  ;;  %v2478_v4 = vpop.permute.xlu2 %2477  ;;  %3058 = vmatpush.bf16.msrb.mxu1 %v6947_v53  ;;  %v8092_v18 = vpop.permute.xlu1 %4412 }
 0x3cf   : > { %v2465_v17 = vunpack.c.l.b16 %v8059_v0  ;;  %v2447_v29 = vpack.c.bf16 %v2439_v30, %v2439_v30 }
 0x3d0   : > { %v2544_v1 = vunpack.c.l.b16 %v8069_v23 }
 0x3d1   : > { %v8067_v44 = vpack.c.b16 %v2465_v17, %v2465_v17  ;;  %v2841_v55 = vunpack.c.l.b16 %v2447_v29 }
 0x3d2   : > { %v2216_v58 = vpop.f32.mrf.mxu3  ;;  %v2552_v43 = vpack.c.b16 %v2544_v1, %v2544_v1  ;;  %v2235_v1 = vld [vmem:[#allocation3] sm:$0xff] }
 0x3d3   : > { %v2226_v59 = vadd.f32 %v2216_v58, %v7853_v52  ;;  %2603 = vrot.lane.b32.xlu2 %v2512_v40, %s7175_s21  ;;  %2487 = vrot.lane.b32.xlu1 %v8067_v44, %s7175_s21  ;;  %v2513_v26 = vpack.c.b16 %v2841_v55, %v2841_v55  ;;  %v2450_v58 = vpack.c.bf16 %v2442_v24, %v2442_v24  ;;  %v2243_v7 = vmax.f32 %v2235_v1, 0.0 }
 0x3d4   : > { %2563 = vrot.lane.b32.xlu0 %v2551_v14, %s7177_s29  ;;  %v2432_v39 = vld [vmem:[#allocation3 + $0x72] sm:$0xff] }
 0x3d5   : > { %v8076_v42 = vld [vmem:[#allocation3 + $0x71] sm:$0xff]  ;;  %2234 = vst.msk [vmem:[#allocation3 + $0x81] sm:$0xff] %vm406_vm4, %v2226_v59  ;;  %v2440_v50 = vmax.f32 %v2432_v39, 0.0 }
 0x3d6   : > { %v2274_v52 = vmax.f32 %v8076_v42, 0.0  ;;  %v2313_v62 = vld [vmem:[#allocation3 + $0x70] sm:$0xff]  ;;  %v6946_v59 = vld [vmem:[#allocation8 + $0xf8] sm:$0xff]  ;;  %v2556_v31 = vpop.permute.xlu2 %2555 }
 0x3d7   : > { %v2448_v63 = vpack.c.bf16 %v2440_v50, %v2440_v50  ;;  %v2321_v38 = vmax.f32 %v2313_v62, 0.0  ;;  %3059 = vmatpush.bf16.msrb.mxu1 %v6946_v59  ;;  %v6945_v50 = vld [vmem:[#allocation8 + $0xf0] sm:$0xff] }
 0x3d8   : > { %v8083_v60 = vpack.c.bf16 %v2274_v52, %v2274_v52  ;;  %v2850_v52 = vunpack.c.l.b16 %v2450_v58 }
 0x3d9   : > { %v2844_v25 = vunpack.c.l.b16 %v2448_v63  ;;  %v8102_v63 = vpop.permute.xlu1 %5359 }
 0x3da   : > { %v2466_v6 = vunpack.c.l.b16 %v8083_v60  ;;  %10184 = vst [vmem:[#allocation20_spill] sm:$0xff] %v8102_v63 }
 0x3db   : > { %2681 = vrot.lane.b32.xlu2 %v2472_v33, %s7177_s29  ;;  %2565 = vrot.lane.b32.xlu1 %v2552_v43, %s7177_s29  ;;  %v2896_v40 = vpack.c.b16 %v2844_v25, %v2841_v55  ;;  %v8094_v33 = vpack.c.bf16 %v2321_v38, %v2321_v38  ;;  %v2514_v41 = vpack.c.b16 %v2844_v25, %v2844_v25 }
 0x3dc   : > { %2641 = vrot.lane.b32.xlu0 %v2551_v14, %s7176_s28  ;;  %v2433_v5 = vld [vmem:[#allocation3 + $0x82] sm:$0xff]  ;;  %v2474_v17 = vpack.c.b16 %v2466_v6, %v2466_v6  ;;  %v8099_v14 = vpop.permute.xlu0 %5399  ;;  %3060 = vmatpush.bf16.msrb.mxu1 %v6945_v50 }
 0x3dd   : > { %6691 = vmatmul.msk.bf16.gmra.mxu2 %vm406_vm4, %v2896_v40  ;;  %v2441_v20 = vmax.f32 %v2433_v5, 0.0  ;;  %10183 = vst [vmem:[#allocation19_spill] sm:$0xff] %v8099_v14  ;;  %v2545_v39 = vunpack.c.l.b16 %v8094_v33  ;;  %v2314_v62 = vld [vmem:[#allocation3 + $0x80] sm:$0xff]  ;;  %v8107_v40 = vpack.c.bf16 %v2243_v7, %v2243_v7  ;;  %v6944_v6 = vld [vmem:[#allocation8 + $0xe8] sm:$0xff] }
 0x3de   : > { %v2322_v15 = vmax.f32 %v2314_v62, 0.0  ;;  %v2520_v53 = vpop.permute.xlu2 %2519 }
 0x3df   : > { %v2449_v30 = vpack.c.bf16 %v2441_v20, %v2441_v20  ;;  %v2693_v25 = vsel %vm406_vm4, %v8107_v40, %v8027_v32  ;;  %v8113_v20 = vld [vmem:[#allocation3 + $0x81] sm:$0xff] }
 0x3e0   : > { %v2330_v38 = vpack.c.bf16 %v2322_v15, %v2322_v15  ;;  %3061 = vmatpush.bf16.msrb.mxu1 %v6944_v6  ;;  %v2417_v58 = vmax.f32 %v8113_v20, 0.0  ;;  %v6941_v15 = vld [vmem:[#allocation8 + $0xd0] sm:$0xff] }
 0x3e1   : > { %v2847_v29 = vunpack.c.l.b16 %v2449_v30  ;;  %v2696_v30 = vsel %vm406_vm4, %v7968_v37, %v2478_v4  ;;  %v6942_v4 = vld [vmem:[#allocation8 + $0xd8] sm:$0xff] }
 0x3e2   : > { %v2546_v1 = vunpack.c.l.b16 %v2330_v38 }
 0x3e3   : > { %2643 = vrot.lane.b32.xlu1 %v2552_v43, %s7176_s28  ;;  %2489 = vrot.lane.b32.xlu2 %v2474_v17, %s7175_s21  ;;  %v2553_v43 = vpack.c.b16 %v2545_v39, %v2545_v39  ;;  %v2899_v55 = vpack.c.b16 %v2850_v52, %v2847_v29 }
 0x3e4   : > { %2527 = vrot.lane.b32.xlu0 %v2513_v26, %s7176_s28  ;;  %v2554_v62 = vpack.c.b16 %v2546_v1, %v2546_v1 }
 0x3e5   : > { %v2518_v24 = vpop.permute.xlu1 %2517 }
 0x3e6   : > { %v2718_v59 = vsel %vm1713_vm13, %v2696_v30, %v2518_v24 }
 0x3eb   : > { %2529 = vrot.lane.b32.xlu1 %v2514_v41, %s7176_s28  ;;  %2567 = vrot.lane.b32.xlu2 %v2553_v43, %s7177_s29 }
 0x3ec   : > { %2605 = vrot.lane.b32.xlu0 %v2513_v26, %s7175_s21  ;;  %v2716_v26 = vsel %vm1713_vm13, %v2693_v25, %v8018_v54  ;;  %v2598_v54 = vpop.permute.xlu2 %2597 }
 0x3ed   : > { %6692 = vmatmul.msk.bf16.gmra.mxu2 %vm406_vm4, %v2899_v55  ;;  %v2480_v5 = vpop.permute.xlu0 %2479  ;;  %v2732_v32 = vsel %vm1730_vm14, %v2716_v26, %v2556_v31 }
 0x3ee   : > { %v2827_v52 = vunpack.c.l.b16 %v2732_v32  ;;  %v2699_v32 = vsel %vm406_vm4, %v7979_v51, %v2480_v5  ;;  %v2752_v51 = vsel %vm406_vm4, %v7976_v46, %v2598_v54 }
 0x3ef   : > { %v2720_v1 = vsel %vm1713_vm13, %v2699_v32, %v2520_v53 }
 0x3f3   : > { %2607 = vrot.lane.b32.xlu1 %v2514_v41, %s7175_s21  ;;  %2645 = vrot.lane.b32.xlu2 %v2553_v43, %s7176_s28  ;;  %v2594_v41 = vpack.c.b16 %v2847_v29, %v2847_v29  ;;  %v8127_v43 = vpack.c.bf16 %v2417_v58, %v2417_v58 }
 0x3f4   : > { %2683 = vrot.lane.b32.xlu0 %v8067_v44, %s7177_s29  ;;  %v6943_v44 = vld [vmem:[#allocation8 + $0xe0] sm:$0xff]  ;;  %v2676_v29 = vpop.permute.xlu2 %2675 }
 0x3f5   : > { %v2558_v39 = vpop.permute.xlu0 %2557  ;;  %v2665_v37 = vunpack.c.l.b16 %v8127_v43  ;;  %3062 = vmatpush.bf16.msrb.mxu1 %v6943_v44 }
 0x3f6   : > { %v2734_v50 = vsel %vm1730_vm14, %v2718_v59, %v2558_v39 }
 0x3f7   : > { %v2830_v7 = vunpack.c.l.b16 %v2734_v50  ;;  %v2673_v31 = vpack.c.b16 %v2665_v37, %v2665_v37 }
 0x3f9   : > { %v2888_v55 = vpack.c.b16 %v2830_v7, %v2827_v52  ;;  %3063 = vmatpush.bf16.msrb.mxu1 %v6942_v4 }
 0x3fb   : > { %2685 = vrot.lane.b32.xlu1 %v2474_v17, %s7177_s29  ;;  %2609 = vrot.lane.b32.xlu2 %v2594_v41, %s7175_s21  ;;  %v2596_v17 = vpop.permute.xlu1 %2595 }
 0x3fc   : > { %3036 = vmatmul.bf16.vlgmr.msrb.gmra.mxu0 %v2888_v55  ;;  %2569 = vrot.lane.b32.xlu0 %v2554_v62, %s7177_s29  ;;  %v2749_v44 = vsel %vm406_vm4, %v7965_v3, %v2596_v17 }
 0x3fd   : > { %3064 = vmatpush.bf16.msrb.mxu1 %v6941_v15  ;;  %v2636_v25 = vpop.permute.xlu0 %2635 }
 0x3fe   : > { %v2484_v6 = vpop.permute.xlu2 %2483  ;;  %v2772_v55 = vsel %vm1713_vm13, %v2749_v44, %v2636_v25 }
 0x3ff   : > { %v2788_v5 = vsel %vm1730_vm14, %v2772_v55, %v2676_v29  ;;  %v2705_v29 = vsel %vm406_vm4, %v8012_v49, %v2484_v6 }
 0x403   : > { %2687 = vrot.lane.b32.xlu2 %v2673_v31, %s7177_s29  ;;  %v2828_v31 = vunpack.c.l.b16 %v2788_v5 }
 0x404   : > { %2647 = vrot.lane.b32.xlu0 %v2554_v62, %s7176_s28 }
 0x406   : > { %v2562_v58 = vpop.permute.xlu2 %2561 }
 0x40e   : > { %v2522_v38 = vpop.permute.xlu0 %2521  ;;  %v2640_v17 = vpop.permute.xlu2 %2639 }
 0x40f   : > { %v2482_v24 = vpop.permute.xlu1 %2481 }
 0x410   : > { %v2702_v26 = vsel %vm406_vm4, %v8000_v27, %v2482_v24 }
 0x411   : > { %v2722_v30 = vsel %vm1713_vm13, %v2702_v26, %v2522_v38 }
 0x412   : > { %v2738_v39 = vsel %vm1730_vm14, %v2722_v30, %v2562_v58 }
 0x413   : > { %v2836_v41 = vunpack.c.l.b16 %v2738_v39 }
 0x416   : > { %v2600_v59 = vpop.permute.xlu0 %2599 }
 0x417   : > { %v2560_v50 = vpop.permute.xlu1 %2559  ;;  %v2755_v39 = vsel %vm406_vm4, %v7997_v11, %v2600_v59 }
 0x418   : > { %v2736_v52 = vsel %vm1730_vm14, %v2720_v1, %v2560_v50 }
 0x419   : > { %v2833_v7 = vunpack.c.l.b16 %v2736_v52 }
 0x41b   : > { %v2891_v27 = vpack.c.b16 %v2836_v41, %v2833_v7  ;;  %v2776_v7 = vsel %vm1713_vm13, %v2755_v39, %v2640_v17  ;;  %v6958_v17 = vld [vmem:[#allocation10 + $0x78] sm:$0xff] }
 0x41c   : > { %3192 = vmatpush.bf16.msra.mxu3 %v6958_v17  ;;  %v6952_v17 = vld [vmem:[#allocation10 + $0x48] sm:$0xff] }
 0x41d   : > { %3041 = vmatmul.bf16.gmra.mxu0 %v2891_v27 }
 0x41e   : > { %v2678_v62 = vpop.permute.xlu0 %2677 }
 0x41f   : > { %v2638_v37 = vpop.permute.xlu1 %2637 }
 0x420   : > { %v2774_v53 = vsel %vm1713_vm13, %v2752_v51, %v2638_v37 }
 0x421   : > { %v2790_v4 = vsel %vm1730_vm14, %v2774_v53, %v2678_v62 }
 0x422   : > { %v2831_v15 = vunpack.c.l.b16 %v2790_v4 }
 0x424   : > { %v2889_v38 = vpack.c.b16 %v2831_v15, %v2828_v31 }
 0x425   : > { %v2526_v24 = vpop.permute.xlu2 %2525 }
 0x426   : > { %3065 = vmatmul.bf16.vlgmr.msrb.gmra.mxu1 %v2889_v38 }
 0x427   : > { %v2524_v3 = vpop.permute.xlu1 %2523 }
 0x428   : > { %v2724_v50 = vsel %vm1713_vm13, %v2705_v29, %v2524_v3 }
 0x42d   : > { %v2604_v26 = vpop.permute.xlu2 %2603 }
 0x42e   : > { %v2761_v29 = vsel %vm406_vm4, %v8042_v19, %v2604_v26 }
 0x42f   : > { %v2602_v25 = vpop.permute.xlu1 %2601 }
 0x430   : > { %v2758_v27 = vsel %vm406_vm4, %v8008_v21, %v2602_v25 }
 0x435   : > { %v2682_v54 = vpop.permute.xlu2 %2681 }
 0x437   : > { %v2680_v30 = vpop.permute.xlu1 %2679 }
 0x438   : > { %v2792_v49 = vsel %vm1730_vm14, %v2776_v7, %v2680_v30  ;;  %v6957_v30 = vld [vmem:[#allocation10 + $0x70] sm:$0xff] }
 0x439   : > { %v2834_v51 = vunpack.c.l.b16 %v2792_v49  ;;  %3193 = vmatpush.bf16.msra.mxu3 %v6957_v30 }
 0x43d   : > { %v2490_v5 = vpop.permute.xlu2 %2489 }
 0x43e   : > { %v2486_v32 = vpop.permute.xlu0 %2485  ;;  %v2714_v7 = vsel %vm406_vm4, %v8094_v33, %v2490_v5 }
 0x43f   : > { %v2708_v1 = vsel %vm406_vm4, %v8047_v12, %v2486_v32 }
 0x440   : > { %v2726_v41 = vsel %vm1713_vm13, %v2708_v1, %v2526_v24 }
 0x445   : > { %v2488_v58 = vpop.permute.xlu1 %2487  ;;  %v2568_v15 = vpop.permute.xlu2 %2567 }
 0x446   : > { %v2564_v46 = vpop.permute.xlu0 %2563 }
 0x447   : > { %v2740_v52 = vsel %vm1730_vm14, %v2724_v50, %v2564_v46  ;;  %v2711_v46 = vsel %vm406_vm4, %v8069_v23, %v2488_v58 }
 0x448   : > { %v2839_v59 = vunpack.c.l.b16 %v2740_v52 }
 0x44d   : > { %v2566_v44 = vpop.permute.xlu1 %2565  ;;  %v2646_v24 = vpop.permute.xlu2 %2645 }
 0x44e   : > { %v2642_v6 = vpop.permute.xlu0 %2641  ;;  %v2742_v11 = vsel %vm1730_vm14, %v2726_v41, %v2566_v44 }
 0x44f   : > { %v2778_v12 = vsel %vm1713_vm13, %v2758_v27, %v2642_v6  ;;  %v2842_v55 = vunpack.c.l.b16 %v2742_v11 }
 0x450   : > { %v2794_v62 = vsel %vm1730_vm14, %v2778_v12, %v2682_v54  ;;  %v6956_v54 = vld [vmem:[#allocation10 + $0x68] sm:$0xff] }
 0x451   : > { %v2894_v37 = vpack.c.b16 %v2842_v55, %v2839_v59  ;;  %v2837_v53 = vunpack.c.l.b16 %v2794_v62  ;;  %3194 = vmatpush.bf16.msra.mxu3 %v6956_v54 }
 0x453   : > { %3046 = vmatmul.bf16.gmra.mxu0 %v2894_v37  ;;  %v2892_v4 = vpack.c.b16 %v2837_v53, %v2834_v51 }
 0x455   : > { %3070 = vmatmul.bf16.gmra.mxu1 %v2892_v4  ;;  %v2644_v31 = vpop.permute.xlu1 %2643  ;;  %v2610_v27 = vpop.permute.xlu2 %2609 }
 0x456   : > { %v2528_v21 = vpop.permute.xlu0 %2527  ;;  %v2780_v50 = vsel %vm1713_vm13, %v2761_v29, %v2644_v31  ;;  %v2770_v55 = vsel %vm406_vm4, %v8127_v43, %v2610_v27  ;;  %v6955_v31 = vld [vmem:[#allocation10 + $0x60] sm:$0xff] }
 0x457   : > { %v2728_v39 = vsel %vm1713_vm13, %v2711_v46, %v2528_v21  ;;  %v2786_v37 = vsel %vm1713_vm13, %v2770_v55, %v8034_v13  ;;  %3195 = vmatpush.bf16.msra.mxu3 %v6955_v31 }
 0x458   : > { %v2744_v58 = vsel %vm1730_vm14, %v2728_v39, %v2568_v15  ;;  %v2802_v21 = vsel %vm1730_vm14, %v2786_v37, %v8023_v36 }
 0x459   : > { %v2845_v59 = vunpack.c.l.b16 %v2744_v58 }
 0x45d   : > { %v2530_v38 = vpop.permute.xlu1 %2529  ;;  %v2688_v53 = vpop.permute.xlu2 %2687 }
 0x45e   : > { %v2606_v3 = vpop.permute.xlu0 %2605  ;;  %v2730_v19 = vsel %vm1713_vm13, %v2714_v7, %v2530_v38  ;;  %v2849_v38 = vunpack.c.l.b16 %v2802_v21 }
 0x45f   : > { %v2764_v1 = vsel %vm406_vm4, %v8059_v0, %v2606_v3  ;;  %v6954_v3 = vld [vmem:[#allocation10 + $0x58] sm:$0xff] }
 0x460   : > { %v2782_v23 = vsel %vm1713_vm13, %v2764_v1, %v2646_v24  ;;  %3196 = vmatpush.bf16.msra.mxu3 %v6954_v3  ;;  %v6951_v24 = vld [vmem:[#allocation10 + $0x40] sm:$0xff] }
 0x465   : > { %v2608_v25 = vpop.permute.xlu1 %2607 }
 0x466   : > { %v2684_v32 = vpop.permute.xlu0 %2683  ;;  %v2767_v62 = vsel %vm406_vm4, %v8083_v60, %v2608_v25  ;;  %v6953_v60 = vld [vmem:[#allocation10 + $0x50] sm:$0xff]  ;;  %v3095_v25 = vpop.f32.mrf.mxu2 }
 0x467   : > { %v2796_v52 = vsel %vm1730_vm14, %v2780_v50, %v2684_v32  ;;  %3197 = vmatpush.bf16.msra.mxu3 %v6953_v60 }
 0x468   : > { %v2840_v0 = vunpack.c.l.b16 %v2796_v52 }
 0x46b   : > { %3198 = vmatpush.bf16.msra.mxu3 %v6952_v17 }
 0x46d   : > { %v2686_v41 = vpop.permute.xlu1 %2685 }
 0x46e   : > { %v2798_v26 = vsel %vm1730_vm14, %v2782_v23, %v2686_v41  ;;  %v2570_v44 = vpop.permute.xlu0 %2569  ;;  %v3097_v39 = vpop.f32.mrf.mxu2 }
 0x46f   : > { %v2843_v49 = vunpack.c.l.b16 %v2798_v26  ;;  %v2746_v6 = vsel %vm1730_vm14, %v2730_v19, %v2570_v44  ;;  %3199 = vmatpush.bf16.msra.mxu3 %v6951_v24 }
 0x470   : > { %v2848_v11 = vunpack.c.l.b16 %v2746_v6 }
 0x471   : > { %v2895_v12 = vpack.c.b16 %v2843_v49, %v2840_v0 }
 0x472   : > { %v2897_v33 = vpack.c.b16 %v2848_v11, %v2845_v59 }
 0x473   : > { %3075 = vmatmul.bf16.gmra.mxu1 %v2895_v12 }
 0x474   : > { %3051 = vmatmul.bf16.gmra.mxu0 %v2897_v33 }
 0x476   : > { %v2648_v51 = vpop.permute.xlu0 %2647  ;;  %v3100_v23 = vpop.f32.mrf.mxu2 }
 0x477   : > { %v2784_v5 = vsel %vm1713_vm13, %v2767_v62, %v2648_v51 }
 0x478   : > { %v2800_v4 = vsel %vm1730_vm14, %v2784_v5, %v2688_v53 }
 0x479   : > { %v2846_v15 = vunpack.c.l.b16 %v2800_v4  ;;  %v3037_v13 = vpop.f32.mrf.mxu0 }
 0x47b   : > { %v2898_v43 = vpack.c.b16 %v2849_v38, %v2846_v15 }
 0x47e   : > { %v3102_v49 = vpop.f32.mrf.mxu2 }
 0x481   : > { %v3039_v46 = vpop.f32.mrf.mxu0 }
 0x483   : > { %3080 = vmatmul.bf16.gmra.mxu1 %v2898_v43 }
 0x486   : > { %v3105_v33 = vpop.f32.mrf.mxu2 }
 0x48e   : > { %v3107_v5 = vpop.f32.mrf.mxu2 }
 0x496   : > { %v3110_v60 = vpop.f32.mrf.mxu2 }
 0x49a   : > { %v3042_v41 = vpop.f32.mrf.mxu0 }
 0x4a2   : > { %v3044_v26 = vpop.f32.mrf.mxu0 }
 0x4a3   : > { %v3066_v30 = vpop.f32.mrf.mxu1 }
 0x4a4   : > { %v3067_v32 = vadd.f32 %v3066_v30, %v3037_v13 }
 0x4a6   : > { %v3096_v36 = vadd.f32 %v3095_v25, %v3067_v32 }
 0x4a8   : > { %v3115_v50 = vmax.f32 %v3096_v36, 0.0 }
 0x4ab   : > { %v3068_v54 = vpop.f32.mrf.mxu1 }
 0x4ac   : > { %v3069_v29 = vadd.f32 %v3068_v54, %v3039_v46  ;;  %v3112_v46 = vpop.f32.mrf.mxu2 }
 0x4ae   : > { %v3098_v1 = vadd.f32 %v3097_v39, %v3069_v29 }
 0x4b0   : > { %v3116_v52 = vmax.f32 %v3098_v1, 0.0 }
 0x4b2   : > { %v3123_v7 = vpack.c.bf16 %v3116_v52, %v3115_v50 }
 0x4b4   : > { %3200 = vmatmul.bf16.vlgmr.msra.gmra.mxu3 %v3123_v7 }
 0x4d0   : > { %v3047_v55 = vpop.f32.mrf.mxu0 }
 0x4d2   : > { %v3071_v58 = vpop.f32.mrf.mxu1 }
 0x4d3   : > { %v3072_v19 = vadd.f32 %v3071_v58, %v3042_v41 }
 0x4d5   : > { %v3101_v27 = vadd.f32 %v3100_v23, %v3072_v19 }
 0x4d7   : > { %v3117_v11 = vmax.f32 %v3101_v27, 0.0 }
 0x4d8   : > { %v3049_v37 = vpop.f32.mrf.mxu0 }
 0x4da   : > { %v3073_v44 = vpop.f32.mrf.mxu1 }
 0x4db   : > { %v3074_v0 = vadd.f32 %v3073_v44, %v3044_v26 }
 0x4dd   : > { %v3103_v6 = vadd.f32 %v3102_v49, %v3074_v0 }
 0x4df   : > { %v3118_v59 = vmax.f32 %v3103_v6, 0.0 }
 0x4e1   : > { %v3124_v12 = vpack.c.bf16 %v3118_v59, %v3117_v11 }
 0x4e3   : > { %3205 = vmatmul.bf16.gmra.mxu3 %v3124_v12 }
 0x4f0   : > { %v3076_v62 = vpop.f32.mrf.mxu1 }
 0x4f1   : > { %v3077_v51 = vadd.f32 %v3076_v62, %v3047_v55  ;;  %v3052_v43 = vpop.f32.mrf.mxu0 }
 0x4f3   : > { %v3106_v4 = vadd.f32 %v3105_v33, %v3077_v51 }
 0x4f5   : > { %v3119_v15 = vmax.f32 %v3106_v4, 0.0 }
 0x4f8   : > { %v3078_v53 = vpop.f32.mrf.mxu1 }
 0x4f9   : > { %v3079_v31 = vadd.f32 %v3078_v53, %v3049_v37  ;;  %v3054_v13 = vpop.f32.mrf.mxu0 }
 0x4fb   : > { %v3108_v21 = vadd.f32 %v3107_v5, %v3079_v31 }
 0x4fd   : > { %v3120_v38 = vmax.f32 %v3108_v21, 0.0 }
 0x4ff   : > { %v3125_v3 = vpack.c.bf16 %v3120_v38, %v3119_v15  ;;  %v6976_v38 = vld [vmem:[%s10138_s5 + $0x88] sm:$0xff] }
 0x500   : > { %v3081_v17 = vpop.f32.mrf.mxu1  ;;  %4097 = vmatpush.bf16.msra.mxu2 %v6976_v38 }
 0x501   : > { %3210 = vmatmul.bf16.gmra.mxu3 %v3125_v3  ;;  %v3082_v24 = vadd.f32 %v3081_v17, %v3052_v43  ;;  %v6975_v43 = vld [vmem:[%s10138_s5 + $0x80] sm:$0xff] }
 0x503   : > { %v3111_v30 = vadd.f32 %v3110_v60, %v3082_v24 }
 0x504   : > { %4098 = vmatpush.bf16.msra.mxu2 %v6975_v43 }
 0x505   : > { %v3121_v36 = vmax.f32 %v3111_v30, 0.0 }
 0x508   : > { %v3083_v25 = vpop.f32.mrf.mxu1 }
 0x509   : > { %v3084_v32 = vadd.f32 %v3083_v25, %v3054_v13 }
 0x50b   : > { %v3113_v54 = vadd.f32 %v3112_v46, %v3084_v32 }
 0x50d   : > { %v3122_v29 = vmax.f32 %v3113_v54, 0.0 }
 0x50f   : > { %v3126_v39 = vpack.c.bf16 %v3122_v29, %v3121_v36 }
 0x511   : > { %3215 = vmatmul.bf16.gmra.mxu3 %v3126_v39 }
 0x537   : > { %v3201_v1 = vpop.f32.mrf.mxu3 }
 0x538   : > { %v3221_v50 = vadd.f32 %v3201_v1, %v7961_v57 }
 0x53a   : > { %3229 = vst.msk [vmem:[#allocation3 + $0x11] sm:$0xff] %vm406_vm4, %v3221_v50 }
 0x53f   : > { %v3203_v52 = vpop.f32.mrf.mxu3 }
 0x540   : > { %v3222_v7 = vadd.f32 %v3203_v52, %v7970_v10 }
 0x541   : > { %v3286_v41 = vld [vmem:[#allocation3 + $0x12] sm:$0xff] }
 0x542   : > { %v3262_v23 = vld [vmem:[#allocation3 + $0x11] sm:$0xff]  ;;  %3230 = vst.msk [vmem:[#allocation3 + $0x21] sm:$0xff] %vm406_vm4, %v3222_v7  ;;  %v3294_v19 = vmax.f32 %v3286_v41, 0.0 }
 0x543   : > { %v3309_v58 = vld [vmem:[#allocation3 + $0x10] sm:$0xff]  ;;  %v3270_v26 = vmax.f32 %v3262_v23, 0.0 }
 0x544   : > { %v3302_v44 = vpack.c.bf16 %v3294_v19, %v3294_v19  ;;  %v3317_v0 = vmax.f32 %v3309_v58, 0.0 }
 0x545   : > { %v8197_v27 = vpack.c.bf16 %v3270_v26, %v3270_v26 }
 0x546   : > { %v3502_v49 = vunpack.c.l.b16 %v3302_v44  ;;  %v8200_v59 = vpack.c.bf16 %v3317_v0, %v3317_v0 }
 0x547   : > { %v3462_v6 = vunpack.c.l.b16 %v8197_v27 }
 0x548   : > { %v3510_v57 = vpack.c.b16 %v3502_v49, %v3502_v49  ;;  %v3541_v62 = vunpack.c.l.b16 %v8200_v59 }
 0x549   : > { %v3470_v11 = vpack.c.b16 %v3462_v6, %v3462_v6  ;;  %v3263_v12 = vld [vmem:[#allocation3 + $0x21] sm:$0xff] }
 0x54a   : > { %v3287_v10 = vld [vmem:[#allocation3 + $0x22] sm:$0xff]  ;;  %3519 = vrot.lane.b32.xlu1 %v3510_v57, %s7176_s28  ;;  %v3271_v33 = vmax.f32 %v3263_v12, 0.0  ;;  %v3549_v4 = vpack.c.b16 %v3541_v62, %v3541_v62 }
 0x54b   : > { %3479 = vrot.lane.b32.xlu2 %v3470_v11, %s7175_s21  ;;  %v3310_v55 = vld [vmem:[#allocation3 + $0x20] sm:$0xff]  ;;  %v3295_v5 = vmax.f32 %v3287_v10, 0.0 }
 0x54c   : > { %v8205_v51 = vpack.c.bf16 %v3271_v33, %v3271_v33  ;;  %v3318_v37 = vmax.f32 %v3310_v55, 0.0 }
 0x54d   : > { %v3303_v21 = vpack.c.bf16 %v3295_v5, %v3295_v5 }
 0x54e   : > { %v3463_v53 = vunpack.c.l.b16 %v8205_v51  ;;  %v8208_v15 = vpack.c.bf16 %v3318_v37, %v3318_v37 }
 0x54f   : > { %v3503_v3 = vunpack.c.l.b16 %v3303_v21 }
 0x550   : > { %v3471_v31 = vpack.c.b16 %v3463_v53, %v3463_v53  ;;  %v3542_v60 = vunpack.c.l.b16 %v8208_v15 }
 0x551   : > { %v3511_v17 = vpack.c.b16 %v3503_v3, %v3503_v3 }
 0x552   : > { %3597 = vrot.lane.b32.xlu1 %v3510_v57, %s7175_s21  ;;  %3481 = vrot.lane.b32.xlu0 %v3471_v31, %s7175_s21  ;;  %v3550_v24 = vpack.c.b16 %v3542_v60, %v3542_v60 }
 0x553   : > { %3557 = vrot.lane.b32.xlu2 %v3549_v4, %s7177_s29 }
 0x55a   : > { %3559 = vrot.lane.b32.xlu0 %v3550_v24, %s7177_s29 }
 0x55b   : > { %3521 = vrot.lane.b32.xlu2 %v3511_v17, %s7176_s28 }
 0x562   : > { %3637 = vrot.lane.b32.xlu0 %v3550_v24, %s7176_s28 }
 0x563   : > { %3599 = vrot.lane.b32.xlu2 %v3511_v17, %s7175_s21 }
 0x566   : > { %v3206_v13 = vpop.f32.mrf.mxu3 }
 0x567   : > { %v3223_v25 = vadd.f32 %v3206_v13, %v7993_v2 }
 0x569   : > { %3231 = vst.msk [vmem:[#allocation3 + $0x31] sm:$0xff] %vm406_vm4, %v3223_v25 }
 0x56b   : > { %3677 = vrot.lane.b32.xlu2 %v3471_v31, %s7177_s29 }
 0x56e   : > { %v3208_v30 = vpop.f32.mrf.mxu3 }
 0x56f   : > { %v3224_v32 = vadd.f32 %v3208_v30, %v8002_v16 }
 0x570   : > { %v3264_v46 = vld [vmem:[#allocation3 + $0x31] sm:$0xff] }
 0x571   : > { %v3430_v54 = vld [vmem:[#allocation3 + $0x32] sm:$0xff]  ;;  %3232 = vst.msk [vmem:[#allocation3 + $0x41] sm:$0xff] %vm406_vm4, %v3224_v32  ;;  %v3272_v29 = vmax.f32 %v3264_v46, 0.0 }
 0x572   : > { %v3311_v36 = vld [vmem:[#allocation3 + $0x30] sm:$0xff]  ;;  %v3438_v39 = vmax.f32 %v3430_v54, 0.0 }
 0x573   : > { %v8229_v1 = vpack.c.bf16 %v3272_v29, %v3272_v29  ;;  %v3319_v52 = vmax.f32 %v3311_v36, 0.0  ;;  %v6965_v29 = vld [vmem:[%s10138_s5 + $0x30] sm:$0xff] }
 0x574   : > { %v3446_v50 = vpack.c.bf16 %v3438_v39, %v3438_v39 }
 0x575   : > { %v3464_v2 = vunpack.c.l.b16 %v8229_v1  ;;  %v8232_v19 = vpack.c.bf16 %v3319_v52, %v3319_v52 }
 0x576   : > { %v3834_v7 = vunpack.c.l.b16 %v3446_v50 }
 0x577   : > { %v3472_v41 = vpack.c.b16 %v3464_v2, %v3464_v2  ;;  %v3543_v0 = vunpack.c.l.b16 %v8232_v19 }
 0x578   : > { %v3895_v23 = vpack.c.b16 %v3834_v7, %v3503_v3  ;;  %v3512_v58 = vpack.c.b16 %v3834_v7, %v3834_v7  ;;  %v3265_v16 = vld [vmem:[#allocation3 + $0x41] sm:$0xff] }
 0x579   : > { %v3312_v26 = vld [vmem:[#allocation3 + $0x40] sm:$0xff]  ;;  %3483 = vrot.lane.b32.xlu1 %v3472_v41, %s7175_s21  ;;  %v3273_v44 = vmax.f32 %v3265_v16, 0.0  ;;  %v3551_v11 = vpack.c.b16 %v3543_v0, %v3543_v0 }
 0x57a   : > { %6797 = vmatmul.msk.bf16.vlgmr.msra.gmra.mxu2 %vm406_vm4, %v3895_v23  ;;  %3523 = vrot.lane.b32.xlu0 %v3512_v58, %s7176_s28  ;;  %v3320_v6 = vmax.f32 %v3312_v26, 0.0  ;;  %v3289_v33 = vld [vmem:[#allocation3 + $0x42] sm:$0xff] }
 0x57b   : > { %v8238_v49 = vpack.c.bf16 %v3273_v44, %v3273_v44  ;;  %v3297_v62 = vmax.f32 %v3289_v33, 0.0 }
 0x57c   : > { %v8243_v10 = vpack.c.bf16 %v3320_v6, %v3320_v6  ;;  %v6963_v6 = vld [vmem:[%s10138_s5 + $0x20] sm:$0xff] }
 0x57d   : > { %v3465_v57 = vunpack.c.l.b16 %v8238_v49  ;;  %v3305_v4 = vpack.c.bf16 %v3297_v62, %v3297_v62 }
 0x57e   : > { %v3544_v55 = vunpack.c.l.b16 %v8243_v10 }
 0x57f   : > { %v8241_v12 = vpack.c.b16 %v3465_v57, %v3465_v57  ;;  %v3505_v31 = vunpack.c.l.b16 %v3305_v4 }
 0x580   : > { %v3552_v53 = vpack.c.b16 %v3544_v55, %v3544_v55 }
 0x581   : > { %3561 = vrot.lane.b32.xlu1 %v3551_v11, %s7177_s29  ;;  %3485 = vrot.lane.b32.xlu2 %v8241_v12, %s7175_s21 }
 0x582   : > { %3601 = vrot.lane.b32.xlu0 %v3512_v58, %s7175_s21 }
 0x584   : > { %v3211_v5 = vpop.f32.mrf.mxu3 }
 0x585   : > { %v3225_v37 = vadd.f32 %v3211_v5, %v8037_v48  ;;  %v3513_v48 = vpack.c.b16 %v3505_v31, %v3505_v31 }
 0x587   : > { %3233 = vst.msk [vmem:[#allocation3 + $0x51] sm:$0xff] %vm406_vm4, %v3225_v37  ;;  %v6974_v37 = vld [vmem:[%s10138_s5 + $0x78] sm:$0xff] }
 0x588   : > { %4062 = vmatpush.bf16.msra.mxu1 %v6974_v37 }
 0x589   : > { %3639 = vrot.lane.b32.xlu1 %v3551_v11, %s7176_s28  ;;  %3563 = vrot.lane.b32.xlu2 %v3552_v53, %s7177_s29 }
 0x58a   : > { %3679 = vrot.lane.b32.xlu0 %v3472_v41, %s7177_s29 }
 0x58c   : > { %v3213_v21 = vpop.f32.mrf.mxu3 }
 0x58d   : > { %v3226_v38 = vadd.f32 %v3213_v21, %v8049_v8  ;;  %v6966_v8 = vld [vmem:[%s10138_s5 + $0x38] sm:$0xff] }
 0x58e   : > { %v3432_v43 = vld [vmem:[#allocation3 + $0x52] sm:$0xff]  ;;  %4033 = vmatpush.bf16.msra.mxu0 %v6966_v8 }
 0x58f   : > { %v3266_v3 = vld [vmem:[#allocation3 + $0x51] sm:$0xff]  ;;  %3234 = vst.msk [vmem:[#allocation3 + $0x61] sm:$0xff] %vm406_vm4, %v3226_v38  ;;  %v3440_v17 = vmax.f32 %v3432_v43, 0.0 }
 0x590   : > { %v3313_v60 = vld [vmem:[#allocation3 + $0x50] sm:$0xff]  ;;  %v3274_v24 = vmax.f32 %v3266_v3, 0.0 }
 0x591   : > { %v3321_v13 = vmax.f32 %v3313_v60, 0.0  ;;  %3525 = vrot.lane.b32.xlu1 %v3513_v48, %s7176_s28  ;;  %3641 = vrot.lane.b32.xlu2 %v3552_v53, %s7176_s28  ;;  %v3448_v25 = vpack.c.bf16 %v3440_v17, %v3440_v17  ;;  %v6962_v53 = vld [vmem:[%s10138_s5 + $0x18] sm:$0xff] }
 0x592   : > { %v8259_v30 = vpack.c.bf16 %v3274_v24, %v3274_v24  ;;  %4034 = vmatpush.bf16.msra.mxu0 %v6965_v29  ;;  %v3436_v60 = vld [vmem:[#allocation3 + $0x92] sm:$0xff] }
 0x593   : > { %v3840_v32 = vunpack.c.l.b16 %v3448_v25  ;;  %v8265_v36 = vpack.c.bf16 %v3321_v13, %v3321_v13 }
 0x594   : > { %v3466_v46 = vunpack.c.l.b16 %v8259_v30  ;;  %v3216_v54 = vpop.f32.mrf.mxu3 }
 0x595   : > { %v3227_v39 = vadd.f32 %v3216_v54, %v8076_v42  ;;  %v3898_v50 = vpack.c.b16 %v3840_v32, %v3505_v31  ;;  %v3514_v2 = vpack.c.b16 %v3840_v32, %v3840_v32  ;;  %v3545_v23 = vunpack.c.l.b16 %v8265_v36  ;;  %v6964_v42 = vld [vmem:[%s10138_s5 + $0x28] sm:$0xff] }
 0x596   : > { %v3474_v52 = vpack.c.b16 %v3466_v46, %v3466_v46  ;;  %v3433_v7 = vld [vmem:[#allocation3 + $0x62] sm:$0xff]  ;;  %4035 = vmatpush.bf16.msra.mxu0 %v6964_v42  ;;  %v3444_v32 = vmax.f32 %v3436_v60, 0.0  ;;  %v6973_v46 = vld [vmem:[%s10138_s5 + $0x70] sm:$0xff] }
 0x597   : > { %3235 = vst.msk [vmem:[#allocation3 + $0x71] sm:$0xff] %vm406_vm4, %v3227_v39  ;;  %6798 = vmatmul.msk.bf16.gmra.mxu2 %vm406_vm4, %v3898_v50  ;;  %v3267_v41 = vld [vmem:[#allocation3 + $0x61] sm:$0xff]  ;;  %v3441_v58 = vmax.f32 %v3433_v7, 0.0  ;;  %v3553_v0 = vpack.c.b16 %v3545_v23, %v3545_v23  ;;  %4063 = vmatpush.bf16.msra.mxu1 %v6973_v46 }
 0x598   : > { %3487 = vrot.lane.b32.xlu0 %v3474_v52, %s7175_s21  ;;  %v3275_v16 = vmax.f32 %v3267_v41, 0.0  ;;  %v3314_v62 = vld [vmem:[#allocation3 + $0x60] sm:$0xff]  ;;  %v6960_v54 = vld [vmem:[%s10138_s5 + $0x8] sm:$0xff] }
 0x599   : > { %3603 = vrot.lane.b32.xlu1 %v3513_v48, %s7175_s21  ;;  %3527 = vrot.lane.b32.xlu2 %v3514_v2, %s7176_s28  ;;  %v3449_v33 = vpack.c.bf16 %v3441_v58, %v3441_v58  ;;  %v3322_v4 = vmax.f32 %v3314_v62, 0.0  ;;  %v6961_v48 = vld [vmem:[%s10138_s5 + $0x10] sm:$0xff]  ;;  %v6959_v41 = vld [vmem:[%s10138_s5] sm:$0xff] }
 0x59a   : > { %v8286_v55 = vpack.c.bf16 %v3275_v16, %v3275_v16  ;;  %4036 = vmatpush.bf16.msra.mxu0 %v6963_v6  ;;  %v6971_v62 = vld [vmem:[%s10138_s5 + $0x60] sm:$0xff] }
 0x59b   : > { %v3843_v31 = vunpack.c.l.b16 %v3449_v33  ;;  %v8303_v24 = vpack.c.bf16 %v3322_v4, %v3322_v4 }
 0x59c   : > { %v3218_v26 = vpop.f32.mrf.mxu3  ;;  %v3467_v38 = vunpack.c.l.b16 %v8286_v55 }
 0x59d   : > { %v3228_v44 = vadd.f32 %v3218_v26, %v8113_v20  ;;  %v3546_v29 = vunpack.c.l.b16 %v8303_v24 }
 0x59e   : > { %v3434_v57 = vld [vmem:[#allocation3 + $0x72] sm:$0xff]  ;;  %4037 = vmatpush.bf16.msra.mxu0 %v6962_v53  ;;  %v3475_v17 = vpack.c.b16 %v3467_v38, %v3467_v38 }
 0x59f   : > { %3236 = vst.msk [vmem:[#allocation3 + $0x81] sm:$0xff] %vm406_vm4, %v3228_v44  ;;  %v3442_v11 = vmax.f32 %v3434_v57, 0.0  ;;  %v3268_v5 = vld [vmem:[#allocation3 + $0x71] sm:$0xff]  ;;  %v3554_v23 = vpack.c.b16 %v3546_v29, %v3546_v29 }
 0x5a0   : > { %3565 = vrot.lane.b32.xlu0 %v3553_v0, %s7177_s29  ;;  %v3276_v43 = vmax.f32 %v3268_v5, 0.0  ;;  %v3315_v25 = vld [vmem:[#allocation3 + $0x70] sm:$0xff] }
 0x5a1   : > { %3681 = vrot.lane.b32.xlu1 %v8241_v12, %s7177_s29  ;;  %3605 = vrot.lane.b32.xlu2 %v3514_v2, %s7175_s21  ;;  %v3450_v20 = vpack.c.bf16 %v3442_v11, %v3442_v11  ;;  %v3323_v50 = vmax.f32 %v3315_v25, 0.0  ;;  %v3515_v2 = vpack.c.b16 %v3843_v31, %v3843_v31 }
 0x5a2   : > { %v8305_v13 = vpack.c.bf16 %v3276_v43, %v3276_v43  ;;  %4038 = vmatpush.bf16.msra.mxu0 %v6961_v48 }
 0x5a3   : > { %v3846_v21 = vunpack.c.l.b16 %v3450_v20  ;;  %v8321_v58 = vpack.c.bf16 %v3323_v50, %v3323_v50  ;;  %v6970_v20 = vld [vmem:[%s10138_s5 + $0x58] sm:$0xff] }
 0x5a4   : > { %v3468_v39 = vunpack.c.l.b16 %v8305_v13 }
 0x5a5   : > { %v3901_v12 = vpack.c.b16 %v3846_v21, %v3843_v31  ;;  %v3547_v44 = vunpack.c.l.b16 %v8321_v58  ;;  %v3480_v11 = vpop.permute.xlu2 %3479  ;;  %v3516_v53 = vpack.c.b16 %v3846_v21, %v3846_v21  ;;  %v3695_v21 = vsel %vm406_vm4, %v8107_v40, %v8051_v45  ;;  %v6968_v45 = vld [vmem:[%s10138_s5 + $0x48] sm:$0xff] }
 0x5a6   : > { %v3435_v3 = vld [vmem:[#allocation3 + $0x82] sm:$0xff]  ;;  %4039 = vmatpush.bf16.msra.mxu0 %v6960_v54  ;;  %v3476_v42 = vpack.c.b16 %v3468_v39, %v3468_v39  ;;  %v3698_v54 = vsel %vm406_vm4, %v8200_v59, %v3480_v11 }
 0x5a7   : > { %6799 = vmatmul.msk.bf16.gmra.mxu2 %vm406_vm4, %v3901_v12  ;;  %v3443_v8 = vmax.f32 %v3435_v3, 0.0  ;;  %v3316_v57 = vld [vmem:[#allocation3 + $0x80] sm:$0xff]  ;;  %v3555_v33 = vpack.c.b16 %v3547_v44, %v3547_v44  ;;  %v6969_v12 = vld [vmem:[%s10138_s5 + $0x50] sm:$0xff] }
 0x5a8   : > { %3643 = vrot.lane.b32.xlu0 %v3553_v0, %s7176_s28  ;;  %v6972_v0 = vld [vmem:[%s10138_s5 + $0x68] sm:$0xff]  ;;  %v3324_v5 = vmax.f32 %v3316_v57, 0.0 }
 0x5a9   : > { %3489 = vrot.lane.b32.xlu1 %v3475_v17, %s7175_s21  ;;  %3683 = vrot.lane.b32.xlu2 %v3474_v52, %s7177_s29  ;;  %v3451_v7 = vpack.c.bf16 %v3443_v8, %v3443_v8  ;;  %v3452_v52 = vpack.c.bf16 %v3444_v32, %v3444_v32  ;;  %v3411_v4 = vld [vmem:[#allocation3 + $0x81] sm:$0xff]  ;;  %v3718_v8 = vsel %vm1713_vm13, %v3695_v21, %v8031_v28 }
 0x5aa   : > { %4040 = vmatpush.bf16.msra.mxu0 %v6959_v41  ;;  %4064 = vmatpush.bf16.msra.mxu1 %v6972_v0  ;;  %v3332_v37 = vpack.c.bf16 %v3324_v5, %v3324_v5  ;;  %v3419_v43 = vmax.f32 %v3411_v4, 0.0  ;;  %v6967_v41 = vld [vmem:[%s10138_s5 + $0x40] sm:$0xff] }
 0x5ab   : > { %v3849_v16 = vunpack.c.l.b16 %v3451_v7  ;;  %v3852_v26 = vunpack.c.l.b16 %v3452_v52 }
 0x5ac   : > { %v3548_v38 = vunpack.c.l.b16 %v3332_v37 }
 0x5ad   : > { %v3904_v6 = vpack.c.b16 %v3852_v26, %v3849_v16  ;;  %v3558_v31 = vpop.permute.xlu2 %3557  ;;  %v3596_v48 = vpack.c.b16 %v3849_v16, %v3849_v16 }
 0x5ae   : > { %4065 = vmatpush.bf16.msra.mxu1 %v6971_v62  ;;  %v3556_v60 = vpack.c.b16 %v3548_v38, %v3548_v38  ;;  %v3734_v29 = vsel %vm1730_vm14, %v3718_v8, %v3558_v31 }
 0x5b0   : > { %3529 = vrot.lane.b32.xlu0 %v3515_v2, %s7176_s28 }
 0x5b1   : > { %3567 = vrot.lane.b32.xlu1 %v3554_v23, %s7177_s29  ;;  %3491 = vrot.lane.b32.xlu2 %v3476_v42, %s7175_s21 }
 0x5b2   : > { %4066 = vmatpush.bf16.msra.mxu1 %v6970_v20 }
 0x5b5   : > { %v3522_v32 = vpop.permute.xlu2 %3521 }
 0x5b6   : > { %4067 = vmatpush.bf16.msra.mxu1 %v6969_v12 }
 0x5b7   : > { %6800 = vmatmul.msk.bf16.gmra.mxu2 %vm406_vm4, %v3904_v6 }
 0x5b8   : > { %3607 = vrot.lane.b32.xlu0 %v3515_v2, %s7175_s21  ;;  %v3829_v2 = vunpack.c.l.b16 %v3734_v29 }
 0x5b9   : > { %3645 = vrot.lane.b32.xlu1 %v3554_v23, %s7176_s28  ;;  %3569 = vrot.lane.b32.xlu2 %v3555_v33, %s7177_s29 }
 0x5ba   : > { %4068 = vmatpush.bf16.msra.mxu1 %v6968_v45 }
 0x5bc   : > { %v3520_v25 = vpop.permute.xlu1 %3519 }
 0x5bd   : > { %v3720_v39 = vsel %vm1713_vm13, %v3698_v54, %v3520_v25  ;;  %v3600_v59 = vpop.permute.xlu2 %3599 }
 0x5be   : > { %4069 = vmatpush.bf16.msra.mxu1 %v6967_v41 }
 0x5c0   : > { %3685 = vrot.lane.b32.xlu0 %v3475_v17, %s7177_s29  ;;  %v8346_v17 = vpack.c.bf16 %v3419_v43, %v3419_v43 }
 0x5c1   : > { %3531 = vrot.lane.b32.xlu1 %v3516_v53, %s7176_s28  ;;  %3647 = vrot.lane.b32.xlu2 %v3555_v33, %s7176_s28 }
 0x5c2   : > { %v3667_v46 = vunpack.c.l.b16 %v8346_v17 }
 0x5c4   : > { %v3482_v3 = vpop.permute.xlu0 %3481  ;;  %v3675_v28 = vpack.c.b16 %v3667_v46, %v3667_v46  ;;  %v3598_v16 = vpop.permute.xlu1 %3597 }
 0x5c5   : > { %v3678_v23 = vpop.permute.xlu2 %3677  ;;  %v3701_v11 = vsel %vm406_vm4, %v8208_v15, %v3482_v3  ;;  %v3754_v15 = vsel %vm406_vm4, %v8205_v51, %v3600_v59 }
 0x5c6   : > { %v3722_v20 = vsel %vm1713_vm13, %v3701_v11, %v3522_v32 }
 0x5c8   : > { %3571 = vrot.lane.b32.xlu0 %v3556_v60, %s7177_s29 }
 0x5c9   : > { %3609 = vrot.lane.b32.xlu1 %v3516_v53, %s7175_s21  ;;  %3611 = vrot.lane.b32.xlu2 %v3596_v48, %s7175_s21 }
 0x5cc   : > { %v3560_v50 = vpop.permute.xlu0 %3559 }
 0x5cd   : > { %v3736_v40 = vsel %vm1730_vm14, %v3720_v39, %v3560_v50 }
 0x5ce   : > { %v3832_v7 = vunpack.c.l.b16 %v3736_v40 }
 0x5d0   : > { %3649 = vrot.lane.b32.xlu0 %v3556_v60, %s7176_s28  ;;  %v3893_v52 = vpack.c.b16 %v3832_v7, %v3829_v2 }
 0x5d1   : > { %3687 = vrot.lane.b32.xlu1 %v3476_v42, %s7177_s29  ;;  %3689 = vrot.lane.b32.xlu2 %v3675_v28, %s7177_s29 }
 0x5d2   : > { %4041 = vmatmul.bf16.vlgmr.msra.gmra.mxu0 %v3893_v52 }
 0x5d4   : > { %v3638_v26 = vpop.permute.xlu0 %3637 }
 0x5db   : > { %v3486_v44 = vpop.permute.xlu2 %3485 }
 0x5e3   : > { %v3564_v33 = vpop.permute.xlu2 %3563 }
 0x5eb   : > { %v3484_v0 = vpop.permute.xlu1 %3483  ;;  %v3642_v60 = vpop.permute.xlu2 %3641 }
 0x5ec   : > { %v3704_v6 = vsel %vm406_vm4, %v8232_v19, %v3484_v0  ;;  %v3524_v57 = vpop.permute.xlu0 %3523  ;;  %v3751_v19 = vsel %vm406_vm4, %v8197_v27, %v3598_v16 }
 0x5ed   : > { %v3724_v42 = vsel %vm1713_vm13, %v3704_v6, %v3524_v57  ;;  %v3774_v43 = vsel %vm1713_vm13, %v3751_v19, %v3638_v26 }
 0x5ee   : > { %v3740_v62 = vsel %vm1730_vm14, %v3724_v42, %v3564_v33  ;;  %v3790_v12 = vsel %vm1730_vm14, %v3774_v43, %v3678_v23 }
 0x5ef   : > { %v3838_v31 = vunpack.c.l.b16 %v3740_v62  ;;  %v3830_v8 = vunpack.c.l.b16 %v3790_v12 }
 0x5f3   : > { %v3562_v5 = vpop.permute.xlu1 %3561  ;;  %v3528_v54 = vpop.permute.xlu2 %3527 }
 0x5f4   : > { %v3738_v37 = vsel %vm1730_vm14, %v3722_v20, %v3562_v5  ;;  %v3602_v53 = vpop.permute.xlu0 %3601 }
 0x5f5   : > { %v3835_v4 = vunpack.c.l.b16 %v3738_v37  ;;  %v3757_v40 = vsel %vm406_vm4, %v8229_v1, %v3602_v53  ;;  %v3707_v1 = vsel %vm406_vm4, %v8243_v10, %v3486_v44 }
 0x5f6   : > { %v3778_v2 = vsel %vm1713_vm13, %v3757_v40, %v3642_v60 }
 0x5f7   : > { %v3896_v38 = vpack.c.b16 %v3838_v31, %v3835_v4 }
 0x5f9   : > { %4046 = vmatmul.bf16.gmra.mxu0 %v3896_v38 }
 0x5fb   : > { %v3640_v3 = vpop.permute.xlu1 %3639  ;;  %v3606_v50 = vpop.permute.xlu2 %3605 }
 0x5fc   : > { %v3776_v48 = vsel %vm1713_vm13, %v3754_v15, %v3640_v3  ;;  %v3680_v21 = vpop.permute.xlu0 %3679 }
 0x5fd   : > { %v3792_v25 = vsel %vm1730_vm14, %v3776_v48, %v3680_v21 }
 0x5fe   : > { %v3833_v32 = vunpack.c.l.b16 %v3792_v25 }
 0x600   : > { %v3894_v46 = vpack.c.b16 %v3833_v32, %v3830_v8 }
 0x602   : > { %4070 = vmatmul.bf16.vlgmr.msra.gmra.mxu1 %v3894_v46 }
 0x603   : > { %v3526_v27 = vpop.permute.xlu1 %3525  ;;  %v3684_v59 = vpop.permute.xlu2 %3683 }
 0x60a   : > { %v3488_v29 = vpop.permute.xlu0 %3487 }
 0x60b   : > { %v3604_v39 = vpop.permute.xlu1 %3603  ;;  %v3710_v57 = vsel %vm406_vm4, %v8265_v36, %v3488_v29  ;;  %v3492_v53 = vpop.permute.xlu2 %3491 }
 0x60c   : > { %v3760_v7 = vsel %vm406_vm4, %v8238_v49, %v3604_v39  ;;  %v3726_v49 = vsel %vm1713_vm13, %v3707_v1, %v3526_v27  ;;  %v3728_v62 = vsel %vm1713_vm13, %v3710_v57, %v3528_v54  ;;  %v3716_v15 = vsel %vm406_vm4, %v8321_v58, %v3492_v53  ;;  %v4100_v1 = vpop.f32.mrf.mxu2 }
 0x612   : > { %v3566_v45 = vpop.permute.xlu0 %3565 }
 0x613   : > { %v3682_v51 = vpop.permute.xlu1 %3681  ;;  %v3742_v11 = vsel %vm1730_vm14, %v3726_v49, %v3566_v45  ;;  %v3570_v31 = vpop.permute.xlu2 %3569 }
 0x614   : > { %v3794_v28 = vsel %vm1730_vm14, %v3778_v2, %v3682_v51  ;;  %v3841_v20 = vunpack.c.l.b16 %v3742_v11 }
 0x615   : > { %v3836_v26 = vunpack.c.l.b16 %v3794_v28 }
 0x61a   : > { %v3644_v52 = vpop.permute.xlu0 %3643 }
 0x61b   : > { %v3780_v41 = vsel %vm1713_vm13, %v3760_v7, %v3644_v52  ;;  %v3490_v23 = vpop.permute.xlu1 %3489  ;;  %v3648_v21 = vpop.permute.xlu2 %3647 }
 0x61c   : > { %v3796_v16 = vsel %vm1730_vm14, %v3780_v41, %v3684_v59  ;;  %v3713_v38 = vsel %vm406_vm4, %v8303_v24, %v3490_v23  ;;  %v3763_v24 = vsel %vm406_vm4, %v8259_v30, %v3606_v50 }
 0x61d   : > { %v3839_v0 = vunpack.c.l.b16 %v3796_v16 }
 0x61f   : > { %v3897_v6 = vpack.c.b16 %v3839_v0, %v3836_v26 }
 0x621   : > { %4075 = vmatmul.bf16.gmra.mxu1 %v3897_v6 }
 0x622   : > { %v3530_v42 = vpop.permute.xlu0 %3529 }
 0x623   : > { %v3568_v33 = vpop.permute.xlu1 %3567  ;;  %v3730_v43 = vsel %vm1713_vm13, %v3713_v38, %v3530_v42  ;;  %v3612_v51 = vpop.permute.xlu2 %3611 }
 0x624   : > { %v3744_v5 = vsel %vm1730_vm14, %v3728_v62, %v3568_v33  ;;  %v3746_v12 = vsel %vm1730_vm14, %v3730_v43, %v3570_v31  ;;  %v3772_v30 = vsel %vm406_vm4, %v8346_v17, %v3612_v51 }
 0x625   : > { %v3844_v37 = vunpack.c.l.b16 %v3744_v5  ;;  %v3847_v32 = vunpack.c.l.b16 %v3746_v12  ;;  %v3788_v52 = vsel %vm1713_vm13, %v3772_v30, %v8078_v47  ;;  %v4102_v5 = vpop.f32.mrf.mxu2 }
 0x626   : > { %v3804_v23 = vsel %vm1730_vm14, %v3788_v52, %v8044_v56 }
 0x627   : > { %v3899_v4 = vpack.c.b16 %v3844_v37, %v3841_v20  ;;  %v3851_v26 = vunpack.c.l.b16 %v3804_v23 }
 0x629   : > { %4051 = vmatmul.bf16.gmra.mxu0 %v3899_v4 }
 0x62a   : > { %v3608_v10 = vpop.permute.xlu0 %3607 }
 0x62b   : > { %v3646_v44 = vpop.permute.xlu1 %3645  ;;  %v3766_v27 = vsel %vm406_vm4, %v8286_v55, %v3608_v10  ;;  %v3690_v59 = vpop.permute.xlu2 %3689 }
 0x62c   : > { %v3782_v58 = vsel %vm1713_vm13, %v3763_v24, %v3646_v44  ;;  %v3784_v39 = vsel %vm1713_vm13, %v3766_v27, %v3648_v21 }
 0x62d   : > { %v4105_v12 = vpop.f32.mrf.mxu2 }
 0x632   : > { %v3686_v36 = vpop.permute.xlu0 %3685 }
 0x633   : > { %v3532_v19 = vpop.permute.xlu1 %3531  ;;  %v3798_v54 = vsel %vm1730_vm14, %v3782_v58, %v3686_v36 }
 0x634   : > { %v3732_v3 = vsel %vm1713_vm13, %v3716_v15, %v3532_v19  ;;  %v3842_v40 = vunpack.c.l.b16 %v3798_v54 }
 0x63a   : > { %v3572_v60 = vpop.permute.xlu0 %3571 }
 0x63b   : > { %v3748_v48 = vsel %vm1730_vm14, %v3732_v3, %v3572_v60  ;;  %v3610_v8 = vpop.permute.xlu1 %3609 }
 0x63c   : > { %v3850_v25 = vunpack.c.l.b16 %v3748_v48  ;;  %v3769_v55 = vsel %vm406_vm4, %v8305_v13, %v3610_v8  ;;  %v8431_v13 = vld [vmem:[%s10139_s6] ss:$0 sm:$0xff] }
 0x63e   : > { %v3902_v46 = vpack.c.b16 %v3850_v25, %v3847_v32 }
 0x640   : > { %4056 = vmatmul.bf16.gmra.mxu0 %v3902_v46 }
 0x642   : > { %v3650_v28 = vpop.permute.xlu0 %3649 }
 0x643   : > { %v3688_v29 = vpop.permute.xlu1 %3687  ;;  %v3786_v50 = vsel %vm1713_vm13, %v3769_v55, %v3650_v28 }
 0x644   : > { %v3800_v45 = vsel %vm1730_vm14, %v3784_v39, %v3688_v29  ;;  %v3802_v41 = vsel %vm1730_vm14, %v3786_v50, %v3690_v59  ;;  %v4107_v39 = vpop.f32.mrf.mxu2 }
 0x645   : > { %v3845_v2 = vunpack.c.l.b16 %v3800_v45  ;;  %v3848_v16 = vunpack.c.l.b16 %v3802_v41 }
 0x647   : > { %v3900_v7 = vpack.c.b16 %v3845_v2, %v3842_v40  ;;  %v3903_v0 = vpack.c.b16 %v3851_v26, %v3848_v16 }
 0x649   : > { %4080 = vmatmul.bf16.gmra.mxu1 %v3900_v7 }
 0x64c   : > { %v4110_v16 = vpop.f32.mrf.mxu2 }
 0x64f   : > { %v4042_v6 = vpop.f32.mrf.mxu0 }
 0x650   : > { %v4043_v17 = vadd.f32 %v8431_v13, %v4042_v6 }
 0x657   : > { %v4044_v42 = vpop.f32.mrf.mxu0 }
 0x658   : > { %v4045_v56 = vadd.f32 %v8431_v13, %v4044_v42  ;;  %v4112_v42 = vpop.f32.mrf.mxu2 }
 0x659   : > { %4085 = vmatmul.bf16.gmra.mxu1 %v3903_v0 }
 0x676   : > { %v4047_v43 = vpop.f32.mrf.mxu0 }
 0x677   : > { %v4048_v15 = vadd.f32 %v8431_v13, %v4047_v43 }
 0x67e   : > { %v4049_v25 = vpop.f32.mrf.mxu0 }
 0x67f   : > { %v4071_v47 = vpop.f32.mrf.mxu1  ;;  %v4050_v24 = vadd.f32 %v8431_v13, %v4049_v25 }
 0x680   : > { %v4072_v57 = vadd.f32 %v4071_v47, %v4043_v17 }
 0x682   : > { %v4101_v49 = vadd.f32 %v4100_v1, %v4072_v57 }
 0x684   : > { %v4120_v11 = vmax.f32 %v4101_v49, 0.0 }
 0x686   : > { %4129 = vst.msk [vmem:[#allocation4 + $0x11] sm:$0xff] %vm428_vm0, %v4120_v11  ;;  %4211 = vrot.lane.b32.xlu2 %v4120_v11, %s7179_s26  ;;  %4178 = vrot.lane.b32.xlu0 %v4120_v11, %s7177_s29 }
 0x687   : > { %4145 = vrot.lane.b32.xlu1 %v4120_v11, %s7178_s13  ;;  %v4073_v33 = vpop.f32.mrf.mxu1 }
 0x688   : > { %v4074_v62 = vadd.f32 %v4073_v33, %v4045_v56 }
 0x68a   : > { %v4103_v20 = vadd.f32 %v4102_v5, %v4074_v62 }
 0x68c   : > { %v4121_v37 = vmax.f32 %v4103_v20, 0.0 }
 0x68d   : > { %v4839_v53 = vld [vmem:[#allocation4 + $0x12] sm:$0xff] }
 0x68e   : > { %v4308_v4 = vld [vmem:[#allocation4 + $0x11] sm:$0xff]  ;;  %4130 = vst.msk [vmem:[#allocation4 + $0x21] sm:$0xff] %vm428_vm0, %v4121_v37  ;;  %4147 = vrot.lane.b32.xlu2 %v4121_v37, %s7178_s13  ;;  %4213 = vrot.lane.b32.xlu0 %v4121_v37, %s7179_s26  ;;  %v4847_v10 = vpack.c.bf16 %v4839_v53, %v4839_v53 }
 0x68f   : > { %v8442_v44 = vpack.c.bf16 %v4308_v4, %v4308_v4  ;;  %4180 = vrot.lane.b32.xlu1 %v4121_v37, %s7177_s29 }
 0x690   : > { %v4967_v31 = vunpack.c.l.b16 %v4847_v10 }
 0x691   : > { %10185 = vst [vmem:[#allocation21_spill] sm:$0xff] %v8442_v44  ;;  %v4516_v36 = vunpack.c.l.b16 %v8442_v44 }
 0x692   : > { %v4975_v19 = vpack.c.b16 %v4967_v31, %v4967_v31 }
 0x693   : > { %v4524_v38 = vpack.c.b16 %v4516_v36, %v4516_v36 }
 0x695   : > { %v4840_v48 = vld [vmem:[#allocation4 + $0x22] sm:$0xff] }
 0x696   : > { %5585 = vrot.lane.b32.xlu0 %v4975_v19, %s7175_s21  ;;  %4983 = vrot.lane.b32.xlu2 %v4975_v19, %s7179_s26  ;;  %v5209_v8 = vld [vmem:[#allocation4 + $0x21] sm:$0xff]  ;;  %v4848_v46 = vpack.c.bf16 %v4840_v48, %v4840_v48 }
 0x697   : > { %4532 = vrot.lane.b32.xlu1 %v4524_v38, %s7176_s28  ;;  %v8455_v27 = vpack.c.bf16 %v5209_v8, %v5209_v8 }
 0x698   : > { %v8458_v29 = vunpack.c.l.b16 %v4848_v46 }
 0x699   : > { %10186 = vst [vmem:[#allocation22_spill] sm:$0xff] %v8455_v27  ;;  %v5369_v51 = vunpack.c.l.b16 %v8455_v27 }
 0x69a   : > { %v4976_v2 = vpack.c.b16 %v8458_v29, %v8458_v29 }
 0x69b   : > { %v5377_v28 = vpack.c.b16 %v5369_v51, %v5369_v51 }
 0x69e   : > { %v4076_v3 = vpop.f32.mrf.mxu1  ;;  %5241 = vrot.lane.b32.xlu2 %v4524_v38, %s7171_s17 }
 0x69f   : > { %v4077_v60 = vadd.f32 %v4076_v3, %v4048_v15  ;;  %4927 = vrot.lane.b32.xlu1 %v4524_v38, %s7180_s27  ;;  %v4115_v38 = vpop.f32.mrf.mxu2 }
 0x6a1   : > { %v4106_v21 = vadd.f32 %v4105_v12, %v4077_v60 }
 0x6a3   : > { %v4122_v32 = vmax.f32 %v4106_v21, 0.0 }
 0x6a5   : > { %4131 = vst.msk [vmem:[#allocation4 + $0x31] sm:$0xff] %vm428_vm0, %v4122_v32  ;;  %4149 = vrot.lane.b32.xlu0 %v4122_v32, %s7178_s13 }
 0x6a6   : > { %v4078_v58 = vpop.f32.mrf.mxu1  ;;  %4182 = vrot.lane.b32.xlu2 %v4122_v32, %s7177_s29  ;;  %v4052_v41 = vpop.f32.mrf.mxu0 }
 0x6a7   : > { %v4079_v54 = vadd.f32 %v4078_v58, %v4050_v24  ;;  %4215 = vrot.lane.b32.xlu1 %v4122_v32, %s7179_s26  ;;  %v4053_v0 = vadd.f32 %v8431_v13, %v4052_v41 }
 0x6a9   : > { %v4108_v45 = vadd.f32 %v4107_v39, %v4079_v54  ;;  %v4117_v39 = vpop.f32.mrf.mxu2 }
 0x6ab   : > { %v4123_v40 = vmax.f32 %v4108_v45, 0.0 }
 0x6ac   : > { %v4841_v7 = vld [vmem:[#allocation4 + $0x32] sm:$0xff] }
 0x6ad   : > { %4132 = vst.msk [vmem:[#allocation4 + $0x41] sm:$0xff] %vm428_vm0, %v4123_v40  ;;  %4985 = vrot.lane.b32.xlu0 %v4976_v2, %s7179_s26  ;;  %v4849_v30 = vpack.c.bf16 %v4841_v7, %v4841_v7  ;;  %v4310_v52 = vld [vmem:[#allocation4 + $0x31] sm:$0xff] }
 0x6ae   : > { %4534 = vrot.lane.b32.xlu2 %v5377_v28, %s7176_s28  ;;  %v8475_v59 = vpack.c.bf16 %v4310_v52, %v4310_v52  ;;  %v4054_v47 = vpop.f32.mrf.mxu0 }
 0x6af   : > { %v8467_v55 = vunpack.c.l.b16 %v4849_v30  ;;  %5385 = vrot.lane.b32.xlu1 %v5377_v28, %s7178_s13  ;;  %v4055_v11 = vadd.f32 %v8431_v13, %v4054_v47 }
 0x6b0   : > { %10187 = vst [vmem:[#allocation23_spill] sm:$0xff] %v8475_v59  ;;  %v4518_v23 = vunpack.c.l.b16 %v8475_v59 }
 0x6b1   : > { %v8485_v6 = vpack.c.b16 %v8467_v55, %v8467_v55 }
 0x6b2   : > { %v4526_v26 = vpack.c.b16 %v4518_v23, %v4518_v23 }
 0x6b3   : > { %10188 = vst [vmem:[#allocation24_spill] sm:$0xff] %v8485_v6 }
 0x6b4   : > { %v4842_v5 = vld [vmem:[#allocation4 + $0x42] sm:$0xff] }
 0x6b5   : > { %5243 = vrot.lane.b32.xlu0 %v5377_v28, %s7171_s17  ;;  %v4311_v37 = vld [vmem:[#allocation4 + $0x41] sm:$0xff]  ;;  %v4850_v4 = vpack.c.bf16 %v4842_v5, %v4842_v5 }
 0x6b6   : > { %4929 = vrot.lane.b32.xlu2 %v5377_v28, %s7180_s27  ;;  %v8498_v36 = vpack.c.bf16 %v4311_v37, %v4311_v37 }
 0x6b7   : > { %5587 = vrot.lane.b32.xlu1 %v4976_v2, %s7175_s21  ;;  %v8502_v12 = vunpack.c.l.b16 %v4850_v4 }
 0x6b8   : > { %10189 = vst [vmem:[#allocation25_spill] sm:$0xff] %v8498_v36  ;;  %v4519_v48 = vunpack.c.l.b16 %v8498_v36 }
 0x6b9   : > { %v8514_v32 = vpack.c.b16 %v8502_v12, %v8502_v12 }
 0x6ba   : > { %v8519_v24 = vpack.c.b16 %v4519_v48, %v4519_v48 }
 0x6bb   : > { %10190 = vst [vmem:[#allocation26_spill] sm:$0xff] %v8514_v32 }
 0x6bc   : > { %10191 = vst [vmem:[#allocation27_spill] sm:$0xff] %v8519_v24 }
 0x6bd   : > { %4184 = vrot.lane.b32.xlu0 %v4123_v40, %s7177_s29  ;;  %v4057_v62 = vpop.f32.mrf.mxu0 }
 0x6be   : > { %5657 = vrot.lane.b32.xlu2 %v5377_v28, %s7177_s29  ;;  %v4058_v31 = vadd.f32 %v8431_v13, %v4057_v62 }
 0x6bf   : > { %4151 = vrot.lane.b32.xlu1 %v4123_v40, %s7178_s13 }
 0x6c5   : > { %4536 = vrot.lane.b32.xlu0 %v4526_v26, %s7176_s28  ;;  %v4059_v25 = vpop.f32.mrf.mxu0 }
 0x6c6   : > { %4217 = vrot.lane.b32.xlu2 %v4123_v40, %s7179_s26  ;;  %v4081_v17 = vpop.f32.mrf.mxu1  ;;  %v4060_v46 = vadd.f32 %v8431_v13, %v4059_v25 }
 0x6c7   : > { %4987 = vrot.lane.b32.xlu1 %v8485_v6, %s7179_s26  ;;  %v4082_v1 = vadd.f32 %v4081_v17, %v4053_v0 }
 0x6c9   : > { %v4111_v57 = vadd.f32 %v4110_v16, %v4082_v1  ;;  %v6985_v16 = vld [vmem:[#allocation12 + $0x40] sm:$0xff] }
 0x6ca   : > { %6117 = vmatpush.bf16.msrb.mxu0 %v6985_v16  ;;  %6994 = vmatpush.bf16.msrb.mxu1 %v6985_v16 }
 0x6cb   : > { %v4124_v49 = vmax.f32 %v4111_v57, 0.0 }
 0x6cd   : > { %4931 = vrot.lane.b32.xlu0 %v4526_v26, %s7180_s27  ;;  %4133 = vst.msk [vmem:[#allocation4 + $0x51] sm:$0xff] %vm428_vm0, %v4124_v49 }
 0x6ce   : > { %5387 = vrot.lane.b32.xlu2 %v4526_v26, %s7178_s13  ;;  %v4083_v56 = vpop.f32.mrf.mxu1 }
 0x6cf   : > { %5245 = vrot.lane.b32.xlu1 %v4526_v26, %s7171_s17  ;;  %v4084_v33 = vadd.f32 %v4083_v56, %v4055_v11 }
 0x6d1   : > { %v4113_v20 = vadd.f32 %v4112_v42, %v4084_v33 }
 0x6d3   : > { %v4125_v53 = vmax.f32 %v4113_v20, 0.0 }
 0x6d4   : > { %v4843_v10 = vld [vmem:[#allocation4 + $0x52] sm:$0xff] }
 0x6d5   : > { %5659 = vrot.lane.b32.xlu0 %v4526_v26, %s7177_s29  ;;  %4134 = vst.msk [vmem:[#allocation4 + $0x61] sm:$0xff] %vm428_vm0, %v4125_v53  ;;  %v4851_v19 = vpack.c.bf16 %v4843_v10, %v4843_v10  ;;  %v4312_v30 = vld [vmem:[#allocation4 + $0x51] sm:$0xff] }
 0x6d6   : > { %4153 = vrot.lane.b32.xlu2 %v4124_v49, %s7178_s13  ;;  %v4086_v43 = vpop.f32.mrf.mxu1  ;;  %v8544_v0 = vpack.c.bf16 %v4312_v30, %v4312_v30 }
 0x6d7   : > { %4186 = vrot.lane.b32.xlu1 %v4124_v49, %s7177_s29  ;;  %v4087_v15 = vadd.f32 %v4086_v43, %v4058_v31  ;;  %v8504_v3 = vunpack.c.l.b16 %v4851_v19 }
 0x6d8   : > { %10193 = vst [vmem:[#allocation29_spill] sm:$0xff] %v8544_v0  ;;  %v4520_v1 = vunpack.c.l.b16 %v8544_v0 }
 0x6d9   : > { %v4116_v60 = vadd.f32 %v4115_v38, %v4087_v15  ;;  %v8542_v26 = vpack.c.b16 %v8504_v3, %v8504_v3 }
 0x6da   : > { %v8556_v57 = vpack.c.b16 %v4520_v1, %v4520_v1 }
 0x6db   : > { %v8509_v8 = vmax.f32 %v4116_v60, 0.0  ;;  %10192 = vst [vmem:[#allocation28_spill] sm:$0xff] %v8542_v26 }
 0x6dc   : > { %v4844_v40 = vld [vmem:[#allocation4 + $0x62] sm:$0xff]  ;;  %10195 = vst [vmem:[#allocation31_spill] sm:$0xff] %v8556_v57 }
 0x6dd   : > { %4219 = vrot.lane.b32.xlu0 %v4124_v49, %s7179_s26  ;;  %4135 = vst.msk [vmem:[#allocation4 + $0x71] sm:$0xff] %vm428_vm0, %v8509_v8  ;;  %v4852_v2 = vpack.c.bf16 %v4844_v40, %v4844_v40  ;;  %v4313_v49 = vld [vmem:[#allocation4 + $0x61] sm:$0xff] }
 0x6de   : > { %4989 = vrot.lane.b32.xlu2 %v8514_v32, %s7179_s26  ;;  %v4088_v58 = vpop.f32.mrf.mxu1  ;;  %v8567_v33 = vpack.c.bf16 %v4313_v49, %v4313_v49 }
 0x6df   : > { %4538 = vrot.lane.b32.xlu1 %v8519_v24, %s7176_s28  ;;  %v4089_v54 = vadd.f32 %v4088_v58, %v4060_v46  ;;  %v8537_v23 = vunpack.c.l.b16 %v4852_v2 }
 0x6e0   : > { %v4212_v45 = vpop.permute.xlu2 %4211  ;;  %10196 = vst [vmem:[#allocation32_spill] sm:$0xff] %v8567_v33  ;;  %v4521_v62 = vunpack.c.l.b16 %v8567_v33 }
 0x6e1   : > { %v4118_v51 = vadd.f32 %v4117_v39, %v4089_v54  ;;  %4236 = vst.msk [vmem:[#allocation7 + $0x11] sm:$0xff] %vm428_vm0, %v4212_v45  ;;  %v8585_v4 = vpack.c.b16 %v8537_v23, %v8537_v23 }
 0x6e3   : > { %v8526_v13 = vmax.f32 %v4118_v51, 0.0  ;;  %10198 = vst [vmem:[#allocation34_spill] sm:$0xff] %v8585_v4 }
 0x6e4   : > { %v4845_v7 = vld [vmem:[#allocation4 + $0x72] sm:$0xff] }
 0x6e5   : > { %4155 = vrot.lane.b32.xlu0 %v4125_v53, %s7178_s13  ;;  %4136 = vst.msk [vmem:[#allocation4 + $0x81] sm:$0xff] %vm428_vm0, %v8526_v13  ;;  %v4853_v28 = vpack.c.bf16 %v4845_v7, %v4845_v7 }
 0x6e6   : > { %5247 = vrot.lane.b32.xlu2 %v8519_v24, %s7171_s17 }
 0x6e7   : > { %4933 = vrot.lane.b32.xlu1 %v8519_v24, %s7180_s27  ;;  %v8535_v52 = vunpack.c.l.b16 %v4853_v28  ;;  %v4314_v28 = vld [vmem:[#allocation4 + $0x71] sm:$0xff] }
 0x6e8   : > { %v4148_v41 = vpop.permute.xlu2 %4147  ;;  %v4372_v10 = vld [vmem:[#allocation7 + $0x11] sm:$0xff]  ;;  %v8638_v1 = vpack.c.bf16 %v4314_v28, %v4314_v28 }
 0x6e9   : > { %4171 = vst.msk [vmem:[#allocation5 + $0x21] sm:$0xff] %vm428_vm0, %v4148_v41  ;;  %v4380_v38 = vpack.c.bf16 %v4372_v10, %v4372_v10  ;;  %v8636_v16 = vpack.c.b16 %v8535_v52, %v8535_v52 }
 0x6ea   : > { %10206 = vst [vmem:[#allocation42_spill] sm:$0xff] %v8638_v1 }
 0x6eb   : > { %v8597_v60 = vunpack.c.l.b16 %v4380_v38  ;;  %10205 = vst [vmem:[#allocation41_spill] sm:$0xff] %v8636_v16 }
 0x6ec   : > { %v4846_v58 = vld [vmem:[#allocation4 + $0x82] sm:$0xff] }
 0x6ed   : > { %4991 = vrot.lane.b32.xlu0 %v8542_v26, %s7179_s26  ;;  %v4854_v45 = vpack.c.bf16 %v4846_v58, %v4846_v58  ;;  %v4315_v40 = vld [vmem:[#allocation4 + $0x81] sm:$0xff] }
 0x6ee   : > { %4188 = vrot.lane.b32.xlu2 %v4125_v53, %s7177_s29  ;;  %v8630_v41 = vpack.c.bf16 %v4315_v40, %v4315_v40 }
 0x6ef   : > { %5389 = vrot.lane.b32.xlu1 %v8519_v24, %s7178_s13  ;;  %v8618_v51 = vunpack.c.l.b16 %v4854_v45 }
 0x6f0   : > { %v8554_v47 = vpop.permute.xlu2 %4983  ;;  %10204 = vst [vmem:[#allocation40_spill] sm:$0xff] %v8630_v41 }
 0x6f1   : > { %10194 = vst [vmem:[#allocation30_spill] sm:$0xff] %v8554_v47  ;;  %v8628_v30 = vpack.c.b16 %v8618_v51, %v8618_v51 }
 0x6f3   : > { %10203 = vst [vmem:[#allocation39_spill] sm:$0xff] %v8628_v30 }
 0x6f5   : > { %5249 = vrot.lane.b32.xlu0 %v8556_v57, %s7171_s17 }
 0x6f6   : > { %4540 = vrot.lane.b32.xlu2 %v8556_v57, %s7176_s28 }
 0x6f7   : > { %4221 = vrot.lane.b32.xlu1 %v4125_v53, %s7179_s26  ;;  %v8578_v53 = vpack.c.b16 %v4521_v62, %v4521_v62 }
 0x6f8   : > { %v8563_v42 = vpop.permute.xlu2 %5241  ;;  %v4179_v11 = vpop.permute.xlu0 %4178 }
 0x6f9   : > { %v4146_v56 = vpop.permute.xlu1 %4145  ;;  %4203 = vst.msk [vmem:[#allocation6 + $0x11] sm:$0xff] %vm428_vm0, %v4179_v11  ;;  %v4523_v11 = vunpack.c.l.b16 %v8630_v41 }
 0x6fa   : > { %4170 = vst.msk [vmem:[#allocation5 + $0x11] sm:$0xff] %vm428_vm0, %v4146_v56 }
 0x6fb   : > { %10197 = vst [vmem:[#allocation33_spill] sm:$0xff] %v8578_v53 }
 0x6fd   : > { %4190 = vrot.lane.b32.xlu0 %v8509_v8, %s7177_s29 }
 0x6fe   : > { %4935 = vrot.lane.b32.xlu2 %v8556_v57, %s7180_s27 }
 0x6ff   : > { %4157 = vrot.lane.b32.xlu1 %v8509_v8, %s7178_s13 }
 0x700   : > { %v4183_v5 = vpop.permute.xlu2 %4182  ;;  %v4214_v20 = vpop.permute.xlu0 %4213  ;;  %v4824_v58 = vld [vmem:[#allocation6 + $0x12] sm:$0xff] }
 0x701   : > { %v4181_v37 = vpop.permute.xlu1 %4180  ;;  %4205 = vst.msk [vmem:[#allocation6 + $0x31] sm:$0xff] %vm428_vm0, %v4183_v5  ;;  %v4324_v56 = vld [vmem:[#allocation5 + $0x11] sm:$0xff]  ;;  %v4522_v5 = vunpack.c.l.b16 %v8638_v1 }
 0x702   : > { %4204 = vst.msk [vmem:[#allocation6 + $0x21] sm:$0xff] %vm428_vm0, %v4181_v37  ;;  %v8651_v37 = vpack.c.b16 %v4523_v11, %v4523_v11  ;;  %v4332_v10 = vpack.c.bf16 %v4324_v56, %v4324_v56  ;;  %v4832_v11 = vpack.c.bf16 %v4824_v58, %v4824_v58  ;;  %v4292_v63 = vld [vmem:[#allocation5 + $0x10] sm:$0xff] }
 0x703   : > { %4237 = vst.msk [vmem:[#allocation7 + $0x21] sm:$0xff] %vm428_vm0, %v4214_v20  ;;  %v8655_v38 = vpack.c.b16 %v4522_v5, %v4522_v5 }
 0x704   : > { %10208 = vst [vmem:[#allocation44_spill] sm:$0xff] %v8651_v37 }
 0x705   : > { %4542 = vrot.lane.b32.xlu0 %v8578_v53, %s7176_s28  ;;  %10209 = vst [vmem:[#allocation45_spill] sm:$0xff] %v8655_v38 }
 0x706   : > { %5391 = vrot.lane.b32.xlu2 %v8556_v57, %s7178_s13 }
 0x707   : > { %4993 = vrot.lane.b32.xlu1 %v8585_v4, %s7179_s26 }
 0x708   : > { %v8591_v31 = vpop.permute.xlu2 %4534  ;;  %v8601_v25 = vpop.permute.xlu0 %5585 }
 0x709   : > { %v8593_v19 = vpop.permute.xlu1 %4532  ;;  %10199 = vst [vmem:[#allocation35_spill] sm:$0xff] %v8601_v25  ;;  %v4825_v27 = vld [vmem:[#allocation6 + $0x22] sm:$0xff] }
 0x70a   : > { %v4373_v43 = vld [vmem:[#allocation7 + $0x21] sm:$0xff] }
 0x70b   : > { %v4381_v15 = vpack.c.bf16 %v4373_v43, %v4373_v43 }
 0x70d   : > { %4937 = vrot.lane.b32.xlu0 %v8578_v53, %s7180_s27  ;;  %v8599_v48 = vunpack.c.l.b16 %v4381_v15  ;;  %v4556_v15 = vunpack.c.l.b16 %v4332_v10 }
 0x70e   : > { %4223 = vrot.lane.b32.xlu2 %v8509_v8, %s7179_s26 }
 0x70f   : > { %5251 = vrot.lane.b32.xlu1 %v8578_v53, %s7171_s17  ;;  %v5850_v46 = vpack.c.b16 %v8599_v48, %v8597_v60  ;;  %v8667_v28 = vpack.c.b16 %v4556_v15, %v4556_v15  ;;  %v8817_v61 = vpack.c.b16 %v8599_v48, %v8599_v48 }
 0x710   : > { %v8609_v54 = vpop.permute.xlu2 %4929 }
 0x711   : > { %10200 = vst [vmem:[#allocation36_spill] sm:$0xff] %v8609_v54  ;;  %6837 = vmatmul.msk.bf16.vlgmr.msrb.gmra.mxu0 %vm428_vm0, %v5850_v46  ;;  %v8612_v39 = vpop.permute.xlu1 %4927  ;;  %v4833_v54 = vpack.c.bf16 %v4825_v27, %v4825_v27 }
 0x712   : > { %10201 = vst [vmem:[#allocation37_spill] sm:$0xff] %v8612_v39 }
 0x713   : > { %v8811_v44 = vunpack.c.l.b16 %v4833_v54 }
 0x715   : > { %4225 = vrot.lane.b32.xlu0 %v8526_v13, %s7179_s26 }
 0x716   : > { %4159 = vrot.lane.b32.xlu2 %v8526_v13, %s7178_s13 }
 0x717   : > { %v4150_v8 = vpop.permute.xlu0 %4149  ;;  %5393 = vrot.lane.b32.xlu1 %v8578_v53, %s7178_s13 }
 0x718   : > { %4172 = vst.msk [vmem:[#allocation5 + $0x31] sm:$0xff] %vm428_vm0, %v4150_v8  ;;  %v8623_v2 = vpop.permute.xlu2 %5657 }
 0x719   : > { %10202 = vst [vmem:[#allocation38_spill] sm:$0xff] %v8623_v2  ;;  %v4216_v7 = vpop.permute.xlu1 %4215 }
 0x71a   : > { %4238 = vst.msk [vmem:[#allocation7 + $0x31] sm:$0xff] %vm428_vm0, %v4216_v7 }
 0x71d   : > { %4997 = vrot.lane.b32.xlu0 %v8628_v30, %s7179_s26 }
 0x71e   : > { %4995 = vrot.lane.b32.xlu2 %v8636_v16, %s7179_s26 }
 0x71f   : > { %v8642_v49 = vpop.permute.xlu0 %4985  ;;  %4192 = vrot.lane.b32.xlu1 %v8526_v13, %s7177_s29 }
 0x720   : > { %10207 = vst [vmem:[#allocation43_spill] sm:$0xff] %v8642_v49  ;;  %v4218_v62 = vpop.permute.xlu2 %4217  ;;  %v4293_v49 = vld [vmem:[#allocation5 + $0x20] sm:$0xff] }
 0x721   : > { %v8648_v20 = vpop.permute.xlu1 %5385  ;;  %4239 = vst.msk [vmem:[#allocation7 + $0x41] sm:$0xff] %vm428_vm0, %v4218_v62  ;;  %v4374_v43 = vld [vmem:[#allocation7 + $0x31] sm:$0xff] }
 0x722   : > { %v4382_v46 = vpack.c.bf16 %v4374_v43, %v4374_v43  ;;  %v8679_v43 = vunpack.c.l.b16 %v4832_v11 }
 0x724   : > { %v8669_v56 = vunpack.c.l.b16 %v4382_v46  ;;  %v4904_v58 = vpack.c.b16 %v8679_v43, %v8679_v43 }
 0x725   : > { %5255 = vrot.lane.b32.xlu0 %v8651_v37, %s7171_s17 }
 0x726   : > { %5253 = vrot.lane.b32.xlu2 %v8655_v38, %s7171_s17  ;;  %v8872_v26 = vpack.c.b16 %v8669_v56, %v8669_v56 }
 0x727   : > { %v8659_v13 = vpop.permute.xlu0 %5243  ;;  %4544 = vrot.lane.b32.xlu1 %v8655_v38, %s7176_s28 }
 0x728   : > { %v8663_v45 = vpop.permute.xlu2 %5387  ;;  %v4375_v8 = vld [vmem:[#allocation7 + $0x41] sm:$0xff] }
 0x729   : > { %v8665_v40 = vpop.permute.xlu1 %5587  ;;  %v4383_v7 = vpack.c.bf16 %v4375_v8, %v4375_v8  ;;  %v4356_v8 = vld [vmem:[#allocation6 + $0x11] sm:$0xff] }
 0x72a   : > { %10210 = vst [vmem:[#allocation46_spill] sm:$0xff] %v8665_v40  ;;  %v8694_v11 = vpack.c.bf16 %v4356_v8, %v4356_v8  ;;  %v8777_v40 = vpack.c.bf16 %v4293_v49, %v4293_v49 }
 0x72b   : > { %v8671_v62 = vunpack.c.l.b16 %v4383_v7  ;;  %v8692_v7 = vpack.c.b16 %v8597_v60, %v8597_v60 }
 0x72c   : > { %10211 = vst [vmem:[#allocation47_spill] sm:$0xff] %v8694_v11  ;;  %v4636_v17 = vunpack.c.l.b16 %v8694_v11 }
 0x72d   : > { %4572 = vrot.lane.b32.xlu0 %v8667_v28, %s7179_s26  ;;  %v5852_v5 = vpack.c.b16 %v8671_v62, %v8669_v56 }
 0x72e   : > { %5395 = vrot.lane.b32.xlu2 %v8655_v38, %s7178_s13  ;;  %v8713_v41 = vpack.c.b16 %v4636_v17, %v4636_v17 }
 0x72f   : > { %v4185_v10 = vpop.permute.xlu0 %4184  ;;  %4939 = vrot.lane.b32.xlu1 %v8655_v38, %s7180_s27  ;;  %6838 = vmatmul.msk.bf16.gmra.mxu0 %vm428_vm0, %v5852_v5 }
 0x730   : > { %4206 = vst.msk [vmem:[#allocation6 + $0x41] sm:$0xff] %vm428_vm0, %v4185_v10  ;;  %v4154_v15 = vpop.permute.xlu2 %4153 }
 0x731   : > { %v4152_v46 = vpop.permute.xlu1 %4151  ;;  %4174 = vst.msk [vmem:[#allocation5 + $0x51] sm:$0xff] %vm428_vm0, %v4154_v15 }
 0x732   : > { %4173 = vst.msk [vmem:[#allocation5 + $0x41] sm:$0xff] %vm428_vm0, %v4152_v46 }
 0x735   : > { %4913 = vrot.lane.b32.xlu0 %v4904_v58, %s7175_s21 }
 0x736   : > { %4546 = vrot.lane.b32.xlu2 %v8651_v37, %s7176_s28 }
 0x737   : > { %v8698_v5 = vpop.permute.xlu0 %4536  ;;  %4454 = vrot.lane.b32.xlu1 %v8692_v7, %s7175_s21 }
 0x738   : > { %v8702_v10 = vpop.permute.xlu2 %4989  ;;  %v5228_v15 = vld [vmem:[#allocation5 + $0x51] sm:$0xff] }
 0x739   : > { %v8704_v46 = vpop.permute.xlu1 %4987  ;;  %v5227_v21 = vld [vmem:[#allocation5 + $0x41] sm:$0xff]  ;;  %v5236_v60 = vpack.c.bf16 %v5228_v15, %v5228_v15 }
 0x73a   : > { %10212 = vst [vmem:[#allocation48_spill] sm:$0xff] %v8704_v46  ;;  %v5235_v50 = vpack.c.bf16 %v5227_v21, %v5227_v21  ;;  %v4340_v21 = vld [vmem:[#allocation7 + $0x10] sm:$0xff]  ;;  %v8741_v46 = vpack.c.bf16 %v4292_v63, %v4292_v63 }
 0x73b   : > { %v8707_v8 = vunpack.c.l.b16 %v5236_v60  ;;  %v8728_v17 = vpack.c.bf16 %v4340_v21, %v4340_v21 }
 0x73c   : > { %v8711_v1 = vunpack.c.l.b16 %v5235_v50 }
 0x73d   : > { %4943 = vrot.lane.b32.xlu0 %v8667_v28, %s7176_s28  ;;  %v4596_v14 = vunpack.c.l.b16 %v8728_v17 }
 0x73e   : > { %4941 = vrot.lane.b32.xlu2 %v8651_v37, %s7180_s27  ;;  %v5876_v33 = vpack.c.b16 %v8707_v8, %v8711_v1 }
 0x73f   : > { %v8719_v0 = vpop.permute.xlu0 %4931  ;;  %4652 = vrot.lane.b32.xlu1 %v8713_v41, %s7178_s13  ;;  %v4604_v21 = vpack.c.b16 %v4596_v14, %v4596_v14 }
 0x740   : > { %10213 = vst [vmem:[#allocation49_spill] sm:$0xff] %v8719_v0  ;;  %6846 = vmatmul.msk.bf16.vlgmr.msrb.gmra.mxu1 %vm428_vm0, %v5876_v33  ;;  %v8724_v15 = vpop.permute.xlu2 %5247 }
 0x741   : > { %v8726_v50 = vpop.permute.xlu1 %5245 }
 0x745   : > { %5023 = vrot.lane.b32.xlu0 %v8692_v7, %s7178_s13 }
 0x746   : > { %5397 = vrot.lane.b32.xlu2 %v8651_v37, %s7178_s13  ;;  %v4325_v37 = vld [vmem:[#allocation5 + $0x21] sm:$0xff] }
 0x747   : > { %v8734_v60 = vpop.permute.xlu0 %5659  ;;  %4873 = vrot.lane.b32.xlu1 %v8692_v7, %s7171_s17 }
 0x748   : > { %10214 = vst [vmem:[#allocation50_spill] sm:$0xff] %v8734_v60  ;;  %v4189_v33 = vpop.permute.xlu2 %4188 }
 0x749   : > { %v4187_v36 = vpop.permute.xlu1 %4186  ;;  %4208 = vst.msk [vmem:[#allocation6 + $0x61] sm:$0xff] %vm428_vm0, %v4189_v33  ;;  %v4476_v33 = vunpack.c.l.b16 %v8741_v46 }
 0x74a   : > { %4207 = vst.msk [vmem:[#allocation6 + $0x51] sm:$0xff] %vm428_vm0, %v4187_v36  ;;  %v4262_v36 = vld [vmem:[#allocation6 + $0x21] sm:$0xff] }
 0x74b   : > { %v4484_v14 = vpack.c.b16 %v4476_v33, %v4476_v33  ;;  %v8764_v47 = vpack.c.bf16 %v4262_v36, %v4262_v36 }
 0x74d   : > { %5273 = vrot.lane.b32.xlu0 %v4604_v21, %s7180_s27  ;;  %10216 = vst [vmem:[#allocation52_spill] sm:$0xff] %v8764_v47 }
 0x74e   : > { %4414 = vrot.lane.b32.xlu2 %v8713_v41, %s7171_s17 }
 0x74f   : > { %v4220_v0 = vpop.permute.xlu0 %4219  ;;  %4999 = vrot.lane.b32.xlu1 %v8713_v41, %s7177_s29 }
 0x750   : > { %4240 = vst.msk [vmem:[#allocation7 + $0x51] sm:$0xff] %vm428_vm0, %v4220_v0  ;;  %v8749_v2 = vpop.permute.xlu2 %4540 }
 0x751   : > { %10215 = vst [vmem:[#allocation51_spill] sm:$0xff] %v8749_v2  ;;  %v8752_v60 = vpop.permute.xlu1 %4538  ;;  %v6981_v2 = vld [vmem:[#allocation12 + $0x20] sm:$0xff] }
 0x755   : > { %5305 = vrot.lane.b32.xlu0 %v8692_v7, %s7179_s26 }
 0x756   : > { %4492 = vrot.lane.b32.xlu2 %v4484_v14, %s7180_s27  ;;  %v4398_v14 = vunpack.c.l.b16 %v8764_v47  ;;  %v4341_v47 = vld [vmem:[#allocation7 + $0x20] sm:$0xff] }
 0x757   : > { %v4156_v63 = vpop.permute.xlu0 %4155  ;;  %5257 = vrot.lane.b32.xlu1 %v8667_v28, %s7175_s21  ;;  %v8796_v39 = vpack.c.bf16 %v4341_v47, %v4341_v47  ;;  %v4376_v35 = vld [vmem:[#allocation7 + $0x51] sm:$0xff] }
 0x758   : > { %4175 = vst.msk [vmem:[#allocation5 + $0x61] sm:$0xff] %vm428_vm0, %v4156_v63  ;;  %v8760_v0 = vpop.permute.xlu2 %4935  ;;  %v8779_v36 = vpack.c.b16 %v4398_v14, %v4398_v14 }
 0x759   : > { %v8762_v22 = vpop.permute.xlu1 %4933 }
 0x75d   : > { %5641 = vrot.lane.b32.xlu0 %v4904_v58, %s7179_s26  ;;  %v4333_v58 = vpack.c.bf16 %v4325_v37, %v4325_v37 }
 0x75e   : > { %4612 = vrot.lane.b32.xlu2 %v4604_v21, %s7177_s29 }
 0x75f   : > { %v8768_v33 = vpop.permute.xlu0 %4991  ;;  %5569 = vrot.lane.b32.xlu1 %v8667_v28, %s7171_s17  ;;  %v4477_v28 = vunpack.c.l.b16 %v8777_v40  ;;  %v8791_v14 = vunpack.c.l.b16 %v4333_v58  ;;  %v5229_v54 = vld [vmem:[#allocation5 + $0x61] sm:$0xff] }
 0x760   : > { %v8773_v63 = vpop.permute.xlu2 %5391 }
 0x761   : > { %10217 = vst [vmem:[#allocation53_spill] sm:$0xff] %v8773_v63  ;;  %v8775_v59 = vpop.permute.xlu1 %5389  ;;  %v8794_v37 = vpack.c.b16 %v4477_v28, %v4477_v28  ;;  %v4384_v28 = vpack.c.bf16 %v4376_v35, %v4376_v35  ;;  %v8825_v35 = vpack.c.b16 %v8811_v44, %v8811_v44 }
 0x763   : > { %v8819_v30 = vunpack.c.l.b16 %v4384_v28  ;;  %v5237_v28 = vpack.c.bf16 %v5229_v54, %v5229_v54 }
 0x765   : > { %4416 = vrot.lane.b32.xlu0 %v8779_v36, %s7171_s17  ;;  %v8842_v11 = vunpack.c.l.b16 %v5237_v28 }
 0x766   : > { %5289 = vrot.lane.b32.xlu2 %v8713_v41, %s7176_s28 }
 0x767   : > { %v8785_v21 = vpop.permute.xlu0 %5249  ;;  %5617 = vrot.lane.b32.xlu1 %v8692_v7, %s7176_s28  ;;  %v8802_v7 = vpack.c.b16 %v8791_v14, %v8791_v14 }
 0x768   : > { %v4224_v49 = vpop.permute.xlu2 %4223 }
 0x769   : > { %v4222_v25 = vpop.permute.xlu1 %4221  ;;  %4242 = vst.msk [vmem:[#allocation7 + $0x71] sm:$0xff] %vm428_vm0, %v4224_v49 }
 0x76a   : > { %4241 = vst.msk [vmem:[#allocation7 + $0x61] sm:$0xff] %vm428_vm0, %v4222_v25  ;;  %v4597_v25 = vunpack.c.l.b16 %v8796_v39 }
 0x76b   : > { %10218 = vst [vmem:[#allocation54_spill] sm:$0xff] %v8802_v7 }
 0x76c   : > { %v4605_v9 = vpack.c.b16 %v4597_v25, %v4597_v25 }
 0x76d   : > { %4494 = vrot.lane.b32.xlu0 %v8794_v37, %s7180_s27 }
 0x76e   : > { %5601 = vrot.lane.b32.xlu2 %v8713_v41, %s7180_s27 }
 0x76f   : > { %v4191_v58 = vpop.permute.xlu0 %4190  ;;  %4574 = vrot.lane.b32.xlu1 %v8802_v7, %s7179_s26 }
 0x770   : > { %4209 = vst.msk [vmem:[#allocation6 + $0x71] sm:$0xff] %vm428_vm0, %v4191_v58  ;;  %v4160_v47 = vpop.permute.xlu2 %4159 }
 0x771   : > { %4177 = vst.msk [vmem:[#allocation5 + $0x81] sm:$0xff] %vm428_vm0, %v4160_v47  ;;  %v4158_v49 = vpop.permute.xlu1 %4157  ;;  %v4377_v27 = vld [vmem:[#allocation7 + $0x61] sm:$0xff] }
 0x772   : > { %4176 = vst.msk [vmem:[#allocation5 + $0x71] sm:$0xff] %vm428_vm0, %v4158_v49  ;;  %v4385_v41 = vpack.c.bf16 %v4377_v27, %v4377_v27 }
 0x774   : > { %v8821_v58 = vunpack.c.l.b16 %v4385_v41 }
 0x775   : > { %4614 = vrot.lane.b32.xlu0 %v4605_v9, %s7177_s29 }
 0x776   : > { %4456 = vrot.lane.b32.xlu2 %v8817_v61, %s7175_s21  ;;  %v5854_v25 = vpack.c.b16 %v8821_v58, %v8819_v30 }
 0x777   : > { %v8831_v47 = vpop.permute.xlu0 %4542  ;;  %4915 = vrot.lane.b32.xlu1 %v8825_v35, %s7175_s21  ;;  %v4861_v32 = vld [vmem:[#allocation6 + $0x72] sm:$0xff] }
 0x778   : > { %10219 = vst [vmem:[#allocation55_spill] sm:$0xff] %v8831_v47  ;;  %6839 = vmatmul.msk.bf16.gmra.mxu0 %vm428_vm0, %v5854_v25  ;;  %v8836_v48 = vpop.permute.xlu2 %4995  ;;  %v5231_v28 = vld [vmem:[#allocation5 + $0x81] sm:$0xff] }
 0x779   : > { %10220 = vst [vmem:[#allocation56_spill] sm:$0xff] %v8836_v48  ;;  %v8838_v49 = vpop.permute.xlu1 %4993  ;;  %v5230_v27 = vld [vmem:[#allocation5 + $0x71] sm:$0xff] }
 0x77a   : > { %10221 = vst [vmem:[#allocation57_spill] sm:$0xff] %v8838_v49  ;;  %v5238_v41 = vpack.c.bf16 %v5230_v27, %v5230_v27 }
 0x77c   : > { %v8844_v16 = vunpack.c.l.b16 %v5238_v41  ;;  %v5232_v41 = vld [vmem:[#allocation5 + $0x91] sm:$0xff] }
 0x77d   : > { %5291 = vrot.lane.b32.xlu0 %v8779_v36, %s7176_s28  ;;  %v5240_v53 = vpack.c.bf16 %v5232_v41, %v5232_v41  ;;  %v4378_v41 = vld [vmem:[#allocation7 + $0x71] sm:$0xff] }
 0x77e   : > { %10222 = vst [vmem:[#allocation58_spill] sm:$0xff] %v8844_v16  ;;  %4654 = vrot.lane.b32.xlu2 %v8779_v36, %s7178_s13  ;;  %v5878_v25 = vpack.c.b16 %v8844_v16, %v8842_v11  ;;  %v5239_v16 = vpack.c.bf16 %v5231_v28, %v5231_v28 }
 0x77f   : > { %v8850_v38 = vpop.permute.xlu0 %4937  ;;  %4945 = vrot.lane.b32.xlu1 %v8802_v7, %s7176_s28  ;;  %v8876_v57 = vunpack.c.l.b16 %v5240_v53 }
 0x780   : > { %10223 = vst [vmem:[#allocation59_spill] sm:$0xff] %v8850_v38  ;;  %6847 = vmatmul.msk.bf16.gmra.mxu1 %vm428_vm0, %v5878_v25  ;;  %v8855_v54 = vpop.permute.xlu2 %5253  ;;  %v4358_v25 = vld [vmem:[#allocation6 + $0x31] sm:$0xff]  ;;  %v8874_v24 = vunpack.c.l.b16 %v5239_v16 }
 0x781   : > { %10224 = vst [vmem:[#allocation60_spill] sm:$0xff] %v8855_v54  ;;  %v8857_v27 = vpop.permute.xlu1 %5251  ;;  %v8878_v28 = vpack.c.bf16 %v4358_v25, %v4358_v25 }
 0x782   : > { %10225 = vst [vmem:[#allocation61_spill] sm:$0xff] %v8857_v27 }
 0x783   : > { %10228 = vst [vmem:[#allocation64_spill] sm:$0xff] %v8874_v24  ;;  %v4638_v16 = vunpack.c.l.b16 %v8878_v28 }
 0x784   : > { %10229 = vst [vmem:[#allocation65_spill] sm:$0xff] %v8876_v57 }
 0x785   : > { %5603 = vrot.lane.b32.xlu0 %v8779_v36, %s7180_s27 }
 0x786   : > { %4875 = vrot.lane.b32.xlu2 %v8817_v61, %s7171_s17 }
 0x787   : > { %v4226_v48 = vpop.permute.xlu0 %4225  ;;  %5025 = vrot.lane.b32.xlu1 %v8817_v61, %s7178_s13 }
 0x788   : > { %4243 = vst.msk [vmem:[#allocation7 + $0x81] sm:$0xff] %vm428_vm0, %v4226_v48  ;;  %v8866_v54 = vpop.permute.xlu2 %5395  ;;  %v4386_v48 = vpack.c.bf16 %v4378_v41, %v4378_v41 }
 0x789   : > { %10226 = vst [vmem:[#allocation62_spill] sm:$0xff] %v8866_v54  ;;  %v8868_v4 = vpop.permute.xlu1 %5393  ;;  %v5880_v54 = vpack.c.b16 %v8876_v57, %v8874_v24 }
 0x78a   : > { %10227 = vst [vmem:[#allocation63_spill] sm:$0xff] %v8868_v4  ;;  %v8893_v41 = vunpack.c.l.b16 %v4386_v48 }
 0x78d   : > { %4458 = vrot.lane.b32.xlu0 %v8872_v26, %s7175_s21 }
 0x78e   : > { %5001 = vrot.lane.b32.xlu2 %v8779_v36, %s7177_s29  ;;  %v8898_v36 = vpack.c.b16 %v4638_v16, %v4638_v16  ;;  %v10237_v16 = vpack.c.b16 %v8467_v55, %v8458_v29 }
 0x78f   : > { %v8886_v4 = vpop.permute.xlu0 %4997  ;;  %v4379_v56 = vld [vmem:[#allocation7 + $0x81] sm:$0xff]  ;;  %5275 = vrot.lane.b32.xlu1 %v4605_v9, %s7180_s27 }
 0x790   : > { %10230 = vst [vmem:[#allocation66_spill] sm:$0xff] %v8886_v4  ;;  %v4387_v53 = vpack.c.bf16 %v4379_v56, %v4379_v56  ;;  %6848 = vmatmul.msk.bf16.gmra.mxu1 %vm428_vm0, %v5880_v54  ;;  %v8891_v25 = vpop.permute.xlu2 %4546 }
 0x791   : > { %10231 = vst [vmem:[#allocation67_spill] sm:$0xff] %v8891_v25  ;;  %v4193_v27 = vpop.permute.xlu1 %4192 }
 0x792   : > { %v8895_v49 = vunpack.c.l.b16 %v4387_v53  ;;  %4210 = vst.msk [vmem:[#allocation6 + $0x81] sm:$0xff] %vm428_vm0, %v4193_v27 }
 0x793   : > { %10233 = vst [vmem:[#allocation69_spill] sm:$0xff] %v8898_v36 }
 0x794   : > { %10232 = vst [vmem:[#allocation68_spill] sm:$0xff] %v8895_v49  ;;  %v5856_v57 = vpack.c.b16 %v8895_v49, %v8893_v41 }
 0x795   : > { %4656 = vrot.lane.b32.xlu0 %v8898_v36, %s7178_s13 }
 0x796   : > { %6840 = vmatmul.msk.bf16.gmra.mxu0 %vm428_vm0, %v5856_v57  ;;  %5259 = vrot.lane.b32.xlu2 %v8802_v7, %s7175_s21  ;;  %v4326_v57 = vld [vmem:[#allocation5 + $0x31] sm:$0xff] }
 0x797   : > { %v8907_v9 = vpop.permute.xlu0 %5255  ;;  %5307 = vrot.lane.b32.xlu1 %v8817_v61, %s7179_s26  ;;  %v4334_v24 = vpack.c.bf16 %v4326_v57, %v4326_v57 }
 0x798   : > { %10234 = vst [vmem:[#allocation70_spill] sm:$0xff] %v8907_v9  ;;  %v8911_v54 = vpop.permute.xlu2 %4941  ;;  %v4294_v9 = vld [vmem:[#allocation5 + $0x30] sm:$0xff] }
 0x799   : > { %10235 = vst [vmem:[#allocation71_spill] sm:$0xff] %v8911_v54  ;;  %v8913_v27 = vpop.permute.xlu1 %4544  ;;  %v8935_v4 = vpack.c.bf16 %v4294_v9, %v4294_v9  ;;  %v8942_v55 = vunpack.c.l.b16 %v4334_v24 }
 0x79a   : > { %10236 = vst [vmem:[#allocation72_spill] sm:$0xff] %v8913_v27  ;;  %v6984_v27 = vld [vmem:[#allocation12 + $0x38] sm:$0xff] }
 0x79b   : > { %v4478_v9 = vunpack.c.l.b16 %v8935_v4  ;;  %v8953_v57 = vpack.c.b16 %v8942_v55, %v8942_v55  ;;  %6021 = vmatpush.bf16.msrb.mxu2 %v6984_v27  ;;  %6986 = vmatpush.bf16.msrb.mxu3 %v6984_v27 }
 0x79d   : > { %4877 = vrot.lane.b32.xlu0 %v8872_v26, %s7171_s17  ;;  %10241 = vst [vmem:[#allocation76_spill] sm:$0xff] %v8953_v57  ;;  %v4486_v24 = vpack.c.b16 %v4478_v9, %v4478_v9 }
 0x79e   : > { %5345 = vrot.lane.b32.xlu2 %v8794_v37, %s7177_s29  ;;  %v5862_v37 = vpack.c.b16 %v8811_v44, %v8679_v43  ;;  %v4858_v44 = vld [vmem:[#allocation6 + $0x42] sm:$0xff] }
 0x79f   : > { %v8919_v48 = vpop.permute.xlu0 %4572  ;;  %5643 = vrot.lane.b32.xlu1 %v8825_v35, %s7179_s26 }
 0x7a0   : > { %6849 = vmatmul.msk.bf16.gmra.mxu1 %vm428_vm0, %v10237_v16  ;;  %v8927_v56 = vpop.permute.xlu2 %5397  ;;  %v4342_v16 = vld [vmem:[#allocation7 + $0x30] sm:$0xff] }
 0x7a1   : > { %10238 = vst [vmem:[#allocation73_spill] sm:$0xff] %v8927_v56  ;;  %v8929_v53 = vpop.permute.xlu1 %4939  ;;  %v4866_v56 = vpack.c.bf16 %v4858_v44, %v4858_v44  ;;  %v8957_v54 = vpack.c.bf16 %v4342_v16, %v4342_v16  ;;  %v10243_v44 = vpack.c.b16 %v8504_v3, %v8502_v12  ;;  %v6982_v3 = vld [vmem:[#allocation12 + $0x28] sm:$0xff] }
 0x7a2   : > { %10239 = vst [vmem:[#allocation74_spill] sm:$0xff] %v8929_v53 }
 0x7a3   : > { %v8964_v25 = vunpack.c.l.b16 %v4866_v56  ;;  %v4598_v16 = vunpack.c.l.b16 %v8957_v54 }
 0x7a5   : > { %5003 = vrot.lane.b32.xlu0 %v8898_v36, %s7177_s29  ;;  %v8977_v56 = vpack.c.b16 %v4598_v16, %v4598_v16 }
 0x7a6   : > { %6841 = vmatmul.msk.bf16.gmra.mxu0 %vm428_vm0, %v5862_v37  ;;  %5571 = vrot.lane.b32.xlu2 %v8802_v7, %s7171_s17  ;;  %v4857_v37 = vld [vmem:[#allocation6 + $0x32] sm:$0xff] }
 0x7a7   : > { %v8940_v29 = vpop.permute.xlu0 %4913  ;;  %4418 = vrot.lane.b32.xlu1 %v8898_v36, %s7171_s17 }
 0x7a8   : > { %10240 = vst [vmem:[#allocation75_spill] sm:$0xff] %v8940_v29  ;;  %v8946_v35 = vpop.permute.xlu2 %4414  ;;  %v4865_v29 = vpack.c.bf16 %v4857_v37, %v4857_v37 }
 0x7a9   : > { %v8948_v43 = vpop.permute.xlu1 %4454 }
 0x7aa   : > { %v5180_v37 = vunpack.c.l.b16 %v4865_v29  ;;  %v4859_v29 = vld [vmem:[#allocation6 + $0x52] sm:$0xff] }
 0x7ab   : > { %v4867_v16 = vpack.c.bf16 %v4859_v29, %v4859_v29  ;;  %v6980_v29 = vld [vmem:[#allocation12 + $0x18] sm:$0xff] }
 0x7ad   : > { %5261 = vrot.lane.b32.xlu0 %v8953_v57, %s7175_s21 }
 0x7ae   : > { %5619 = vrot.lane.b32.xlu2 %v8817_v61, %s7176_s28  ;;  %v5864_v61 = vpack.c.b16 %v8964_v25, %v5180_v37 }
 0x7af   : > { %v8961_v53 = vpop.permute.xlu0 %4943  ;;  %4496 = vrot.lane.b32.xlu1 %v4486_v24, %s7180_s27 }
 0x7b0   : > { %10242 = vst [vmem:[#allocation77_spill] sm:$0xff] %v8961_v53  ;;  %6850 = vmatmul.msk.bf16.gmra.mxu1 %vm428_vm0, %v10243_v44  ;;  %v8970_v47 = vpop.permute.xlu2 %4492  ;;  %v6983_v53 = vld [vmem:[#allocation12 + $0x30] sm:$0xff]  ;;  %v4860_v44 = vld [vmem:[#allocation6 + $0x62] sm:$0xff] }
 0x7b1   : > { %v8972_v9 = vpop.permute.xlu1 %4652  ;;  %6022 = vmatpush.bf16.msrb.mxu2 %v6983_v53  ;;  %6987 = vmatpush.bf16.msrb.mxu3 %v6983_v53 }
 0x7b5   : > { %5347 = vrot.lane.b32.xlu0 %v4486_v24, %s7177_s29  ;;  %6023 = vmatpush.bf16.msrb.mxu2 %v6982_v3 }
 0x7b6   : > { %6842 = vmatmul.msk.bf16.gmra.mxu0 %vm428_vm0, %v5864_v61  ;;  %4576 = vrot.lane.b32.xlu2 %v8953_v57, %s7179_s26  ;;  %v4868_v61 = vpack.c.bf16 %v4860_v44, %v4860_v44  ;;  %v10247_v44 = vpack.c.b16 %v8535_v52, %v8537_v23  ;;  %v9022_v52 = vpack.c.b16 %v8671_v62, %v8671_v62  ;;  %v4862_v62 = vld [vmem:[#allocation6 + $0x82] sm:$0xff] }
 0x7b7   : > { %v8982_v12 = vpop.permute.xlu0 %5023  ;;  %4616 = vrot.lane.b32.xlu1 %v8977_v56, %s7177_s29  ;;  %6988 = vmatpush.bf16.msrb.mxu3 %v6982_v3 }
 0x7b8   : > { %10244 = vst [vmem:[#allocation78_spill] sm:$0xff] %v8982_v12  ;;  %v8986_v27 = vpop.permute.xlu2 %4612  ;;  %v8992_v12 = vpack.c.b16 %v5180_v37, %v5180_v37  ;;  %v9002_v3 = vunpack.c.l.b16 %v4868_v61 }
 0x7b9   : > { %v8988_v24 = vpop.permute.xlu1 %4873  ;;  %6024 = vmatpush.bf16.msrb.mxu2 %v6981_v2 }
 0x7ba   : > { %10245 = vst [vmem:[#allocation79_spill] sm:$0xff] %v8988_v24  ;;  %v9000_v24 = vunpack.c.l.b16 %v4867_v16  ;;  %v6979_v16 = vld [vmem:[#allocation12 + $0x10] sm:$0xff] }
 0x7bb   : > { %10246 = vst [vmem:[#allocation80_spill] sm:$0xff] %v8992_v12  ;;  %6989 = vmatpush.bf16.msrb.mxu3 %v6981_v2  ;;  %v9014_v2 = vpack.c.b16 %v8711_v1, %v8711_v1 }
 0x7bc   : > { %v5866_v61 = vpack.c.b16 %v9002_v3, %v9000_v24 }
 0x7bd   : > { %5309 = vrot.lane.b32.xlu0 %v8872_v26, %s7179_s26  ;;  %6025 = vmatpush.bf16.msrb.mxu2 %v6980_v29 }
 0x7be   : > { %4917 = vrot.lane.b32.xlu2 %v8992_v12, %s7175_s21  ;;  %v4359_v12 = vld [vmem:[#allocation6 + $0x41] sm:$0xff] }
 0x7bf   : > { %v8996_v53 = vpop.permute.xlu0 %5273  ;;  %5293 = vrot.lane.b32.xlu1 %v8898_v36, %s7176_s28  ;;  %6990 = vmatpush.bf16.msrb.mxu3 %v6980_v29  ;;  %v5560_v36 = vld [vmem:[#allocation4 + $0x92] sm:$0xff]  ;;  %v9025_v23 = vpack.c.bf16 %v4359_v12, %v4359_v12 }
 0x7c0   : > { %6851 = vmatmul.msk.bf16.gmra.mxu1 %vm428_vm0, %v10247_v44  ;;  %v9008_v37 = vpop.permute.xlu2 %5289  ;;  %v5568_v29 = vpack.c.bf16 %v5560_v36, %v5560_v36  ;;  %v6978_v44 = vld [vmem:[#allocation12 + $0x8] sm:$0xff]  ;;  %v4870_v36 = vpack.c.bf16 %v4862_v62, %v4862_v62 }
 0x7c1   : > { %v9010_v38 = vpop.permute.xlu1 %4999  ;;  %6026 = vmatpush.bf16.msrb.mxu2 %v6979_v16  ;;  %v4639_v12 = vunpack.c.l.b16 %v9025_v23 }
 0x7c2   : > { %10248 = vst [vmem:[#allocation81_spill] sm:$0xff] %v9010_v38  ;;  %v5848_v7 = vunpack.c.l.b16 %v5568_v29 }
 0x7c3   : > { %6991 = vmatpush.bf16.msrb.mxu3 %v6979_v16  ;;  %v6977_v16 = vld [vmem:[#allocation12] sm:$0xff]  ;;  %v9044_v49 = vpack.c.b16 %v4639_v12, %v4639_v12 }
 0x7c4   : > { %v4343_v12 = vld [vmem:[#allocation7 + $0x40] sm:$0xff] }
 0x7c5   : > { %4578 = vrot.lane.b32.xlu0 %v9014_v2, %s7179_s26  ;;  %6027 = vmatpush.bf16.msrb.mxu2 %v6978_v44 }
 0x7c6   : > { %6843 = vmatmul.msk.bf16.gmra.mxu0 %vm428_vm0, %v5866_v61  ;;  %4947 = vrot.lane.b32.xlu2 %v8953_v57, %s7176_s28  ;;  %v9040_v61 = vpack.c.b16 %v8964_v25, %v8964_v25  ;;  %v5892_v57 = vpack.c.b16 %v5848_v7, %v8618_v51  ;;  %v9053_v25 = vunpack.c.l.b16 %v4870_v36 }
 0x7c7   : > { %v9029_v1 = vpop.permute.xlu0 %5305  ;;  %4460 = vrot.lane.b32.xlu1 %v9022_v52, %s7175_s21  ;;  %6992 = vmatpush.bf16.msrb.mxu3 %v6978_v44  ;;  %v4244_v44 = vld [vmem:[#allocation7] sm:$0xff] }
 0x7c8   : > { %v9033_v38 = vpop.permute.xlu2 %5601  ;;  %10251 = vst [vmem:[#allocation84_spill] sm:$0xff] %v9053_v25  ;;  %v4252_v7 = vpack.c.bf16 %v4244_v44, %v4244_v44 }
 0x7c9   : > { %10249 = vst [vmem:[#allocation82_spill] sm:$0xff] %v9033_v38  ;;  %v9035_v6 = vpop.permute.xlu1 %5257  ;;  %v4869_v38 = vpack.c.bf16 %v4861_v32, %v4861_v32  ;;  %6028 = vmatpush.bf16.msrb.mxu2 %v6977_v16 }
 0x7cb   : > { %6993 = vmatpush.bf16.msrb.mxu3 %v6977_v16  ;;  %v9060_v62 = vunpack.c.l.b16 %v4869_v38  ;;  %v4670_v38 = vsel %vm428_vm0, %v4252_v7, %v8092_v18  ;;  %v4295_v16 = vld [vmem:[#allocation5 + $0x40] sm:$0xff] }
 0x7cd   : > { %4919 = vrot.lane.b32.xlu0 %v9040_v61, %s7175_s21  ;;  %v5868_v51 = vpack.c.b16 %v9053_v25, %v9060_v62  ;;  %v4673_v25 = vsel %vm428_vm0, %v8728_v17, %v8946_v35  ;;  %v4265_v35 = vld [vmem:[#allocation6 + $0x51] sm:$0xff] }
 0x7ce   : > { %5027 = vrot.lane.b32.xlu2 %v8872_v26, %s7178_s13  ;;  %v4695_v17 = vsel %vm406_vm4, %v4673_v25, %v8948_v43  ;;  %v5874_v25 = vpack.c.b16 %v8942_v55, %v8791_v14 }
 0x7cf   : > { %v9049_v63 = vpop.permute.xlu0 %5641  ;;  %4658 = vrot.lane.b32.xlu1 %v9044_v49, %s7178_s13 }
 0x7d0   : > { %10250 = vst [vmem:[#allocation83_spill] sm:$0xff] %v9049_v63  ;;  %6852 = vmatmul.msk.bf16.gmra.mxu1 %vm428_vm0, %v5892_v57  ;;  %v9056_v29 = vpop.permute.xlu2 %4456  ;;  %v9077_v63 = vpack.c.bf16 %v4343_v12, %v4343_v12 }
 0x7d1   : > { %v9058_v32 = vpop.permute.xlu1 %5569 }
 0x7d2   : > { %10252 = vst [vmem:[#allocation85_spill] sm:$0xff] %v9058_v32  ;;  %v4599_v7 = vunpack.c.l.b16 %v9077_v63 }
 0x7d5   : > { %4949 = vrot.lane.b32.xlu0 %v9014_v2, %s7176_s28 }
 0x7d6   : > { %6844 = vmatmul.msk.bf16.gmra.mxu0 %vm428_vm0, %v5868_v51  ;;  %5277 = vrot.lane.b32.xlu2 %v8977_v56, %s7180_s27  ;;  %v4693_v51 = vsel %vm406_vm4, %v4670_v38, %v8063_v34  ;;  %v9081_v56 = vpack.c.bf16 %v4295_v16, %v4295_v16 }
 0x7d7   : > { %v9069_v57 = vpop.permute.xlu0 %4416  ;;  %4879 = vrot.lane.b32.xlu1 %v9022_v52, %s7171_s17  ;;  %v4710_v32 = vsel %vm4708_vm15, %v4693_v51, %v8970_v47 }
 0x7d8   : > { %v4655_v36 = vpop.permute.xlu2 %4654  ;;  %v4726_v34 = vsel %vm1713_vm13, %v4710_v32, %v8593_v19  ;;  %v4479_v38 = vunpack.c.l.b16 %v9081_v56  ;;  %v9105_v19 = vpack.c.bf16 %v4265_v35, %v4265_v35 }
 0x7d9   : > { %v9075_v44 = vpop.permute.xlu1 %5617  ;;  %v4743_v51 = vsel %vm4741_vm1, %v4726_v34, %v8919_v48 }
 0x7da   : > { %10253 = vst [vmem:[#allocation86_spill] sm:$0xff] %v9075_v44  ;;  %v4607_v44 = vpack.c.b16 %v4599_v7, %v4599_v7  ;;  %v4759_v32 = vsel %vm1730_vm14, %v4743_v51, %v8986_v27  ;;  %v4401_v27 = vunpack.c.l.b16 %v9105_v19 }
 0x7db   : > { %v4776_v48 = vsel %vm4774_vm2, %v4759_v32, %v8972_v9 }
 0x7dc   : > { %v4807_v35 = vunpack.c.l.b16 %v4776_v48 }
 0x7dd   : > { %5029 = vrot.lane.b32.xlu0 %v9022_v52, %s7178_s13 }
 0x7de   : > { %4420 = vrot.lane.b32.xlu2 %v9044_v49, %s7171_s17 }
 0x7df   : > { %v4495_v18 = vpop.permute.xlu0 %4494  ;;  %5005 = vrot.lane.b32.xlu1 %v9044_v49, %s7177_s29 }
 0x7e0   : > { %v4712_v47 = vsel %vm4708_vm15, %v4695_v17, %v4495_v18  ;;  %v9100_v12 = vpop.permute.xlu2 %4875  ;;  %v4487_v18 = vpack.c.b16 %v4479_v38, %v4479_v38  ;;  %v4296_v17 = vld [vmem:[#allocation5 + $0x50] sm:$0xff] }
 0x7e1   : > { %10254 = vst [vmem:[#allocation87_spill] sm:$0xff] %v9100_v12  ;;  %v4575_v16 = vpop.permute.xlu1 %4574  ;;  %v4728_v43 = vsel %vm1713_vm13, %v4712_v47, %v8591_v31  ;;  %v9128_v38 = vpack.c.bf16 %v4296_v17, %v4296_v17 }
 0x7e2   : > { %v4745_v7 = vsel %vm4741_vm1, %v4728_v43, %v4575_v16  ;;  %v9130_v16 = vpack.c.b16 %v4401_v27, %v4401_v27  ;;  %v4344_v43 = vld [vmem:[#allocation7 + $0x50] sm:$0xff]  ;;  %v9147_v27 = vpack.c.b16 %v8707_v8, %v8707_v8  ;;  %v9161_v8 = vpack.c.b16 %v9000_v24, %v9000_v24 }
 0x7e4   : > { %10260 = vst [vmem:[#allocation93_spill] sm:$0xff] %v9161_v8 }
 0x7e5   : > { %5279 = vrot.lane.b32.xlu0 %v4607_v44, %s7180_s27 }
 0x7e6   : > { %6845 = vmatmul.msk.bf16.gmra.mxu0 %vm428_vm0, %v5874_v25  ;;  %4498 = vrot.lane.b32.xlu2 %v4487_v18, %s7180_s27 }
 0x7e7   : > { %v4615_v34 = vpop.permute.xlu0 %4614  ;;  %5263 = vrot.lane.b32.xlu1 %v9014_v2, %s7175_s21 }
 0x7e8   : > { %v4761_v31 = vsel %vm1730_vm14, %v4745_v7, %v4615_v34  ;;  %v9124_v55 = vpop.permute.xlu2 %5001  ;;  %v9142_v34 = vpack.c.bf16 %v4344_v43, %v4344_v43  ;;  %v9174_v43 = vpack.c.b16 %v8819_v30, %v8819_v30 }
 0x7e9   : > { %v4778_v14 = vsel %vm4774_vm2, %v4761_v31, %v4655_v36  ;;  %10255 = vst [vmem:[#allocation88_spill] sm:$0xff] %v9124_v55  ;;  %v9126_v9 = vpop.permute.xlu1 %4915  ;;  %v4480_v36 = vunpack.c.l.b16 %v9128_v38  ;;  %v5403_v55 = vsel %vm428_vm0, %v8741_v46, %v8563_v42 }
 0x7ea   : > { %v4809_v47 = vunpack.c.l.b16 %v4778_v14  ;;  %10256 = vst [vmem:[#allocation89_spill] sm:$0xff] %v9126_v9  ;;  %v4600_v17 = vunpack.c.l.b16 %v9142_v34 }
 0x7eb   : > { %v4488_v7 = vpack.c.b16 %v4480_v36, %v4480_v36  ;;  %10262 = vst [vmem:[#allocation95_spill] sm:$0xff] %v9174_v43 }
 0x7ec   : > { %v5849_v51 = vpack.c.b16 %v4809_v47, %v4807_v35  ;;  %v4608_v35 = vpack.c.b16 %v4600_v17, %v4600_v17 }
 0x7ed   : > { %4422 = vrot.lane.b32.xlu0 %v9130_v16, %s7171_s17 }
 0x7ee   : > { %6029 = vmatmul.bf16.vlgmr.msrb.gmra.mxu2 %v5849_v51  ;;  %4618 = vrot.lane.b32.xlu2 %v4607_v44, %s7177_s29 }
 0x7ef   : > { %v9135_v32 = vpop.permute.xlu0 %5291  ;;  %5311 = vrot.lane.b32.xlu1 %v9022_v52, %s7179_s26 }
 0x7f0   : > { %v5260_v25 = vpop.permute.xlu2 %5259 }
 0x7f1   : > { %v9140_v48 = vpop.permute.xlu1 %4945 }
 0x7f2   : > { %10257 = vst [vmem:[#allocation90_spill] sm:$0xff] %v9140_v48 }
 0x7f5   : > { %4500 = vrot.lane.b32.xlu0 %v4488_v7, %s7180_s27 }
 0x7f6   : > { %5295 = vrot.lane.b32.xlu2 %v9044_v49, %s7176_s28 }
 0x7f7   : > { %v9151_v44 = vpop.permute.xlu0 %5603  ;;  %4580 = vrot.lane.b32.xlu1 %v9147_v27, %s7179_s26 }
 0x7f8   : > { %10258 = vst [vmem:[#allocation91_spill] sm:$0xff] %v9151_v44  ;;  %v5346_v31 = vpop.permute.xlu2 %5345 }
 0x7f9   : > { %v9156_v14 = vpop.permute.xlu1 %5025 }
 0x7fa   : > { %10259 = vst [vmem:[#allocation92_spill] sm:$0xff] %v9156_v14  ;;  %v4266_v14 = vld [vmem:[#allocation6 + $0x61] sm:$0xff] }
 0x7fd   : > { %4620 = vrot.lane.b32.xlu0 %v4608_v35, %s7177_s29 }
 0x7fe   : > { %5349 = vrot.lane.b32.xlu2 %v4487_v18, %s7177_s29 }
 0x7ff   : > { %v9164_v47 = vpop.permute.xlu0 %4458  ;;  %4921 = vrot.lane.b32.xlu1 %v9161_v8, %s7175_s21  ;;  %v9214_v8 = vpack.c.b16 %v8821_v58, %v8821_v58  ;;  %v5406_v58 = vsel %vm428_vm0, %v8777_v40, %v8659_v13 }
 0x800   : > { %v9168_v51 = vpop.permute.xlu2 %5571 }
 0x801   : > { %10261 = vst [vmem:[#allocation94_spill] sm:$0xff] %v9168_v51  ;;  %v5276_v36 = vpop.permute.xlu1 %5275  ;;  %v4297_v51 = vld [vmem:[#allocation5 + $0x60] sm:$0xff] }
 0x802   : > { %v9220_v42 = vpack.c.bf16 %v4297_v51, %v4297_v51 }
 0x805   : > { %5297 = vrot.lane.b32.xlu0 %v9130_v16, %s7176_s28 }
 0x806   : > { %4462 = vrot.lane.b32.xlu2 %v9174_v43, %s7175_s21 }
 0x807   : > { %v9178_v24 = vpop.permute.xlu0 %4656  ;;  %4951 = vrot.lane.b32.xlu1 %v9147_v27, %s7176_s28 }
 0x808   : > { %v9182_v18 = vpop.permute.xlu2 %5619 }
 0x809   : > { %10263 = vst [vmem:[#allocation96_spill] sm:$0xff] %v9182_v18  ;;  %v5308_v17 = vpop.permute.xlu1 %5307  ;;  %v9197_v18 = vpack.c.bf16 %v4266_v14, %v4266_v14 }
 0x80b   : > { %v4402_v14 = vunpack.c.l.b16 %v9197_v18 }
 0x80d   : > { %5351 = vrot.lane.b32.xlu0 %v4488_v7, %s7177_s29  ;;  %v9222_v46 = vpack.c.b16 %v4402_v14, %v4402_v14  ;;  %v4481_v14 = vunpack.c.l.b16 %v9220_v42 }
 0x80e   : > { %4660 = vrot.lane.b32.xlu2 %v9130_v16, %s7178_s13 }
 0x80f   : > { %v9187_v9 = vpop.permute.xlu0 %4877  ;;  %5031 = vrot.lane.b32.xlu1 %v9174_v43, %s7178_s13  ;;  %v4489_v40 = vpack.c.b16 %v4481_v14, %v4481_v14 }
 0x810   : > { %v9191_v30 = vpop.permute.xlu2 %4576 }
 0x811   : > { %v9193_v12 = vpop.permute.xlu1 %5643 }
 0x812   : > { %10264 = vst [vmem:[#allocation97_spill] sm:$0xff] %v9193_v12  ;;  %v5426_v12 = vsel %vm406_vm4, %v5403_v55, %v9035_v6 }
 0x815   : > { %5313 = vrot.lane.b32.xlu0 %v9174_v43, %s7179_s26 }
 0x816   : > { %4881 = vrot.lane.b32.xlu2 %v9174_v43, %s7171_s17 }
 0x817   : > { %v9201_v7 = vpop.permute.xlu0 %5003  ;;  %5281 = vrot.lane.b32.xlu1 %v4608_v35, %s7180_s27  ;;  %v5442_v35 = vsel %vm4708_vm15, %v5426_v12, %v8996_v53  ;;  %v5428_v12 = vsel %vm406_vm4, %v5406_v58, %v5260_v25 }
 0x818   : > { %10265 = vst [vmem:[#allocation98_spill] sm:$0xff] %v9201_v7  ;;  %v9207_v44 = vpop.permute.xlu2 %4917  ;;  %v5458_v55 = vsel %vm1713_vm13, %v5442_v35, %v9008_v37  ;;  %v5444_v43 = vsel %vm4708_vm15, %v5428_v12, %v5276_v36  ;;  %v4345_v37 = vld [vmem:[#allocation7 + $0x60] sm:$0xff] }
 0x819   : > { %v4419_v48 = vpop.permute.xlu1 %4418  ;;  %v5474_v7 = vsel %vm4741_vm1, %v5458_v55, %v9029_v1  ;;  %v5460_v13 = vsel %vm1713_vm13, %v5444_v43, %v9135_v32 }
 0x81a   : > { %v5490_v35 = vsel %vm1730_vm14, %v5474_v7, %v5346_v31  ;;  %v5476_v58 = vsel %vm4741_vm1, %v5460_v13, %v5308_v17  ;;  %v9267_v17 = vpack.c.b16 %v8842_v11, %v8842_v11  ;;  %v9282_v13 = vpack.c.b16 %v9002_v3, %v9002_v3 }
 0x81b   : > { %v5506_v25 = vsel %vm4774_vm2, %v5490_v35, %v8648_v20 }
 0x81c   : > { %v5537_v43 = vunpack.c.l.b16 %v5506_v25 }
 0x81d   : > { %4464 = vrot.lane.b32.xlu0 %v9214_v8, %s7175_s21 }
 0x81e   : > { %5007 = vrot.lane.b32.xlu2 %v9130_v16, %s7177_s29 }
 0x81f   : > { %v9226_v6 = vpop.permute.xlu0 %5261  ;;  %4424 = vrot.lane.b32.xlu1 %v9222_v46, %s7171_s17 }
 0x820   : > { %v9235_v53 = vpop.permute.xlu2 %4947 }
 0x821   : > { %10266 = vst [vmem:[#allocation99_spill] sm:$0xff] %v9235_v53  ;;  %v4497_v51 = vpop.permute.xlu1 %4496  ;;  %v9247_v53 = vpack.c.bf16 %v4345_v37, %v4345_v37 }
 0x823   : > { %v4601_v20 = vunpack.c.l.b16 %v9247_v53 }
 0x825   : > { %4662 = vrot.lane.b32.xlu0 %v9222_v46, %s7178_s13  ;;  %v4609_v14 = vpack.c.b16 %v4601_v20, %v4601_v20 }
 0x826   : > { %5265 = vrot.lane.b32.xlu2 %v9147_v27, %s7175_s21 }
 0x827   : > { %v5348_v1 = vpop.permute.xlu0 %5347  ;;  %4502 = vrot.lane.b32.xlu1 %v4489_v40, %s7180_s27  ;;  %v4330_v40 = vld [vmem:[#allocation5 + $0x71] sm:$0xff] }
 0x828   : > { %v5492_v31 = vsel %vm1730_vm14, %v5476_v58, %v5348_v1  ;;  %v9258_v32 = vpop.permute.xlu2 %5027  ;;  %v4676_v1 = vsel %vm428_vm0, %v8796_v39, %v9069_v57 }
 0x829   : > { %v5508_v36 = vsel %vm4774_vm2, %v5492_v31, %v8663_v45  ;;  %v4617_v55 = vpop.permute.xlu1 %4616  ;;  %v4338_v31 = vpack.c.bf16 %v4330_v40, %v4330_v40  ;;  %v4697_v3 = vsel %vm406_vm4, %v4676_v1, %v9056_v29 }
 0x82a   : > { %v5539_v7 = vunpack.c.l.b16 %v5508_v36  ;;  %v4679_v36 = vsel %vm428_vm0, %v8957_v54, %v4419_v48 }
 0x82b   : > { %v4562_v20 = vunpack.c.l.b16 %v4338_v31  ;;  %v4699_v29 = vsel %vm406_vm4, %v4679_v36, %v9164_v47 }
 0x82c   : > { %v9261_v12 = vpack.c.b16 %v5539_v7, %v5537_v43  ;;  %v4714_v43 = vsel %vm4708_vm15, %v4697_v3, %v4497_v51  ;;  %v4362_v51 = vld [vmem:[#allocation6 + $0x71] sm:$0xff]  ;;  %v9324_v3 = vpack.c.b16 %v8893_v41, %v8893_v41 }
 0x82d   : > { %4883 = vrot.lane.b32.xlu0 %v9214_v8, %s7171_s17  ;;  %v4730_v57 = vsel %vm1713_vm13, %v4714_v43, %v8698_v5  ;;  %v9313_v48 = vpack.c.b16 %v4562_v20, %v4562_v20  ;;  %v9326_v47 = vpack.c.bf16 %v4362_v51, %v4362_v51 }
 0x82e   : > { %4582 = vrot.lane.b32.xlu2 %v9267_v17, %s7179_s26  ;;  %v4747_v1 = vsel %vm4741_vm1, %v4730_v57, %v9191_v30  ;;  %v5196_v57 = vld [vmem:[#allocation5 + $0x60] sm:$0xff] }
 0x82f   : > { %v9271_v45 = vpop.permute.xlu0 %5309  ;;  %4622 = vrot.lane.b32.xlu1 %v4609_v14, %s7177_s29  ;;  %v4763_v31 = vsel %vm1730_vm14, %v4747_v1, %v4617_v55 }
 0x830   : > { %v9274_v37 = vpop.permute.xlu2 %5277  ;;  %v4780_v30 = vsel %vm4774_vm2, %v4763_v31, %v9178_v24  ;;  %v9347_v24 = vpack.c.b16 %v9060_v62, %v9060_v62  ;;  %v5409_v62 = vsel %vm428_vm0, %v8935_v4, %v8726_v50 }
 0x831   : > { %v9276_v35 = vpop.permute.xlu1 %5293 }
 0x835   : > { %5009 = vrot.lane.b32.xlu0 %v9222_v46, %s7177_s29 }
 0x836   : > { %4923 = vrot.lane.b32.xlu2 %v9282_v13, %s7175_s21 }
 0x837   : > { %v4579_v11 = vpop.permute.xlu0 %4578  ;;  %5299 = vrot.lane.b32.xlu1 %v9222_v46, %s7176_s28 }
 0x838   : > { %v9288_v25 = vpop.permute.xlu2 %4420 }
 0x839   : > { %v9290_v58 = vpop.permute.xlu1 %4460 }
 0x83d   : > { %5267 = vrot.lane.b32.xlu0 %v9267_v17, %s7175_s21 }
 0x83e   : > { %4953 = vrot.lane.b32.xlu2 %v9267_v17, %s7176_s28 }
 0x83f   : > { %v9304_v7 = vpop.permute.xlu0 %4919  ;;  %5315 = vrot.lane.b32.xlu1 %v9214_v8, %s7179_s26 }
 0x840   : > { %v4499_v39 = vpop.permute.xlu2 %4498 }
 0x841   : > { %v4659_v40 = vpop.permute.xlu1 %4658  ;;  %v4716_v54 = vsel %vm4708_vm15, %v4699_v29, %v4499_v39  ;;  %v4642_v39 = vunpack.c.l.b16 %v9326_v47 }
 0x842   : > { %v4732_v5 = vsel %vm1713_vm13, %v4716_v54, %v8752_v60  ;;  %v5050_v60 = vsel %vm428_vm0, %v8878_v28, %v9187_v9  ;;  %v5204_v28 = vpack.c.bf16 %v5196_v57, %v5196_v57  ;;  %v4298_v57 = vld [vmem:[#allocation5 + $0x70] sm:$0xff] }
 0x843   : > { %v4749_v43 = vsel %vm4741_vm1, %v4732_v5, %v4579_v11  ;;  %v5070_v29 = vsel %vm406_vm4, %v5050_v60, %v9207_v44  ;;  %v4811_v11 = vunpack.c.l.b16 %v4780_v30  ;;  %v9353_v1 = vpack.c.b16 %v4642_v39, %v4642_v39 }
 0x844   : > { %v5086_v9 = vsel %vm4708_vm15, %v5070_v29, %v8762_v22  ;;  %v5333_v30 = vunpack.c.l.b16 %v5204_v28  ;;  %v5430_v22 = vsel %vm406_vm4, %v5409_v62, %v9226_v6  ;;  %v5412_v39 = vsel %vm428_vm0, %v9081_v56, %v8724_v15 }
 0x845   : > { %4584 = vrot.lane.b32.xlu0 %v9313_v48, %s7179_s26  ;;  %v9391_v28 = vpack.c.bf16 %v4298_v57, %v4298_v57 }
 0x846   : > { %5033 = vrot.lane.b32.xlu2 %v9214_v8, %s7178_s13  ;;  %v5341_v4 = vpack.c.b16 %v5333_v30, %v5333_v30 }
 0x847   : > { %v4950_v36 = vpop.permute.xlu0 %4949  ;;  %4466 = vrot.lane.b32.xlu1 %v9324_v3, %s7175_s21 }
 0x848   : > { %v4619_v55 = vpop.permute.xlu2 %4618  ;;  %v5102_v44 = vsel %vm1713_vm13, %v5086_v9, %v4950_v36  ;;  %v5197_v9 = vld [vmem:[#allocation5 + $0x70] sm:$0xff] }
 0x849   : > { %v9338_v41 = vpop.permute.xlu1 %4879  ;;  %v4765_v20 = vsel %vm1730_vm14, %v4749_v43, %v4619_v55  ;;  %v5118_v36 = vsel %vm4741_vm1, %v5102_v44, %v8702_v10  ;;  %v4346_v10 = vld [vmem:[#allocation7 + $0x70] sm:$0xff]  ;;  %v4482_v44 = vunpack.c.l.b16 %v9391_v28  ;;  %v5205_v30 = vpack.c.bf16 %v5197_v9, %v5197_v9 }
 0x84a   : > { %v4782_v54 = vsel %vm4774_vm2, %v4765_v20, %v4659_v40 }
 0x84b   : > { %v4813_v51 = vunpack.c.l.b16 %v4782_v54 }
 0x84d   : > { %4925 = vrot.lane.b32.xlu0 %v9347_v24, %s7175_s21  ;;  %v5851_v31 = vpack.c.b16 %v4813_v51, %v4811_v11  ;;  %v9388_v11 = vpack.c.bf16 %v4346_v10, %v4346_v10  ;;  %v4331_v10 = vld [vmem:[#allocation5 + $0x81] sm:$0xff] }
 0x84e   : > { %5283 = vrot.lane.b32.xlu2 %v4609_v14, %s7180_s27  ;;  %v5446_v14 = vsel %vm4708_vm15, %v5430_v22, %v9274_v37  ;;  %v4490_v22 = vpack.c.b16 %v4482_v44, %v4482_v44 }
 0x84f   : > { %v5030_v40 = vpop.permute.xlu0 %5029  ;;  %4664 = vrot.lane.b32.xlu1 %v9353_v1, %s7178_s13  ;;  %6034 = vmatmul.bf16.gmra.mxu2 %v5851_v31  ;;  %v5462_v50 = vsel %vm1713_vm13, %v5446_v14, %v9276_v35  ;;  %v4602_v56 = vunpack.c.l.b16 %v9388_v11  ;;  %v4299_v14 = vld [vmem:[#allocation5 + $0x80] sm:$0xff] }
 0x850   : > { %v5296_v5 = vpop.permute.xlu2 %5295  ;;  %v5478_v20 = vsel %vm4741_vm1, %v5462_v50, %v9271_v45  ;;  %v9419_v50 = vpack.c.bf16 %v4299_v14, %v4299_v14 }
 0x851   : > { %v5006_v55 = vpop.permute.xlu1 %5005 }
 0x852   : > { %v5134_v43 = vsel %vm1730_vm14, %v5118_v36, %v5006_v55  ;;  %v5334_v36 = vunpack.c.l.b16 %v5205_v30  ;;  %v4483_v57 = vunpack.c.l.b16 %v9419_v50 }
 0x853   : > { %v9370_v60 = vsel %vm4774_vm2, %v5134_v43, %v5030_v40 }
 0x855   : > { %4955 = vrot.lane.b32.xlu0 %v9313_v48, %s7176_s28 }
 0x856   : > { %5353 = vrot.lane.b32.xlu2 %v5341_v4, %s7177_s29 }
 0x857   : > { %v5280_v6 = vpop.permute.xlu0 %5279  ;;  %4885 = vrot.lane.b32.xlu1 %v9324_v3, %s7171_s17 }
 0x858   : > { %v5350_v37 = vpop.permute.xlu2 %5349 }
 0x859   : > { %v5264_v29 = vpop.permute.xlu1 %5263  ;;  %v9385_v54 = vsel %vm1730_vm14, %v5478_v20, %v5350_v37  ;;  %v9425_v37 = vld [vmem:[%s10141_s8] ss:$0 sm:$0xff]  ;;  %v4339_v20 = vpack.c.bf16 %v4331_v10, %v4331_v10 }
 0x85a   : > { %v5432_v35 = vsel %vm406_vm4, %v5412_v39, %v5264_v29  ;;  %v6119_v29 = vpop.f32.mrf.mxu0 }
 0x85b   : > { %v5448_v51 = vsel %vm4708_vm15, %v5432_v35, %v5280_v6  ;;  %v5342_v6 = vpack.c.b16 %v5334_v36, %v5334_v36  ;;  %v4347_v35 = vld [vmem:[#allocation7 + $0x80] sm:$0xff] }
 0x85c   : > { %v5464_v45 = vsel %vm1713_vm13, %v5448_v51, %v5296_v5  ;;  %v4610_v5 = vpack.c.b16 %v4602_v56, %v4602_v56  ;;  %v4355_v36 = vpack.c.bf16 %v4347_v35, %v4347_v35 }
 0x85d   : > { %5035 = vrot.lane.b32.xlu0 %v9324_v3, %s7178_s13 }
 0x85e   : > { %4426 = vrot.lane.b32.xlu2 %v9353_v1, %s7171_s17  ;;  %v4603_v35 = vunpack.c.l.b16 %v4355_v36 }
 0x85f   : > { %v9398_v15 = vpop.permute.xlu0 %4422  ;;  %5011 = vrot.lane.b32.xlu1 %v9353_v1, %s7177_s29 }
 0x860   : > { %v9403_v31 = vpop.permute.xlu2 %4462 }
 0x861   : > { %v5312_v40 = vpop.permute.xlu1 %5311 }
 0x862   : > { %v9407_v62 = vsel %vm4741_vm1, %v5464_v45, %v5312_v40  ;;  %v4563_v40 = vunpack.c.l.b16 %v4339_v20 }
 0x864   : > { %v9454_v10 = vpack.c.b16 %v4563_v40, %v4563_v40 }
 0x865   : > { %5285 = vrot.lane.b32.xlu0 %v4610_v5, %s7180_s27 }
 0x866   : > { %4504 = vrot.lane.b32.xlu2 %v4490_v22, %s7180_s27  ;;  %v4491_v22 = vpack.c.b16 %v4483_v57, %v4483_v57 }
 0x867   : > { %v9411_v55 = vpop.permute.xlu0 %4500  ;;  %5269 = vrot.lane.b32.xlu1 %v9313_v48, %s7175_s21 }
 0x868   : > { %v9415_v43 = vpop.permute.xlu2 %4660 }
 0x869   : > { %v9417_v4 = vpop.permute.xlu1 %4580 }
 0x86d   : > { %5355 = vrot.lane.b32.xlu0 %v5342_v6, %s7177_s29 }
 0x86e   : > { %4624 = vrot.lane.b32.xlu2 %v4610_v5, %s7177_s29  ;;  %v4363_v5 = vld [vmem:[#allocation6 + $0x81] sm:$0xff] }
 0x86f   : > { %v9428_v39 = vpop.permute.xlu0 %4620  ;;  %5317 = vrot.lane.b32.xlu1 %v9324_v3, %s7179_s26  ;;  %v4371_v6 = vpack.c.bf16 %v4363_v5, %v4363_v5 }
 0x870   : > { %v4882_v51 = vpop.permute.xlu2 %4881 }
 0x871   : > { %v6030_v45 = vpop.f32.mrf.mxu2  ;;  %v4922_v56 = vpop.permute.xlu1 %4921  ;;  %v5056_v9 = vsel %vm428_vm0, %v9105_v19, %v4882_v51  ;;  %v5053_v19 = vsel %vm428_vm0, %v9025_v23, %v9338_v41 }
 0x872   : > { %v6031_v44 = vadd.f32 %v9425_v37, %v6030_v45  ;;  %v9443_v30 = vsel %vm406_vm4, %v5056_v9, %v4922_v56  ;;  %v5072_v20 = vsel %vm406_vm4, %v5053_v19, %v9304_v7  ;;  %v6121_v9 = vpop.f32.mrf.mxu0 }
 0x873   : > { %v5088_v45 = vsel %vm4708_vm15, %v5072_v20, %v8760_v0  ;;  %v5510_v0 = vsel %vm4774_vm2, %v9385_v54, %v8775_v59  ;;  %v10267_v20 = vld [vmem:[#allocation53_spill] sm:$0xff] }
 0x874   : > { %v9448_v14 = vadd.f32 %v6119_v29, %v6031_v44  ;;  %v4643_v29 = vunpack.c.l.b16 %v4371_v6  ;;  %v9466_v44 = vpack.c.b16 %v4603_v35, %v4603_v35  ;;  %v5415_v6 = vsel %vm428_vm0, %v9128_v38, %v8785_v21 }
 0x875   : > { %4506 = vrot.lane.b32.xlu0 %v4491_v22, %s7180_s27 }
 0x876   : > { %6200 = vst.msk [vmem:[%s9440_s18] sm:$0xff] %vm6199_vm3, %v9448_v14  ;;  %5301 = vrot.lane.b32.xlu2 %v9353_v1, %s7176_s28  ;;  %v9475_v36 = vpack.c.b16 %v4643_v29, %v4643_v29 }
 0x877   : > { %v5298_v57 = vpop.permute.xlu0 %5297  ;;  %4586 = vrot.lane.b32.xlu1 %v9454_v10, %s7179_s26 }
 0x878   : > { %v5008_v23 = vpop.permute.xlu2 %5007 }
 0x879   : > { %v6032_v41 = vpop.f32.mrf.mxu2  ;;  %v4952_v51 = vpop.permute.xlu1 %4951 }
 0x87a   : > { %v6033_v56 = vadd.f32 %v9425_v37, %v6032_v41  ;;  %v5104_v7 = vsel %vm1713_vm13, %v5088_v45, %v4952_v51  ;;  %v5541_v41 = vunpack.c.l.b16 %v5510_v0  ;;  %v10270_v0 = vld [vmem:[#allocation26_spill] sm:$0xff] }
 0x87b   : > { %v5120_v40 = vsel %vm4741_vm1, %v5104_v7, %v8768_v33 }
 0x87c   : > { %v9470_v5 = vadd.f32 %v6121_v9, %v6033_v56  ;;  %v5136_v22 = vsel %vm1730_vm14, %v5120_v40, %v5008_v23  ;;  %v10269_v56 = vld [vmem:[#allocation68_spill] sm:$0xff] }
 0x87d   : > { %4626 = vrot.lane.b32.xlu0 %v9466_v44, %s7177_s29  ;;  %v9504_v21 = vpack.c.b16 %v10269_v56, %v10269_v56 }
 0x87e   : > { %6201 = vst.msk [vmem:[%s9440_s18 + $0x20] sm:$0xff] %vm6199_vm3, %v9470_v5  ;;  %4666 = vrot.lane.b32.xlu2 %v9475_v36, %s7178_s13 }
 0x87f   : > { %v5352_v33 = vpop.permute.xlu0 %5351  ;;  %4957 = vrot.lane.b32.xlu1 %v9454_v10, %s7176_s28 }
 0x880   : > { %v5496_v19 = vsel %vm1730_vm14, %v9407_v62, %v5352_v33  ;;  %v5266_v23 = vpop.permute.xlu2 %5265  ;;  %v10268_v62 = vld [vmem:[#allocation76_spill] sm:$0xff] }
 0x881   : > { %v5512_v35 = vsel %vm4774_vm2, %v5496_v19, %v10267_v20  ;;  %v5032_v54 = vpop.permute.xlu1 %5031  ;;  %v5434_v29 = vsel %vm406_vm4, %v5415_v6, %v5266_v23  ;;  %v10271_v6 = vld [vmem:[#allocation54_spill] sm:$0xff] }
 0x882   : > { %v5543_v59 = vunpack.c.l.b16 %v5512_v35  ;;  %v9496_v51 = vsel %vm4774_vm2, %v5136_v22, %v5032_v54  ;;  %v10272_v54 = vld [vmem:[#allocation24_spill] sm:$0xff] }
 0x884   : > { %v9498_v45 = vpack.c.b16 %v5543_v59, %v5541_v41 }
 0x885   : > { %5573 = vrot.lane.b32.xlu0 %v10268_v62, %s7171_s17 }
 0x886   : > { %5013 = vrot.lane.b32.xlu2 %v9475_v36, %s7177_s29 }
 0x887   : > { %v5314_v38 = vpop.permute.xlu0 %5313  ;;  %5037 = vrot.lane.b32.xlu1 %v9504_v21, %s7178_s13 }
 0x888   : > { %v4583_v9 = vpop.permute.xlu2 %4582 }
 0x889   : > { %v5282_v7 = vpop.permute.xlu1 %5281 }
 0x88a   : > { %v5450_v40 = vsel %vm4708_vm15, %v5434_v29, %v5282_v7  ;;  %v10274_v7 = vld [vmem:[#allocation51_spill] sm:$0xff] }
 0x88b   : > { %v5466_v22 = vsel %vm1713_vm13, %v5450_v40, %v5298_v57  ;;  %v4682_v57 = vsel %vm428_vm0, %v9077_v63, %v9288_v25  ;;  %v10275_v40 = vld [vmem:[#allocation55_spill] sm:$0xff] }
 0x88c   : > { %v9515_v33 = vsel %vm4741_vm1, %v5466_v22, %v5314_v38  ;;  %v4701_v59 = vsel %vm406_vm4, %v4682_v57, %v9290_v58 }
 0x88d   : > { %5591 = vrot.lane.b32.xlu0 %v10270_v0, %s7175_s21  ;;  %v4718_v63 = vsel %vm4708_vm15, %v4701_v59, %v9411_v55  ;;  %v10276_v0 = vld [vmem:[#allocation69_spill] sm:$0xff] }
 0x88e   : > { %5683 = vrot.lane.b32.xlu2 %v10268_v62, %s7178_s13  ;;  %v10273_v62 = vld [vmem:[#allocation59_spill] sm:$0xff] }
 0x88f   : > { %v4465_v19 = vpop.permute.xlu0 %4464  ;;  %5681 = vrot.lane.b32.xlu1 %v10271_v6, %s7178_s13 }
 0x890   : > { %v4924_v20 = vpop.permute.xlu2 %4923 }
 0x891   : > { %v4425_v35 = vpop.permute.xlu1 %4424 }
 0x892   : > { %v4688_v23 = vsel %vm428_vm0, %v9247_v53, %v4425_v35  ;;  %v4685_v53 = vsel %vm428_vm0, %v9142_v34, %v9398_v15  ;;  %v4734_v34 = vsel %vm1713_vm13, %v4718_v63, %v10274_v7  ;;  %v10281_v7 = vld [vmem:[#allocation27_spill] sm:$0xff] }
 0x893   : > { %v9527_v41 = vsel %vm406_vm4, %v4688_v23, %v4465_v19  ;;  %v4703_v38 = vsel %vm406_vm4, %v4685_v53, %v9403_v31  ;;  %v4751_v55 = vsel %vm4741_vm1, %v4734_v34, %v9417_v4  ;;  %v5198_v34 = vld [vmem:[#allocation5 + $0x80] sm:$0xff] }
 0x895   : > { %5621 = vrot.lane.b32.xlu0 %v8872_v26, %s7176_s28  ;;  %v5090_v26 = vsel %vm4708_vm15, %v9443_v30, %v10273_v62  ;;  %v4767_v30 = vsel %vm1730_vm14, %v4751_v55, %v9428_v39 }
 0x896   : > { %5589 = vrot.lane.b32.xlu2 %v10272_v54, %s7175_s21  ;;  %v4784_v39 = vsel %vm4774_vm2, %v4767_v30, %v9415_v43  ;;  %v10278_v54 = vld [vmem:[#allocation57_spill] sm:$0xff] }
 0x897   : > { %v4663_v29 = vpop.permute.xlu0 %4662  ;;  %5575 = vrot.lane.b32.xlu1 %v9014_v2, %s7171_s17  ;;  %v4815_v57 = vunpack.c.l.b16 %v4784_v39 }
 0x898   : > { %v4954_v25 = vpop.permute.xlu2 %4953 }
 0x899   : > { %v5106_v58 = vsel %vm1713_vm13, %v5090_v26, %v4954_v25  ;;  %v4503_v56 = vpop.permute.xlu1 %4502  ;;  %v5183_v25 = vunpack.c.l.b16 %v9496_v51 }
 0x89a   : > { %v4720_v15 = vsel %vm4708_vm15, %v4703_v38, %v4503_v56  ;;  %v5122_v53 = vsel %vm4741_vm1, %v5106_v58, %v10278_v54  ;;  %v10279_v58 = vld [vmem:[#allocation61_spill] sm:$0xff]  ;;  %v6124_v54 = vpop.f32.mrf.mxu0 }
 0x89b   : > { %v4736_v22 = vsel %vm1713_vm13, %v4720_v15, %v10275_v40  ;;  %v5418_v56 = vsel %vm428_vm0, %v9220_v42, %v10279_v58 }
 0x89c   : > { %v4753_v35 = vsel %vm4741_vm1, %v4736_v22, %v4583_v9 }
 0x89d   : > { %5647 = vrot.lane.b32.xlu0 %v9040_v61, %s7179_s26 }
 0x89e   : > { %5607 = vrot.lane.b32.xlu2 %v9044_v49, %s7180_s27 }
 0x89f   : > { %v4884_v31 = vpop.permute.xlu0 %4883  ;;  %5605 = vrot.lane.b32.xlu1 %v10276_v0, %s7180_s27 }
 0x8a0   : > { %v5059_v19 = vsel %vm428_vm0, %v9197_v18, %v4884_v31  ;;  %v5034_v4 = vpop.permute.xlu2 %5033  ;;  %v10277_v18 = vld [vmem:[#allocation80_spill] sm:$0xff]  ;;  %v5206_v31 = vpack.c.bf16 %v5198_v34, %v5198_v34 }
 0x8a1   : > { %v9566_v61 = vsel %vm406_vm4, %v5059_v19, %v4924_v20  ;;  %v4623_v6 = vpop.permute.xlu1 %4622 }
 0x8a2   : > { %v4769_v23 = vsel %vm1730_vm14, %v4753_v35, %v4623_v6  ;;  %v5335_v19 = vunpack.c.l.b16 %v5206_v31 }
 0x8a3   : > { %v4786_v49 = vsel %vm4774_vm2, %v4769_v23, %v4663_v29 }
 0x8a4   : > { %v4817_v59 = vunpack.c.l.b16 %v4786_v49  ;;  %v5343_v39 = vpack.c.b16 %v5335_v19, %v5335_v19  ;;  %v10282_v49 = vld [vmem:[#allocation28_spill] sm:$0xff]  ;;  %v10290_v19 = vld [vmem:[#allocation45_spill] sm:$0xff] }
 0x8a5   : > { %5685 = vrot.lane.b32.xlu0 %v9014_v2, %s7178_s13 }
 0x8a6   : > { %5645 = vrot.lane.b32.xlu2 %v10277_v18, %s7179_s26  ;;  %v5853_v20 = vpack.c.b16 %v4817_v59, %v4815_v57 }
 0x8a7   : > { %v5010_v43 = vpop.permute.xlu0 %5009  ;;  %5623 = vrot.lane.b32.xlu1 %v9022_v52, %s7176_s28  ;;  %v10280_v52 = vld [vmem:[#allocation31_spill] sm:$0xff] }
 0x8a8   : > { %v5138_v9 = vsel %vm1730_vm14, %v5122_v53, %v5010_v43  ;;  %6039 = vmatmul.bf16.gmra.mxu2 %v5853_v20  ;;  %v5284_v63 = vpop.permute.xlu2 %5283 }
 0x8a9   : > { %v5154_v29 = vsel %vm4774_vm2, %v5138_v9, %v5034_v4  ;;  %v5300_v62 = vpop.permute.xlu1 %5299  ;;  %v10284_v9 = vld [vmem:[#allocation33_spill] sm:$0xff] }
 0x8aa   : > { %v5185_v2 = vunpack.c.l.b16 %v5154_v29 }
 0x8ac   : > { %v9584_v26 = vpack.c.b16 %v5185_v2, %v5183_v25  ;;  %v10287_v2 = vld [vmem:[#allocation60_spill] sm:$0xff] }
 0x8ad   : > { %5579 = vrot.lane.b32.xlu0 %v9267_v17, %s7171_s17 }
 0x8ae   : > { %5663 = vrot.lane.b32.xlu2 %v10280_v52, %s7177_s29 }
 0x8af   : > { %v5268_v38 = vpop.permute.xlu0 %5267  ;;  %5661 = vrot.lane.b32.xlu1 %v10281_v7, %s7177_s29 }
 0x8b0   : > { %v5436_v51 = vsel %vm406_vm4, %v5418_v56, %v5268_v38  ;;  %v5354_v55 = vpop.permute.xlu2 %5353  ;;  %v10288_v38 = vld [vmem:[#allocation58_spill] sm:$0xff] }
 0x8b1   : > { %v5452_v15 = vsel %vm4708_vm15, %v5436_v51, %v5284_v63  ;;  %v5498_v30 = vsel %vm1730_vm14, %v9515_v33, %v5354_v55  ;;  %v5316_v40 = vpop.permute.xlu1 %5315  ;;  %v5678_v7 = vpack.c.b16 %v10288_v38, %v10288_v38 }
 0x8b2   : > { %v5468_v22 = vsel %vm1713_vm13, %v5452_v15, %v5300_v62  ;;  %v5421_v62 = vsel %vm428_vm0, %v9391_v28, %v10287_v2  ;;  %v6126_v15 = vpop.f32.mrf.mxu0 }
 0x8b3   : > { %v5484_v42 = vsel %vm4741_vm1, %v5468_v22, %v5316_v40  ;;  %v10289_v22 = vld [vmem:[#allocation63_spill] sm:$0xff] }
 0x8b4   : > { %v5514_v28 = vsel %vm4774_vm2, %v5498_v30, %v10289_v22 }
 0x8b5   : > { %5303 = vrot.lane.b32.xlu0 %v9475_v36, %s7176_s28 }
 0x8b6   : > { %5577 = vrot.lane.b32.xlu2 %v9147_v27, %s7171_s17 }
 0x8b7   : > { %v9605_v0 = vpop.permute.xlu0 %4584  ;;  %5687 = vrot.lane.b32.xlu1 %v9147_v27, %s7178_s13 }
 0x8b8   : > { %v4427_v4 = vpop.permute.xlu2 %4426 }
 0x8b9   : > { %v4467_v33 = vpop.permute.xlu1 %4466 }
 0x8bd   : > { %5357 = vrot.lane.b32.xlu0 %v5343_v39, %s7177_s29 }
 0x8be   : > { %5271 = vrot.lane.b32.xlu2 %v9454_v10, %s7175_s21 }
 0x8bf   : > { %v9612_v6 = vpop.permute.xlu0 %4925  ;;  %5287 = vrot.lane.b32.xlu1 %v9466_v44, %s7180_s27  ;;  %v10283_v44 = vld [vmem:[#allocation34_spill] sm:$0xff] }
 0x8c0   : > { %v4505_v35 = vpop.permute.xlu2 %4504 }
 0x8c1   : > { %v9616_v23 = vpop.permute.xlu1 %4664 }
 0x8c5   : > { %5609 = vrot.lane.b32.xlu0 %v9130_v16, %s7180_s27 }
 0x8c6   : > { %5319 = vrot.lane.b32.xlu2 %v9504_v21, %s7179_s26 }
 0x8c7   : > { %v9622_v27 = vpop.permute.xlu0 %4955  ;;  %5593 = vrot.lane.b32.xlu1 %v10282_v49, %s7175_s21  ;;  %v10291_v49 = vld [vmem:[#allocation62_spill] sm:$0xff] }
 0x8c8   : > { %v4625_v57 = vpop.permute.xlu2 %4624 }
 0x8c9   : > { %v4886_v59 = vpop.permute.xlu1 %4885 }
 0x8cd   : > { %5627 = vrot.lane.b32.xlu0 %v9214_v8, %s7176_s28  ;;  %v10285_v8 = vld [vmem:[#allocation95_spill] sm:$0xff] }
 0x8ce   : > { %5595 = vrot.lane.b32.xlu2 %v10283_v44, %s7175_s21 }
 0x8cf   : > { %v9630_v18 = vpop.permute.xlu0 %5035  ;;  %5611 = vrot.lane.b32.xlu1 %v9222_v46, %s7180_s27  ;;  %v10286_v46 = vld [vmem:[#allocation93_spill] sm:$0xff] }
 0x8d0   : > { %v5302_v16 = vpop.permute.xlu2 %5301 }
 0x8d1   : > { %v9634_v20 = vpop.permute.xlu1 %5011 }
 0x8d2   : > { %v6035_v53 = vpop.f32.mrf.mxu2 }
 0x8d3   : > { %v6036_v43 = vadd.f32 %v9425_v37, %v6035_v53 }
 0x8d5   : > { %5665 = vrot.lane.b32.xlu0 %v10284_v9, %s7177_s29  ;;  %v9639_v29 = vadd.f32 %v6124_v54, %v6036_v43  ;;  %v5545_v54 = vunpack.c.l.b16 %v5514_v28  ;;  %v4691_v9 = vsel %vm428_vm0, %v9388_v11, %v4427_v4  ;;  %v10301_v28 = vld [vmem:[#allocation75_spill] sm:$0xff] }
 0x8d6   : > { %5625 = vrot.lane.b32.xlu2 %v10285_v8, %s7176_s28  ;;  %v4722_v8 = vsel %vm4708_vm15, %v9527_v41, %v4505_v35 }
 0x8d7   : > { %v5286_v63 = vpop.permute.xlu0 %5285  ;;  %6202 = vst.msk [vmem:[%s9440_s18 + $0x40] sm:$0xff] %vm6199_vm3, %v9639_v29  ;;  %5649 = vrot.lane.b32.xlu1 %v10286_v46, %s7179_s26  ;;  %v10293_v46 = vld [vmem:[#allocation72_spill] sm:$0xff] }
 0x8d8   : > { %v4667_v25 = vpop.permute.xlu2 %4666  ;;  %v4738_v2 = vsel %vm1713_vm13, %v4722_v8, %v10293_v46  ;;  %v10305_v8 = vld [vmem:[#allocation17_spill] sm:$0xff] }
 0x8d9   : > { %v5270_v58 = vpop.permute.xlu1 %5269  ;;  %v4755_v35 = vsel %vm4741_vm1, %v4738_v2, %v9605_v0  ;;  %v10308_v2 = vld [vmem:[#allocation22_spill] sm:$0xff] }
 0x8da   : > { %v5438_v56 = vsel %vm406_vm4, %v5421_v62, %v5270_v58  ;;  %v6037_v52 = vpop.f32.mrf.mxu2  ;;  %v4707_v62 = vsel %vm406_vm4, %v4691_v9, %v4467_v33  ;;  %v4771_v58 = vsel %vm1730_vm14, %v4755_v35, %v4625_v57  ;;  %v10296_v33 = vld [vmem:[#allocation47_spill] sm:$0xff]  ;;  %v10310_v35 = vld [vmem:[#allocation37_spill] sm:$0xff] }
 0x8db   : > { %v5454_v51 = vsel %vm4708_vm15, %v5438_v56, %v5286_v63  ;;  %v6038_v34 = vadd.f32 %v9425_v37, %v6037_v52  ;;  %v5062_v52 = vsel %vm428_vm0, %v9326_v47, %v4886_v59  ;;  %v10297_v47 = vld [vmem:[#allocation39_spill] sm:$0xff]  ;;  %v10298_v59 = vld [vmem:[#allocation18_spill] sm:$0xff] }
 0x8dc   : > { %v5470_v55 = vsel %vm1713_vm13, %v5454_v51, %v5302_v16  ;;  %v5078_v51 = vsel %vm406_vm4, %v5062_v52, %v9612_v6 }
 0x8dd   : > { %5691 = vrot.lane.b32.xlu0 %v5678_v7, %s7178_s13  ;;  %v9658_v40 = vadd.f32 %v6126_v15, %v6038_v34  ;;  %v4788_v7 = vsel %vm4774_vm2, %v4771_v58, %v9616_v23  ;;  %v10299_v34 = vld [vmem:[#allocation15_spill] sm:$0xff] }
 0x8de   : > { %5651 = vrot.lane.b32.xlu2 %v9282_v13, %s7179_s26  ;;  %v5041_v15 = vsel %vm428_vm0, %v10299_v34, %v10298_v59  ;;  %v10318_v34 = vld [vmem:[#allocation43_spill] sm:$0xff] }
 0x8df   : > { %v5356_v31 = vpop.permute.xlu0 %5355  ;;  %6203 = vst.msk [vmem:[%s9440_s18 + $0x60] sm:$0xff] %vm6199_vm3, %v9658_v40  ;;  %5667 = vrot.lane.b32.xlu1 %v10290_v19, %s7177_s29  ;;  %v4819_v19 = vunpack.c.l.b16 %v4788_v7 }
 0x8e0   : > { %v5500_v39 = vsel %vm1730_vm14, %v5484_v42, %v5356_v31  ;;  %v9672_v16 = vpop.permute.xlu2 %5013  ;;  %v10292_v42 = vld [vmem:[#allocation41_spill] sm:$0xff] }
 0x8e1   : > { %v5516_v44 = vsel %vm4774_vm2, %v5500_v39, %v10291_v49  ;;  %v5318_v30 = vpop.permute.xlu1 %5317 }
 0x8e2   : > { %v5547_v53 = vunpack.c.l.b16 %v5516_v44  ;;  %v9675_v43 = vsel %vm4741_vm1, %v5470_v55, %v5318_v30  ;;  %v10300_v55 = vld [vmem:[#allocation74_spill] sm:$0xff]  ;;  %v10302_v44 = vld [vmem:[#allocation71_spill] sm:$0xff]  ;;  %v10304_v30 = vld [vmem:[#allocation21_spill] sm:$0xff] }
 0x8e3   : > { %v5092_v23 = vsel %vm4708_vm15, %v9566_v61, %v10300_v55 }
 0x8e4   : > { %v9677_v13 = vpack.c.b16 %v5547_v53, %v5545_v54  ;;  %v5108_v6 = vsel %vm1713_vm13, %v5092_v23, %v9622_v27  ;;  %v5094_v54 = vsel %vm4708_vm15, %v5078_v51, %v10302_v44  ;;  %v10303_v53 = vld [vmem:[#allocation85_spill] sm:$0xff]  ;;  %v10307_v27 = vld [vmem:[#allocation94_spill] sm:$0xff] }
 0x8e5   : > { %5597 = vrot.lane.b32.xlu0 %v10292_v42, %s7175_s21  ;;  %v5699_v9 = vsel %vm428_vm0, %v10304_v30, %v10303_v53  ;;  %v5064_v42 = vsel %vm406_vm4, %v5041_v15, %v10305_v8  ;;  %v10323_v53 = vld [vmem:[#allocation91_spill] sm:$0xff] }
 0x8e6   : > { %5689 = vrot.lane.b32.xlu2 %v9267_v17, %s7178_s13  ;;  %v10294_v17 = vld [vmem:[#allocation67_spill] sm:$0xff]  ;;  %v5080_v58 = vsel %vm4708_vm15, %v5064_v42, %v10310_v35 }
 0x8e7   : > { %v4507_v63 = vpop.permute.xlu0 %4506  ;;  %5581 = vrot.lane.b32.xlu1 %v9313_v48, %s7171_s17  ;;  %v10295_v48 = vld [vmem:[#allocation79_spill] sm:$0xff] }
 0x8e8   : > { %v4724_v11 = vsel %vm4708_vm15, %v4707_v62, %v4507_v63  ;;  %v9693_v4 = vpop.permute.xlu2 %5683  ;;  %v5044_v38 = vsel %vm428_vm0, %v10296_v33, %v10295_v48  ;;  %v10306_v63 = vld [vmem:[#allocation36_spill] sm:$0xff]  ;;  %v5702_v62 = vsel %vm428_vm0, %v10308_v2, %v10307_v27  ;;  %v10312_v48 = vld [vmem:[#allocation77_spill] sm:$0xff] }
 0x8e9   : > { %v4587_v41 = vpop.permute.xlu1 %4586  ;;  %v4740_v56 = vsel %vm1713_vm13, %v4724_v11, %v10294_v17  ;;  %v5066_v31 = vsel %vm406_vm4, %v5044_v38, %v10301_v28  ;;  %v10309_v11 = vld [vmem:[#allocation56_spill] sm:$0xff]  ;;  %v10311_v17 = vld [vmem:[#allocation90_spill] sm:$0xff]  ;;  %v5096_v33 = vsel %vm1713_vm13, %v5080_v58, %v10312_v48  ;;  %v10313_v38 = vld [vmem:[#allocation35_spill] sm:$0xff] }
 0x8ea   : > { %v4757_v0 = vsel %vm4741_vm1, %v4740_v56, %v4587_v41  ;;  %v5082_v46 = vsel %vm4708_vm15, %v5066_v31, %v10306_v63  ;;  %v5124_v41 = vsel %vm4741_vm1, %v5108_v6, %v10309_v11  ;;  %v5722_v7 = vsel %vm406_vm4, %v5699_v9, %v10313_v38  ;;  %v10319_v28 = vld [vmem:[#allocation30_spill] sm:$0xff]  ;;  %v10324_v9 = vld [vmem:[#allocation88_spill] sm:$0xff]  ;;  %v10327_v27 = vld [vmem:[#allocation97_spill] sm:$0xff] }
 0x8eb   : > { %v5098_v56 = vsel %vm1713_vm13, %v5082_v46, %v10311_v17  ;;  %v5140_v52 = vsel %vm1730_vm14, %v5124_v41, %v9634_v20  ;;  %v10317_v20 = vld [vmem:[#allocation23_spill] sm:$0xff]  ;;  %v5112_v31 = vsel %vm4741_vm1, %v5096_v33, %v10319_v28  ;;  %v10320_v6 = vld [vmem:[#allocation82_spill] sm:$0xff]  ;;  %v10329_v41 = vld [vmem:[#allocation84_spill] sm:$0xff] }
 0x8ec   : > { %v5114_v15 = vsel %vm4741_vm1, %v5098_v56, %v10318_v34  ;;  %v5156_v55 = vsel %vm4774_vm2, %v5140_v52, %v9630_v18  ;;  %v5640_v35 = vpack.c.b16 %v10329_v41, %v10329_v41  ;;  %v10330_v58 = vld [vmem:[#allocation78_spill] sm:$0xff]  ;;  %v10331_v56 = vld [vmem:[#allocation83_spill] sm:$0xff] }
 0x8ed   : > { %5653 = vrot.lane.b32.xlu0 %v9347_v24, %s7179_s26  ;;  %v5187_v42 = vunpack.c.l.b16 %v5156_v55  ;;  %v10332_v38 = vld [vmem:[#allocation50_spill] sm:$0xff] }
 0x8ee   : > { %5613 = vrot.lane.b32.xlu2 %v9353_v1, %s7180_s27 }
 0x8ef   : > { %v4627_v57 = vpop.permute.xlu0 %4626  ;;  %5599 = vrot.lane.b32.xlu1 %v10297_v47, %s7175_s21  ;;  %v10316_v47 = vld [vmem:[#allocation46_spill] sm:$0xff] }
 0x8f0   : > { %v4773_v24 = vsel %vm1730_vm14, %v4757_v0, %v4627_v57  ;;  %v5590_v1 = vpop.permute.xlu2 %5589  ;;  %v10314_v0 = vld [vmem:[#allocation66_spill] sm:$0xff] }
 0x8f1   : > { %v4790_v22 = vsel %vm4774_vm2, %v4773_v24, %v4667_v25  ;;  %v4958_v49 = vpop.permute.xlu1 %4957  ;;  %v5724_v24 = vsel %vm406_vm4, %v5702_v62, %v10316_v47  ;;  %v10328_v62 = vld [vmem:[#allocation16_spill] sm:$0xff]  ;;  %v10333_v47 = vld [vmem:[#allocation38_spill] sm:$0xff] }
 0x8f2   : > { %v4821_v39 = vunpack.c.l.b16 %v4790_v22  ;;  %v5110_v61 = vsel %vm1713_vm13, %v5094_v54, %v4958_v49  ;;  %v10321_v49 = vld [vmem:[#allocation81_spill] sm:$0xff]  ;;  %v10322_v54 = vld [vmem:[#allocation86_spill] sm:$0xff] }
 0x8f3   : > { %v5126_v57 = vsel %vm4741_vm1, %v5110_v61, %v10314_v0  ;;  %v5128_v44 = vsel %vm1730_vm14, %v5112_v31, %v10321_v49  ;;  %v5130_v61 = vsel %vm1730_vm14, %v5114_v15, %v10324_v9  ;;  %v10336_v15 = vld [vmem:[#allocation89_spill] sm:$0xff] }
 0x8f4   : > { %v5855_v25 = vpack.c.b16 %v4821_v39, %v4819_v19  ;;  %v5738_v19 = vsel %vm4708_vm15, %v5722_v7, %v10320_v6  ;;  %v5142_v39 = vsel %vm1730_vm14, %v5126_v57, %v9672_v16  ;;  %v10326_v16 = vld [vmem:[#allocation92_spill] sm:$0xff]  ;;  %v5144_v17 = vsel %vm4774_vm2, %v5128_v44, %v10330_v58  ;;  %v10341_v9 = vld [vmem:[#allocation25_spill] sm:$0xff] }
 0x8f5   : > { %5615 = vrot.lane.b32.xlu0 %v9475_v36, %s7180_s27  ;;  %v10315_v36 = vld [vmem:[#allocation44_spill] sm:$0xff]  ;;  %v5754_v18 = vsel %vm1713_vm13, %v5738_v19, %v10322_v54  ;;  %v5146_v46 = vsel %vm4774_vm2, %v5130_v61, %v10326_v16  ;;  %v10339_v54 = vld [vmem:[#allocation99_spill] sm:$0xff] }
 0x8f6   : > { %6044 = vmatmul.bf16.gmra.mxu2 %v5855_v25  ;;  %5669 = vrot.lane.b32.xlu2 %v10315_v36, %s7177_s29  ;;  %v10325_v25 = vld [vmem:[#allocation96_spill] sm:$0xff]  ;;  %v5770_v52 = vsel %vm4741_vm1, %v5754_v18, %v10331_v56  ;;  %v5177_v33 = vunpack.c.l.b16 %v5146_v46  ;;  %v5175_v36 = vunpack.c.l.b16 %v5144_v17  ;;  %v6129_v17 = vpop.f32.mrf.mxu0 }
 0x8f7   : > { %v5574_v51 = vpop.permute.xlu0 %5573  ;;  %5629 = vrot.lane.b32.xlu1 %v9324_v3, %s7176_s28 }
 0x8f8   : > { %v5705_v59 = vsel %vm428_vm0, %v10317_v20, %v5574_v51  ;;  %v5608_v23 = vpop.permute.xlu2 %5607  ;;  %v10334_v20 = vld [vmem:[#allocation87_spill] sm:$0xff]  ;;  %v5861_v6 = vpack.c.b16 %v5177_v33, %v5175_v36 }
 0x8f9   : > { %v9770_v22 = vsel %vm406_vm4, %v5705_v59, %v5590_v1  ;;  %v5038_v3 = vpop.permute.xlu1 %5037  ;;  %v5740_v1 = vsel %vm4708_vm15, %v5724_v24, %v10323_v53  ;;  %v5786_v24 = vsel %vm1730_vm14, %v5770_v52, %v10333_v47  ;;  %v10335_v59 = vld [vmem:[#allocation52_spill] sm:$0xff] }
 0x8fa   : > { %v5158_v30 = vsel %vm4774_vm2, %v5142_v39, %v5038_v3  ;;  %v5756_v8 = vsel %vm1713_vm13, %v5740_v1, %v10325_v25  ;;  %v10338_v39 = vld [vmem:[#allocation49_spill] sm:$0xff]  ;;  %v10340_v1 = vld [vmem:[#allocation48_spill] sm:$0xff] }
 0x8fb   : > { %v5189_v63 = vunpack.c.l.b16 %v5158_v30  ;;  %v5772_v2 = vsel %vm4741_vm1, %v5756_v8, %v10327_v27  ;;  %v10342_v25 = vld [vmem:[#allocation65_spill] sm:$0xff] }
 0x8fc   : > { %v5788_v7 = vsel %vm1730_vm14, %v5772_v2, %v10332_v38  ;;  %v5680_v8 = vpack.c.b16 %v10342_v25, %v10342_v25  ;;  %v5181_v2 = vunpack.c.l.b16 %v9370_v60 }
 0x8fd   : > { %5671 = vrot.lane.b32.xlu0 %v10328_v62, %s7177_s29  ;;  %v5867_v11 = vpack.c.b16 %v5189_v63, %v5187_v42  ;;  %v5804_v0 = vsel %vm4774_vm2, %v5788_v7, %v9693_v4  ;;  %v10337_v4 = vld [vmem:[#allocation64_spill] sm:$0xff]  ;;  %v10343_v63 = vld [vmem:[#allocation98_spill] sm:$0xff] }
 0x8fe   : > { %5583 = vrot.lane.b32.xlu2 %v9454_v10, %s7171_s17  ;;  %v5047_v10 = vsel %vm428_vm0, %v10335_v59, %v10334_v20  ;;  %v5835_v28 = vunpack.c.l.b16 %v5804_v0  ;;  %v5679_v19 = vpack.c.b16 %v10337_v4, %v10337_v4  ;;  %s7182_s17 = smov 6  }
 0x8ff   : > { %v5592_v48 = vpop.permute.xlu0 %5591  ;;  %5655 = vrot.lane.b32.xlu1 %v5640_v35, %s7179_s26  ;;  %6064 = vmatmul.bf16.vlgmr.msrb.gmra.mxu3 %v5867_v11  ;;  %v5068_v55 = vsel %vm406_vm4, %v5047_v10, %v10336_v15 }
 0x900   : > { %v5646_v57 = vpop.permute.xlu2 %5645  ;;  %v5084_v49 = vsel %vm4708_vm15, %v5068_v55, %v10338_v39  ;;  %v10344_v55 = vld [vmem:[#allocation70_spill] sm:$0xff] }
 0x901   : > { %v5682_v51 = vpop.permute.xlu1 %5681  ;;  %v5100_v18 = vsel %vm1713_vm13, %v5084_v49, %v10339_v54  ;;  %v10345_v49 = vld [vmem:[#allocation73_spill] sm:$0xff] }
 0x902   : > { %v5802_v34 = vsel %vm4774_vm2, %v5786_v24, %v5682_v51  ;;  %v5116_v30 = vsel %vm4741_vm1, %v5100_v18, %v10340_v1  ;;  %v10346_v18 = vld [vmem:[#allocation20_spill] sm:$0xff] }
 0x903   : > { %v5833_v31 = vunpack.c.l.b16 %v5802_v34  ;;  %v5132_v16 = vsel %vm1730_vm14, %v5116_v30, %v10343_v63  ;;  %v10347_v30 = vld [vmem:[#allocation19_spill] sm:$0xff] }
 0x904   : > { %v5148_v46 = vsel %vm4774_vm2, %v5132_v16, %v9258_v32 }
 0x905   : > { %6216 = vrot.lane.b32.xlu0 %v9448_v14, %s7181_s10  ;;  %v9820_v3 = vpack.c.b16 %v5835_v28, %v5833_v31 }
 0x906   : > { %6049 = vmatmul.bf16.gmra.mxu2 %v5861_v6  ;;  %5631 = vrot.lane.b32.xlu2 %v9504_v21, %s7176_s28 }
 0x907   : > { %v5622_v44 = vpop.permute.xlu0 %5621  ;;  %5693 = vrot.lane.b32.xlu1 %v5679_v19, %s7178_s13 }
 0x908   : > { %v5664_v53 = vpop.permute.xlu2 %5663 }
 0x909   : > { %v5576_v14 = vpop.permute.xlu1 %5575 }
 0x90a   : > { %v5708_v61 = vsel %vm428_vm0, %v10341_v9, %v5576_v14 }
 0x90b   : > { %v5728_v42 = vsel %vm406_vm4, %v5708_v61, %v5592_v48 }
 0x90c   : > { %v5744_v21 = vsel %vm4708_vm15, %v5728_v42, %v5608_v23 }
 0x90d   : > { %6222 = vrot.lane.b32.xlu0 %v9658_v40, %s7181_s10  ;;  %v5179_v40 = vunpack.c.l.b16 %v5148_v46 }
 0x90e   : > { %5695 = vrot.lane.b32.xlu2 %v5680_v8, %s7178_s13 }
 0x90f   : > { %v5648_v27 = vpop.permute.xlu0 %5647  ;;  %6218 = vrot.lane.b32.xlu1 %v9470_v5, %s7181_s10  ;;  %6069 = vmatmul.bf16.gmra.mxu3 %v9261_v12  ;;  %v5863_v32 = vpack.c.b16 %v5181_v2, %v5179_v40  ;;  %v10348_v2 = vld [vmem:[#allocation29_spill] sm:$0xff] }
 0x910   : > { %v9848_v62 = vpop.permute.xlu2 %5577 }
 0x911   : > { %v5606_v23 = vpop.permute.xlu1 %5605  ;;  %v5711_v40 = vsel %vm428_vm0, %v10348_v2, %v9848_v62 }
 0x912   : > { %v5742_v11 = vsel %vm4708_vm15, %v9770_v22, %v5606_v23 }
 0x913   : > { %v5758_v41 = vsel %vm1713_vm13, %v5742_v11, %v5622_v44 }
 0x914   : > { %v5774_v35 = vsel %vm4741_vm1, %v5758_v41, %v5646_v57 }
 0x916   : > { %6054 = vmatmul.bf16.gmra.mxu2 %v5863_v32  ;;  %6220 = vrot.lane.b32.xlu2 %v9639_v29, %s7181_s10  ;;  %v6131_v29 = vpop.f32.mrf.mxu0 }
 0x917   : > { %v5686_v60 = vpop.permute.xlu0 %5685 }
 0x918   : > { %v5272_v5 = vpop.permute.xlu2 %5271 }
 0x919   : > { %v5624_v58 = vpop.permute.xlu1 %5623 }
 0x91a   : > { %v5760_v12 = vsel %vm1713_vm13, %v5744_v21, %v5624_v58 }
 0x91b   : > { %v5776_v56 = vsel %vm4741_vm1, %v5760_v12, %v5648_v27 }
 0x91c   : > { %v5792_v52 = vsel %vm1730_vm14, %v5776_v56, %v5664_v53 }
 0x91e   : > { %v9865_v59 = vpop.f32.mrf.mxu0 }
 0x91f   : > { %v5580_v22 = vpop.permute.xlu0 %5579  ;;  %6074 = vmatmul.bf16.gmra.mxu3 %v9498_v45 }
 0x920   : > { %v5320_v48 = vpop.permute.xlu2 %5319 }
 0x921   : > { %v5662_v33 = vpop.permute.xlu1 %5661 }
 0x922   : > { %v5790_v38 = vsel %vm1730_vm14, %v5774_v35, %v5662_v33  ;;  %v10349_v35 = vld [vmem:[#allocation32_spill] sm:$0xff] }
 0x923   : > { %v5806_v7 = vsel %vm4774_vm2, %v5790_v38, %v5686_v60  ;;  %v5714_v60 = vsel %vm428_vm0, %v10349_v35, %v5580_v22 }
 0x924   : > { %v5837_v47 = vunpack.c.l.b16 %v5806_v7 }
 0x926   : > { %6059 = vmatmul.bf16.gmra.mxu2 %v9584_v26  ;;  %v5424_v26 = vsel %vm428_vm0, %v9419_v50, %v10344_v55  ;;  %v9889_v9 = vpop.f32.mrf.mxu0 }
 0x927   : > { %v5304_v0 = vpop.permute.xlu0 %5303  ;;  %v5440_v31 = vsel %vm406_vm4, %v5424_v26, %v5272_v5 }
 0x928   : > { %v5596_v57 = vpop.permute.xlu2 %5595 }
 0x929   : > { %v5688_v36 = vpop.permute.xlu1 %5687  ;;  %v5732_v58 = vsel %vm406_vm4, %v5714_v60, %v5596_v57 }
 0x92a   : > { %v5808_v51 = vsel %vm4774_vm2, %v5792_v52, %v5688_v36 }
 0x92b   : > { %v5839_v24 = vunpack.c.l.b16 %v5808_v51  ;;  %v6040_v20 = vpop.f32.mrf.mxu2 }
 0x92c   : > { %v6041_v45 = vadd.f32 %v9425_v37, %v6040_v20 }
 0x92d   : > { %v9867_v10 = vpack.c.b16 %v5839_v24, %v5837_v47 }
 0x92e   : > { %v6130_v34 = vadd.f32 %v6129_v17, %v6041_v45  ;;  %v9894_v46 = vpop.f32.mrf.mxu0 }
 0x92f   : > { %v5358_v15 = vpop.permute.xlu0 %5357  ;;  %6079 = vmatmul.bf16.gmra.mxu3 %v9677_v13 }
 0x930   : > { %6204 = vst.msk [vmem:[%s9440_s18 + $0x80] sm:$0xff] %vm6199_vm3, %v6130_v34  ;;  %6224 = vrot.lane.b32.xlu1 %v6130_v34, %s7181_s10  ;;  %v5626_v28 = vpop.permute.xlu2 %5625  ;;  %v5502_v6 = vsel %vm1730_vm14, %v9675_v43, %v5358_v15 }
 0x931   : > { %v5288_v4 = vpop.permute.xlu1 %5287  ;;  %v5518_v50 = vsel %vm4774_vm2, %v5502_v6, %v10345_v49 }
 0x932   : > { %v5456_v19 = vsel %vm4708_vm15, %v5440_v31, %v5288_v4  ;;  %v5549_v61 = vunpack.c.l.b16 %v5518_v50 }
 0x933   : > { %v5472_v13 = vsel %vm1713_vm13, %v5456_v19, %v5304_v0  ;;  %v6042_v39 = vpop.f32.mrf.mxu2  ;;  %v10350_v19 = vld [vmem:[#allocation40_spill] sm:$0xff] }
 0x934   : > { %v5488_v44 = vsel %vm4741_vm1, %v5472_v13, %v5320_v48  ;;  %v6043_v54 = vadd.f32 %v9425_v37, %v6042_v39  ;;  %v10351_v39 = vld [vmem:[#allocation42_spill] sm:$0xff] }
 0x935   : > { %v5504_v53 = vsel %vm1730_vm14, %v5488_v44, %v10346_v18 }
 0x936   : > { %v6132_v14 = vadd.f32 %v6131_v29, %v6043_v54  ;;  %v5520_v43 = vsel %vm4774_vm2, %v5504_v53, %v10347_v30  ;;  %v9905_v17 = vpop.f32.mrf.mxu0 }
 0x937   : > { %v5610_v1 = vpop.permute.xlu0 %5609  ;;  %v5551_v25 = vunpack.c.l.b16 %v5520_v43 }
 0x938   : > { %6205 = vst.msk [vmem:[%s9440_s18 + $0xa0] sm:$0xff] %vm6199_vm3, %v6132_v14  ;;  %6226 = vrot.lane.b32.xlu2 %v6132_v14, %s7181_s10  ;;  %v5652_v8 = vpop.permute.xlu2 %5651 }
 0x939   : > { %v5594_v42 = vpop.permute.xlu1 %5593  ;;  %v5879_v21 = vpack.c.b16 %v5551_v25, %v5549_v61 }
 0x93a   : > { %v5730_v23 = vsel %vm406_vm4, %v5711_v40, %v5594_v42 }
 0x93b   : > { %v5746_v41 = vsel %vm4708_vm15, %v5730_v23, %v5610_v1 }
 0x93c   : > { %v5762_v12 = vsel %vm1713_vm13, %v5746_v41, %v5626_v28 }
 0x93e   : > { %v9916_v47 = vpop.f32.mrf.mxu0 }
 0x93f   : > { %v5628_v63 = vpop.permute.xlu0 %5627  ;;  %6084 = vmatmul.bf16.gmra.mxu3 %v5879_v21 }
 0x940   : > { %v5690_v16 = vpop.permute.xlu2 %5689 }
 0x941   : > { %v5612_v27 = vpop.permute.xlu1 %5611 }
 0x942   : > { %v5748_v56 = vsel %vm4708_vm15, %v5732_v58, %v5612_v27 }
 0x943   : > { %v5764_v52 = vsel %vm1713_vm13, %v5748_v56, %v5628_v63 }
 0x944   : > { %v5780_v7 = vsel %vm4741_vm1, %v5764_v52, %v5652_v8 }
 0x947   : > { %v5666_v11 = vpop.permute.xlu0 %5665 }
 0x948   : > { %v5614_v32 = vpop.permute.xlu2 %5613 }
 0x949   : > { %v5650_v5 = vpop.permute.xlu1 %5649 }
 0x94a   : > { %v5778_v62 = vsel %vm4741_vm1, %v5762_v12, %v5650_v5 }
 0x94b   : > { %v5794_v48 = vsel %vm1730_vm14, %v5778_v62, %v5666_v11 }
 0x94c   : > { %v5810_v29 = vsel %vm4774_vm2, %v5794_v48, %v5690_v16 }
 0x94d   : > { %v5841_v51 = vunpack.c.l.b16 %v5810_v29  ;;  %v6164_v29 = vpop.f32.mrf.mxu1 }
 0x94f   : > { %v5692_v33 = vpop.permute.xlu0 %5691  ;;  %6089 = vmatmul.bf16.gmra.mxu3 %v9820_v3  ;;  %v9918_v3 = vpop.f32.mrf.mxu0 }
 0x950   : > { %v5670_v38 = vpop.permute.xlu2 %5669 }
 0x951   : > { %v5668_v22 = vpop.permute.xlu1 %5667 }
 0x952   : > { %v5796_v0 = vsel %vm1730_vm14, %v5780_v7, %v5668_v22 }
 0x953   : > { %v5812_v57 = vsel %vm4774_vm2, %v5796_v0, %v5692_v33 }
 0x954   : > { %v5843_v36 = vunpack.c.l.b16 %v5812_v57 }
 0x956   : > { %v5889_v20 = vpack.c.b16 %v5843_v36, %v5841_v51 }
 0x957   : > { %v5598_v24 = vpop.permute.xlu0 %5597  ;;  %v9921_v6 = vpop.f32.mrf.mxu0 }
 0x958   : > { %v5584_v45 = vpop.permute.xlu2 %5583 }
 0x959   : > { %v5582_v34 = vpop.permute.xlu1 %5581  ;;  %v5720_v13 = vsel %vm428_vm0, %v10350_v19, %v5584_v45 }
 0x95a   : > { %v5717_v49 = vsel %vm428_vm0, %v10351_v39, %v5582_v34  ;;  %vm6281_vm0 = vcmask 97328  }
 0x95b   : > { %v5734_v54 = vsel %vm406_vm4, %v5717_v49, %v5598_v24 }
 0x95c   : > { %v5750_v1 = vsel %vm4708_vm15, %v5734_v54, %v5614_v32 }
 0x95f   : > { %v5654_v15 = vpop.permute.xlu0 %5653  ;;  %6094 = vmatmul.bf16.gmra.mxu3 %v9867_v10  ;;  %v9935_v43 = vpop.f32.mrf.mxu0 }
 0x960   : > { %v5632_v55 = vpop.permute.xlu2 %5631 }
 0x961   : > { %v5600_v26 = vpop.permute.xlu1 %5599 }
 0x962   : > { %v5736_v50 = vsel %vm406_vm4, %v5720_v13, %v5600_v26 }
 0x967   : > { %v5616_v28 = vpop.permute.xlu0 %5615  ;;  %v6154_v32 = vpop.f32.mrf.mxu0 }
 0x968   : > { %v5696_v31 = vpop.permute.xlu2 %5695  ;;  %v5752_v44 = vsel %vm4708_vm15, %v5736_v50, %v5616_v28 }
 0x969   : > { %v5630_v4 = vpop.permute.xlu1 %5629  ;;  %v5768_v14 = vsel %vm1713_vm13, %v5752_v44, %v5632_v55 }
 0x96a   : > { %v5766_v61 = vsel %vm1713_vm13, %v5750_v1, %v5630_v4 }
 0x96b   : > { %v5782_v8 = vsel %vm4741_vm1, %v5766_v61, %v5654_v15  ;;  %v6166_v15 = vpop.f32.mrf.mxu1 }
 0x96c   : > { %v5798_v27 = vsel %vm1730_vm14, %v5782_v8, %v5670_v38 }
 0x96f   : > { %v5672_v10 = vpop.permute.xlu0 %5671  ;;  %6099 = vmatmul.bf16.gmra.mxu3 %v5889_v20  ;;  %v6156_v48 = vpop.f32.mrf.mxu0 }
 0x970   : > { %v6221_v18 = vpop.permute.xlu2 %6220 }
 0x971   : > { %v5656_v53 = vpop.permute.xlu1 %5655  ;;  %6855 = vst.msk [vmem:[%s9440_s18 + $0x48] sm:$0xff] %vm6199_vm3, %v6221_v18 }
 0x972   : > { %v5784_v30 = vsel %vm4741_vm1, %v5768_v14, %v5656_v53 }
 0x973   : > { %v5800_v25 = vsel %vm1730_vm14, %v5784_v30, %v5672_v10  ;;  %v6169_v13 = vpop.f32.mrf.mxu1 }
 0x974   : > { %v5816_v63 = vsel %vm4774_vm2, %v5800_v25, %v5696_v31 }
 0x975   : > { %v5847_v41 = vunpack.c.l.b16 %v5816_v63 }
 0x977   : > { %v6217_v42 = vpop.permute.xlu0 %6216  ;;  %v6159_v36 = vpop.f32.mrf.mxu0 }
 0x978   : > { %6853 = vst.msk [vmem:[%s9440_s18 + $0x8] sm:$0xff] %vm6199_vm3, %v6217_v42 }
 0x979   : > { %v6045_v21 = vpop.f32.mrf.mxu2  ;;  %v5694_v16 = vpop.permute.xlu1 %5693 }
 0x97a   : > { %v6046_v2 = vadd.f32 %v9425_v37, %v6045_v21  ;;  %v5814_v40 = vsel %vm4774_vm2, %v5798_v27, %v5694_v16 }
 0x97b   : > { %v5845_v23 = vunpack.c.l.b16 %v5814_v40  ;;  %v6171_v18 = vpop.f32.mrf.mxu1 }
 0x97c   : > { %v6135_v11 = vadd.f32 %v9865_v59, %v6046_v2 }
 0x97d   : > { %v5891_v35 = vpack.c.b16 %v5847_v41, %v5845_v23 }
 0x97e   : > { %6206 = vst.msk [vmem:[%s9440_s18 + $0xc0] sm:$0xff] %vm6199_vm3, %v6135_v11  ;;  %6228 = vrot.lane.b32.xlu0 %v6135_v11, %s7181_s10 }
 0x97f   : > { %v6223_v60 = vpop.permute.xlu0 %6222  ;;  %6104 = vmatmul.bf16.gmra.mxu3 %v5891_v35  ;;  %v6161_v4 = vpop.f32.mrf.mxu0 }
 0x980   : > { %6856 = vst.msk [vmem:[%s9440_s18 + $0x68] sm:$0xff] %vm6199_vm3, %v6223_v60 }
 0x981   : > { %v6047_v5 = vpop.f32.mrf.mxu2  ;;  %v6219_v58 = vpop.permute.xlu1 %6218 }
 0x982   : > { %v6048_v12 = vadd.f32 %v9425_v37, %v6047_v5  ;;  %6854 = vst.msk [vmem:[%s9440_s18 + $0x28] sm:$0xff] %vm6199_vm3, %v6219_v58  ;;  %v6065_v56 = vpop.f32.mrf.mxu3 }
 0x983   : > { %v6066_v62 = vadd.f32 %v9425_v37, %v6065_v56  ;;  %v6174_v42 = vpop.f32.mrf.mxu1 }
 0x984   : > { %v6137_v59 = vadd.f32 %v9889_v9, %v6048_v12 }
 0x985   : > { %v9959_v52 = vadd.f32 %v6154_v32, %v6066_v62 }
 0x986   : > { %6207 = vst.msk [vmem:[%s9440_s18 + $0xe0] sm:$0xff] %vm6199_vm3, %v6137_v59  ;;  %6230 = vrot.lane.b32.xlu1 %v6137_v59, %s7181_s10 }
 0x987   : > { %6269 = vrot.lane.b32.xlu2 %v9959_v52, %s7182_s17 }
 0x989   : > { %v6050_v33 = vpop.f32.mrf.mxu2 }
 0x98a   : > { %v6051_v38 = vadd.f32 %v9425_v37, %v6050_v33  ;;  %v6067_v22 = vpop.f32.mrf.mxu3 }
 0x98b   : > { %v6068_v7 = vadd.f32 %v9425_v37, %v6067_v22  ;;  %v6176_v40 = vpop.f32.mrf.mxu1 }
 0x98c   : > { %v6140_v9 = vadd.f32 %v9894_v46, %v6051_v38 }
 0x98d   : > { %v9969_v0 = vadd.f32 %v6156_v48, %v6068_v7 }
 0x98e   : > { %6861 = vst.msk [vmem:[%s9440_s18 + $0x8] sm:$0xff] %vm6281_vm0, %v6140_v9 }
 0x98f   : > { %6257 = vrot.lane.b32.xlu2 %v6140_v9, %s7182_s17  ;;  %6271 = vrot.lane.b32.xlu0 %v9969_v0, %s7182_s17 }
 0x991   : > { %v6052_v57 = vpop.f32.mrf.mxu2 }
 0x992   : > { %v6053_v51 = vadd.f32 %v9425_v37, %v6052_v57  ;;  %v6227_v24 = vpop.permute.xlu2 %6226  ;;  %v6070_v20 = vpop.f32.mrf.mxu3 }
 0x993   : > { %6858 = vst.msk [vmem:[%s9440_s18 + $0xa8] sm:$0xff] %vm6199_vm3, %v6227_v24  ;;  %v6071_v45 = vadd.f32 %v9425_v37, %v6070_v20  ;;  %v6179_v32 = vpop.f32.mrf.mxu1 }
 0x994   : > { %v6142_v46 = vadd.f32 %v9905_v17, %v6053_v51 }
 0x995   : > { %v6160_v34 = vadd.f32 %v6159_v36, %v6071_v45 }
 0x996   : > { %6862 = vst.msk [vmem:[%s9440_s18 + $0x28] sm:$0xff] %vm6281_vm0, %v6142_v46 }
 0x997   : > { %6869 = vst.msk [vmem:[%s9440_s18 + $0x10] sm:$0xff] %vm6199_vm3, %v6160_v34  ;;  %6315 = vrot.lane.b32.xlu1 %v6160_v34, %s7181_s10  ;;  %6259 = vrot.lane.b32.xlu0 %v6142_v46, %s7182_s17 }
 0x999   : > { %v6055_v55 = vpop.f32.mrf.mxu2 }
 0x99a   : > { %v6056_v26 = vadd.f32 %v9425_v37, %v6055_v55  ;;  %v6072_v28 = vpop.f32.mrf.mxu3 }
 0x99b   : > { %v6073_v31 = vadd.f32 %v9425_v37, %v6072_v28  ;;  %v6181_v58 = vpop.f32.mrf.mxu1 }
 0x99c   : > { %v6145_v17 = vadd.f32 %v9916_v47, %v6056_v26  ;;  %v9997_v47 = vld [vmem:[%s10141_s8] ss:$0 sm:$0xff] }
 0x99d   : > { %v6162_v19 = vadd.f32 %v6161_v4, %v6073_v31 }
 0x99e   : > { %6863 = vst.msk [vmem:[%s9440_s18 + $0x48] sm:$0xff] %vm6281_vm0, %v6145_v17 }
 0x99f   : > { %6870 = vst.msk [vmem:[%s9440_s18 + $0x30] sm:$0xff] %vm6199_vm3, %v6162_v19  ;;  %6317 = vrot.lane.b32.xlu2 %v6162_v19, %s7181_s10  ;;  %6261 = vrot.lane.b32.xlu1 %v6145_v17, %s7182_s17 }
 0x9a1   : > { %v6057_v39 = vpop.f32.mrf.mxu2 }
 0x9a2   : > { %v6058_v37 = vadd.f32 %v9997_v47, %v6057_v39  ;;  %v6225_v49 = vpop.permute.xlu1 %6224  ;;  %v6075_v50 = vpop.f32.mrf.mxu3 }
 0x9a3   : > { %6857 = vst.msk [vmem:[%s9440_s18 + $0x88] sm:$0xff] %vm6199_vm3, %v6225_v49  ;;  %v6076_v10 = vadd.f32 %v9997_v47, %v6075_v50  ;;  %v6184_v62 = vpop.f32.mrf.mxu1 }
 0x9a4   : > { %v6147_v44 = vadd.f32 %v9918_v3, %v6058_v37 }
 0x9a5   : > { %v6165_v54 = vadd.f32 %v6164_v29, %v6076_v10 }
 0x9a6   : > { %6864 = vst.msk [vmem:[%s9440_s18 + $0x68] sm:$0xff] %vm6281_vm0, %v6147_v44 }
 0x9a7   : > { %6871 = vst.msk [vmem:[%s9440_s18 + $0x50] sm:$0xff] %vm6199_vm3, %v6165_v54  ;;  %6263 = vrot.lane.b32.xlu2 %v6147_v44, %s7182_s17  ;;  %6319 = vrot.lane.b32.xlu0 %v6165_v54, %s7181_s10 }
 0x9a9   : > { %v6060_v53 = vpop.f32.mrf.mxu2 }
 0x9aa   : > { %v6061_v14 = vadd.f32 %v9997_v47, %v6060_v53  ;;  %v6077_v1 = vpop.f32.mrf.mxu3 }
 0x9ab   : > { %v6078_v30 = vadd.f32 %v9997_v47, %v6077_v1  ;;  %v6186_v29 = vpop.f32.mrf.mxu1 }
 0x9ac   : > { %v6150_v3 = vadd.f32 %v9921_v6, %v6061_v14 }
 0x9ad   : > { %v6167_v61 = vadd.f32 %v6166_v15, %v6078_v30 }
 0x9ae   : > { %6865 = vst.msk [vmem:[%s9440_s18 + $0x88] sm:$0xff] %vm6281_vm0, %v6150_v3 }
 0x9af   : > { %6872 = vst.msk [vmem:[%s9440_s18 + $0x70] sm:$0xff] %vm6199_vm3, %v6167_v61  ;;  %6321 = vrot.lane.b32.xlu1 %v6167_v61, %s7181_s10  ;;  %6265 = vrot.lane.b32.xlu0 %v6150_v3, %s7182_s17 }
 0x9b1   : > { %v6062_v25 = vpop.f32.mrf.mxu2 }
 0x9b2   : > { %v6063_v8 = vadd.f32 %v9997_v47, %v6062_v25  ;;  %v6080_v21 = vpop.f32.mrf.mxu3 }
 0x9b3   : > { %v6081_v6 = vadd.f32 %v9997_v47, %v6080_v21  ;;  %v6189_v46 = vpop.f32.mrf.mxu1 }
 0x9b4   : > { %v6152_v63 = vadd.f32 %v9935_v43, %v6063_v8 }
 0x9b5   : > { %v6170_v16 = vadd.f32 %v6169_v13, %v6081_v6 }
 0x9b6   : > { %6866 = vst.msk [vmem:[%s9440_s18 + $0xa8] sm:$0xff] %vm6281_vm0, %v6152_v63 }
 0x9b7   : > { %6873 = vst.msk [vmem:[%s9440_s18 + $0x90] sm:$0xff] %vm6199_vm3, %v6170_v16  ;;  %6323 = vrot.lane.b32.xlu2 %v6170_v16, %s7181_s10  ;;  %6267 = vrot.lane.b32.xlu1 %v6152_v63, %s7182_s17 }
 0x9ba   : > { %v6082_v27 = vpop.f32.mrf.mxu3 }
 0x9bb   : > { %v6083_v2 = vadd.f32 %v9997_v47, %v6082_v27  ;;  %v6191_v28 = vpop.f32.mrf.mxu1 }
 0x9bd   : > { %v6172_v23 = vadd.f32 %v6171_v18, %v6083_v2 }
 0x9bf   : > { %6874 = vst.msk [vmem:[%s9440_s18 + $0xb0] sm:$0xff] %vm6199_vm3, %v6172_v23  ;;  %6325 = vrot.lane.b32.xlu0 %v6172_v23, %s7181_s10 }
 0x9c2   : > { %v6085_v43 = vpop.f32.mrf.mxu3 }
 0x9c3   : > { %v6086_v11 = vadd.f32 %v9997_v47, %v6085_v43  ;;  %v6194_v39 = vpop.f32.mrf.mxu1 }
 0x9c5   : > { %v6175_v41 = vadd.f32 %v6174_v42, %v6086_v11 }
 0x9c7   : > { %6875 = vst.msk [vmem:[%s9440_s18 + $0xd0] sm:$0xff] %vm6199_vm3, %v6175_v41  ;;  %6327 = vrot.lane.b32.xlu1 %v6175_v41, %s7181_s10 }
 0x9ca   : > { %v6087_v35 = vpop.f32.mrf.mxu3 }
 0x9cb   : > { %v6088_v60 = vadd.f32 %v9997_v47, %v6087_v35  ;;  %v6196_v18 = vpop.f32.mrf.mxu1 }
 0x9cd   : > { %v6177_v5 = vadd.f32 %v6176_v40, %v6088_v60 }
 0x9cf   : > { %6876 = vst.msk [vmem:[%s9440_s18 + $0xf0] sm:$0xff] %vm6199_vm3, %v6177_v5  ;;  %6329 = vrot.lane.b32.xlu2 %v6177_v5, %s7181_s10 }
 0x9d2   : > { %v6090_v12 = vpop.f32.mrf.mxu3 }
 0x9d3   : > { %v6091_v56 = vadd.f32 %v9997_v47, %v6090_v12 }
 0x9d5   : > { %v6180_v59 = vadd.f32 %v6179_v32, %v6091_v56 }
 0x9d7   : > { %6356 = vrot.lane.b32.xlu0 %v6180_v59, %s7182_s17 }
 0x9da   : > { %v6092_v48 = vpop.f32.mrf.mxu3 }
 0x9db   : > { %v6093_v33 = vadd.f32 %v9997_v47, %v6092_v48 }
 0x9dd   : > { %v6182_v38 = vadd.f32 %v6181_v58, %v6093_v33 }
 0x9df   : > { %6358 = vrot.lane.b32.xlu1 %v6182_v38, %s7182_s17 }
 0x9e1   : > { %v6270_v22 = vpop.permute.xlu2 %6269 }
 0x9e2   : > { %6288 = vst.msk [vmem:[%s9440_s18 + $0xc0] sm:$0xff] %vm6281_vm0, %v6270_v22  ;;  %v6095_v9 = vpop.f32.mrf.mxu3 }
 0x9e3   : > { %v6096_v7 = vadd.f32 %v9997_v47, %v6095_v9 }
 0x9e5   : > { %v6185_v57 = vadd.f32 %v6184_v62, %v6096_v7 }
 0x9e7   : > { %6360 = vrot.lane.b32.xlu2 %v6185_v57, %s7182_s17 }
 0x9e9   : > { %v6258_v36 = vpop.permute.xlu2 %6257 }
 0x9ea   : > { %6282 = vst.msk [vmem:[%s9440_s18] sm:$0xff] %vm6281_vm0, %v6258_v36  ;;  %v6097_v51 = vpop.f32.mrf.mxu3 }
 0x9eb   : > { %v6098_v24 = vadd.f32 %v9997_v47, %v6097_v51 }
 0x9ed   : > { %v6187_v20 = vadd.f32 %v6186_v29, %v6098_v24 }
 0x9ef   : > { %6362 = vrot.lane.b32.xlu0 %v6187_v20, %s7182_s17 }
 0x9f0   : > { %v6229_v45 = vpop.permute.xlu0 %6228 }
 0x9f1   : > { %6859 = vst.msk [vmem:[%s9440_s18 + $0xc8] sm:$0xff] %vm6199_vm3, %v6229_v45 }
 0x9f2   : > { %6867 = vst.msk [vmem:[%s9440_s18 + $0xc8] sm:$0xff] %vm6281_vm0, %v9959_v52  ;;  %v6100_v34 = vpop.f32.mrf.mxu3 }
 0x9f3   : > { %v6101_v15 = vadd.f32 %v9997_v47, %v6100_v34 }
 0x9f5   : > { %v6190_v55 = vadd.f32 %v6189_v46, %v6101_v15 }
 0x9f7   : > { %6364 = vrot.lane.b32.xlu1 %v6190_v55, %s7182_s17 }
 0x9f8   : > { %v6231_v26 = vpop.permute.xlu1 %6230 }
 0x9f9   : > { %6860 = vst.msk [vmem:[%s9440_s18 + $0xe8] sm:$0xff] %vm6199_vm3, %v6231_v26  ;;  %v6318_v17 = vpop.permute.xlu2 %6317 }
 0x9fa   : > { %6868 = vst.msk [vmem:[%s9440_s18 + $0xe8] sm:$0xff] %vm6281_vm0, %v9969_v0  ;;  %v6102_v31 = vpop.f32.mrf.mxu3 }
 0x9fb   : > { %6878 = vst.msk [vmem:[%s9440_s18 + $0x38] sm:$0xff] %vm6199_vm3, %v6318_v17  ;;  %v6103_v52 = vadd.f32 %v9997_v47, %v6102_v31 }
 0x9fc   : > { %6894 = vst.msk [vmem:[%s9440_s18 + $0x38] sm:$0xff] %vm6281_vm0, %v6182_v38 }
 0x9fd   : > { %v6192_v4 = vadd.f32 %v6191_v28, %v6103_v52 }
 0x9ff   : > { %6366 = vrot.lane.b32.xlu2 %v6192_v4, %s7182_s17 }
 0xa01   : > { %v6264_v19 = vpop.permute.xlu2 %6263  ;;  %v6272_v13 = vpop.permute.xlu0 %6271 }
 0xa02   : > { %6285 = vst.msk [vmem:[%s9440_s18 + $0x60] sm:$0xff] %vm6281_vm0, %v6264_v19  ;;  %v6105_v37 = vpop.f32.mrf.mxu3 }
 0xa03   : > { %6289 = vst.msk [vmem:[%s9440_s18 + $0xe0] sm:$0xff] %vm6281_vm0, %v6272_v13  ;;  %v6106_v0 = vadd.f32 %v9997_v47, %v6105_v37 }
 0xa05   : > { %v6195_v49 = vadd.f32 %v6194_v39, %v6106_v0 }
 0xa07   : > { %6368 = vrot.lane.b32.xlu0 %v6195_v49, %s7182_s17 }
 0xa09   : > { %v6316_v50 = vpop.permute.xlu1 %6315  ;;  %v6260_v44 = vpop.permute.xlu0 %6259 }
 0xa0a   : > { %6877 = vst.msk [vmem:[%s9440_s18 + $0x18] sm:$0xff] %vm6199_vm3, %v6316_v50  ;;  %v6107_v10 = vpop.f32.mrf.mxu3 }
 0xa0b   : > { %6893 = vst.msk [vmem:[%s9440_s18 + $0x18] sm:$0xff] %vm6281_vm0, %v6180_v59  ;;  %v6108_v54 = vadd.f32 %v9997_v47, %v6107_v10 }
 0xa0c   : > { %6283 = vst.msk [vmem:[%s9440_s18 + $0x20] sm:$0xff] %vm6281_vm0, %v6260_v44 }
 0xa0d   : > { %v6197_v53 = vadd.f32 %v6196_v18, %v6108_v54 }
 0xa0f   : > { %6370 = vrot.lane.b32.xlu1 %v6197_v53, %s7182_s17 }
 0xa11   : > { %v6324_v14 = vpop.permute.xlu2 %6323  ;;  %v6262_v1 = vpop.permute.xlu1 %6261 }
 0xa12   : > { %6881 = vst.msk [vmem:[%s9440_s18 + $0x98] sm:$0xff] %vm6199_vm3, %v6324_v14 }
 0xa13   : > { %6897 = vst.msk [vmem:[%s9440_s18 + $0x98] sm:$0xff] %vm6281_vm0, %v6190_v55 }
 0xa14   : > { %6284 = vst.msk [vmem:[%s9440_s18 + $0x40] sm:$0xff] %vm6281_vm0, %v6262_v1 }
 0xa19   : > { %v6320_v47 = vpop.permute.xlu0 %6319 }
 0xa1a   : > { %6879 = vst.msk [vmem:[%s9440_s18 + $0x58] sm:$0xff] %vm6199_vm3, %v6320_v47 }
 0xa1b   : > { %6895 = vst.msk [vmem:[%s9440_s18 + $0x58] sm:$0xff] %vm6281_vm0, %v6185_v57 }
 0xa21   : > { %v6322_v3 = vpop.permute.xlu1 %6321  ;;  %v6266_v30 = vpop.permute.xlu0 %6265 }
 0xa22   : > { %6880 = vst.msk [vmem:[%s9440_s18 + $0x78] sm:$0xff] %vm6199_vm3, %v6322_v3 }
 0xa23   : > { %6896 = vst.msk [vmem:[%s9440_s18 + $0x78] sm:$0xff] %vm6281_vm0, %v6187_v20 }
 0xa24   : > { %6286 = vst.msk [vmem:[%s9440_s18 + $0x80] sm:$0xff] %vm6281_vm0, %v6266_v30 }
 0xa29   : > { %v6268_v61 = vpop.permute.xlu1 %6267  ;;  %v6330_v25 = vpop.permute.xlu2 %6329 }
 0xa2a   : > { %6287 = vst.msk [vmem:[%s9440_s18 + $0xa0] sm:$0xff] %vm6281_vm0, %v6268_v61 }
 0xa2b   : > { %6884 = vst.msk [vmem:[%s9440_s18 + $0xf8] sm:$0xff] %vm6199_vm3, %v6330_v25 }
 0xa2c   : > { %6900 = vst.msk [vmem:[%s9440_s18 + $0xf8] sm:$0xff] %vm6281_vm0, %v6197_v53 }
 0xa31   : > { %v6326_v8 = vpop.permute.xlu0 %6325 }
 0xa32   : > { %6882 = vst.msk [vmem:[%s9440_s18 + $0xb8] sm:$0xff] %vm6199_vm3, %v6326_v8 }
 0xa33   : > { %6898 = vst.msk [vmem:[%s9440_s18 + $0xb8] sm:$0xff] %vm6281_vm0, %v6192_v4 }
 0xa39   : > { %v6328_v42 = vpop.permute.xlu1 %6327 }
 0xa3a   : > { %6883 = vst.msk [vmem:[%s9440_s18 + $0xd8] sm:$0xff] %vm6199_vm3, %v6328_v42 }
 0xa3b   : > { %6899 = vst.msk [vmem:[%s9440_s18 + $0xd8] sm:$0xff] %vm6281_vm0, %v6195_v49 }
 0xa41   : > { %v6361_v21 = vpop.permute.xlu2 %6360 }
 0xa42   : > { %6887 = vst.msk [vmem:[%s9440_s18 + $0x50] sm:$0xff] %vm6281_vm0, %v6361_v21 }
 0xa49   : > { %v6357_v63 = vpop.permute.xlu0 %6356 }
 0xa4a   : > { %6885 = vst.msk [vmem:[%s9440_s18 + $0x10] sm:$0xff] %vm6281_vm0, %v6357_v63 }
 0xa51   : > { %v6359_v6 = vpop.permute.xlu1 %6358 }
 0xa52   : > { %6886 = vst.msk [vmem:[%s9440_s18 + $0x30] sm:$0xff] %vm6281_vm0, %v6359_v6 }
 0xa59   : > { %v6367_v16 = vpop.permute.xlu2 %6366 }
 0xa5a   : > { %6890 = vst.msk [vmem:[%s9440_s18 + $0xb0] sm:$0xff] %vm6281_vm0, %v6367_v16 }
 0xa61   : > { %v6363_v27 = vpop.permute.xlu0 %6362 }
 0xa62   : > { %6888 = vst.msk [vmem:[%s9440_s18 + $0x70] sm:$0xff] %vm6281_vm0, %v6363_v27 }
 0xa69   : > { %v6365_v2 = vpop.permute.xlu1 %6364 }
 0xa6a   : > { %6889 = vst.msk [vmem:[%s9440_s18 + $0x90] sm:$0xff] %vm6281_vm0, %v6365_v2 }
 0xa79   : > { %v6369_v40 = vpop.permute.xlu0 %6368 }
 0xa7a   : > { %6891 = vst.msk [vmem:[%s9440_s18 + $0xd0] sm:$0xff] %vm6281_vm0, %v6369_v40 }
 0xa81   : > { %v6371_v23 = vpop.permute.xlu1 %6370 }
 0xa82   : > { %6892 = vst.msk [vmem:[%s9440_s18 + $0xf0] sm:$0xff] %vm6281_vm0, %v6371_v23 }
 0xa83 PF: > { %s21_s30 = sadd.s32 1, %s7160_s30  }
 0xa84   : > { %p18_p7 = scmp.ge.s32.totalorder %s21_s30, 4  }
 0xa86   :  { %20 = sbr.rel (!%p18_p7) target bundleno = 2 (0x2), region = 114 }
 0xa8b   :  { %6417 = vsyncpa [#allocation9], 1 }
 0xa8c   :  { %6419 = vsyncpa [#allocation9 + $0x1], 1 }
 0xa8d   :  { %6420 = vsyncpa [#allocation11], 1 }

</bundles_post_ra>
